<compile_context>
chip_gen: v7x
topology: tpu7x:2x2x1
jax: 0.10.0
libtpu: 0.0.40
codegen_flags: <defaults>
</compile_context>

<pallas_src>
import functools

import jax
import jax.numpy as jnp
from jax.experimental import pallas as pl
from jax.experimental.pallas import tpu as pltpu

EPS = 1e-5          # nn.BatchNorm2d default eps
CP = 128            # padded channel width (lane-dense)
HIDDEN = 100        # real channel count of MyNet


def _compiler_params():
    return pltpu.CompilerParams(
        dimension_semantics=("parallel",),
        vmem_limit_bytes=48 * 1024 * 1024,
    )


# ----------------------------------------------------------------------------
# Kernels
# ----------------------------------------------------------------------------
def _conv1_kernel(x_ref, w_ref, b_ref, y_ref, ssum_ref, ssq_ref, *, h, w):
    """3x3 'same' conv (real cin) + bias + leaky_relu + BN1 stat partials.

    x_ref   : (1, h+2, w+2, ci) bf16  spatially pre-padded image
    w_ref   : (9, ci, co)       bf16  tap-major conv weights
    b_ref   : (1, co)           f32
    y_ref   : (1, h, w, co)     bf16  pre-BN activated output
    ssum/ssq: (1, 1, co)        f32   per-image channel sum / sum of squares
    """
    ci = x_ref.shape[-1]
    co = w_ref.shape[-1]
    rows = h * w
    acc = jnp.zeros((rows, co), jnp.float32)
    for dy in range(3):                          # static unroll: 9 matmuls
        for dx in range(3):
            tap = x_ref[0, dy:dy + h, dx:dx + w, :].reshape(rows, ci)
            acc = acc + jnp.dot(tap, w_ref[dy * 3 + dx],
                                preferred_element_type=jnp.float32)
    acc = acc + b_ref[...]
    acc = jnp.where(acc > 0, acc, 0.01 * acc)    # F.leaky_relu default slope
    y_ref[...] = acc.astype(y_ref.dtype).reshape(1, h, w, co)
    ssum_ref[...] = jnp.sum(acc, axis=0, keepdims=True)[None]
    ssq_ref[...] = jnp.sum(acc * acc, axis=0, keepdims=True)[None]


def _conv2_kernel(y1_ref, sc_ref, sh_ref, w_ref, b_ref,
                  y2_ref, ssum_ref, ssq_ref, zpad_ref, patch_ref, *, h, w):
    """Fused: BN1-apply -> spatial zero-pad -> 3x3 conv (K-packed) -> relu
    -> BN2 stat partials.

    y1_ref   : (1, h, w, c)   bf16  pre-BN1 activations (unpadded)
    sc/sh    : (1, c)         f32   folded BN1 scale / shift
    w_ref    : (9*c, c)       bf16  K-packed conv weights
    b_ref    : (1, c)         f32
    y2_ref   : (1, h*w, c)    bf16  pre-BN2 activated output
    ssum/ssq : (1, 1, c)      f32
    zpad_ref : (h+2, w+2, c)  bf16  VMEM scratch (post-BN, zero halo)
    patch_ref: (h*w, 9*c)     bf16  VMEM im2col scratch (K = 9*128 = 1152)
    """
    c = y1_ref.shape[-1]
    rows = h * w
    # Apply BN1 in f32, cast to bf16 for the MXU.
    z = (y1_ref[0].astype(jnp.float32) * sc_ref[...] + sh_ref[...]
         ).astype(jnp.bfloat16)
    # Halo must be post-BN zeros ('same' conv semantics), so re-zero + fill.
    zpad_ref[...] = jnp.zeros(zpad_ref.shape, zpad_ref.dtype)
    zpad_ref[1:h + 1, 1:w + 1, :] = z
    # Build one K-packed im2col buffer in VMEM (lane-aligned column writes).
    for dy in range(3):
        for dx in range(3):
            t = dy * 3 + dx
            patch_ref[:, t * c:(t + 1) * c] = (
                zpad_ref[dy:dy + h, dx:dx + w, :].reshape(rows, c))
    acc = jnp.dot(patch_ref[...], w_ref[...],
                  preferred_element_type=jnp.float32)
    acc = acc + b_ref[...]
    acc = jnp.maximum(acc, 0.0)                  # relu
    y2_ref[...] = acc.astype(y2_ref.dtype)[None]
    ssum_ref[...] = jnp.sum(acc, axis=0, keepdims=True)[None]
    ssq_ref[...] = jnp.sum(acc * acc, axis=0, keepdims=True)[None]


def _bn_conv1x1_kernel(y_ref, sc_ref, sh_ref, w_ref, b_ref,
                       o_ref, ssum_ref, ssq_ref):
    """Fused: BN2-apply -> 1x1 conv + bias -> BN3 stat partials.

    y_ref : (tr, c)  bf16  pre-BN2 activated rows
    w_ref : (c, c)   bf16  1x1 conv as a matmul
    """
    z = y_ref[...].astype(jnp.float32) * sc_ref[...] + sh_ref[...]
    acc = jnp.dot(z.astype(jnp.bfloat16), w_ref[...],
                  preferred_element_type=jnp.float32)
    acc = acc + b_ref[...]
    o_ref[...] = acc.astype(o_ref.dtype)
    ssum_ref[...] = jnp.sum(acc, axis=0, keepdims=True)[None]
    ssq_ref[...] = jnp.sum(acc * acc, axis=0, keepdims=True)[None]


def _bn_apply_kernel(y_ref, sc_ref, sh_ref, o_ref):
    """Apply folded BatchNorm: y * scale + shift (per channel)."""
    o_ref[...] = (y_ref[...].astype(jnp.float32) * sc_ref[...]
                  + sh_ref[...]).astype(o_ref.dtype)


# ----------------------------------------------------------------------------
# Tiling helper
# ----------------------------------------------------------------------------
def _pick_tile_rows(rows, cap=2048):
    """Largest multiple-of-8 divisor of rows <= cap, preferring >= 2 tiles so
    both v7x TensorCores get work."""
    limit = min(cap, rows)
    if rows >= 16:
        limit = min(limit, rows // 2)
    limit -= limit % 8
    for t in range(limit, 7, -8):
        if rows % t == 0:
            return t
    return rows   # small / awkward inputs: single block


# ----------------------------------------------------------------------------
# Layer wrappers (pallas_call plumbing)
# ----------------------------------------------------------------------------
def conv1_leaky_stats(x_nhwc, w_hwio, bias):
    """x: (N,H,W,cin) real channels. Returns bf16 pre-BN y1 (N,H,W,CP) and
    per-image BN partials ssum/ssq (N,1,CP)."""
    n, h, w, ci = x_nhwc.shape
    co = w_hwio.shape[-1]
    xp = jnp.pad(x_nhwc.astype(jnp.bfloat16), ((0, 0), (1, 1), (1, 1), (0, 0)))
    wt = w_hwio.reshape(9, ci, co).astype(jnp.bfloat16)
    b2 = bias.reshape(1, co).astype(jnp.float32)
    return pl.pallas_call(
        functools.partial(_conv1_kernel, h=h, w=w),
        grid=(n,),
        in_specs=[
            pl.BlockSpec((1, h + 2, w + 2, ci), lambda i: (i, 0, 0, 0)),
            pl.BlockSpec((9, ci, co), lambda i: (0, 0, 0)),
            pl.BlockSpec((1, co), lambda i: (0, 0)),
        ],
        out_specs=[
            pl.BlockSpec((1, h, w, co), lambda i: (i, 0, 0, 0)),
            pl.BlockSpec((1, 1, co), lambda i: (i, 0, 0)),
            pl.BlockSpec((1, 1, co), lambda i: (i, 0, 0)),
        ],
        out_shape=[
            jax.ShapeDtypeStruct((n, h, w, co), jnp.bfloat16),
            jax.ShapeDtypeStruct((n, 1, co), jnp.float32),
            jax.ShapeDtypeStruct((n, 1, co), jnp.float32),
        ],
        compiler_params=_compiler_params(),
    )(xp, wt, b2)


def conv2_fused_bn1(y1, sc1, sh1, w_hwio, bias):
    """Applies BN1 in-kernel, then 3x3 conv + relu. Returns bf16 pre-BN y2
    (N,H*W,CP) and per-image BN partials (N,1,CP)."""
    n, h, w, c = y1.shape
    co = w_hwio.shape[-1]
    wt = w_hwio.reshape(9 * c, co).astype(jnp.bfloat16)
    b2 = bias.reshape(1, co).astype(jnp.float32)
    return pl.pallas_call(
        functools.partial(_conv2_kernel, h=h, w=w),
        grid=(n,),
        in_specs=[
            pl.BlockSpec((1, h, w, c), lambda i: (i, 0, 0, 0)),
            pl.BlockSpec((1, c), lambda i: (0, 0)),
            pl.BlockSpec((1, c), lambda i: (0, 0)),
            pl.BlockSpec((9 * c, co), lambda i: (0, 0)),
            pl.BlockSpec((1, co), lambda i: (0, 0)),
        ],
        out_specs=[
            pl.BlockSpec((1, h * w, co), lambda i: (i, 0, 0)),
            pl.BlockSpec((1, 1, co), lambda i: (i, 0, 0)),
            pl.BlockSpec((1, 1, co), lambda i: (i, 0, 0)),
        ],
        out_shape=[
            jax.ShapeDtypeStruct((n, h * w, co), jnp.bfloat16),
            jax.ShapeDtypeStruct((n, 1, co), jnp.float32),
            jax.ShapeDtypeStruct((n, 1, co), jnp.float32),
        ],
        scratch_shapes=[
            pltpu.VMEM((h + 2, w + 2, c), jnp.bfloat16),
            pltpu.VMEM((h * w, 9 * c), jnp.bfloat16),
        ],
        compiler_params=_compiler_params(),
    )(y1, sc1, sh1, wt, b2)


def bn_apply_conv1x1_stats(y_rows, scale, shift, w3, b3):
    rows, cp = y_rows.shape
    co = w3.shape[-1]
    tr = _pick_tile_rows(rows)
    grid = (rows // tr,)
    w3b = w3.astype(jnp.bfloat16)
    b32 = b3.reshape(1, co).astype(jnp.float32)
    return pl.pallas_call(
        _bn_conv1x1_kernel,
        grid=grid,
        in_specs=[
            pl.BlockSpec((tr, cp), lambda i: (i, 0)),
            pl.BlockSpec((1, cp), lambda i: (0, 0)),
            pl.BlockSpec((1, cp), lambda i: (0, 0)),
            pl.BlockSpec((cp, co), lambda i: (0, 0)),
            pl.BlockSpec((1, co), lambda i: (0, 0)),
        ],
        out_specs=[
            pl.BlockSpec((tr, co), lambda i: (i, 0)),
            pl.BlockSpec((1, 1, co), lambda i: (i, 0, 0)),
            pl.BlockSpec((1, 1, co), lambda i: (i, 0, 0)),
        ],
        out_shape=[
            jax.ShapeDtypeStruct((rows, co), jnp.bfloat16),
            jax.ShapeDtypeStruct((grid[0], 1, co), jnp.float32),
            jax.ShapeDtypeStruct((grid[0], 1, co), jnp.float32),
        ],
        compiler_params=_compiler_params(),
    )(y_rows, scale, shift, w3b, b32)


def bn_apply(y_rows, scale, shift, out_dtype):
    rows, co = y_rows.shape
    tr = _pick_tile_rows(rows)
    grid = (rows // tr,)
    return pl.pallas_call(
        _bn_apply_kernel,
        grid=grid,
        in_specs=[
            pl.BlockSpec((tr, co), lambda i: (i, 0)),
            pl.BlockSpec((1, co), lambda i: (0, 0)),
            pl.BlockSpec((1, co), lambda i: (0, 0)),
        ],
        out_specs=pl.BlockSpec((tr, co), lambda i: (i, 0)),
        out_shape=jax.ShapeDtypeStruct((rows, co), out_dtype),
        compiler_params=_compiler_params(),
    )(y_rows, scale, shift)


def _bn_scale_shift(ssum, ssq, gamma, beta, rows):
    """Fold training-mode BN (biased batch var) into per-channel scale/shift.
    NOTE: uses E[x^2]-E[x]^2 in f32 (clamped >= 0); can drift slightly from
    PyTorch's two-pass variance when |mean| >> std."""
    co = ssum.shape[-1]
    mean = jnp.sum(ssum.reshape(-1, co), axis=0) / rows
    var = jnp.maximum(jnp.sum(ssq.reshape(-1, co), axis=0) / rows - mean * mean, 0.0)
    scale = gamma * jax.lax.rsqrt(var + EPS)
    shift = beta - mean * scale
    return (scale.reshape(1, -1).astype(jnp.float32),
            shift.reshape(1, -1).astype(jnp.float32))


def _pad_params(params, cp=CP):
    """Zero-pad channel dims to cp (layer-1 input channels stay real).
    gamma padded with 0 so padded lanes stay exactly 0 through every BN."""
    def pad_w(wgt, pad_in):
        _, _, ci, co = wgt.shape
        pin = cp - ci if pad_in else 0
        return jnp.pad(wgt, ((0, 0), (0, 0), (0, pin), (0, cp - co)))

    def pad_v(v):
        return jnp.pad(v, (0, cp - v.shape[0]))

    p = {
        "w1": pad_w(params["w1"], pad_in=False),
        "w2": pad_w(params["w2"], pad_in=True),
        "w3": pad_w(params["w3"], pad_in=True).reshape(cp, cp),
    }
    for i in (1, 2, 3):
        p[f"b{i}"] = pad_v(params[f"b{i}"])
        p[f"g{i}"] = pad_v(params[f"g{i}"])
        p[f"be{i}"] = pad_v(params[f"be{i}"])
    return p


# ----------------------------------------------------------------------------
# Forward pass
# ----------------------------------------------------------------------------
def mynet_forward(x_nchw, params):
    """Matches MyNet.forward with training-mode BatchNorm batch statistics."""
    x = jnp.transpose(x_nchw, (0, 2, 3, 1)).astype(jnp.float32)   # NCHW -> NHWC
    n, h, w, _ = x.shape
    rows = n * h * w
    p = _pad_params(params, CP)

    # layer 1: conv3x3 -> leaky_relu (+ BN1 partial stats)
    y1, ss1, sq1 = conv1_leaky_stats(x, p["w1"], p["b1"])
    sc1, sh1 = _bn_scale_shift(ss1, sq1, p["g1"], p["be1"], rows)

    # layer 2: fused BN1-apply -> conv3x3 -> relu (+ BN2 partial stats)
    y2, ss2, sq2 = conv2_fused_bn1(y1, sc1, sh1, p["w2"], p["b2"])
    sc2, sh2 = _bn_scale_shift(ss2, sq2, p["g2"], p["be2"], rows)

    # layer 3: fused BN2-apply -> conv1x1 + bias (+ BN3 partial stats)
    y3, ss3, sq3 = bn_apply_conv1x1_stats(y2.reshape(rows, CP), sc2, sh2,
                                          p["w3"], p["b3"])
    sc3, sh3 = _bn_scale_shift(ss3, sq3, p["g3"], p["be3"], rows)

    # apply BN3, drop channel padding, back to NCHW
    out = bn_apply(y3, sc3, sh3, jnp.float32).reshape(n, h, w, CP)
    out = out[..., :HIDDEN]
    return jnp.transpose(out, (0, 3, 1, 2))


# ----------------------------------------------------------------------------
# Deterministic synthetic params (shapes per MyNet.__init__)
# ----------------------------------------------------------------------------
def init_params(key, input_dim, hidden=HIDDEN):
    keys = jax.random.split(key, 6)

    def conv_w(k, kh, kw, ci, co):
        fan_in = ci * kh * kw
        return jax.random.normal(k, (kh, kw, ci, co), jnp.float32) / jnp.sqrt(fan_in)

    return {
        "w1": conv_w(keys[0], 3, 3, input_dim, hidden),
        "b1": 0.01 * jax.random.normal(keys[1], (hidden,), jnp.float32),
        "g1": jnp.ones((hidden,), jnp.float32),
        "be1": jnp.zeros((hidden,), jnp.float32),
        "w2": conv_w(keys[2], 3, 3, hidden, hidden),
        "b2": 0.01 * jax.random.normal(keys[3], (hidden,), jnp.float32),
        "g2": jnp.ones((hidden,), jnp.float32),
        "be2": jnp.zeros((hidden,), jnp.float32),
        "w3": conv_w(keys[4], 1, 1, hidden, hidden),
        "b3": 0.01 * jax.random.normal(keys[5], (hidden,), jnp.float32),
        "g3": jnp.ones((hidden,), jnp.float32),
        "be3": jnp.zeros((hidden,), jnp.float32),
    }


if __name__ == "__main__":
    key = jax.random.PRNGKey(0)
    kx, kp = jax.random.split(key)
    N, C, H, W = 2, 4, 16, 16
    x = jax.random.normal(kx, (N, C, H, W), jnp.float32)
    params = init_params(kp, C)
    out = jax.jit(mynet_forward)(x, params)
    out = jax.block_until_ready(out)
    assert out.shape == (N, HIDDEN, H, W) and out.dtype == jnp.float32
    assert bool(jnp.all(jnp.isfinite(out)))
    print("KERNEL_OK")
</pallas_src>

<mosaic_0001>
module attributes {stable_mosaic.version = 11 : i64} {
  func.func @_conv1_kernel(%arg0: i32, %arg1: memref<1x18x18x4xbf16, #tpu.memory_space<vmem>>, %arg2: memref<9x4x128xbf16, #tpu.memory_space<vmem>>, %arg3: memref<1x128xf32, #tpu.memory_space<vmem>>, %arg4: memref<1x16x16x128xbf16, #tpu.memory_space<vmem>>, %arg5: memref<1x1x128xf32, #tpu.memory_space<vmem>>, %arg6: memref<1x1x128xf32, #tpu.memory_space<vmem>>) attributes {dimension_semantics = [#tpu.dimension_semantics<parallel>], iteration_bounds = array<i64: 2>, scalar_prefetch = 0 : i64, scratch_operands = 0 : i64, tpu.core_type = #tpu.core_type<tc>, window_params = [{transform_indices = @transform_0, window_bounds = array<i64: 1, 18, 18, 4>}, {pipeline_mode = #tpu.pipeline_mode<synchronous>, transform_indices = @transform_1, window_bounds = array<i64: 9, 4, 128>}, {pipeline_mode = #tpu.pipeline_mode<synchronous>, transform_indices = @transform_2, window_bounds = array<i64: 1, 128>}, {transform_indices = @transform_3, window_bounds = array<i64: 1, 16, 16, 128>}, {transform_indices = @transform_4, window_bounds = array<i64: 1, 1, 128>}, {transform_indices = @transform_5, window_bounds = array<i64: 1, 1, 128>}]} {
    %cst = arith.constant 0.000000e+00 : f32
    %0 = vector.broadcast %cst : f32 to vector<256x128xf32>
    %c0 = arith.constant 0 : index
    %c0_0 = arith.constant 0 : index
    %c0_1 = arith.constant 0 : index
    %c0_2 = arith.constant 0 : index
    %1 = vector.load %arg1[%c0, %c0_0, %c0_1, %c0_2] : memref<1x18x18x4xbf16, #tpu.memory_space<vmem>>, vector<1x16x16x4xbf16>
    %2 = vector.shape_cast %1 : vector<1x16x16x4xbf16> to vector<16x16x4xbf16>
    %3 = vector.shape_cast %2 : vector<16x16x4xbf16> to vector<256x4xbf16>
    %c0_3 = arith.constant 0 : index
    %c0_4 = arith.constant 0 : index
    %c0_5 = arith.constant 0 : index
    %4 = vector.load %arg2[%c0_3, %c0_4, %c0_5] : memref<9x4x128xbf16, #tpu.memory_space<vmem>>, vector<1x4x128xbf16>
    %5 = vector.shape_cast %4 : vector<1x4x128xbf16> to vector<4x128xbf16>
    %cst_6 = arith.constant dense<0.000000e+00> : vector<256x128xf32>
    %6 = tpu.matmul %3, %5, %cst_6 {dimension_numbers = #tpu.dot_dimension_numbers<[1], [0], [0], [1], [0, 0, 1, 1], [], []>} : vector<256x4xbf16>, vector<4x128xbf16>, vector<256x128xf32> -> vector<256x128xf32>
    %7 = arith.addf %0, %6 : vector<256x128xf32>
    %c0_7 = arith.constant 0 : index
    %c0_8 = arith.constant 0 : index
    %c1 = arith.constant 1 : index
    %c0_9 = arith.constant 0 : index
    %8 = vector.load %arg1[%c0_7, %c0_8, %c1, %c0_9] : memref<1x18x18x4xbf16, #tpu.memory_space<vmem>>, vector<1x16x16x4xbf16>
    %9 = vector.shape_cast %8 : vector<1x16x16x4xbf16> to vector<16x16x4xbf16>
    %10 = vector.shape_cast %9 : vector<16x16x4xbf16> to vector<256x4xbf16>
    %c1_10 = arith.constant 1 : index
    %c0_11 = arith.constant 0 : index
    %c0_12 = arith.constant 0 : index
    %11 = vector.load %arg2[%c1_10, %c0_11, %c0_12] : memref<9x4x128xbf16, #tpu.memory_space<vmem>>, vector<1x4x128xbf16>
    %12 = vector.shape_cast %11 : vector<1x4x128xbf16> to vector<4x128xbf16>
    %cst_13 = arith.constant dense<0.000000e+00> : vector<256x128xf32>
    %13 = tpu.matmul %10, %12, %cst_13 {dimension_numbers = #tpu.dot_dimension_numbers<[1], [0], [0], [1], [0, 0, 1, 1], [], []>} : vector<256x4xbf16>, vector<4x128xbf16>, vector<256x128xf32> -> vector<256x128xf32>
    %14 = arith.addf %7, %13 : vector<256x128xf32>
    %c0_14 = arith.constant 0 : index
    %c0_15 = arith.constant 0 : index
    %c2 = arith.constant 2 : index
    %c0_16 = arith.constant 0 : index
    %15 = vector.load %arg1[%c0_14, %c0_15, %c2, %c0_16] : memref<1x18x18x4xbf16, #tpu.memory_space<vmem>>, vector<1x16x16x4xbf16>
    %16 = vector.shape_cast %15 : vector<1x16x16x4xbf16> to vector<16x16x4xbf16>
    %17 = vector.shape_cast %16 : vector<16x16x4xbf16> to vector<256x4xbf16>
    %c2_17 = arith.constant 2 : index
    %c0_18 = arith.constant 0 : index
    %c0_19 = arith.constant 0 : index
    %18 = vector.load %arg2[%c2_17, %c0_18, %c0_19] : memref<9x4x128xbf16, #tpu.memory_space<vmem>>, vector<1x4x128xbf16>
    %19 = vector.shape_cast %18 : vector<1x4x128xbf16> to vector<4x128xbf16>
    %cst_20 = arith.constant dense<0.000000e+00> : vector<256x128xf32>
    %20 = tpu.matmul %17, %19, %cst_20 {dimension_numbers = #tpu.dot_dimension_numbers<[1], [0], [0], [1], [0, 0, 1, 1], [], []>} : vector<256x4xbf16>, vector<4x128xbf16>, vector<256x128xf32> -> vector<256x128xf32>
    %21 = arith.addf %14, %20 : vector<256x128xf32>
    %c0_21 = arith.constant 0 : index
    %c1_22 = arith.constant 1 : index
    %c0_23 = arith.constant 0 : index
    %c0_24 = arith.constant 0 : index
    %22 = vector.load %arg1[%c0_21, %c1_22, %c0_23, %c0_24] : memref<1x18x18x4xbf16, #tpu.memory_space<vmem>>, vector<1x16x16x4xbf16>
    %23 = vector.shape_cast %22 : vector<1x16x16x4xbf16> to vector<16x16x4xbf16>
    %24 = vector.shape_cast %23 : vector<16x16x4xbf16> to vector<256x4xbf16>
    %c3 = arith.constant 3 : index
    %c0_25 = arith.constant 0 : index
    %c0_26 = arith.constant 0 : index
    %25 = vector.load %arg2[%c3, %c0_25, %c0_26] : memref<9x4x128xbf16, #tpu.memory_space<vmem>>, vector<1x4x128xbf16>
    %26 = vector.shape_cast %25 : vector<1x4x128xbf16> to vector<4x128xbf16>
    %cst_27 = arith.constant dense<0.000000e+00> : vector<256x128xf32>
    %27 = tpu.matmul %24, %26, %cst_27 {dimension_numbers = #tpu.dot_dimension_numbers<[1], [0], [0], [1], [0, 0, 1, 1], [], []>} : vector<256x4xbf16>, vector<4x128xbf16>, vector<256x128xf32> -> vector<256x128xf32>
    %28 = arith.addf %21, %27 : vector<256x128xf32>
    %c0_28 = arith.constant 0 : index
    %c1_29 = arith.constant 1 : index
    %c1_30 = arith.constant 1 : index
    %c0_31 = arith.constant 0 : index
    %29 = vector.load %arg1[%c0_28, %c1_29, %c1_30, %c0_31] : memref<1x18x18x4xbf16, #tpu.memory_space<vmem>>, vector<1x16x16x4xbf16>
    %30 = vector.shape_cast %29 : vector<1x16x16x4xbf16> to vector<16x16x4xbf16>
    %31 = vector.shape_cast %30 : vector<16x16x4xbf16> to vector<256x4xbf16>
    %c4 = arith.constant 4 : index
    %c0_32 = arith.constant 0 : index
    %c0_33 = arith.constant 0 : index
    %32 = vector.load %arg2[%c4, %c0_32, %c0_33] : memref<9x4x128xbf16, #tpu.memory_space<vmem>>, vector<1x4x128xbf16>
    %33 = vector.shape_cast %32 : vector<1x4x128xbf16> to vector<4x128xbf16>
    %cst_34 = arith.constant dense<0.000000e+00> : vector<256x128xf32>
    %34 = tpu.matmul %31, %33, %cst_34 {dimension_numbers = #tpu.dot_dimension_numbers<[1], [0], [0], [1], [0, 0, 1, 1], [], []>} : vector<256x4xbf16>, vector<4x128xbf16>, vector<256x128xf32> -> vector<256x128xf32>
    %35 = arith.addf %28, %34 : vector<256x128xf32>
    %c0_35 = arith.constant 0 : index
    %c1_36 = arith.constant 1 : index
    %c2_37 = arith.constant 2 : index
    %c0_38 = arith.constant 0 : index
    %36 = vector.load %arg1[%c0_35, %c1_36, %c2_37, %c0_38] : memref<1x18x18x4xbf16, #tpu.memory_space<vmem>>, vector<1x16x16x4xbf16>
    %37 = vector.shape_cast %36 : vector<1x16x16x4xbf16> to vector<16x16x4xbf16>
    %38 = vector.shape_cast %37 : vector<16x16x4xbf16> to vector<256x4xbf16>
    %c5 = arith.constant 5 : index
    %c0_39 = arith.constant 0 : index
    %c0_40 = arith.constant 0 : index
    %39 = vector.load %arg2[%c5, %c0_39, %c0_40] : memref<9x4x128xbf16, #tpu.memory_space<vmem>>, vector<1x4x128xbf16>
    %40 = vector.shape_cast %39 : vector<1x4x128xbf16> to vector<4x128xbf16>
    %cst_41 = arith.constant dense<0.000000e+00> : vector<256x128xf32>
    %41 = tpu.matmul %38, %40, %cst_41 {dimension_numbers = #tpu.dot_dimension_numbers<[1], [0], [0], [1], [0, 0, 1, 1], [], []>} : vector<256x4xbf16>, vector<4x128xbf16>, vector<256x128xf32> -> vector<256x128xf32>
    %42 = arith.addf %35, %41 : vector<256x128xf32>
    %c0_42 = arith.constant 0 : index
    %c2_43 = arith.constant 2 : index
    %c0_44 = arith.constant 0 : index
    %c0_45 = arith.constant 0 : index
    %43 = vector.load %arg1[%c0_42, %c2_43, %c0_44, %c0_45] : memref<1x18x18x4xbf16, #tpu.memory_space<vmem>>, vector<1x16x16x4xbf16>
    %44 = vector.shape_cast %43 : vector<1x16x16x4xbf16> to vector<16x16x4xbf16>
    %45 = vector.shape_cast %44 : vector<16x16x4xbf16> to vector<256x4xbf16>
    %c6 = arith.constant 6 : index
    %c0_46 = arith.constant 0 : index
    %c0_47 = arith.constant 0 : index
    %46 = vector.load %arg2[%c6, %c0_46, %c0_47] : memref<9x4x128xbf16, #tpu.memory_space<vmem>>, vector<1x4x128xbf16>
    %47 = vector.shape_cast %46 : vector<1x4x128xbf16> to vector<4x128xbf16>
    %cst_48 = arith.constant dense<0.000000e+00> : vector<256x128xf32>
    %48 = tpu.matmul %45, %47, %cst_48 {dimension_numbers = #tpu.dot_dimension_numbers<[1], [0], [0], [1], [0, 0, 1, 1], [], []>} : vector<256x4xbf16>, vector<4x128xbf16>, vector<256x128xf32> -> vector<256x128xf32>
    %49 = arith.addf %42, %48 : vector<256x128xf32>
    %c0_49 = arith.constant 0 : index
    %c2_50 = arith.constant 2 : index
    %c1_51 = arith.constant 1 : index
    %c0_52 = arith.constant 0 : index
    %50 = vector.load %arg1[%c0_49, %c2_50, %c1_51, %c0_52] : memref<1x18x18x4xbf16, #tpu.memory_space<vmem>>, vector<1x16x16x4xbf16>
    %51 = vector.shape_cast %50 : vector<1x16x16x4xbf16> to vector<16x16x4xbf16>
    %52 = vector.shape_cast %51 : vector<16x16x4xbf16> to vector<256x4xbf16>
    %c7 = arith.constant 7 : index
    %c0_53 = arith.constant 0 : index
    %c0_54 = arith.constant 0 : index
    %53 = vector.load %arg2[%c7, %c0_53, %c0_54] : memref<9x4x128xbf16, #tpu.memory_space<vmem>>, vector<1x4x128xbf16>
    %54 = vector.shape_cast %53 : vector<1x4x128xbf16> to vector<4x128xbf16>
    %cst_55 = arith.constant dense<0.000000e+00> : vector<256x128xf32>
    %55 = tpu.matmul %52, %54, %cst_55 {dimension_numbers = #tpu.dot_dimension_numbers<[1], [0], [0], [1], [0, 0, 1, 1], [], []>} : vector<256x4xbf16>, vector<4x128xbf16>, vector<256x128xf32> -> vector<256x128xf32>
    %56 = arith.addf %49, %55 : vector<256x128xf32>
    %c0_56 = arith.constant 0 : index
    %c2_57 = arith.constant 2 : index
    %c2_58 = arith.constant 2 : index
    %c0_59 = arith.constant 0 : index
    %57 = vector.load %arg1[%c0_56, %c2_57, %c2_58, %c0_59] : memref<1x18x18x4xbf16, #tpu.memory_space<vmem>>, vector<1x16x16x4xbf16>
    %58 = vector.shape_cast %57 : vector<1x16x16x4xbf16> to vector<16x16x4xbf16>
    %59 = vector.shape_cast %58 : vector<16x16x4xbf16> to vector<256x4xbf16>
    %c8 = arith.constant 8 : index
    %c0_60 = arith.constant 0 : index
    %c0_61 = arith.constant 0 : index
    %60 = vector.load %arg2[%c8, %c0_60, %c0_61] : memref<9x4x128xbf16, #tpu.memory_space<vmem>>, vector<1x4x128xbf16>
    %61 = vector.shape_cast %60 : vector<1x4x128xbf16> to vector<4x128xbf16>
    %cst_62 = arith.constant dense<0.000000e+00> : vector<256x128xf32>
    %62 = tpu.matmul %59, %61, %cst_62 {dimension_numbers = #tpu.dot_dimension_numbers<[1], [0], [0], [1], [0, 0, 1, 1], [], []>} : vector<256x4xbf16>, vector<4x128xbf16>, vector<256x128xf32> -> vector<256x128xf32>
    %63 = arith.addf %56, %62 : vector<256x128xf32>
    %c0_63 = arith.constant 0 : index
    %c0_64 = arith.constant 0 : index
    %64 = vector.load %arg3[%c0_63, %c0_64] : memref<1x128xf32, #tpu.memory_space<vmem>>, vector<1x128xf32>
    %65 = vector.broadcast %64 : vector<1x128xf32> to vector<256x128xf32>
    %66 = arith.addf %63, %65 : vector<256x128xf32>
    %cst_65 = arith.constant 0.000000e+00 : f32
    %67 = vector.broadcast %cst_65 : f32 to vector<256x128xf32>
    %68 = arith.cmpf ogt, %66, %67 : vector<256x128xf32>
    %cst_66 = arith.constant 0.00999999977 : f32
    %69 = vector.broadcast %cst_66 : f32 to vector<256x128xf32>
    %70 = arith.mulf %69, %66 : vector<256x128xf32>
    %71 = arith.select %68, %66, %70 : vector<256x128xi1>, vector<256x128xf32>
    %72 = arith.truncf %71 : vector<256x128xf32> to vector<256x128xbf16>
    %73 = vector.shape_cast %72 : vector<256x128xbf16> to vector<1x16x16x128xbf16>
    %c0_67 = arith.constant 0 : index
    %c0_68 = arith.constant 0 : index
    %c0_69 = arith.constant 0 : index
    %c0_70 = arith.constant 0 : index
    %74 = vector.load %arg4[%c0_67, %c0_68, %c0_69, %c0_70] : memref<1x16x16x128xbf16, #tpu.memory_space<vmem>>, vector<1x16x16x128xbf16>
    tpu.vector_store %arg4[%c0_67, %c0_68, %c0_69, %c0_70], %73 {strides = array<i32>} : memref<1x16x16x128xbf16, #tpu.memory_space<vmem>>, vector<1x16x16x128xbf16>,
    %cst_71 = arith.constant dense<0.000000e+00> : vector<128xf32>
    %75 = vector.multi_reduction <add>, %71, %cst_71 [0] : vector<256x128xf32> to vector<128xf32>
    %76 = vector.shape_cast %75 : vector<128xf32> to vector<1x128xf32>
    %77 = vector.shape_cast %76 : vector<1x128xf32> to vector<1x1x128xf32>
    %c0_72 = arith.constant 0 : index
    %c0_73 = arith.constant 0 : index
    %c0_74 = arith.constant 0 : index
    %78 = vector.load %arg5[%c0_72, %c0_73, %c0_74] : memref<1x1x128xf32, #tpu.memory_space<vmem>>, vector<1x1x128xf32>
    tpu.vector_store %arg5[%c0_72, %c0_73, %c0_74], %77 {strides = array<i32>} : memref<1x1x128xf32, #tpu.memory_space<vmem>>, vector<1x1x128xf32>,
    %79 = arith.mulf %71, %71 : vector<256x128xf32>
    %cst_75 = arith.constant dense<0.000000e+00> : vector<128xf32>
    %80 = vector.multi_reduction <add>, %79, %cst_75 [0] : vector<256x128xf32> to vector<128xf32>
    %81 = vector.shape_cast %80 : vector<128xf32> to vector<1x128xf32>
    %82 = vector.shape_cast %81 : vector<1x128xf32> to vector<1x1x128xf32>
    %c0_76 = arith.constant 0 : index
    %c0_77 = arith.constant 0 : index
    %c0_78 = arith.constant 0 : index
    %83 = vector.load %arg6[%c0_76, %c0_77, %c0_78] : memref<1x1x128xf32, #tpu.memory_space<vmem>>, vector<1x1x128xf32>
    tpu.vector_store %arg6[%c0_76, %c0_77, %c0_78], %82 {strides = array<i32>} : memref<1x1x128xf32, #tpu.memory_space<vmem>>, vector<1x1x128xf32>,
    return
  }
  func.func @transform_0(%arg0: i32) -> (i32, i32, i32, i32) {
    %c0_i32 = arith.constant 0 : i32
    %c0_i32_0 = arith.constant 0 : i32
    %c0_i32_1 = arith.constant 0 : i32
    %c0_i32_2 = arith.constant 0 : i32
    return %arg0, %c0_i32, %c0_i32_0, %c0_i32_1 : i32, i32, i32, i32
  }
  func.func @transform_1(%arg0: i32) -> (i32, i32, i32) {
    %c0_i32 = arith.constant 0 : i32
    %c0_i32_0 = arith.constant 0 : i32
    %c0_i32_1 = arith.constant 0 : i32
    %c0_i32_2 = arith.constant 0 : i32
    return %c0_i32, %c0_i32_0, %c0_i32_1 : i32, i32, i32
  }
  func.func @transform_2(%arg0: i32) -> (i32, i32) {
    %c0_i32 = arith.constant 0 : i32
    %c0_i32_0 = arith.constant 0 : i32
    %c0_i32_1 = arith.constant 0 : i32
    return %c0_i32, %c0_i32_0 : i32, i32
  }
  func.func @transform_3(%arg0: i32) -> (i32, i32, i32, i32) {
    %c0_i32 = arith.constant 0 : i32
    %c0_i32_0 = arith.constant 0 : i32
    %c0_i32_1 = arith.constant 0 : i32
    %c0_i32_2 = arith.constant 0 : i32
    return %arg0, %c0_i32, %c0_i32_0, %c0_i32_1 : i32, i32, i32, i32
  }
  func.func @transform_4(%arg0: i32) -> (i32, i32, i32) {
    %c0_i32 = arith.constant 0 : i32
    %c0_i32_0 = arith.constant 0 : i32
    %c0_i32_1 = arith.constant 0 : i32
    return %arg0, %c0_i32, %c0_i32_0 : i32, i32, i32
  }
  func.func @transform_5(%arg0: i32) -> (i32, i32, i32) {
    %c0_i32 = arith.constant 0 : i32
    %c0_i32_0 = arith.constant 0 : i32
    %c0_i32_1 = arith.constant 0 : i32
    return %arg0, %c0_i32, %c0_i32_0 : i32, i32, i32
  }
}

module attributes {stable_mosaic.version = 11 : i64} {
  func.func @_conv2_kernel(%arg0: i32, %arg1: memref<1x16x16x128xbf16, #tpu.memory_space<vmem>>, %arg2: memref<1x128xf32, #tpu.memory_space<vmem>>, %arg3: memref<1x128xf32, #tpu.memory_space<vmem>>, %arg4: memref<1152x128xbf16, #tpu.memory_space<vmem>>, %arg5: memref<1x128xf32, #tpu.memory_space<vmem>>, %arg6: memref<1x256x128xbf16, #tpu.memory_space<vmem>>, %arg7: memref<1x1x128xf32, #tpu.memory_space<vmem>>, %arg8: memref<1x1x128xf32, #tpu.memory_space<vmem>>, %arg9: memref<18x18x128xbf16, #tpu.memory_space<vmem>>, %arg10: memref<256x1152xbf16, #tpu.memory_space<vmem>>) attributes {dimension_semantics = [#tpu.dimension_semantics<parallel>], iteration_bounds = array<i64: 2>, scalar_prefetch = 0 : i64, scratch_operands = 2 : i64, tpu.core_type = #tpu.core_type<tc>, window_params = [{transform_indices = @transform_0, window_bounds = array<i64: 1, 16, 16, 128>}, {pipeline_mode = #tpu.pipeline_mode<synchronous>, transform_indices = @transform_1, window_bounds = array<i64: 1, 128>}, {pipeline_mode = #tpu.pipeline_mode<synchronous>, transform_indices = @transform_2, window_bounds = array<i64: 1, 128>}, {pipeline_mode = #tpu.pipeline_mode<synchronous>, transform_indices = @transform_3, window_bounds = array<i64: 1152, 128>}, {pipeline_mode = #tpu.pipeline_mode<synchronous>, transform_indices = @transform_4, window_bounds = array<i64: 1, 128>}, {transform_indices = @transform_5, window_bounds = array<i64: 1, 256, 128>}, {transform_indices = @transform_6, window_bounds = array<i64: 1, 1, 128>}, {transform_indices = @transform_7, window_bounds = array<i64: 1, 1, 128>}]} {
    %c0 = arith.constant 0 : index
    %c0_0 = arith.constant 0 : index
    %c0_1 = arith.constant 0 : index
    %c0_2 = arith.constant 0 : index
    %0 = vector.load %arg1[%c0, %c0_0, %c0_1, %c0_2] : memref<1x16x16x128xbf16, #tpu.memory_space<vmem>>, vector<1x16x16x128xbf16>
    %1 = vector.shape_cast %0 : vector<1x16x16x128xbf16> to vector<16x16x128xbf16>
    %2 = arith.extf %1 : vector<16x16x128xbf16> to vector<16x16x128xf32>
    %c0_3 = arith.constant 0 : index
    %c0_4 = arith.constant 0 : index
    %3 = vector.load %arg2[%c0_3, %c0_4] : memref<1x128xf32, #tpu.memory_space<vmem>>, vector<1x128xf32>
    %4 = vector.shape_cast %3 : vector<1x128xf32> to vector<1x1x128xf32>
    %5 = vector.broadcast %4 : vector<1x1x128xf32> to vector<16x16x128xf32>
    %6 = arith.mulf %2, %5 : vector<16x16x128xf32>
    %c0_5 = arith.constant 0 : index
    %c0_6 = arith.constant 0 : index
    %7 = vector.load %arg3[%c0_5, %c0_6] : memref<1x128xf32, #tpu.memory_space<vmem>>, vector<1x128xf32>
    %8 = vector.shape_cast %7 : vector<1x128xf32> to vector<1x1x128xf32>
    %9 = vector.broadcast %8 : vector<1x1x128xf32> to vector<16x16x128xf32>
    %10 = arith.addf %6, %9 : vector<16x16x128xf32>
    %11 = arith.truncf %10 : vector<16x16x128xf32> to vector<16x16x128xbf16>
    %cst = arith.constant 0.000000e+00 : bf16
    %12 = vector.broadcast %cst : bf16 to vector<18x18x128xbf16>
    %c0_7 = arith.constant 0 : index
    %c0_8 = arith.constant 0 : index
    %c0_9 = arith.constant 0 : index
    %13 = vector.load %arg9[%c0_7, %c0_8, %c0_9] : memref<18x18x128xbf16, #tpu.memory_space<vmem>>, vector<18x18x128xbf16>
    tpu.vector_store %arg9[%c0_7, %c0_8, %c0_9], %12 {strides = array<i32>} : memref<18x18x128xbf16, #tpu.memory_space<vmem>>, vector<18x18x128xbf16>,
    %c1 = arith.constant 1 : index
    %c1_10 = arith.constant 1 : index
    %c0_11 = arith.constant 0 : index
    %14 = vector.load %arg9[%c1, %c1_10, %c0_11] : memref<18x18x128xbf16, #tpu.memory_space<vmem>>, vector<16x16x128xbf16>
    tpu.vector_store %arg9[%c1, %c1_10, %c0_11], %11 {strides = array<i32>} : memref<18x18x128xbf16, #tpu.memory_space<vmem>>, vector<16x16x128xbf16>,
    %c0_12 = arith.constant 0 : index
    %c0_13 = arith.constant 0 : index
    %c0_14 = arith.constant 0 : index
    %15 = vector.load %arg9[%c0_12, %c0_13, %c0_14] : memref<18x18x128xbf16, #tpu.memory_space<vmem>>, vector<16x16x128xbf16>
    %16 = vector.shape_cast %15 : vector<16x16x128xbf16> to vector<256x128xbf16>
    %c0_15 = arith.constant 0 : index
    %c0_16 = arith.constant 0 : index
    %17 = vector.load %arg10[%c0_15, %c0_16] : memref<256x1152xbf16, #tpu.memory_space<vmem>>, vector<256x128xbf16>
    tpu.vector_store %arg10[%c0_15, %c0_16], %16 {strides = array<i32>} : memref<256x1152xbf16, #tpu.memory_space<vmem>>, vector<256x128xbf16>,
    %c0_17 = arith.constant 0 : index
    %c1_18 = arith.constant 1 : index
    %c0_19 = arith.constant 0 : index
    %18 = vector.load %arg9[%c0_17, %c1_18, %c0_19] : memref<18x18x128xbf16, #tpu.memory_space<vmem>>, vector<16x16x128xbf16>
    %19 = vector.shape_cast %18 : vector<16x16x128xbf16> to vector<256x128xbf16>
    %c0_20 = arith.constant 0 : index
    %c128 = arith.constant 128 : index
    %20 = vector.load %arg10[%c0_20, %c128] : memref<256x1152xbf16, #tpu.memory_space<vmem>>, vector<256x128xbf16>
    tpu.vector_store %arg10[%c0_20, %c128], %19 {strides = array<i32>} : memref<256x1152xbf16, #tpu.memory_space<vmem>>, vector<256x128xbf16>,
    %c0_21 = arith.constant 0 : index
    %c2 = arith.constant 2 : index
    %c0_22 = arith.constant 0 : index
    %21 = vector.load %arg9[%c0_21, %c2, %c0_22] : memref<18x18x128xbf16, #tpu.memory_space<vmem>>, vector<16x16x128xbf16>
    %22 = vector.shape_cast %21 : vector<16x16x128xbf16> to vector<256x128xbf16>
    %c0_23 = arith.constant 0 : index
    %c256 = arith.constant 256 : index
    %23 = vector.load %arg10[%c0_23, %c256] : memref<256x1152xbf16, #tpu.memory_space<vmem>>, vector<256x128xbf16>
    tpu.vector_store %arg10[%c0_23, %c256], %22 {strides = array<i32>} : memref<256x1152xbf16, #tpu.memory_space<vmem>>, vector<256x128xbf16>,
    %c1_24 = arith.constant 1 : index
    %c0_25 = arith.constant 0 : index
    %c0_26 = arith.constant 0 : index
    %24 = vector.load %arg9[%c1_24, %c0_25, %c0_26] : memref<18x18x128xbf16, #tpu.memory_space<vmem>>, vector<16x16x128xbf16>
    %25 = vector.shape_cast %24 : vector<16x16x128xbf16> to vector<256x128xbf16>
    %c0_27 = arith.constant 0 : index
    %c384 = arith.constant 384 : index
    %26 = vector.load %arg10[%c0_27, %c384] : memref<256x1152xbf16, #tpu.memory_space<vmem>>, vector<256x128xbf16>
    tpu.vector_store %arg10[%c0_27, %c384], %25 {strides = array<i32>} : memref<256x1152xbf16, #tpu.memory_space<vmem>>, vector<256x128xbf16>,
    %c1_28 = arith.constant 1 : index
    %c1_29 = arith.constant 1 : index
    %c0_30 = arith.constant 0 : index
    %27 = vector.load %arg9[%c1_28, %c1_29, %c0_30] : memref<18x18x128xbf16, #tpu.memory_space<vmem>>, vector<16x16x128xbf16>
    %28 = vector.shape_cast %27 : vector<16x16x128xbf16> to vector<256x128xbf16>
    %c0_31 = arith.constant 0 : index
    %c512 = arith.constant 512 : index
    %29 = vector.load %arg10[%c0_31, %c512] : memref<256x1152xbf16, #tpu.memory_space<vmem>>, vector<256x128xbf16>
    tpu.vector_store %arg10[%c0_31, %c512], %28 {strides = array<i32>} : memref<256x1152xbf16, #tpu.memory_space<vmem>>, vector<256x128xbf16>,
    %c1_32 = arith.constant 1 : index
    %c2_33 = arith.constant 2 : index
    %c0_34 = arith.constant 0 : index
    %30 = vector.load %arg9[%c1_32, %c2_33, %c0_34] : memref<18x18x128xbf16, #tpu.memory_space<vmem>>, vector<16x16x128xbf16>
    %31 = vector.shape_cast %30 : vector<16x16x128xbf16> to vector<256x128xbf16>
    %c0_35 = arith.constant 0 : index
    %c640 = arith.constant 640 : index
    %32 = vector.load %arg10[%c0_35, %c640] : memref<256x1152xbf16, #tpu.memory_space<vmem>>, vector<256x128xbf16>
    tpu.vector_store %arg10[%c0_35, %c640], %31 {strides = array<i32>} : memref<256x1152xbf16, #tpu.memory_space<vmem>>, vector<256x128xbf16>,
    %c2_36 = arith.constant 2 : index
    %c0_37 = arith.constant 0 : index
    %c0_38 = arith.constant 0 : index
    %33 = vector.load %arg9[%c2_36, %c0_37, %c0_38] : memref<18x18x128xbf16, #tpu.memory_space<vmem>>, vector<16x16x128xbf16>
    %34 = vector.shape_cast %33 : vector<16x16x128xbf16> to vector<256x128xbf16>
    %c0_39 = arith.constant 0 : index
    %c768 = arith.constant 768 : index
    %35 = vector.load %arg10[%c0_39, %c768] : memref<256x1152xbf16, #tpu.memory_space<vmem>>, vector<256x128xbf16>
    tpu.vector_store %arg10[%c0_39, %c768], %34 {strides = array<i32>} : memref<256x1152xbf16, #tpu.memory_space<vmem>>, vector<256x128xbf16>,
    %c2_40 = arith.constant 2 : index
    %c1_41 = arith.constant 1 : index
    %c0_42 = arith.constant 0 : index
    %36 = vector.load %arg9[%c2_40, %c1_41, %c0_42] : memref<18x18x128xbf16, #tpu.memory_space<vmem>>, vector<16x16x128xbf16>
    %37 = vector.shape_cast %36 : vector<16x16x128xbf16> to vector<256x128xbf16>
    %c0_43 = arith.constant 0 : index
    %c896 = arith.constant 896 : index
    %38 = vector.load %arg10[%c0_43, %c896] : memref<256x1152xbf16, #tpu.memory_space<vmem>>, vector<256x128xbf16>
    tpu.vector_store %arg10[%c0_43, %c896], %37 {strides = array<i32>} : memref<256x1152xbf16, #tpu.memory_space<vmem>>, vector<256x128xbf16>,
    %c2_44 = arith.constant 2 : index
    %c2_45 = arith.constant 2 : index
    %c0_46 = arith.constant 0 : index
    %39 = vector.load %arg9[%c2_44, %c2_45, %c0_46] : memref<18x18x128xbf16, #tpu.memory_space<vmem>>, vector<16x16x128xbf16>
    %40 = vector.shape_cast %39 : vector<16x16x128xbf16> to vector<256x128xbf16>
    %c0_47 = arith.constant 0 : index
    %c1024 = arith.constant 1024 : index
    %41 = vector.load %arg10[%c0_47, %c1024] : memref<256x1152xbf16, #tpu.memory_space<vmem>>, vector<256x128xbf16>
    tpu.vector_store %arg10[%c0_47, %c1024], %40 {strides = array<i32>} : memref<256x1152xbf16, #tpu.memory_space<vmem>>, vector<256x128xbf16>,
    %c0_48 = arith.constant 0 : index
    %c0_49 = arith.constant 0 : index
    %42 = vector.load %arg10[%c0_48, %c0_49] : memref<256x1152xbf16, #tpu.memory_space<vmem>>, vector<256x1152xbf16>
    %c0_50 = arith.constant 0 : index
    %c0_51 = arith.constant 0 : index
    %43 = vector.load %arg4[%c0_50, %c0_51] : memref<1152x128xbf16, #tpu.memory_space<vmem>>, vector<1152x128xbf16>
    %cst_52 = arith.constant dense<0.000000e+00> : vector<256x128xf32>
    %44 = tpu.matmul %42, %43, %cst_52 {dimension_numbers = #tpu.dot_dimension_numbers<[1], [0], [0], [1], [0, 0, 1, 1], [], []>} : vector<256x1152xbf16>, vector<1152x128xbf16>, vector<256x128xf32> -> vector<256x128xf32>
    %c0_53 = arith.constant 0 : index
    %c0_54 = arith.constant 0 : index
    %45 = vector.load %arg5[%c0_53, %c0_54] : memref<1x128xf32, #tpu.memory_space<vmem>>, vector<1x128xf32>
    %46 = vector.broadcast %45 : vector<1x128xf32> to vector<256x128xf32>
    %47 = arith.addf %44, %46 : vector<256x128xf32>
    %cst_55 = arith.constant 0.000000e+00 : f32
    %48 = vector.broadcast %cst_55 : f32 to vector<256x128xf32>
    %49 = arith.maximumf %47, %48 : vector<256x128xf32>
    %50 = arith.truncf %49 : vector<256x128xf32> to vector<256x128xbf16>
    %51 = vector.shape_cast %50 : vector<256x128xbf16> to vector<1x256x128xbf16>
    %c0_56 = arith.constant 0 : index
    %c0_57 = arith.constant 0 : index
    %c0_58 = arith.constant 0 : index
    %52 = vector.load %arg6[%c0_56, %c0_57, %c0_58] : memref<1x256x128xbf16, #tpu.memory_space<vmem>>, vector<1x256x128xbf16>
    tpu.vector_store %arg6[%c0_56, %c0_57, %c0_58], %51 {strides = array<i32>} : memref<1x256x128xbf16, #tpu.memory_space<vmem>>, vector<1x256x128xbf16>,
    %cst_59 = arith.constant dense<0.000000e+00> : vector<128xf32>
    %53 = vector.multi_reduction <add>, %49, %cst_59 [0] : vector<256x128xf32> to vector<128xf32>
    %54 = vector.shape_cast %53 : vector<128xf32> to vector<1x128xf32>
    %55 = vector.shape_cast %54 : vector<1x128xf32> to vector<1x1x128xf32>
    %c0_60 = arith.constant 0 : index
    %c0_61 = arith.constant 0 : index
    %c0_62 = arith.constant 0 : index
    %56 = vector.load %arg7[%c0_60, %c0_61, %c0_62] : memref<1x1x128xf32, #tpu.memory_space<vmem>>, vector<1x1x128xf32>
    tpu.vector_store %arg7[%c0_60, %c0_61, %c0_62], %55 {strides = array<i32>} : memref<1x1x128xf32, #tpu.memory_space<vmem>>, vector<1x1x128xf32>,
    %57 = arith.mulf %49, %49 : vector<256x128xf32>
    %cst_63 = arith.constant dense<0.000000e+00> : vector<128xf32>
    %58 = vector.multi_reduction <add>, %57, %cst_63 [0] : vector<256x128xf32> to vector<128xf32>
    %59 = vector.shape_cast %58 : vector<128xf32> to vector<1x128xf32>
    %60 = vector.shape_cast %59 : vector<1x128xf32> to vector<1x1x128xf32>
    %c0_64 = arith.constant 0 : index
    %c0_65 = arith.constant 0 : index
    %c0_66 = arith.constant 0 : index
    %61 = vector.load %arg8[%c0_64, %c0_65, %c0_66] : memref<1x1x128xf32, #tpu.memory_space<vmem>>, vector<1x1x128xf32>
    tpu.vector_store %arg8[%c0_64, %c0_65, %c0_66], %60 {strides = array<i32>} : memref<1x1x128xf32, #tpu.memory_space<vmem>>, vector<1x1x128xf32>,
    return
  }
  func.func @transform_0(%arg0: i32) -> (i32, i32, i32, i32) {
    %c0_i32 = arith.constant 0 : i32
    %c0_i32_0 = arith.constant 0 : i32
    %c0_i32_1 = arith.constant 0 : i32
    %c0_i32_2 = arith.constant 0 : i32
    return %arg0, %c0_i32, %c0_i32_0, %c0_i32_1 : i32, i32, i32, i32
  }
  func.func @transform_1(%arg0: i32) -> (i32, i32) {
    %c0_i32 = arith.constant 0 : i32
    %c0_i32_0 = arith.constant 0 : i32
    %c0_i32_1 = arith.constant 0 : i32
    return %c0_i32, %c0_i32_0 : i32, i32
  }
  func.func @transform_2(%arg0: i32) -> (i32, i32) {
    %c0_i32 = arith.constant 0 : i32
    %c0_i32_0 = arith.constant 0 : i32
    %c0_i32_1 = arith.constant 0 : i32
    return %c0_i32, %c0_i32_0 : i32, i32
  }
  func.func @transform_3(%arg0: i32) -> (i32, i32) {
    %c0_i32 = arith.constant 0 : i32
    %c0_i32_0 = arith.constant 0 : i32
    %c0_i32_1 = arith.constant 0 : i32
    return %c0_i32, %c0_i32_0 : i32, i32
  }
  func.func @transform_4(%arg0: i32) -> (i32, i32) {
    %c0_i32 = arith.constant 0 : i32
    %c0_i32_0 = arith.constant 0 : i32
    %c0_i32_1 = arith.constant 0 : i32
    return %c0_i32, %c0_i32_0 : i32, i32
  }
  func.func @transform_5(%arg0: i32) -> (i32, i32, i32) {
    %c0_i32 = arith.constant 0 : i32
    %c0_i32_0 = arith.constant 0 : i32
    %c0_i32_1 = arith.constant 0 : i32
    return %arg0, %c0_i32, %c0_i32_0 : i32, i32, i32
  }
  func.func @transform_6(%arg0: i32) -> (i32, i32, i32) {
    %c0_i32 = arith.constant 0 : i32
    %c0_i32_0 = arith.constant 0 : i32
    %c0_i32_1 = arith.constant 0 : i32
    return %arg0, %c0_i32, %c0_i32_0 : i32, i32, i32
  }
  func.func @transform_7(%arg0: i32) -> (i32, i32, i32) {
    %c0_i32 = arith.constant 0 : i32
    %c0_i32_0 = arith.constant 0 : i32
    %c0_i32_1 = arith.constant 0 : i32
    return %arg0, %c0_i32, %c0_i32_0 : i32, i32, i32
  }
}

module attributes {stable_mosaic.version = 11 : i64} {
  func.func @_bn_conv1x1_kernel(%arg0: i32, %arg1: memref<256x128xbf16, #tpu.memory_space<vmem>>, %arg2: memref<1x128xf32, #tpu.memory_space<vmem>>, %arg3: memref<1x128xf32, #tpu.memory_space<vmem>>, %arg4: memref<128x128xbf16, #tpu.memory_space<vmem>>, %arg5: memref<1x128xf32, #tpu.memory_space<vmem>>, %arg6: memref<256x128xbf16, #tpu.memory_space<vmem>>, %arg7: memref<1x1x128xf32, #tpu.memory_space<vmem>>, %arg8: memref<1x1x128xf32, #tpu.memory_space<vmem>>) attributes {dimension_semantics = [#tpu.dimension_semantics<parallel>], iteration_bounds = array<i64: 2>, scalar_prefetch = 0 : i64, scratch_operands = 0 : i64, tpu.core_type = #tpu.core_type<tc>, window_params = [{transform_indices = @transform_0, window_bounds = array<i64: 256, 128>}, {pipeline_mode = #tpu.pipeline_mode<synchronous>, transform_indices = @transform_1, window_bounds = array<i64: 1, 128>}, {pipeline_mode = #tpu.pipeline_mode<synchronous>, transform_indices = @transform_2, window_bounds = array<i64: 1, 128>}, {pipeline_mode = #tpu.pipeline_mode<synchronous>, transform_indices = @transform_3, window_bounds = array<i64: 128, 128>}, {pipeline_mode = #tpu.pipeline_mode<synchronous>, transform_indices = @transform_4, window_bounds = array<i64: 1, 128>}, {transform_indices = @transform_5, window_bounds = array<i64: 256, 128>}, {transform_indices = @transform_6, window_bounds = array<i64: 1, 1, 128>}, {transform_indices = @transform_7, window_bounds = array<i64: 1, 1, 128>}]} {
    %c0 = arith.constant 0 : index
    %c0_0 = arith.constant 0 : index
    %0 = vector.load %arg1[%c0, %c0_0] : memref<256x128xbf16, #tpu.memory_space<vmem>>, vector<256x128xbf16>
    %1 = arith.extf %0 : vector<256x128xbf16> to vector<256x128xf32>
    %c0_1 = arith.constant 0 : index
    %c0_2 = arith.constant 0 : index
    %2 = vector.load %arg2[%c0_1, %c0_2] : memref<1x128xf32, #tpu.memory_space<vmem>>, vector<1x128xf32>
    %3 = vector.broadcast %2 : vector<1x128xf32> to vector<256x128xf32>
    %4 = arith.mulf %1, %3 : vector<256x128xf32>
    %c0_3 = arith.constant 0 : index
    %c0_4 = arith.constant 0 : index
    %5 = vector.load %arg3[%c0_3, %c0_4] : memref<1x128xf32, #tpu.memory_space<vmem>>, vector<1x128xf32>
    %6 = vector.broadcast %5 : vector<1x128xf32> to vector<256x128xf32>
    %7 = arith.addf %4, %6 : vector<256x128xf32>
    %8 = arith.truncf %7 : vector<256x128xf32> to vector<256x128xbf16>
    %c0_5 = arith.constant 0 : index
    %c0_6 = arith.constant 0 : index
    %9 = vector.load %arg4[%c0_5, %c0_6] : memref<128x128xbf16, #tpu.memory_space<vmem>>, vector<128x128xbf16>
    %cst = arith.constant dense<0.000000e+00> : vector<256x128xf32>
    %10 = tpu.matmul %8, %9, %cst {dimension_numbers = #tpu.dot_dimension_numbers<[1], [0], [0], [1], [0, 0, 1, 1], [], []>} : vector<256x128xbf16>, vector<128x128xbf16>, vector<256x128xf32> -> vector<256x128xf32>
    %c0_7 = arith.constant 0 : index
    %c0_8 = arith.constant 0 : index
    %11 = vector.load %arg5[%c0_7, %c0_8] : memref<1x128xf32, #tpu.memory_space<vmem>>, vector<1x128xf32>
    %12 = vector.broadcast %11 : vector<1x128xf32> to vector<256x128xf32>
    %13 = arith.addf %10, %12 : vector<256x128xf32>
    %14 = arith.truncf %13 : vector<256x128xf32> to vector<256x128xbf16>
    %c0_9 = arith.constant 0 : index
    %c0_10 = arith.constant 0 : index
    %15 = vector.load %arg6[%c0_9, %c0_10] : memref<256x128xbf16, #tpu.memory_space<vmem>>, vector<256x128xbf16>
    tpu.vector_store %arg6[%c0_9, %c0_10], %14 {strides = array<i32>} : memref<256x128xbf16, #tpu.memory_space<vmem>>, vector<256x128xbf16>,
    %cst_11 = arith.constant dense<0.000000e+00> : vector<128xf32>
    %16 = vector.multi_reduction <add>, %13, %cst_11 [0] : vector<256x128xf32> to vector<128xf32>
    %17 = vector.shape_cast %16 : vector<128xf32> to vector<1x128xf32>
    %18 = vector.shape_cast %17 : vector<1x128xf32> to vector<1x1x128xf32>
    %c0_12 = arith.constant 0 : index
    %c0_13 = arith.constant 0 : index
    %c0_14 = arith.constant 0 : index
    %19 = vector.load %arg7[%c0_12, %c0_13, %c0_14] : memref<1x1x128xf32, #tpu.memory_space<vmem>>, vector<1x1x128xf32>
    tpu.vector_store %arg7[%c0_12, %c0_13, %c0_14], %18 {strides = array<i32>} : memref<1x1x128xf32, #tpu.memory_space<vmem>>, vector<1x1x128xf32>,
    %20 = arith.mulf %13, %13 : vector<256x128xf32>
    %cst_15 = arith.constant dense<0.000000e+00> : vector<128xf32>
    %21 = vector.multi_reduction <add>, %20, %cst_15 [0] : vector<256x128xf32> to vector<128xf32>
    %22 = vector.shape_cast %21 : vector<128xf32> to vector<1x128xf32>
    %23 = vector.shape_cast %22 : vector<1x128xf32> to vector<1x1x128xf32>
    %c0_16 = arith.constant 0 : index
    %c0_17 = arith.constant 0 : index
    %c0_18 = arith.constant 0 : index
    %24 = vector.load %arg8[%c0_16, %c0_17, %c0_18] : memref<1x1x128xf32, #tpu.memory_space<vmem>>, vector<1x1x128xf32>
    tpu.vector_store %arg8[%c0_16, %c0_17, %c0_18], %23 {strides = array<i32>} : memref<1x1x128xf32, #tpu.memory_space<vmem>>, vector<1x1x128xf32>,
    return
  }
  func.func @transform_0(%arg0: i32) -> (i32, i32) {
    %c0_i32 = arith.constant 0 : i32
    %c0_i32_0 = arith.constant 0 : i32
    return %arg0, %c0_i32 : i32, i32
  }
  func.func @transform_1(%arg0: i32) -> (i32, i32) {
    %c0_i32 = arith.constant 0 : i32
    %c0_i32_0 = arith.constant 0 : i32
    %c0_i32_1 = arith.constant 0 : i32
    return %c0_i32, %c0_i32_0 : i32, i32
  }
  func.func @transform_2(%arg0: i32) -> (i32, i32) {
    %c0_i32 = arith.constant 0 : i32
    %c0_i32_0 = arith.constant 0 : i32
    %c0_i32_1 = arith.constant 0 : i32
    return %c0_i32, %c0_i32_0 : i32, i32
  }
  func.func @transform_3(%arg0: i32) -> (i32, i32) {
    %c0_i32 = arith.constant 0 : i32
    %c0_i32_0 = arith.constant 0 : i32
    %c0_i32_1 = arith.constant 0 : i32
    return %c0_i32, %c0_i32_0 : i32, i32
  }
  func.func @transform_4(%arg0: i32) -> (i32, i32) {
    %c0_i32 = arith.constant 0 : i32
    %c0_i32_0 = arith.constant 0 : i32
    %c0_i32_1 = arith.constant 0 : i32
    return %c0_i32, %c0_i32_0 : i32, i32
  }
  func.func @transform_5(%arg0: i32) -> (i32, i32) {
    %c0_i32 = arith.constant 0 : i32
    %c0_i32_0 = arith.constant 0 : i32
    return %arg0, %c0_i32 : i32, i32
  }
  func.func @transform_6(%arg0: i32) -> (i32, i32, i32) {
    %c0_i32 = arith.constant 0 : i32
    %c0_i32_0 = arith.constant 0 : i32
    %c0_i32_1 = arith.constant 0 : i32
    return %arg0, %c0_i32, %c0_i32_0 : i32, i32, i32
  }
  func.func @transform_7(%arg0: i32) -> (i32, i32, i32) {
    %c0_i32 = arith.constant 0 : i32
    %c0_i32_0 = arith.constant 0 : i32
    %c0_i32_1 = arith.constant 0 : i32
    return %arg0, %c0_i32, %c0_i32_0 : i32, i32, i32
  }
}

module attributes {stable_mosaic.version = 11 : i64} {
  func.func @_bn_apply_kernel(%arg0: i32, %arg1: memref<256x128xbf16, #tpu.memory_space<vmem>>, %arg2: memref<1x128xf32, #tpu.memory_space<vmem>>, %arg3: memref<1x128xf32, #tpu.memory_space<vmem>>, %arg4: memref<256x128xf32, #tpu.memory_space<vmem>>) attributes {dimension_semantics = [#tpu.dimension_semantics<parallel>], iteration_bounds = array<i64: 2>, scalar_prefetch = 0 : i64, scratch_operands = 0 : i64, tpu.core_type = #tpu.core_type<tc>, window_params = [{transform_indices = @transform_0, window_bounds = array<i64: 256, 128>}, {pipeline_mode = #tpu.pipeline_mode<synchronous>, transform_indices = @transform_1, window_bounds = array<i64: 1, 128>}, {pipeline_mode = #tpu.pipeline_mode<synchronous>, transform_indices = @transform_2, window_bounds = array<i64: 1, 128>}, {transform_indices = @transform_3, window_bounds = array<i64: 256, 128>}]} {
    %c0 = arith.constant 0 : index
    %c0_0 = arith.constant 0 : index
    %0 = vector.load %arg1[%c0, %c0_0] : memref<256x128xbf16, #tpu.memory_space<vmem>>, vector<256x128xbf16>
    %1 = arith.extf %0 : vector<256x128xbf16> to vector<256x128xf32>
    %c0_1 = arith.constant 0 : index
    %c0_2 = arith.constant 0 : index
    %2 = vector.load %arg2[%c0_1, %c0_2] : memref<1x128xf32, #tpu.memory_space<vmem>>, vector<1x128xf32>
    %3 = vector.broadcast %2 : vector<1x128xf32> to vector<256x128xf32>
    %4 = arith.mulf %1, %3 : vector<256x128xf32>
    %c0_3 = arith.constant 0 : index
    %c0_4 = arith.constant 0 : index
    %5 = vector.load %arg3[%c0_3, %c0_4] : memref<1x128xf32, #tpu.memory_space<vmem>>, vector<1x128xf32>
    %6 = vector.broadcast %5 : vector<1x128xf32> to vector<256x128xf32>
    %7 = arith.addf %4, %6 : vector<256x128xf32>
    %c0_5 = arith.constant 0 : index
    %c0_6 = arith.constant 0 : index
    %8 = vector.load %arg4[%c0_5, %c0_6] : memref<256x128xf32, #tpu.memory_space<vmem>>, vector<256x128xf32>
    tpu.vector_store %arg4[%c0_5, %c0_6], %7 {strides = array<i32>} : memref<256x128xf32, #tpu.memory_space<vmem>>, vector<256x128xf32>,
    return
  }
  func.func @transform_0(%arg0: i32) -> (i32, i32) {
    %c0_i32 = arith.constant 0 : i32
    %c0_i32_0 = arith.constant 0 : i32
    return %arg0, %c0_i32 : i32, i32
  }
  func.func @transform_1(%arg0: i32) -> (i32, i32) {
    %c0_i32 = arith.constant 0 : i32
    %c0_i32_0 = arith.constant 0 : i32
    %c0_i32_1 = arith.constant 0 : i32
    return %c0_i32, %c0_i32_0 : i32, i32
  }
  func.func @transform_2(%arg0: i32) -> (i32, i32) {
    %c0_i32 = arith.constant 0 : i32
    %c0_i32_0 = arith.constant 0 : i32
    %c0_i32_1 = arith.constant 0 : i32
    return %c0_i32, %c0_i32_0 : i32, i32
  }
  func.func @transform_3(%arg0: i32) -> (i32, i32) {
    %c0_i32 = arith.constant 0 : i32
    %c0_i32_0 = arith.constant 0 : i32
    return %arg0, %c0_i32 : i32, i32
  }
}

</mosaic_0001>

<bundles_post_ra>
// kernel: mynet_forward.7
= control target key start
LH: loop header
LB: loop body
LE: loop exit
PB: predicated region body
PF: predicated region fallthrough
CT: control target
= control target key end

     0   :  { %s532_s12 = smov 0   ;;  %s675_s0 = inlined_call_operand.vmem [shape: bf16[512,128], index: 0, kind: input, shape index: {}]   ;;  %s676_s1 = inlined_call_operand.vmem [shape: f32[1,128], index: 1, kind: input, shape index: {}]   ;;  %s677_s2 = inlined_call_operand.vmem [shape: f32[1,128], index: 2, kind: input, shape index: {}]   ;;  %s678_s3 = inlined_call_operand.vmem [shape: f32[512,128], index: 3, kind: output, shape index: {}]  }
   0x1 LB: > { %s404_s13 = sadd.s32 4294967295, %s510_s12   ;;  %p408_p0 = scmp.ge.s32.totalorder %s510_s12, 1  ;;  %s510_s12 = sphi %s532_s12, %s13_s12  }
   0x2   : > { %p138_p1 = scmp.lt.s32.totalorder %s510_s12, 3 }
   0x4   : > { %p139_p2 = pnand %p408_p0, %p138_p1 }
   0x5   : > { %s409_s14 = sshll.u32 (!%p139_p2), %s404_s13, 5  ;;  %v548_v0 = vld [vmem:[%s676_s1] ss:$0 sm:$0xff] (!%p139_p2) }
   0x6   : > { %142 = sbr.rel (%p139_p2) target bundleno = 45 (0x2d), region = 32  ;;  %p163_p3 = scmp.lt.s32.totalorder (!%p139_p2), %s409_s14, 63  ;;  %v557_v9 = vld [vmem:[%s677_s2] ss:$0 sm:$0xff] (!%p139_p2) }
   0xd   : > { %s680_s14 = smov (!%p163_p3, %s409_s14), 63 }
   0xe   : > { %s410_s15 = sshll.u32 %s680_s14, 2  ;;  %s412_s21 = sshll.u32 %s680_s14, 3 }
   0xf   : > { %s543_s18 = scalar_lea.vmem %s675_s0, %s410_s15  ;;  %s566_s26 = scalar_lea.vmem %s678_s3, %s412_s21 }
  0x10   : > { %v418_v1 = vld [vmem:[%s543_s18] sm:$0xff]   ;;  %v481_v2 = vld [vmem:[%s543_s18 + $0x8] sm:$0xff]   ;;  %v482_v3 = vld [vmem:[%s543_s18 + $0x10] sm:$0xff]  }
  0x11   : > { %v419_v4 = vunpack.c.l.bf16 %v418_v1  ;;  %v420_v5 = vunpack.c.h.bf16 %v418_v1  ;;  %v423_v6 = vunpack.c.l.bf16 %v481_v2  ;;  %v424_v7 = vunpack.c.h.bf16 %v481_v2  ;;  %v483_v8 = vld [vmem:[%s543_s18 + $0x18] sm:$0xff]   ;;  %v484_v22 = vld [vmem:[%s543_s18 + $0x20] sm:$0xff]   ;;  %v485_v23 = vld [vmem:[%s543_s18 + $0x28] sm:$0xff]  }
  0x12   : > { %v427_v10 = vunpack.c.l.bf16 %v482_v3  ;;  %v428_v11 = vunpack.c.h.bf16 %v482_v3  ;;  %v431_v12 = vunpack.c.l.bf16 %v483_v8  ;;  %v432_v13 = vunpack.c.h.bf16 %v483_v8  ;;  %v486_v28 = vld [vmem:[%s543_s18 + $0x30] sm:$0xff]   ;;  %v487_v29 = vld [vmem:[%s543_s18 + $0x38] sm:$0xff]   ;;  %v488_v50 = vld [vmem:[%s543_s18 + $0x40] sm:$0xff]  }
  0x13   : > { %v245_v14 = vmul.f32 %v419_v4, %v548_v0  ;;  %v246_v15 = vmul.f32 %v420_v5, %v548_v0  ;;  %v247_v16 = vmul.f32 %v423_v6, %v548_v0  ;;  %v248_v17 = vmul.f32 %v424_v7, %v548_v0  ;;  %v489_v51 = vld [vmem:[%s543_s18 + $0x48] sm:$0xff]   ;;  %v490_v56 = vld [vmem:[%s543_s18 + $0x50] sm:$0xff]   ;;  %v491_v57 = vld [vmem:[%s543_s18 + $0x58] sm:$0xff]  }
  0x14   : > { %v249_v18 = vmul.f32 %v427_v10, %v548_v0  ;;  %v250_v19 = vmul.f32 %v428_v11, %v548_v0  ;;  %v251_v20 = vmul.f32 %v431_v12, %v548_v0  ;;  %v252_v21 = vmul.f32 %v432_v13, %v548_v0 }
  0x15   : > { %v284_v24 = vadd.f32 %v557_v9, %v245_v14  ;;  %v285_v25 = vadd.f32 %v557_v9, %v246_v15  ;;  %v286_v26 = vadd.f32 %v557_v9, %v247_v16  ;;  %v287_v27 = vadd.f32 %v557_v9, %v248_v17  ;;  %v492_v16 = vld [vmem:[%s543_s18 + $0x60] sm:$0xff]   ;;  %v493_v17 = vld [vmem:[%s543_s18 + $0x68] sm:$0xff]  }
  0x16   : > { %v288_v30 = vadd.f32 %v557_v9, %v249_v18  ;;  %v289_v31 = vadd.f32 %v557_v9, %v250_v19  ;;  %v290_v32 = vadd.f32 %v557_v9, %v251_v20  ;;  %v291_v33 = vadd.f32 %v557_v9, %v252_v21 }
  0x17   : > { %316 = vst [vmem:[%s566_s26] sm:$0xff] %v284_v24  ;;  %317 = vst [vmem:[%s566_s26 + $0x8] sm:$0xff] %v285_v25  ;;  %v435_v34 = vunpack.c.l.bf16 %v484_v22  ;;  %v436_v35 = vunpack.c.h.bf16 %v484_v22  ;;  %v439_v36 = vunpack.c.l.bf16 %v485_v23  ;;  %v440_v37 = vunpack.c.h.bf16 %v485_v23  ;;  %v494_v22 = vld [vmem:[%s543_s18 + $0x70] sm:$0xff]   ;;  %v495_v23 = vld [vmem:[%s543_s18 + $0x78] sm:$0xff]  }
  0x18   : > { %318 = vst [vmem:[%s566_s26 + $0x10] sm:$0xff] %v286_v26  ;;  %319 = vst [vmem:[%s566_s26 + $0x18] sm:$0xff] %v287_v27  ;;  %v443_v38 = vunpack.c.l.bf16 %v486_v28  ;;  %v444_v39 = vunpack.c.h.bf16 %v486_v28  ;;  %v447_v40 = vunpack.c.l.bf16 %v487_v29  ;;  %v448_v41 = vunpack.c.h.bf16 %v487_v29 }
  0x19   : > { %320 = vst [vmem:[%s566_s26 + $0x20] sm:$0xff] %v288_v30  ;;  %321 = vst [vmem:[%s566_s26 + $0x28] sm:$0xff] %v289_v31  ;;  %v253_v42 = vmul.f32 %v435_v34, %v548_v0  ;;  %v254_v43 = vmul.f32 %v436_v35, %v548_v0  ;;  %v255_v44 = vmul.f32 %v439_v36, %v548_v0  ;;  %v451_v62 = vunpack.c.l.bf16 %v488_v50 }
  0x1a   : > { %322 = vst [vmem:[%s566_s26 + $0x30] sm:$0xff] %v290_v32  ;;  %323 = vst [vmem:[%s566_s26 + $0x38] sm:$0xff] %v291_v33  ;;  %v256_v45 = vmul.f32 %v440_v37, %v548_v0  ;;  %v257_v46 = vmul.f32 %v443_v38, %v548_v0  ;;  %v258_v47 = vmul.f32 %v444_v39, %v548_v0  ;;  %v452_v63 = vunpack.c.h.bf16 %v488_v50 }
  0x1b   : > { %v259_v48 = vmul.f32 %v447_v40, %v548_v0  ;;  %v260_v49 = vmul.f32 %v448_v41, %v548_v0  ;;  %v292_v52 = vadd.f32 %v557_v9, %v253_v42  ;;  %v293_v53 = vadd.f32 %v557_v9, %v254_v43 }
  0x1c   : > { %v294_v54 = vadd.f32 %v557_v9, %v255_v44  ;;  %v295_v55 = vadd.f32 %v557_v9, %v256_v45  ;;  %v296_v58 = vadd.f32 %v557_v9, %v257_v46  ;;  %v297_v59 = vadd.f32 %v557_v9, %v258_v47 }
  0x1d   : > { %v298_v60 = vadd.f32 %v557_v9, %v259_v48  ;;  %v299_v61 = vadd.f32 %v557_v9, %v260_v49  ;;  %324 = vst [vmem:[%s566_s26 + $0x40] sm:$0xff] %v292_v52  ;;  %325 = vst [vmem:[%s566_s26 + $0x48] sm:$0xff] %v293_v53  ;;  %v455_v1 = vunpack.c.l.bf16 %v489_v51  ;;  %v456_v2 = vunpack.c.h.bf16 %v489_v51 }
  0x1e   : > { %326 = vst [vmem:[%s566_s26 + $0x50] sm:$0xff] %v294_v54  ;;  %327 = vst [vmem:[%s566_s26 + $0x58] sm:$0xff] %v295_v55  ;;  %v459_v3 = vunpack.c.l.bf16 %v490_v56  ;;  %v460_v4 = vunpack.c.h.bf16 %v490_v56  ;;  %v463_v5 = vunpack.c.l.bf16 %v491_v57  ;;  %v464_v6 = vunpack.c.h.bf16 %v491_v57 }
  0x1f   : > { %328 = vst [vmem:[%s566_s26 + $0x60] sm:$0xff] %v296_v58  ;;  %329 = vst [vmem:[%s566_s26 + $0x68] sm:$0xff] %v297_v59  ;;  %v261_v7 = vmul.f32 %v451_v62, %v548_v0  ;;  %v262_v8 = vmul.f32 %v452_v63, %v548_v0  ;;  %v263_v10 = vmul.f32 %v455_v1, %v548_v0  ;;  %v467_v28 = vunpack.c.l.bf16 %v492_v16 }
  0x20   : > { %330 = vst [vmem:[%s566_s26 + $0x70] sm:$0xff] %v298_v60  ;;  %331 = vst [vmem:[%s566_s26 + $0x78] sm:$0xff] %v299_v61  ;;  %v264_v11 = vmul.f32 %v456_v2, %v548_v0  ;;  %v265_v12 = vmul.f32 %v459_v3, %v548_v0  ;;  %v266_v13 = vmul.f32 %v460_v4, %v548_v0  ;;  %v468_v29 = vunpack.c.h.bf16 %v492_v16 }
  0x21   : > { %v267_v14 = vmul.f32 %v463_v5, %v548_v0  ;;  %v268_v15 = vmul.f32 %v464_v6, %v548_v0  ;;  %v300_v18 = vadd.f32 %v557_v9, %v261_v7  ;;  %v301_v19 = vadd.f32 %v557_v9, %v262_v8 }
  0x22   : > { %v302_v20 = vadd.f32 %v557_v9, %v263_v10  ;;  %v303_v21 = vadd.f32 %v557_v9, %v264_v11  ;;  %v304_v24 = vadd.f32 %v557_v9, %v265_v12  ;;  %v305_v25 = vadd.f32 %v557_v9, %v266_v13 }
  0x23   : > { %v306_v26 = vadd.f32 %v557_v9, %v267_v14  ;;  %v307_v27 = vadd.f32 %v557_v9, %v268_v15  ;;  %332 = vst [vmem:[%s566_s26 + $0x80] sm:$0xff] %v300_v18  ;;  %333 = vst [vmem:[%s566_s26 + $0x88] sm:$0xff] %v301_v19  ;;  %v471_v30 = vunpack.c.l.bf16 %v493_v17  ;;  %v472_v31 = vunpack.c.h.bf16 %v493_v17 }
  0x24   : > { %334 = vst [vmem:[%s566_s26 + $0x90] sm:$0xff] %v302_v20  ;;  %335 = vst [vmem:[%s566_s26 + $0x98] sm:$0xff] %v303_v21  ;;  %v475_v32 = vunpack.c.l.bf16 %v494_v22  ;;  %v476_v33 = vunpack.c.h.bf16 %v494_v22  ;;  %v479_v34 = vunpack.c.l.bf16 %v495_v23  ;;  %v480_v35 = vunpack.c.h.bf16 %v495_v23 }
  0x25   : > { %336 = vst [vmem:[%s566_s26 + $0xa0] sm:$0xff] %v304_v24  ;;  %337 = vst [vmem:[%s566_s26 + $0xa8] sm:$0xff] %v305_v25  ;;  %v269_v36 = vmul.f32 %v467_v28, %v548_v0  ;;  %v270_v37 = vmul.f32 %v468_v29, %v548_v0  ;;  %v271_v38 = vmul.f32 %v471_v30, %v548_v0 }
  0x26   : > { %338 = vst [vmem:[%s566_s26 + $0xb0] sm:$0xff] %v306_v26  ;;  %339 = vst [vmem:[%s566_s26 + $0xb8] sm:$0xff] %v307_v27  ;;  %v272_v39 = vmul.f32 %v472_v31, %v548_v0  ;;  %v273_v40 = vmul.f32 %v475_v32, %v548_v0  ;;  %v274_v41 = vmul.f32 %v476_v33, %v548_v0 }
  0x27   : > { %v275_v42 = vmul.f32 %v479_v34, %v548_v0  ;;  %v276_v43 = vmul.f32 %v480_v35, %v548_v0  ;;  %v308_v44 = vadd.f32 %v557_v9, %v269_v36  ;;  %v309_v45 = vadd.f32 %v557_v9, %v270_v37 }
  0x28   : > { %v310_v46 = vadd.f32 %v557_v9, %v271_v38  ;;  %v311_v47 = vadd.f32 %v557_v9, %v272_v39  ;;  %v312_v48 = vadd.f32 %v557_v9, %v273_v40  ;;  %v313_v49 = vadd.f32 %v557_v9, %v274_v41 }
  0x29   : > { %v314_v50 = vadd.f32 %v557_v9, %v275_v42  ;;  %v315_v51 = vadd.f32 %v557_v9, %v276_v43  ;;  %340 = vst [vmem:[%s566_s26 + $0xc0] sm:$0xff] %v308_v44  ;;  %341 = vst [vmem:[%s566_s26 + $0xc8] sm:$0xff] %v309_v45 }
  0x2a   : > { %342 = vst [vmem:[%s566_s26 + $0xd0] sm:$0xff] %v310_v46  ;;  %343 = vst [vmem:[%s566_s26 + $0xd8] sm:$0xff] %v311_v47 }
  0x2b   : > { %344 = vst [vmem:[%s566_s26 + $0xe0] sm:$0xff] %v312_v48  ;;  %345 = vst [vmem:[%s566_s26 + $0xe8] sm:$0xff] %v313_v49 }
  0x2c   : > { %346 = vst [vmem:[%s566_s26 + $0xf0] sm:$0xff] %v314_v50  ;;  %347 = vst [vmem:[%s566_s26 + $0xf8] sm:$0xff] %v315_v51 }
  0x2d PF: > { %s13_s12 = sadd.s32 1, %s510_s12  }
  0x2e   : > { %p10_p4 = scmp.ge.s32.totalorder %s13_s12, 4  }
  0x30   :  { %12 = sbr.rel (!%p10_p4) target bundleno = 1 (0x1), region = 62 }

// kernel: mynet_forward.6
= control target key start
LH: loop header
LB: loop body
LE: loop exit
PB: predicated region body
PF: predicated region fallthrough
CT: control target
= control target key end

     0   :  { %s1476_s24 = smov 0   ;;  %s1775_s0 = inlined_call_operand.vmem [shape: bf16[512,128], index: 0, kind: input, shape index: {}]   ;;  %s1776_s1 = inlined_call_operand.vmem [shape: f32[1,128], index: 1, kind: input, shape index: {}]   ;;  %s1777_s2 = inlined_call_operand.vmem [shape: f32[1,128], index: 2, kind: input, shape index: {}]   ;;  %s1778_s3 = inlined_call_operand.vmem [shape: bf16[128,128], index: 3, kind: input, shape index: {}]   ;;  %s1779_s4 = inlined_call_operand.vmem [shape: f32[1,128], index: 4, kind: input, shape index: {}]   ;;  %s1780_s5 = inlined_call_operand.vmem [shape: bf16[512,128], index: 5, kind: output, shape index: {0}]   ;;  %s1781_s6 = inlined_call_operand.vmem [shape: f32[2,1,128], index: 6, kind: output, shape index: {1}]   ;;  %s1782_s7 = inlined_call_operand.vmem [shape: f32[2,1,128], index: 7, kind: output, shape index: {2}]  }
   0x1 LB: > { %s1482_s25 = sadd.s32 4294967295, %s1434_s24   ;;  %p1068_p0 = scmp.ge.s32.totalorder %s1434_s24, 1  ;;  %s1434_s24 = sphi %s1476_s24, %s18_s24  }
   0x2   : > { %p243_p1 = scmp.lt.s32.totalorder %s1434_s24, 3 }
   0x4   : > { %p244_p2 = pnand %p1068_p0, %p243_p1 }
   0x5   : > { %v1420_v0 = vld [vmem:[%s1778_s3] sm:$0xff] (!%p244_p2)   ;;  %s1069_s28 = sshll.u32 (!%p244_p2), %s1482_s25, 5  ;;  %v1421_v1 = vld [vmem:[%s1778_s3 + $0x8] sm:$0xff] (!%p244_p2)   ;;  %v1422_v2 = vld [vmem:[%s1778_s3 + $0x10] sm:$0xff] (!%p244_p2)   ;;  %p293_p4 = scmp.lt.s32.totalorder (!%p244_p2), %s1482_s25, 1 }
   0x6   : > { %247 = sbr.rel (%p244_p2) target bundleno = 332 (0x14c), region = 40  ;;  %p282_p3 = scmp.lt.s32.totalorder (!%p244_p2), %s1069_s28, 63  ;;  %1348 = vmatprep.subr.bf16.mxu0 (!%p244_p2), %v1420_v0  ;;  %1396 = vmatprep.subr.bf16.mxu1 (!%p244_p2), %v1420_v0  ;;  %v1423_v3 = vld [vmem:[%s1778_s3 + $0x18] sm:$0xff] (!%p244_p2)   ;;  %v1513_v5 = vld [vmem:[%s1776_s1] ss:$0 sm:$0xff] (!%p244_p2)  ;;  %v1425_v22 = vld [vmem:[%s1778_s3 + $0x28] sm:$0xff] (!%p244_p2)  }
   0x7   : > { %1349 = vmatpush3.bf16.msra.mxu0 (!%p244_p2), %v1420_v0  ;;  %1404 = vmatpush3.bf16.msra.mxu1 (!%p244_p2), %v1420_v0  ;;  %v1518_v8 = vld [vmem:[%s1777_s2] ss:$0 sm:$0xff] (!%p244_p2)  ;;  %v1426_v30 = vld [vmem:[%s1778_s3 + $0x30] sm:$0xff] (!%p244_p2)   ;;  %v1427_v45 = vld [vmem:[%s1778_s3 + $0x38] sm:$0xff] (!%p244_p2)  }
   0x8   : > { %1350 = vmatprep.subr.bf16.mxu0 (!%p244_p2), %v1421_v1  ;;  %1397 = vmatprep.subr.bf16.mxu1 (!%p244_p2), %v1421_v1  ;;  %v1424_v12 = vld [vmem:[%s1778_s3 + $0x20] sm:$0xff] (!%p244_p2)  }
   0xb   : > { %1351 = vmatpush3.bf16.msra.mxu0 (!%p244_p2), %v1421_v1  ;;  %1405 = vmatpush3.bf16.msra.mxu1 (!%p244_p2), %v1421_v1 }
   0xc   : > { %1352 = vmatprep.subr.bf16.mxu0 (!%p244_p2), %v1422_v2  ;;  %1398 = vmatprep.subr.bf16.mxu1 (!%p244_p2), %v1422_v2 }
   0xd   : > { %s1784_s28 = smov (!%p282_p3, %s1069_s28), 63  ;;  %s1786_s25 = smov (!%p293_p4, %s1482_s25), 1 }
   0xe   : > { %s1070_s10 = sshll.u32 %s1784_s28, 2  ;;  %s295_s14 = scalar_lea.vmem %s1781_s6, %s1786_s25 }
   0xf   : > { %s1504_s13 = scalar_lea.vmem %s1775_s0, %s1070_s10  ;;  %1353 = vmatpush3.bf16.msra.mxu0 %v1422_v2  ;;  %1406 = vmatpush3.bf16.msra.mxu1 %v1422_v2  ;;  %s298_s17 = scalar_lea.vmem %s1782_s7, %s1786_s25 }
  0x10   : > { %v1151_v4 = vld [vmem:[%s1504_s13] sm:$0xff]   ;;  %v1294_v11 = vld [vmem:[%s1504_s13 + $0x8] sm:$0xff]   ;;  %1354 = vmatprep.subr.bf16.mxu0 %v1423_v3  ;;  %v1295_v13 = vld [vmem:[%s1504_s13 + $0x10] sm:$0xff]   ;;  %1399 = vmatprep.subr.bf16.mxu1 %v1423_v3 }
  0x11   : > { %v1152_v6 = vunpack.c.l.bf16 %v1151_v4  ;;  %v1153_v7 = vunpack.c.h.bf16 %v1151_v4  ;;  %v1156_v16 = vunpack.c.l.bf16 %v1294_v11  ;;  %v1296_v17 = vld [vmem:[%s1504_s13 + $0x18] sm:$0xff]   ;;  %v1157_v19 = vunpack.c.h.bf16 %v1294_v11  ;;  %v1301_v24 = vld [vmem:[%s1504_s13 + $0x40] sm:$0xff]   ;;  %v1302_v32 = vld [vmem:[%s1504_s13 + $0x48] sm:$0xff]  }
  0x12   : > { %v1160_v20 = vunpack.c.l.bf16 %v1295_v13  ;;  %v1161_v21 = vunpack.c.h.bf16 %v1295_v13  ;;  %v1164_v23 = vunpack.c.l.bf16 %v1296_v17  ;;  %v1165_v26 = vunpack.c.h.bf16 %v1296_v17  ;;  %v1297_v34 = vld [vmem:[%s1504_s13 + $0x20] sm:$0xff]   ;;  %v1303_v39 = vld [vmem:[%s1504_s13 + $0x50] sm:$0xff]   ;;  %v1304_v44 = vld [vmem:[%s1504_s13 + $0x58] sm:$0xff]  }
  0x13   : > { %v371_v9 = vmul.f32 %v1152_v6, %v1513_v5  ;;  %v372_v10 = vmul.f32 %v1153_v7, %v1513_v5  ;;  %1355 = vmatpush3.bf16.msra.mxu0 %v1423_v3  ;;  %1407 = vmatpush3.bf16.msra.mxu1 %v1423_v3  ;;  %v373_v25 = vmul.f32 %v1156_v16, %v1513_v5  ;;  %v1184_v31 = vunpack.c.l.bf16 %v1301_v24  ;;  %v1305_v50 = vld [vmem:[%s1504_s13 + $0x60] sm:$0xff]   ;;  %v1298_v6 = vld [vmem:[%s1504_s13 + $0x28] sm:$0xff]   ;;  %v1299_v11 = vld [vmem:[%s1504_s13 + $0x30] sm:$0xff]  }
  0x14   : > { %1356 = vmatprep.subr.bf16.mxu0 %v1424_v12  ;;  %1400 = vmatprep.subr.bf16.mxu1 %v1424_v12  ;;  %v374_v27 = vmul.f32 %v1157_v19, %v1513_v5  ;;  %v375_v28 = vmul.f32 %v1160_v20, %v1513_v5  ;;  %v376_v29 = vmul.f32 %v1161_v21, %v1513_v5  ;;  %v1185_v37 = vunpack.c.h.bf16 %v1301_v24 }
  0x15   : > { %v410_v14 = vadd.f32 %v1518_v8, %v371_v9  ;;  %v411_v15 = vadd.f32 %v1518_v8, %v372_v10  ;;  %v377_v33 = vmul.f32 %v1164_v23, %v1513_v5  ;;  %v1545_v35 = vadd.f32 %v1518_v8, %v373_v25  ;;  %v1307_v23 = vld [vmem:[%s1504_s13 + $0x70] sm:$0xff]  }
  0x16   : > { %v378_v36 = vmul.f32 %v1165_v26, %v1513_v5  ;;  %v387_v38 = vmul.f32 %v1184_v31, %v1513_v5  ;;  %v413_v40 = vadd.f32 %v1518_v8, %v374_v27  ;;  %v1552_v41 = vadd.f32 %v1518_v8, %v375_v28 }
  0x17   : > { %v442_v18 = vpack.c.bf16 %v411_v15, %v410_v14  ;;  %1357 = vmatpush3.bf16.msra.mxu0 %v1424_v12  ;;  %1408 = vmatpush3.bf16.msra.mxu1 %v1424_v12  ;;  %v1555_v42 = vadd.f32 %v1518_v8, %v376_v29  ;;  %v1188_v43 = vunpack.c.l.bf16 %v1302_v32  ;;  %v1168_v46 = vunpack.c.l.bf16 %v1297_v34 }
  0x18   : > { %1358 = vmatprep.subr.bf16.mxu0 %v1425_v22  ;;  %1401 = vmatprep.subr.bf16.mxu1 %v1425_v22  ;;  %v388_v47 = vmul.f32 %v1185_v37, %v1513_v5  ;;  %v426_v48 = vadd.f32 %v1518_v8, %v387_v38  ;;  %v1189_v49 = vunpack.c.h.bf16 %v1302_v32  ;;  %v1169_v51 = vunpack.c.h.bf16 %v1297_v34 }
  0x19   : > { %1364 = vmatprep.mubr.bf16.mxu0 %v442_v18  ;;  %v389_v52 = vmul.f32 %v1188_v43, %v1513_v5  ;;  %v1192_v53 = vunpack.c.l.bf16 %v1303_v39  ;;  %v1193_v54 = vunpack.c.h.bf16 %v1303_v39  ;;  %v1196_v57 = vunpack.c.l.bf16 %v1304_v44  ;;  %v1306_v18 = vld [vmem:[%s1504_s13 + $0x68] sm:$0xff]  }
  0x1a   : > { %v427_v55 = vadd.f32 %v1518_v8, %v388_v47  ;;  %v390_v56 = vmul.f32 %v1189_v49, %v1513_v5  ;;  %v1197_v58 = vunpack.c.h.bf16 %v1304_v44  ;;  %v1200_v62 = vunpack.c.l.bf16 %v1305_v50  ;;  %v1308_v49 = vld [vmem:[%s1504_s13 + $0x78] sm:$0xff]  }
  0x1b   : > { %1359 = vmatpush3.bf16.msra.mxu0 %v1425_v22  ;;  %1409 = vmatpush3.bf16.msra.mxu1 %v1425_v22  ;;  %v428_v59 = vadd.f32 %v1518_v8, %v389_v52  ;;  %v391_v60 = vmul.f32 %v1192_v53, %v1513_v5  ;;  %v392_v61 = vmul.f32 %v1193_v54, %v1513_v5  ;;  %v1201_v2 = vunpack.c.h.bf16 %v1305_v50 }
  0x1c   : > { %1360 = vmatprep.subr.bf16.mxu0 %v1426_v30  ;;  %1402 = vmatprep.subr.bf16.mxu1 %v1426_v30  ;;  %v443_v63 = vpack.c.bf16 %v413_v40, %v1545_v35  ;;  %v450_v0 = vpack.c.bf16 %v427_v55, %v426_v48  ;;  %v429_v1 = vadd.f32 %v1518_v8, %v390_v56  ;;  %v1172_v21 = vunpack.c.l.bf16 %v1298_v6  ;;  %v1300_v40 = vld [vmem:[%s1504_s13 + $0x38] sm:$0xff]   ;;  %s1642_s13 = scalar_lea.vmem %s1780_s5, %s1070_s10 }
  0x1d   : > { %v379_v3 = vmul.f32 %v1168_v46, %v1513_v5  ;;  %v380_v4 = vmul.f32 %v1169_v51, %v1513_v5  ;;  %v430_v7 = vadd.f32 %v1518_v8, %v391_v60  ;;  %v431_v9 = vadd.f32 %v1518_v8, %v392_v61 }
  0x1e   : > { %v444_v10 = vpack.c.bf16 %v1555_v42, %v1552_v41  ;;  %1380 = vmatprep.mubr.bf16.mxu1 %v450_v0  ;;  %v451_v12 = vpack.c.bf16 %v429_v1, %v428_v59  ;;  %v393_v13 = vmul.f32 %v1196_v57, %v1513_v5  ;;  %v394_v14 = vmul.f32 %v1197_v58, %v1513_v5 }
  0x1f   : > { %1361 = vmatpush3.bf16.msra.mxu0 %v1426_v30  ;;  %1410 = vmatpush3.bf16.msra.mxu1 %v1426_v30  ;;  %v452_v15 = vpack.c.bf16 %v431_v9, %v430_v7  ;;  %v395_v16 = vmul.f32 %v1200_v62, %v1513_v5  ;;  %v396_v17 = vmul.f32 %v1201_v2, %v1513_v5  ;;  %v1173_v22 = vunpack.c.h.bf16 %v1298_v6 }
  0x20   : > { %1362 = vmatprep.subr.bf16.mxu0 %v1427_v45  ;;  %1403 = vmatprep.subr.bf16.mxu1 %v1427_v45  ;;  %v416_v19 = vadd.f32 %v1518_v8, %v377_v33  ;;  %v417_v20 = vadd.f32 %v1518_v8, %v378_v36  ;;  %v418_v24 = vadd.f32 %v1518_v8, %v379_v3  ;;  %v1176_v26 = vunpack.c.l.bf16 %v1299_v11 }
  0x21   : > { %v419_v25 = vadd.f32 %v1518_v8, %v380_v4  ;;  %v1177_v27 = vunpack.c.h.bf16 %v1299_v11  ;;  %v432_v28 = vadd.f32 %v1518_v8, %v393_v13  ;;  %v433_v29 = vadd.f32 %v1518_v8, %v394_v14 }
  0x22   : > { %v1204_v30 = vunpack.c.l.bf16 %v1306_v18  ;;  %v1205_v31 = vunpack.c.h.bf16 %v1306_v18  ;;  %v434_v32 = vadd.f32 %v1518_v8, %v395_v16  ;;  %v435_v33 = vadd.f32 %v1518_v8, %v396_v17 }
  0x23   : > { %1363 = vmatpush3.bf16.msra.mxu0 %v1427_v45  ;;  %1411 = vmatpush3.bf16.msra.mxu1 %v1427_v45  ;;  %v1208_v34 = vunpack.c.l.bf16 %v1307_v23  ;;  %v1209_v35 = vunpack.c.h.bf16 %v1307_v23  ;;  %v445_v36 = vpack.c.bf16 %v417_v20, %v416_v19  ;;  %v381_v37 = vmul.f32 %v1172_v21, %v1513_v5 }
  0x24   : > { %v382_v38 = vmul.f32 %v1173_v22, %v1513_v5  ;;  %v383_v39 = vmul.f32 %v1176_v26, %v1513_v5  ;;  %v384_v41 = vmul.f32 %v1177_v27, %v1513_v5  ;;  %v453_v42 = vpack.c.bf16 %v433_v29, %v432_v28 }
  0x25   : > { %v397_v43 = vmul.f32 %v1204_v30, %v1513_v5  ;;  %v398_v44 = vmul.f32 %v1205_v31, %v1513_v5  ;;  %v446_v45 = vpack.c.bf16 %v419_v25, %v418_v24  ;;  %v454_v46 = vpack.c.bf16 %v435_v33, %v434_v32 }
  0x26   : > { %1365 = vmatmul.mubr.bf16.vlgmr.msra.gmra.mrb[0].mxu0 %v443_v63  ;;  %1381 = vmatmul.mubr.bf16.vlgmr.msra.gmra.mrb[0].mxu1 %v451_v12  ;;  %v399_v47 = vmul.f32 %v1208_v34, %v1513_v5  ;;  %v400_v48 = vmul.f32 %v1209_v35, %v1513_v5  ;;  %v1180_v50 = vunpack.c.l.bf16 %v1300_v40  ;;  %v420_v51 = vadd.f32 %v1518_v8, %v381_v37 }
  0x27   : > { %1368 = vmatprep.mubr.bf16.mxu0 %v444_v10  ;;  %1384 = vmatprep.mubr.bf16.mxu1 %v452_v15  ;;  %v421_v52 = vadd.f32 %v1518_v8, %v382_v38  ;;  %v422_v53 = vadd.f32 %v1518_v8, %v383_v39  ;;  %v1181_v54 = vunpack.c.h.bf16 %v1300_v40  ;;  %v436_v55 = vadd.f32 %v1518_v8, %v397_v43 }
  0x28   : > { %v437_v56 = vadd.f32 %v1518_v8, %v398_v44  ;;  %v1212_v57 = vunpack.c.l.bf16 %v1308_v49  ;;  %v1213_v58 = vunpack.c.h.bf16 %v1308_v49  ;;  %v423_v59 = vadd.f32 %v1518_v8, %v384_v41 }
  0x29   : > { %v438_v60 = vadd.f32 %v1518_v8, %v399_v47  ;;  %v439_v61 = vadd.f32 %v1518_v8, %v400_v48  ;;  %v385_v62 = vmul.f32 %v1180_v50, %v1513_v5  ;;  %v386_v63 = vmul.f32 %v1181_v54, %v1513_v5 }
  0x2a   : > { %v447_v0 = vpack.c.bf16 %v421_v52, %v420_v51  ;;  %v455_v1 = vpack.c.bf16 %v437_v56, %v436_v55  ;;  %v401_v2 = vmul.f32 %v1212_v57, %v1513_v5  ;;  %v402_v3 = vmul.f32 %v1213_v58, %v1513_v5  ;;  %v1623_v5 = vld [vmem:[%s1779_s4] ss:$0 sm:$0xff] }
  0x2b   : > { %v448_v4 = vpack.c.bf16 %v423_v59, %v422_v53  ;;  %v456_v6 = vpack.c.bf16 %v439_v61, %v438_v60  ;;  %v424_v7 = vadd.f32 %v1518_v8, %v385_v62  ;;  %v425_v9 = vadd.f32 %v1518_v8, %v386_v63 }
  0x2c   : > { %v440_v10 = vadd.f32 %v1518_v8, %v401_v2  ;;  %v441_v11 = vadd.f32 %v1518_v8, %v402_v3 }
  0x2d   : > { %v449_v12 = vpack.c.bf16 %v425_v9, %v424_v7 }
  0x2e   : > { %1369 = vmatmul.mubr.bf16.gmra.mrb[4].mxu0 %v445_v36  ;;  %1385 = vmatmul.mubr.bf16.gmra.mrb[4].mxu1 %v453_v42  ;;  %v457_v13 = vpack.c.bf16 %v441_v11, %v440_v10 }
  0x2f   : > { %1372 = vmatprep.mubr.bf16.mxu0 %v446_v45  ;;  %1388 = vmatprep.mubr.bf16.mxu1 %v454_v46 }
  0x36   : > { %1373 = vmatmul.mubr.bf16.gmra.mrb[8].mxu0 %v447_v0  ;;  %1389 = vmatmul.mubr.bf16.gmra.mrb[8].mxu1 %v455_v1 }
  0x37   : > { %1376 = vmatprep.mubr.bf16.mxu0 %v448_v4  ;;  %1392 = vmatprep.mubr.bf16.mxu1 %v456_v6 }
  0x3e   : > { %1377 = vmatmul.mubr.bf16.gmra.mrb[12].mxu0 %v449_v12  ;;  %1393 = vmatmul.mubr.bf16.gmra.mrb[12].mxu1 %v457_v13 }
  0xf9   : > { %v1366_v14 = vpop.f32.mrb[0].mxu0  ;;  %v1382_v15 = vpop.f32.mrb[0].mxu1 }
  0xfa   : > { %v563_v16 = vpop.f32.mrb[1].mxu0  ;;  %v1626_v17 = vadd.f32 %v1382_v15, %v1623_v5  ;;  %v627_v18 = vpop.f32.mrb[1].mxu1  ;;  %v572_v22 = vadd.f32 %v1366_v14, %v1623_v5 }
  0xfb   : > { %v564_v8 = vadd.f32 %v1623_v5, %v563_v16  ;;  %v1367_v19 = vpop.f32.mrb[2].mxu0  ;;  %v1630_v20 = vadd.f32 %v1623_v5, %v627_v18  ;;  %v1383_v21 = vpop.f32.mrb[2].mxu1 }
  0xfc   : > { %v575_v23 = vadd.f32 %v1367_v19, %v1623_v5  ;;  %v566_v24 = vpop.f32.mrb[3].mxu0  ;;  %v1635_v25 = vadd.f32 %v1383_v21, %v1623_v5  ;;  %v630_v26 = vpop.f32.mrb[3].mxu1  ;;  %v890_v36 = vmul.f32 %v572_v22, %v572_v22 }
  0xfd   : > { %v567_v27 = vadd.f32 %v1623_v5, %v566_v24  ;;  %v1646_v28 = vadd.f32 %v1623_v5, %v630_v26  ;;  %v888_v29 = vmul.f32 %v564_v8, %v564_v8 }
  0xfe   : > { %v1222_v30 = vpack.c.bf16 %v575_v23, %v572_v22  ;;  %v1262_v31 = vpack.c.bf16 %v1635_v25, %v1626_v17  ;;  %v891_v44 = vmul.f32 %v575_v23, %v575_v23 }
  0xff   : > { %v1217_v32 = vpack.c.bf16 %v567_v27, %v564_v8  ;;  %v850_v33 = vadd.f32 %v567_v27, %v564_v8  ;;  %v889_v34 = vmul.f32 %v567_v27, %v567_v27  ;;  %v1257_v35 = vpack.c.bf16 %v1646_v28, %v1630_v20 }
 0x100   : > { %1309 = vst [vmem:[%s1642_s13 + $0x8] sm:$0xff] %v1222_v30   ;;  %1317 = vst [vmem:[%s1642_s13 + $0x48] sm:$0xff] %v1262_v31  }
 0x101   : > { %1218 = vst [vmem:[%s1642_s13] sm:$0xff] %v1217_v32   ;;  %v851_v37 = vadd.f32 %v850_v33, %v572_v22  ;;  %v920_v38 = vadd.f32 %v889_v34, %v888_v29  ;;  %v1370_v39 = vpop.f32.mrb[4].mxu0  ;;  %1316 = vst [vmem:[%s1642_s13 + $0x40] sm:$0xff] %v1257_v35   ;;  %v1386_v40 = vpop.f32.mrb[4].mxu1 }
 0x102   : > { %v579_v41 = vpop.f32.mrb[5].mxu0  ;;  %v1657_v42 = vadd.f32 %v1386_v40, %v1623_v5  ;;  %v643_v43 = vpop.f32.mrb[5].mxu1  ;;  %v588_v50 = vadd.f32 %v1370_v39, %v1623_v5 }
 0x103   : > { %v921_v45 = vadd.f32 %v920_v38, %v890_v36  ;;  %v580_v46 = vadd.f32 %v1623_v5, %v579_v41  ;;  %v852_v47 = vadd.f32 %v851_v37, %v575_v23  ;;  %v1371_v48 = vpop.f32.mrb[6].mxu0  ;;  %v1387_v49 = vpop.f32.mrb[6].mxu1  ;;  %v1667_v60 = vadd.f32 %v1623_v5, %v643_v43 }
 0x104   : > { %v591_v51 = vadd.f32 %v1371_v48, %v1623_v5  ;;  %v582_v52 = vpop.f32.mrb[7].mxu0  ;;  %v1663_v53 = vadd.f32 %v1387_v49, %v1623_v5  ;;  %v646_v54 = vpop.f32.mrb[7].mxu1  ;;  %v894_v3 = vmul.f32 %v588_v50, %v588_v50 }
 0x105   : > { %v853_v55 = vadd.f32 %v852_v47, %v580_v46  ;;  %v892_v56 = vmul.f32 %v580_v46, %v580_v46  ;;  %v922_v57 = vadd.f32 %v921_v45, %v891_v44  ;;  %v583_v58 = vadd.f32 %v1623_v5, %v582_v52 }
 0x106   : > { %v1232_v59 = vpack.c.bf16 %v591_v51, %v588_v50  ;;  %v1272_v61 = vpack.c.bf16 %v1663_v53, %v1657_v42  ;;  %v1674_v2 = vadd.f32 %v1623_v5, %v646_v54  ;;  %v895_v14 = vmul.f32 %v591_v51, %v591_v51 }
 0x107   : > { %v923_v62 = vadd.f32 %v922_v57, %v892_v56  ;;  %v1227_v63 = vpack.c.bf16 %v583_v58, %v580_v46  ;;  %v854_v0 = vadd.f32 %v853_v55, %v583_v58  ;;  %v893_v1 = vmul.f32 %v583_v58, %v583_v58 }
 0x108   : > { %1311 = vst [vmem:[%s1642_s13 + $0x18] sm:$0xff] %v1232_v59   ;;  %1319 = vst [vmem:[%s1642_s13 + $0x58] sm:$0xff] %v1272_v61   ;;  %v1267_v11 = vpack.c.bf16 %v1674_v2, %v1667_v60 }
 0x109   : > { %1310 = vst [vmem:[%s1642_s13 + $0x10] sm:$0xff] %v1227_v63   ;;  %v855_v4 = vadd.f32 %v854_v0, %v588_v50  ;;  %v924_v6 = vadd.f32 %v923_v62, %v893_v1  ;;  %v1374_v7 = vpop.f32.mrb[8].mxu0  ;;  %v1390_v9 = vpop.f32.mrb[8].mxu1 }
 0x10a   : > { %v595_v10 = vpop.f32.mrb[9].mxu0  ;;  %v1680_v12 = vadd.f32 %v1390_v9, %v1623_v5  ;;  %v659_v13 = vpop.f32.mrb[9].mxu1  ;;  %v604_v21 = vadd.f32 %v1374_v7, %v1623_v5  ;;  %1318 = vst [vmem:[%s1642_s13 + $0x50] sm:$0xff] %v1267_v11  }
 0x10b   : > { %v925_v15 = vadd.f32 %v924_v6, %v894_v3  ;;  %v596_v16 = vadd.f32 %v1623_v5, %v595_v10  ;;  %v856_v18 = vadd.f32 %v855_v4, %v591_v51  ;;  %v1375_v8 = vpop.f32.mrb[10].mxu0  ;;  %v1391_v19 = vpop.f32.mrb[10].mxu1  ;;  %v1691_v33 = vadd.f32 %v1623_v5, %v659_v13 }
 0x10c   : > { %v607_v22 = vadd.f32 %v1375_v8, %v1623_v5  ;;  %v598_v23 = vpop.f32.mrb[11].mxu0  ;;  %v1687_v24 = vadd.f32 %v1391_v19, %v1623_v5  ;;  %v662_v26 = vpop.f32.mrb[11].mxu1  ;;  %v898_v40 = vmul.f32 %v604_v21, %v604_v21 }
 0x10d   : > { %v857_v27 = vadd.f32 %v856_v18, %v596_v16  ;;  %v896_v29 = vmul.f32 %v596_v16, %v596_v16  ;;  %v926_v30 = vadd.f32 %v925_v15, %v895_v14  ;;  %v599_v31 = vadd.f32 %v1623_v5, %v598_v23 }
 0x10e   : > { %v1242_v32 = vpack.c.bf16 %v607_v22, %v604_v21  ;;  %v1282_v34 = vpack.c.bf16 %v1687_v24, %v1680_v12  ;;  %v1698_v39 = vadd.f32 %v1623_v5, %v662_v26  ;;  %v899_v50 = vmul.f32 %v607_v22, %v607_v22 }
 0x10f   : > { %v927_v35 = vadd.f32 %v926_v30, %v896_v29  ;;  %v1237_v36 = vpack.c.bf16 %v599_v31, %v596_v16  ;;  %v858_v37 = vadd.f32 %v857_v27, %v599_v31  ;;  %v897_v38 = vmul.f32 %v599_v31, %v599_v31 }
 0x110   : > { %1313 = vst [vmem:[%s1642_s13 + $0x28] sm:$0xff] %v1242_v32   ;;  %1321 = vst [vmem:[%s1642_s13 + $0x68] sm:$0xff] %v1282_v34   ;;  %v1277_v47 = vpack.c.bf16 %v1698_v39, %v1691_v33  ;;  %v904_v23 = vmul.f32 %v1630_v20, %v1630_v20  ;;  %v906_v31 = vmul.f32 %v1626_v17, %v1626_v17 }
 0x111   : > { %1312 = vst [vmem:[%s1642_s13 + $0x20] sm:$0xff] %v1237_v36   ;;  %v859_v41 = vadd.f32 %v858_v37, %v604_v21  ;;  %v928_v43 = vadd.f32 %v927_v35, %v897_v38  ;;  %v1378_v44 = vpop.f32.mrb[12].mxu0  ;;  %v1394_v45 = vpop.f32.mrb[12].mxu1  ;;  %v907_v35 = vmul.f32 %v1635_v25, %v1635_v25 }
 0x112   : > { %v611_v46 = vpop.f32.mrb[13].mxu0  ;;  %v1704_v48 = vadd.f32 %v1394_v45, %v1623_v5  ;;  %v675_v49 = vpop.f32.mrb[13].mxu1  ;;  %v620_v57 = vadd.f32 %v1378_v44, %v1623_v5  ;;  %1320 = vst [vmem:[%s1642_s13 + $0x60] sm:$0xff] %v1277_v47  }
 0x113   : > { %v929_v51 = vadd.f32 %v928_v43, %v898_v40  ;;  %v612_v52 = vadd.f32 %v1623_v5, %v611_v46  ;;  %v860_v54 = vadd.f32 %v859_v41, %v607_v22  ;;  %v1379_v55 = vpop.f32.mrb[14].mxu0  ;;  %v1395_v56 = vpop.f32.mrb[14].mxu1  ;;  %v676_v6 = vadd.f32 %v1623_v5, %v675_v49 }
 0x114   : > { %v623_v58 = vadd.f32 %v1379_v55, %v1623_v5  ;;  %v614_v59 = vpop.f32.mrb[15].mxu0  ;;  %v1711_v61 = vadd.f32 %v1395_v56, %v1623_v5  ;;  %v678_v62 = vpop.f32.mrb[15].mxu1  ;;  %v902_v15 = vmul.f32 %v620_v57, %v620_v57  ;;  %v909_v43 = vmul.f32 %v1674_v2, %v1674_v2 }
 0x115   : > { %v861_v63 = vadd.f32 %v860_v54, %v612_v52  ;;  %v900_v0 = vmul.f32 %v612_v52, %v612_v52  ;;  %v930_v1 = vadd.f32 %v929_v51, %v899_v50  ;;  %v615_v3 = vadd.f32 %v1623_v5, %v614_v59 }
 0x116   : > { %v1252_v4 = vpack.c.bf16 %v623_v58, %v620_v57  ;;  %v1292_v7 = vpack.c.bf16 %v1711_v61, %v1704_v48  ;;  %v679_v14 = vadd.f32 %v1623_v5, %v678_v62  ;;  %v903_v19 = vmul.f32 %v623_v58, %v623_v58 }
 0x117   : > { %v931_v9 = vadd.f32 %v930_v1, %v900_v0  ;;  %v1247_v10 = vpack.c.bf16 %v615_v3, %v612_v52  ;;  %v862_v11 = vadd.f32 %v861_v63, %v615_v3  ;;  %v901_v13 = vmul.f32 %v615_v3, %v615_v3 }
 0x118   : > { %1315 = vst [vmem:[%s1642_s13 + $0x38] sm:$0xff] %v1252_v4   ;;  %1323 = vst [vmem:[%s1642_s13 + $0x78] sm:$0xff] %v1292_v7   ;;  %v1287_v8 = vpack.c.bf16 %v679_v14, %v676_v6  ;;  %v905_v5 = vmul.f32 %v1646_v28, %v1646_v28  ;;  %v913_v52 = vmul.f32 %v1698_v39, %v1698_v39 }
 0x119   : > { %1314 = vst [vmem:[%s1642_s13 + $0x30] sm:$0xff] %v1247_v10   ;;  %v863_v16 = vadd.f32 %v862_v11, %v620_v57  ;;  %v932_v18 = vadd.f32 %v931_v9, %v901_v13  ;;  %v916_v57 = vmul.f32 %v676_v6, %v676_v6  ;;  %v918_v0 = vmul.f32 %v1704_v48, %v1704_v48 }
 0x11a   : > { %1322 = vst [vmem:[%s1642_s13 + $0x70] sm:$0xff] %v1287_v8   ;;  %v919_v3 = vmul.f32 %v1711_v61, %v1711_v61 }
 0x11b   : > { %v933_v21 = vadd.f32 %v932_v18, %v902_v15  ;;  %v864_v22 = vadd.f32 %v863_v16, %v623_v58 }
 0x11d   : > { %v865_v26 = vadd.f32 %v864_v22, %v1630_v20  ;;  %v934_v27 = vadd.f32 %v933_v21, %v903_v19  ;;  %v908_v20 = vmul.f32 %v1667_v60, %v1667_v60 }
 0x11f   : > { %v935_v29 = vadd.f32 %v934_v27, %v904_v23  ;;  %v866_v30 = vadd.f32 %v865_v26, %v1646_v28 }
 0x121   : > { %v867_v32 = vadd.f32 %v866_v30, %v1626_v17  ;;  %v936_v34 = vadd.f32 %v935_v29, %v905_v5  ;;  %v910_v17 = vmul.f32 %v1657_v42, %v1657_v42 }
 0x123   : > { %v937_v36 = vadd.f32 %v936_v34, %v906_v31  ;;  %v868_v37 = vadd.f32 %v867_v32, %v1635_v25  ;;  %v911_v25 = vmul.f32 %v1663_v53, %v1663_v53 }
 0x125   : > { %v869_v38 = vadd.f32 %v868_v37, %v1667_v60  ;;  %v938_v40 = vadd.f32 %v937_v36, %v907_v35  ;;  %v912_v60 = vmul.f32 %v1691_v33, %v1691_v33 }
 0x127   : > { %v939_v41 = vadd.f32 %v938_v40, %v908_v20  ;;  %v870_v28 = vadd.f32 %v869_v38, %v1674_v2 }
 0x129   : > { %v871_v44 = vadd.f32 %v870_v28, %v1657_v42  ;;  %v940_v45 = vadd.f32 %v939_v41, %v909_v43  ;;  %v914_v42 = vmul.f32 %v1680_v12, %v1680_v12 }
 0x12b   : > { %v941_v46 = vadd.f32 %v940_v45, %v910_v17  ;;  %v872_v47 = vadd.f32 %v871_v44, %v1663_v53  ;;  %v915_v53 = vmul.f32 %v1687_v24, %v1687_v24 }
 0x12d   : > { %v873_v49 = vadd.f32 %v872_v47, %v1691_v33  ;;  %v942_v50 = vadd.f32 %v941_v46, %v911_v25 }
 0x12f   : > { %v943_v51 = vadd.f32 %v942_v50, %v912_v60  ;;  %v874_v2 = vadd.f32 %v873_v49, %v1698_v39  ;;  %v917_v39 = vmul.f32 %v679_v14, %v679_v14 }
 0x131   : > { %v875_v54 = vadd.f32 %v874_v2, %v1680_v12  ;;  %v944_v55 = vadd.f32 %v943_v51, %v913_v52 }
 0x133   : > { %v945_v56 = vadd.f32 %v944_v55, %v914_v42  ;;  %v876_v33 = vadd.f32 %v875_v54, %v1687_v24 }
 0x135   : > { %v877_v58 = vadd.f32 %v876_v33, %v676_v6  ;;  %v946_v59 = vadd.f32 %v945_v56, %v915_v53 }
 0x137   : > { %v947_v62 = vadd.f32 %v946_v59, %v916_v57  ;;  %v878_v63 = vadd.f32 %v877_v58, %v679_v14 }
 0x139   : > { %v879_v12 = vadd.f32 %v878_v63, %v1704_v48  ;;  %v948_v1 = vadd.f32 %v947_v62, %v917_v39 }
 0x13b   : > { %v880_v4 = vadd.f32 %v879_v12, %v1711_v61  ;;  %v949_v7 = vadd.f32 %v948_v1, %v918_v0 }
 0x13d   : > { %v881_v24 = vrot.slane %v880_v4, 4  ;;  %v950_v9 = vadd.f32 %v949_v7, %v919_v3 }
 0x13f   : > { %v882_v6 = vadd.f32 %v881_v24, %v880_v4  ;;  %v951_v10 = vrot.slane %v950_v9, 4 }
 0x141   : > { %v883_v11 = vrot.slane %v882_v6, 2  ;;  %v952_v13 = vadd.f32 %v951_v10, %v950_v9 }
 0x143   : > { %v884_v14 = vadd.f32 %v883_v11, %v882_v6  ;;  %v953_v15 = vrot.slane %v952_v13, 2 }
 0x145   : > { %v885_v16 = vrot.slane %v884_v14, 1  ;;  %v954_v18 = vadd.f32 %v953_v15, %v952_v13 }
 0x147   : > { %v886_v48 = vadd.f32 %v885_v16, %v884_v14  ;;  %v955_v8 = vrot.slane %v954_v18, 1 }
 0x149   : > { %887 = vst [vmem:[%s295_s14] sm:$0x1] %v886_v48  ;;  %v956_v61 = vadd.f32 %v955_v8, %v954_v18 }
 0x14b   : > { %957 = vst [vmem:[%s298_s17] sm:$0x1] %v956_v61 }
 0x14c PF: > { %s18_s24 = sadd.s32 1, %s1434_s24  }
 0x14d   : > { %p15_p5 = scmp.ge.s32.totalorder %s18_s24, 4  }
 0x14f   :  { %17 = sbr.rel (!%p15_p5) target bundleno = 1 (0x1), region = 94 }

// kernel: mynet_forward.4
= control target key start
LH: loop header
LB: loop body
LE: loop exit
PB: predicated region body
PF: predicated region fallthrough
CT: control target
= control target key end

     0   :  { %s6896_s18 = smov 0   ;;  %s8706_s0 = inlined_call_operand.vmem [shape: bf16[2,18,18,4], index: 0, kind: input, shape index: {}]   ;;  %s8707_s1 = inlined_call_operand.vmem [shape: bf16[9,4,128], index: 1, kind: input, shape index: {}]   ;;  %s8708_s2 = inlined_call_operand.vmem [shape: f32[1,128], index: 2, kind: input, shape index: {}]   ;;  %s8709_s3 = inlined_call_operand.vmem [shape: bf16[2,16,16,128], index: 3, kind: output, shape index: {0}]   ;;  %s8710_s4 = inlined_call_operand.vmem [shape: f32[2,1,128], index: 4, kind: output, shape index: {1}]   ;;  %s8711_s5 = inlined_call_operand.vmem [shape: f32[2,1,128], index: 5, kind: output, shape index: {2}]  }
   0x1 LB: > { %s5310_s19 = sadd.s32 4294967295, %s6864_s18   ;;  %p5314_p0 = scmp.ge.s32.totalorder %s6864_s18, 1  ;;  %s6864_s18 = sphi %s6896_s18, %s16_s18  }
   0x2   : > { %p192_p1 = scmp.lt.s32.totalorder %s6864_s18, 3 }
   0x4   : > { %p193_p2 = pnand %p5314_p0, %p192_p1 }
   0x6   : > { %196 = sbr.rel (%p193_p2) target bundleno = 614 (0x266), region = 32 }
   0xd   : > { %v5318_v0 = vld [vmem:[%s8707_s1 + $0x2] sm:$0x3]  ;;  %vm778_vm0 = vcmask 1041408   ;;  %v5545_v1 = vld [vmem:[%s8707_s1 + $0x8] sm:$0x3]  ;;  %p226_p3 = scmp.lt.s32.totalorder %s5310_s19, 1 }
   0xe   : > { %6734 = vmatprep.subr.msk.bf16.mxu1 %vm778_vm0, %v5318_v0  ;;  %6738 = vmatprep.subr.msk.bf16.mxu0 %vm778_vm0, %v5545_v1  ;;  %v780_v2 = vsel %vm778_vm0, %v5318_v0, 0  ;;  %v6914_v3 = vsel %vm778_vm0, %v5545_v1, 0  ;;  %v275_v4 = vld [vmem:[%s8707_s1] sm:$0x3]  ;;  %v5610_v5 = vld [vmem:[%s8707_s1 + $0xa] sm:$0x3] }
   0xf   : > { %8725 = vst [vmem:[#allocation2_spill] sm:$0xff] %v6914_v3  ;;  %6171 = vmatpush3.bf16.msra.mxu1 %v780_v2  ;;  %6307 = vmatpush3.bf16.msra.mxu0 %v6914_v3  ;;  %s8780_s19 = smov (!%p226_p3, %s5310_s19), 1  ;;  %vm292_vm1 = vsmask.f32 3328  ;;  %vm293_vm2 = vsmask.f32 7440 }
  0x10   : > { %6735 = vmatprep.subr.msk.bf16.mxu1 %vm778_vm0, %v275_v4  ;;  %6740 = vmatprep.subr.msk.bf16.mxu0 %vm778_vm0, %v5610_v5  ;;  %s6744_s28 = smul.u32 216, %s8780_s19  ;;  %vm729_vm3 = vcmask 31744   ;;  %v6944_v17 = vsel %vm778_vm0, %v275_v4, 0  ;;  %v6950_v26 = vld [vmem:[%s8707_s1 + $0xc] sm:$0x3]  ;;  %vm6957_vm4 = vmor %vm292_vm1, %vm293_vm2  ;;  %v6963_v37 = vsel %vm778_vm0, %v5610_v5, 0  ;;  %s241_s9 = scalar_lea.vmem %s8711_s5, %s8780_s19 }
  0x11   : > { %v6967_v41 = vsel %vm778_vm0, %v6950_v26, 0  ;;  %vm1283_vm5 = vcmask 1042432   ;;  %vm1284_vm6 = vcmask 1046532   ;;  %s5889_s25 = sshll.u32 %s8780_s19, 7 }
  0x12   : > { %s6931_s6 = scalar_lea.vmem %s8706_s0, %s6744_s28  ;;  %vm7183_vm7 = vmor %vm1283_vm5, %vm1284_vm6  ;;  %s8636_s28 = scalar_lea.vmem %s8709_s3, %s5889_s25 }
  0x13   : > { %v243_v6 = vld [vmem:[%s6931_s6] sm:$0xf]  ;;  %v244_v7 = vld [vmem:[%s6931_s6 + $0x4] sm:$0xf]  ;;  %v276_v8 = vld [vmem:[%s6931_s6 + $0x8] sm:$0x1] }
  0x14   : > { %v296_v9 = vshrl.u32 %v243_v6, 16  ;;  %v299_v10 = vshll.u32 %v243_v6, 16  ;;  %v305_v11 = vshll.u32 %v244_v7, 16  ;;  %v309_v12 = vshrl.u32 %v244_v7, 16  ;;  %v5497_v13 = vld [vmem:[%s6931_s6 + $0xc] sm:$0xf] }
  0x15   : > { %v315_v14 = vshll.u32 %v276_v8, 16  ;;  %v6938_v15 = vld [vmem:[%s6931_s6 + $0x10] sm:$0xf]  ;;  %v6941_v16 = vld [vmem:[%s6931_s6 + $0x14] sm:$0x1]  ;;  %v2100_v23 = vshrl.u32 %v5497_v13, 16 }
  0x16   : > { %v298_v18 = vrot.slane %v296_v9, 4  ;;  %v301_v19 = vrot.slane %v299_v10, 5  ;;  %v307_v20 = vrot.slane %v305_v11, 5  ;;  %v311_v21 = vrot.slane %v309_v12, 4  ;;  %v245_v31 = vld [vmem:[%s6931_s6 + $0xc] sm:$0xf] }
  0x17   : > { %v317_v22 = vrot.slane %v315_v14, 5  ;;  %v2103_v24 = vshll.u32 %v5497_v13, 16  ;;  %v2109_v25 = vshll.u32 %v6938_v15, 16  ;;  %v2113_v29 = vshrl.u32 %v6938_v15, 16  ;;  %v246_v36 = vld [vmem:[%s6931_s6 + $0x10] sm:$0xf] }
  0x18   : > { %v302_v27 = vor.u32 %v301_v19, %v298_v18  ;;  %v312_v28 = vor.u32 %v311_v21, %v307_v20  ;;  %v2119_v30 = vshll.u32 %v6941_v16, 16  ;;  %v2102_v33 = vrot.slane %v2100_v23, 4  ;;  %v277_v44 = vld [vmem:[%s6931_s6 + $0x14] sm:$0x1]  ;;  %v5500_v55 = vld [vmem:[%s6931_s6 + $0x18] sm:$0xf] }
  0x19   : > { %v2105_v34 = vrot.slane %v2103_v24, 5  ;;  %v2111_v35 = vrot.slane %v2109_v25, 5  ;;  %v2115_v40 = vrot.slane %v2113_v29, 4  ;;  %v320_v45 = vshrl.u32 %v245_v31, 16  ;;  %v6976_v60 = vld [vmem:[%s6931_s6 + $0x1c] sm:$0xf] }
  0x1a   : > { %v303_v38 = vrot.slane %v302_v27, 4  ;;  %v313_v39 = vrot.slane %v312_v28, 4  ;;  %v2121_v43 = vrot.slane %v2119_v30, 5  ;;  %v323_v46 = vshll.u32 %v245_v31, 16  ;;  %v6984_v1 = vld [vmem:[%s6931_s6 + $0x20] sm:$0x1] }
  0x1b   : > { %v2106_v42 = vor.u32 %v2105_v34, %v2102_v33  ;;  %v2116_v49 = vor.u32 %v2115_v40, %v2111_v35  ;;  %v329_v50 = vshll.u32 %v246_v36, 16  ;;  %v322_v53 = vrot.slane %v320_v45, 4  ;;  %v247_v18 = vld [vmem:[%s6931_s6 + $0x18] sm:$0xf]  ;;  %v248_v23 = vld [vmem:[%s6931_s6 + $0x1c] sm:$0xf] }
  0x1c   : > { %v308_v47 = vsel %vm6957_vm4, %v303_v38, %v307_v20  ;;  %v318_v48 = vsel %vm6957_vm4, %v313_v39, %v317_v22  ;;  %v325_v54 = vrot.slane %v323_v46, 5  ;;  %v333_v58 = vshrl.u32 %v246_v36, 16  ;;  %v278_v31 = vld [vmem:[%s6931_s6 + $0x20] sm:$0x1]  ;;  %v5503_v40 = vld [vmem:[%s6931_s6 + $0x24] sm:$0xf] }
  0x1d   : > { %v5319_v51 = vcombine.low %v308_v47, %v318_v48  ;;  %v2107_v52 = vrot.slane %v2106_v42, 4  ;;  %v2117_v56 = vrot.slane %v2116_v49, 4  ;;  %v331_v57 = vrot.slane %v329_v50, 5  ;;  %v7007_v46 = vld [vmem:[%s6931_s6 + $0x28] sm:$0xf] }
  0x1e   : > { %v339_v59 = vshll.u32 %v277_v44, 16  ;;  %v2843_v62 = vrot.slane %v6938_v15, 5  ;;  %v2846_v63 = vrot.slane %v6941_v16, 5  ;;  %v326_v0 = vor.u32 %v325_v54, %v322_v53  ;;  %v7016_v54 = vld [vmem:[%s6931_s6 + $0x2c] sm:$0x1] }
  0x1f   : > { %6172 = vmatprep.mubr.msk.bf16.mxu1 %vm729_vm3, %v5319_v51  ;;  %v2112_v61 = vsel %vm6957_vm4, %v2107_v52, %v2111_v35  ;;  %v2122_v2 = vsel %vm6957_vm4, %v2117_v56, %v2121_v43  ;;  %v335_v4 = vrot.slane %v333_v58, 4  ;;  %v2124_v6 = vshrl.u32 %v5500_v55, 16  ;;  %v5399_v51 = vld [vmem:[%s8707_s1 + $0x4] sm:$0x3]  ;;  %v7216_v16 = vld [vmem:[%s6931_s6 + $0x7c] sm:$0xf] }
  0x20   : > { %v341_v5 = vrot.slane %v339_v59, 5  ;;  %v5546_v7 = vcombine.low %v2112_v61, %v2122_v2  ;;  %v327_v8 = vrot.slane %v326_v0, 4  ;;  %v2127_v9 = vshll.u32 %v5500_v55, 16  ;;  %v249_v0 = vld [vmem:[%s6931_s6 + $0x24] sm:$0xf] }
  0x21   : > { %v2133_v10 = vshll.u32 %v6976_v60, 16  ;;  %v336_v11 = vor.u32 %v335_v4, %v331_v57  ;;  %v2126_v12 = vrot.slane %v2124_v6, 4  ;;  %v2137_v13 = vshrl.u32 %v6976_v60, 16 }
  0x22   : > { %v2143_v14 = vshll.u32 %v6984_v1, 16  ;;  %6308 = vmatprep.mubr.msk.bf16.mxu0 %vm729_vm3, %v5546_v7  ;;  %v332_v19 = vsel %vm6957_vm4, %v327_v8, %v331_v57  ;;  %v2129_v20 = vrot.slane %v2127_v9, 5  ;;  %v2850_v22 = vrot.slane %v6976_v60, 5  ;;  %v250_v7 = vld [vmem:[%s6931_s6 + $0x28] sm:$0xf] }
  0x23   : > { %v2135_v21 = vrot.slane %v2133_v10, 5  ;;  %v337_v24 = vrot.slane %v336_v11, 4  ;;  %v2139_v25 = vrot.slane %v2137_v13, 4  ;;  %v2853_v28 = vrot.slane %v6984_v1, 5  ;;  %v279_v13 = vld [vmem:[%s6931_s6 + $0x2c] sm:$0x1] }
  0x24   : > { %v2145_v27 = vrot.slane %v2143_v14, 5  ;;  %v2130_v29 = vor.u32 %v2129_v20, %v2126_v12  ;;  %v7000_v30 = vrot.slane %v2850_v22, 4  ;;  %v344_v33 = vshrl.u32 %v247_v18, 16 }
  0x25   : > { %v347_v34 = vshll.u32 %v247_v18, 16  ;;  %v342_v35 = vsel %vm6957_vm4, %v337_v24, %v341_v5  ;;  %v2140_v36 = vor.u32 %v2139_v25, %v2135_v21  ;;  %v353_v38 = vshll.u32 %v248_v23, 16  ;;  %v5506_v24 = vld [vmem:[%s6931_s6 + $0x30] sm:$0xf] }
  0x26   : > { %v357_v39 = vshrl.u32 %v248_v23, 16  ;;  %v5320_v42 = vcombine.low %v332_v19, %v342_v35  ;;  %v2131_v43 = vrot.slane %v2130_v29, 4  ;;  %v346_v44 = vrot.slane %v344_v33, 4  ;;  %v7036_v33 = vld [vmem:[%s6931_s6 + $0x34] sm:$0xf] }
  0x27   : > { %v349_v45 = vrot.slane %v347_v34, 5  ;;  %v2141_v47 = vrot.slane %v2140_v36, 4  ;;  %v355_v48 = vrot.slane %v353_v38, 5  ;;  %v363_v50 = vshll.u32 %v278_v31, 16 }
  0x28   : > { %v359_v49 = vrot.slane %v357_v39, 4  ;;  %6173 = vmatmul.mubr.msk.bf16.vlgmr.msra.gmra.mrb[0].mxu1 %vm729_vm3, %v5320_v42  ;;  %v2136_v52 = vsel %vm6957_vm4, %v2131_v43, %v2135_v21  ;;  %v2148_v55 = vshrl.u32 %v5503_v40, 16  ;;  %v2151_v56 = vshll.u32 %v5503_v40, 16  ;;  %v7044_v40 = vld [vmem:[%s6931_s6 + $0x38] sm:$0x1] }
  0x29   : > { %v350_v53 = vor.u32 %v349_v45, %v346_v44  ;;  %6205 = vmatpush3.bf16.msra.mxu1 %v6944_v17  ;;  %v2146_v57 = vsel %vm6957_vm4, %v2141_v47, %v2145_v27  ;;  %v365_v59 = vrot.slane %v363_v50, 5  ;;  %v2157_v61 = vshll.u32 %v7007_v46, 16 }
  0x2a   : > { %v360_v58 = vor.u32 %v359_v49, %v355_v48  ;;  %v5547_v2 = vcombine.low %v2136_v52, %v2146_v57  ;;  %v2150_v5 = vrot.slane %v2148_v55, 4  ;;  %v2153_v6 = vrot.slane %v2151_v56, 5  ;;  %6736 = vmatprep.subr.msk.bf16.mxu1 %vm778_vm0, %v5399_v51  ;;  %v251_v52 = vld [vmem:[%s6931_s6 + $0x30] sm:$0xf] }
  0x2b   : > { %v351_v4 = vrot.slane %v350_v53, 4  ;;  %v2159_v9 = vrot.slane %v2157_v61, 5  ;;  %v2161_v17 = vshrl.u32 %v7007_v46, 16  ;;  %v2167_v10 = vshll.u32 %v7016_v54, 16 }
  0x2c   : > { %v361_v8 = vrot.slane %v360_v58, 4  ;;  %6309 = vmatmul.mubr.msk.bf16.vlgmr.msra.gmra.mrb[0].mxu0 %vm729_vm3, %v5547_v2  ;;  %v2154_v12 = vor.u32 %v2153_v6, %v2150_v5  ;;  %v368_v14 = vshrl.u32 %v249_v0, 16  ;;  %v371_v18 = vshll.u32 %v249_v0, 16  ;;  %v252_v58 = vld [vmem:[%s6931_s6 + $0x34] sm:$0xf] }
  0x2d   : > { %v356_v11 = vsel %vm6957_vm4, %v351_v4, %v355_v48  ;;  %6341 = vmatpush3.bf16.msra.mxu0 %v6963_v37  ;;  %v2163_v20 = vrot.slane %v2161_v17, 4  ;;  %v2169_v21 = vrot.slane %v2167_v10, 5  ;;  %v377_v23 = vshll.u32 %v250_v7, 16  ;;  %v280_v4 = vld [vmem:[%s6931_s6 + $0x38] sm:$0x1] }
  0x2e   : > { %v366_v19 = vsel %vm6957_vm4, %v361_v8, %v365_v59  ;;  %v2155_v27 = vrot.slane %v2154_v12, 4  ;;  %v370_v29 = vrot.slane %v368_v14, 4  ;;  %v373_v31 = vrot.slane %v371_v18, 5  ;;  %6741 = vmatprep.subr.msk.bf16.mxu0 %vm778_vm0, %v6950_v26  ;;  %v5509_v12 = vld [vmem:[%s6931_s6 + $0x3c] sm:$0xf] }
  0x2f   : > { %v5321_v25 = vcombine.low %v356_v11, %v366_v19  ;;  %v2164_v34 = vor.u32 %v2163_v20, %v2159_v9  ;;  %v379_v35 = vrot.slane %v377_v23, 5  ;;  %v381_v37 = vshrl.u32 %v250_v7, 16  ;;  %v7061_v20 = vld [vmem:[%s6931_s6 + $0x40] sm:$0xf] }
  0x30   : > { %v387_v36 = vshll.u32 %v279_v13, 16  ;;  %v2160_v38 = vsel %vm6957_vm4, %v2155_v27, %v2159_v9  ;;  %v374_v39 = vor.u32 %v373_v31, %v370_v29  ;;  %v2172_v42 = vshrl.u32 %v5506_v24, 16 }
  0x31   : > { %6176 = vmatprep.mubr.msk.bf16.mxu1 %vm729_vm3, %v5321_v25  ;;  %v2175_v43 = vshll.u32 %v5506_v24, 16  ;;  %v2165_v44 = vrot.slane %v2164_v34, 4  ;;  %v383_v45 = vrot.slane %v381_v37, 4  ;;  %v2181_v26 = vshll.u32 %v7036_v33, 16  ;;  %v7066_v34 = vld [vmem:[%s6931_s6 + $0x44] sm:$0x1] }
  0x32   : > { %v389_v47 = vrot.slane %v387_v36, 5  ;;  %v375_v48 = vrot.slane %v374_v39, 4  ;;  %v2174_v49 = vrot.slane %v2172_v42, 4  ;;  %v2185_v51 = vshrl.u32 %v7036_v33, 16  ;;  %v253_v42 = vld [vmem:[%s6931_s6 + $0x3c] sm:$0xf] }
  0x33   : > { %v2177_v50 = vrot.slane %v2175_v43, 5  ;;  %v2170_v53 = vsel %vm6957_vm4, %v2165_v44, %v2169_v21  ;;  %v384_v55 = vor.u32 %v383_v45, %v379_v35  ;;  %v2183_v56 = vrot.slane %v2181_v26, 5  ;;  %v254_v26 = vld [vmem:[%s6931_s6 + $0x40] sm:$0xf] }
  0x34   : > { %v2191_v57 = vshll.u32 %v7044_v40, 16  ;;  %v5548_v59 = vcombine.low %v2160_v38, %v2170_v53  ;;  %v380_v61 = vsel %vm6957_vm4, %v375_v48, %v379_v35  ;;  %v2187_v2 = vrot.slane %v2185_v51, 4 }
  0x35   : > { %v2178_v0 = vor.u32 %v2177_v50, %v2174_v49  ;;  %v385_v5 = vrot.slane %v384_v55, 4  ;;  %v392_v7 = vshrl.u32 %v251_v52, 16  ;;  %v395_v8 = vshll.u32 %v251_v52, 16 }
  0x36   : > { %v2193_v6 = vrot.slane %v2191_v57, 5  ;;  %6312 = vmatprep.mubr.msk.bf16.mxu0 %vm729_vm3, %v5548_v59  ;;  %v2188_v17 = vor.u32 %v2187_v2, %v2183_v56  ;;  %v401_v10 = vshll.u32 %v252_v58, 16  ;;  %v405_v11 = vshrl.u32 %v252_v58, 16  ;;  %v5512_v2 = vld [vmem:[%s6931_s6 + $0x48] sm:$0xf] }
  0x37   : > { %v2179_v9 = vrot.slane %v2178_v0, 4  ;;  %v390_v13 = vsel %vm6957_vm4, %v385_v5, %v389_v47  ;;  %v394_v14 = vrot.slane %v392_v7, 4  ;;  %v397_v18 = vrot.slane %v395_v8, 5  ;;  %v7084_v8 = vld [vmem:[%s6931_s6 + $0x4c] sm:$0xf] }
  0x38   : > { %v411_v19 = vshll.u32 %v280_v4, 16  ;;  %v5322_v21 = vcombine.low %v380_v61, %v390_v13  ;;  %v2189_v24 = vrot.slane %v2188_v17, 4  ;;  %v403_v25 = vrot.slane %v401_v10, 5  ;;  %v281_v61 = vld [vmem:[%s6931_s6 + $0x44] sm:$0x1] }
  0x39   : > { %v2184_v23 = vsel %vm6957_vm4, %v2179_v9, %v2183_v56  ;;  %v398_v27 = vor.u32 %v397_v18, %v394_v14  ;;  %v407_v29 = vrot.slane %v405_v11, 4  ;;  %v2196_v35 = vshrl.u32 %v5509_v12, 16 }
  0x3a   : > { %v413_v31 = vrot.slane %v411_v19, 5  ;;  %6177 = vmatmul.mubr.msk.bf16.gmra.mrb[4].mxu1 %vm729_vm3, %v5322_v21  ;;  %v2194_v37 = vsel %vm6957_vm4, %v2189_v24, %v2193_v6  ;;  %v2199_v36 = vshll.u32 %v5509_v12, 16  ;;  %v2205_v38 = vshll.u32 %v7061_v20, 16 }
  0x3b   : > { %v2209_v39 = vshrl.u32 %v7061_v20, 16  ;;  %v5549_v43 = vcombine.low %v2184_v23, %v2194_v37  ;;  %v399_v44 = vrot.slane %v398_v27, 4  ;;  %v408_v45 = vor.u32 %v407_v29, %v403_v25  ;;  %v7092_v23 = vld [vmem:[%s6931_s6 + $0x50] sm:$0x1]  ;;  %v7096_v27 = vld [vmem:[%s6931_s6 + $0x48] sm:$0xf] }
  0x3c   : > { %v2198_v47 = vrot.slane %v2196_v35, 4  ;;  %v2201_v48 = vrot.slane %v2199_v36, 5  ;;  %v2207_v49 = vrot.slane %v2205_v38, 5  ;;  %v2215_v51 = vshll.u32 %v7066_v34, 16  ;;  %v7099_v36 = vld [vmem:[%s6931_s6 + $0x4c] sm:$0xf] }
  0x3d   : > { %v2211_v50 = vrot.slane %v2209_v39, 4  ;;  %6313 = vmatmul.mubr.msk.bf16.gmra.mrb[4].mxu0 %vm729_vm3, %v5549_v43  ;;  %v404_v52 = vsel %vm6957_vm4, %v399_v44, %v403_v25  ;;  %v409_v53 = vrot.slane %v408_v45, 4  ;;  %v416_v55 = vshrl.u32 %v253_v42, 16 }
  0x3e   : > { %v419_v56 = vshll.u32 %v253_v42, 16  ;;  %v2202_v57 = vor.u32 %v2201_v48, %v2198_v47  ;;  %v2217_v59 = vrot.slane %v2215_v51, 5  ;;  %v425_v0 = vshll.u32 %v254_v26, 16 }
  0x3f   : > { %v2212_v58 = vor.u32 %v2211_v50, %v2207_v49  ;;  %v414_v4 = vsel %vm6957_vm4, %v409_v53, %v413_v31  ;;  %v418_v5 = vrot.slane %v416_v55, 4  ;;  %v429_v7 = vshrl.u32 %v254_v26, 16  ;;  %v282_v26 = vld [vmem:[%s6931_s6 + $0x50] sm:$0x1]  ;;  %v5515_v53 = vld [vmem:[%s6931_s6 + $0x54] sm:$0xf] }
  0x40   : > { %v421_v6 = vrot.slane %v419_v56, 5  ;;  %v5323_v9 = vcombine.low %v404_v52, %v414_v4  ;;  %v2203_v17 = vrot.slane %v2202_v57, 4  ;;  %v427_v11 = vrot.slane %v425_v0, 5  ;;  %v7115_v4 = vld [vmem:[%s6931_s6 + $0x58] sm:$0xf] }
  0x41   : > { %v2213_v10 = vrot.slane %v2212_v58, 4  ;;  %v431_v13 = vrot.slane %v429_v7, 4  ;;  %v435_v14 = vshll.u32 %v281_v61, 16  ;;  %v2220_v18 = vshrl.u32 %v5512_v2, 16 }
  0x42   : > { %v422_v12 = vor.u32 %v421_v6, %v418_v5  ;;  %6180 = vmatprep.mubr.msk.bf16.mxu1 %vm729_vm3, %v5323_v9  ;;  %v2208_v19 = vsel %vm6957_vm4, %v2203_v17, %v2207_v49  ;;  %v2223_v24 = vshll.u32 %v5512_v2, 16  ;;  %v2229_v25 = vshll.u32 %v7084_v8, 16 }
  0x43   : > { %v2218_v21 = vsel %vm6957_vm4, %v2213_v10, %v2217_v59  ;;  %v432_v35 = vor.u32 %v431_v13, %v427_v11  ;;  %v437_v37 = vrot.slane %v435_v14, 5  ;;  %v2222_v38 = vrot.slane %v2220_v18, 4 }
  0x44   : > { %v5550_v29 = vcombine.low %v2208_v19, %v2218_v21  ;;  %v423_v31 = vrot.slane %v422_v12, 4  ;;  %v2225_v39 = vrot.slane %v2223_v24, 5  ;;  %v2231_v42 = vrot.slane %v2229_v25, 5  ;;  %v7121_v12 = vld [vmem:[%s6931_s6 + $0x5c] sm:$0x1] }
  0x45   : > { %v2233_v43 = vshrl.u32 %v7084_v8, 16  ;;  %v433_v45 = vrot.slane %v432_v35, 4  ;;  %v2239_v47 = vshll.u32 %v7092_v23, 16  ;;  %v440_v48 = vshrl.u32 %v7096_v27, 16  ;;  %v7125_v24 = vld [vmem:[%s6931_s6 + $0x54] sm:$0xf] }
  0x46   : > { %6316 = vmatprep.mubr.msk.bf16.mxu0 %vm729_vm3, %v5550_v29  ;;  %v428_v44 = vsel %vm6957_vm4, %v423_v31, %v427_v11  ;;  %v2226_v49 = vor.u32 %v2225_v39, %v2222_v38  ;;  %v443_v51 = vshll.u32 %v7096_v27, 16  ;;  %v449_v52 = vshll.u32 %v7099_v36, 16 }
  0x47   : > { %v2235_v50 = vrot.slane %v2233_v43, 4  ;;  %v438_v55 = vsel %vm6957_vm4, %v433_v45, %v437_v37  ;;  %v2241_v56 = vrot.slane %v2239_v47, 5  ;;  %v442_v57 = vrot.slane %v440_v48, 4  ;;  %v7131_v37 = vld [vmem:[%s6931_s6 + $0x58] sm:$0xf] }
  0x48   : > { %v453_v58 = vshrl.u32 %v7099_v36, 16  ;;  %v5324_v59 = vcombine.low %v428_v44, %v438_v55  ;;  %v2227_v61 = vrot.slane %v2226_v49, 4  ;;  %v445_v2 = vrot.slane %v443_v51, 5 }
  0x49   : > { %v2236_v0 = vor.u32 %v2235_v50, %v2231_v42  ;;  %v451_v5 = vrot.slane %v449_v52, 5  ;;  %v459_v7 = vshll.u32 %v282_v26, 16  ;;  %v2244_v9 = vshrl.u32 %v5515_v53, 16  ;;  %v283_v26 = vld [vmem:[%s6931_s6 + $0x5c] sm:$0x1] }
  0x4a   : > { %v455_v6 = vrot.slane %v453_v58, 4  ;;  %6181 = vmatmul.mubr.msk.bf16.gmra.mrb[8].mxu1 %vm729_vm3, %v5324_v59  ;;  %v2232_v17 = vsel %vm6957_vm4, %v2227_v61, %v2231_v42  ;;  %v446_v11 = vor.u32 %v445_v2, %v442_v57  ;;  %v2247_v13 = vshll.u32 %v5515_v53, 16  ;;  %v5518_v53 = vld [vmem:[%s6931_s6 + $0x60] sm:$0xf]  ;;  %v7145_v59 = vld [vmem:[%s6931_s6 + $0x64] sm:$0xf] }
  0x4b   : > { %v2237_v10 = vrot.slane %v2236_v0, 4  ;;  %v461_v18 = vrot.slane %v459_v7, 5  ;;  %v2246_v19 = vrot.slane %v2244_v9, 4  ;;  %v2253_v21 = vshll.u32 %v7115_v4, 16  ;;  %v7152_v9 = vld [vmem:[%s6931_s6 + $0x68] sm:$0x1] }
  0x4c   : > { %v456_v14 = vor.u32 %v455_v6, %v451_v5  ;;  %v447_v29 = vrot.slane %v446_v11, 4  ;;  %v2249_v31 = vrot.slane %v2247_v13, 5  ;;  %v2257_v35 = vshrl.u32 %v7115_v4, 16 }
  0x4d   : > { %v2242_v25 = vsel %vm6957_vm4, %v2237_v10, %v2241_v56  ;;  %v2255_v42 = vrot.slane %v2253_v21, 5  ;;  %v2263_v43 = vshll.u32 %v7121_v12, 16  ;;  %v464_v48 = vshrl.u32 %v7125_v24, 16 }
  0x4e   : > { %v5551_v38 = vcombine.low %v2232_v17, %v2242_v25  ;;  %v457_v39 = vrot.slane %v456_v14, 4  ;;  %v452_v44 = vsel %vm6957_vm4, %v447_v29, %v451_v5  ;;  %v2250_v45 = vor.u32 %v2249_v31, %v2246_v19  ;;  %v7156_v19 = vld [vmem:[%s6931_s6 + $0x60] sm:$0xf] }
  0x4f   : > { %v2259_v47 = vrot.slane %v2257_v35, 4  ;;  %v2265_v50 = vrot.slane %v2263_v43, 5  ;;  %v467_v51 = vshll.u32 %v7125_v24, 16  ;;  %v473_v52 = vshll.u32 %v7131_v37, 16  ;;  %v7162_v35 = vld [vmem:[%s6931_s6 + $0x64] sm:$0xf] }
  0x50   : > { %6317 = vmatmul.mubr.msk.bf16.gmra.mrb[8].mxu0 %vm729_vm3, %v5551_v38  ;;  %v462_v49 = vsel %vm6957_vm4, %v457_v39, %v461_v18  ;;  %v2251_v56 = vrot.slane %v2250_v45, 4  ;;  %v466_v58 = vrot.slane %v464_v48, 4  ;;  %v477_v2 = vshrl.u32 %v7131_v37, 16 }
  0x51   : > { %v5325_v55 = vcombine.low %v452_v44, %v462_v49  ;;  %v2260_v57 = vor.u32 %v2259_v47, %v2255_v42  ;;  %v469_v61 = vrot.slane %v467_v51, 5  ;;  %v475_v0 = vrot.slane %v473_v52, 5 }
  0x52   : > { %v483_v5 = vshll.u32 %v283_v26, 16  ;;  %v2256_v6 = vsel %vm6957_vm4, %v2251_v56, %v2255_v42  ;;  %v2268_v17 = vshrl.u32 %v5518_v53, 16  ;;  %v2271_v10 = vshll.u32 %v5518_v53, 16 }
  0x53   : > { %6184 = vmatprep.mubr.msk.bf16.mxu1 %vm729_vm3, %v5325_v55  ;;  %v2261_v7 = vrot.slane %v2260_v57, 4  ;;  %v470_v11 = vor.u32 %v469_v61, %v466_v58  ;;  %v479_v13 = vrot.slane %v477_v2, 4  ;;  %v2277_v18 = vshll.u32 %v7145_v59, 16  ;;  %v5578_v58 = vld [vmem:[%s6931_s6 + $0xc] sm:$0xe] }
  0x54   : > { %v485_v14 = vrot.slane %v483_v5, 5  ;;  %v2270_v25 = vrot.slane %v2268_v17, 4  ;;  %v2273_v29 = vrot.slane %v2271_v10, 5  ;;  %v2281_v31 = vshrl.u32 %v7145_v59, 16 }
  0x55   : > { %v2266_v21 = vsel %vm6957_vm4, %v2261_v7, %v2265_v50  ;;  %v471_v39 = vrot.slane %v470_v11, 4  ;;  %v480_v42 = vor.u32 %v479_v13, %v475_v0  ;;  %v2279_v43 = vrot.slane %v2277_v18, 5  ;;  %v284_v50 = vld [vmem:[%s6931_s6 + $0x68] sm:$0x1] }
  0x56   : > { %v5552_v38 = vcombine.low %v2256_v6, %v2266_v21  ;;  %v2274_v44 = vor.u32 %v2273_v29, %v2270_v25  ;;  %v2283_v45 = vrot.slane %v2281_v31, 4  ;;  %v2287_v47 = vshll.u32 %v7152_v9, 16  ;;  %v7190_v29 = vld [vmem:[%s6931_s6 + $0x70] sm:$0xf] }
  0x57   : > { %v488_v26 = vshrl.u32 %v7156_v19, 16  ;;  %v476_v48 = vsel %vm6957_vm4, %v471_v39, %v475_v0  ;;  %v481_v49 = vrot.slane %v480_v42, 4  ;;  %v491_v51 = vshll.u32 %v7156_v19, 16  ;;  %v7177_v0 = vld [vmem:[%s6931_s6 + $0x6c] sm:$0xf] }
  0x58   : > { %6320 = vmatprep.mubr.msk.bf16.mxu0 %vm729_vm3, %v5552_v38  ;;  %v497_v52 = vshll.u32 %v7162_v35, 16  ;;  %v2275_v53 = vrot.slane %v2274_v44, 4  ;;  %v2284_v55 = vor.u32 %v2283_v45, %v2279_v43  ;;  %v2289_v56 = vrot.slane %v2287_v47, 5 }
  0x59   : > { %v490_v57 = vrot.slane %v488_v26, 4  ;;  %v486_v61 = vsel %vm6957_vm4, %v481_v49, %v485_v14  ;;  %v493_v2 = vrot.slane %v491_v51, 5  ;;  %v501_v6 = vshrl.u32 %v7162_v35, 16  ;;  %v285_v26 = vld [vmem:[%s6931_s6 + $0x74] sm:$0x1] }
  0x5a   : > { %v499_v5 = vrot.slane %v497_v52, 5  ;;  %v5326_v7 = vcombine.low %v476_v48, %v486_v61  ;;  %v2280_v17 = vsel %vm6957_vm4, %v2275_v53, %v2279_v43  ;;  %v2285_v10 = vrot.slane %v2284_v55, 4  ;;  %v5579_v48 = vld [vmem:[%s6931_s6 + $0x18] sm:$0xe] }
  0x5b   : > { %v507_v11 = vshll.u32 %v284_v50, 16  ;;  %v494_v14 = vor.u32 %v493_v2, %v490_v57  ;;  %v503_v18 = vrot.slane %v501_v6, 4  ;;  %v5594_v21 = vrot.slane %v5578_v58, 9  ;;  %v7209_v53 = vld [vmem:[%s6931_s6 + $0x78] sm:$0xf] }
  0x5c   : > { %v2845_v25 = vrot.slane %v2843_v62, 4  ;;  %6185 = vmatmul.mubr.msk.bf16.gmra.mrb[12].mxu1 %vm729_vm3, %v5326_v7  ;;  %v2290_v31 = vsel %vm6957_vm4, %v2285_v10, %v2289_v56  ;;  %v512_v39 = vshrl.u32 %v7177_v0, 16  ;;  %v515_v42 = vshll.u32 %v7177_v0, 16  ;;  %v286_v57 = vld [vmem:[%s6931_s6 + $0x80] sm:$0x1] }
  0x5d   : > { %v509_v38 = vrot.slane %v507_v11, 5  ;;  %v5553_v43 = vcombine.low %v2280_v17, %v2290_v31  ;;  %v495_v44 = vrot.slane %v494_v14, 4  ;;  %v504_v45 = vor.u32 %v503_v18, %v499_v5  ;;  %v5580_v10 = vld [vmem:[%s6931_s6 + $0x24] sm:$0xe] }
  0x5e   : > { %v2844_v47 = vsel %vm7183_vm7, %v5594_v21, %v2843_v62  ;;  %v2847_v49 = vsel %vm7183_vm7, %v2845_v25, %v2846_v63  ;;  %v514_v50 = vrot.slane %v512_v39, 4  ;;  %v517_v51 = vrot.slane %v515_v42, 5  ;;  %v7235_v39 = vld [vmem:[%s6931_s6 + $0x84] sm:$0xf] }
  0x5f   : > { %v521_v52 = vshll.u32 %v7190_v29, 16  ;;  %6321 = vmatmul.mubr.msk.bf16.gmra.mrb[12].mxu0 %vm729_vm3, %v5553_v43  ;;  %v500_v15 = vsel %vm6957_vm4, %v495_v44, %v499_v5  ;;  %v505_v62 = vrot.slane %v504_v45, 4  ;;  %v5611_v55 = vcombine.low %v2844_v47, %v2847_v49  ;;  %v7243_v43 = vld [vmem:[%s6931_s6 + $0x88] sm:$0xf] }
  0x60   : > { %v525_v56 = vshrl.u32 %v7190_v29, 16  ;;  %v518_v63 = vor.u32 %v517_v51, %v514_v50  ;;  %v531_v61 = vshll.u32 %v285_v26, 16  ;;  %v5595_v2 = vrot.slane %v5579_v48, 9 }
  0x61   : > { %v523_v58 = vrot.slane %v521_v52, 5  ;;  %v510_v6 = vsel %vm6957_vm4, %v505_v62, %v509_v38  ;;  %6342 = vmatprep.mubr.msk.bf16.mxu0 %vm729_vm3, %v5611_v55  ;;  %v2854_v5 = vsel %vm7183_vm7, %v7000_v30, %v2853_v28  ;;  %v536_v17 = vshrl.u32 %v7209_v53, 16  ;;  %v287_v52 = vld [vmem:[%s6931_s6 + $0x8c] sm:$0x1] }
  0x62   : > { %v527_v7 = vrot.slane %v525_v56, 4  ;;  %v5327_v11 = vcombine.low %v500_v15, %v510_v6  ;;  %v519_v14 = vrot.slane %v518_v63, 4  ;;  %v533_v18 = vrot.slane %v531_v61, 5 }
  0x63   : > { %v2851_v21 = vsel %vm7183_vm7, %v5595_v2, %v2850_v22  ;;  %v538_v38 = vrot.slane %v536_v17, 4  ;;  %v539_v1 = vshll.u32 %v7209_v53, 16  ;;  %v545_v30 = vshll.u32 %v7216_v16, 16  ;;  %v7248_v22 = vld [vmem:[%s8707_s1 + $0xe] sm:$0x3] }
  0x64   : > { %v528_v25 = vor.u32 %v527_v7, %v523_v58  ;;  %v5612_v31 = vcombine.low %v2851_v21, %v2854_v5  ;;  %6188 = vmatprep.mubr.msk.bf16.mxu1 %vm729_vm3, %v5327_v11  ;;  %v524_v28 = vsel %vm6957_vm4, %v519_v14, %v523_v58  ;;  %v549_v60 = vshrl.u32 %v7216_v16, 16  ;;  %v7267_v5 = vld [vmem:[%s6931_s6 + $0x90] sm:$0xf] }
  0x65   : > { %v555_v42 = vshll.u32 %v286_v57, 16  ;;  %v541_v45 = vrot.slane %v539_v1, 5  ;;  %v5596_v47 = vrot.slane %v5580_v10, 9  ;;  %v2857_v26 = vrot.slane %v7007_v46, 5  ;;  %v5581_v57 = vld [vmem:[%s6931_s6 + $0x30] sm:$0xe] }
  0x66   : > { %v529_v44 = vrot.slane %v528_v25, 4  ;;  %v547_v48 = vrot.slane %v545_v30, 5  ;;  %v551_v49 = vrot.slane %v549_v60, 4  ;;  %v2860_v51 = vrot.slane %v7016_v54, 5  ;;  %v7279_v30 = vld [vmem:[%s6931_s6 + $0x94] sm:$0xf] }
  0x67   : > { %v557_v50 = vrot.slane %v555_v42, 5  ;;  %6343 = vmatmul.mubr.msk.bf16.vlgmr.msra.gmra.mrb[0].mxu0 %vm729_vm3, %v5612_v31  ;;  %v542_v62 = vor.u32 %v541_v45, %v538_v38  ;;  %v2858_v55 = vsel %vm7183_vm7, %v5596_v47, %v2857_v26  ;;  %v2859_v56 = vrot.slane %v2857_v26, 4  ;;  %v288_v60 = vld [vmem:[%s6931_s6 + $0x98] sm:$0x1]  ;;  %v5582_v26 = vld [vmem:[%s6931_s6 + $0x3c] sm:$0xe] }
  0x68   : > { %v534_v15 = vsel %vm6957_vm4, %v529_v44, %v533_v18  ;;  %6375 = vmatpush3.bf16.msra.mxu0 %v6967_v41  ;;  %v552_v46 = vor.u32 %v551_v49, %v547_v48  ;;  %v560_v58 = vshrl.u32 %v7235_v39, 16  ;;  %v563_v54 = vshll.u32 %v7235_v39, 16 }
  0x69   : > { %v5328_v63 = vcombine.low %v524_v28, %v534_v15  ;;  %v543_v61 = vrot.slane %v542_v62, 4  ;;  %v2861_v2 = vsel %vm7183_vm7, %v2859_v56, %v2860_v51  ;;  %v569_v6 = vshll.u32 %v7243_v43, 16  ;;  %6742 = vmatprep.subr.msk.bf16.mxu0 %vm778_vm0, %v7248_v22 }
  0x6a   : > { %v573_v7 = vshrl.u32 %v7243_v43, 16  ;;  %v553_v41 = vrot.slane %v552_v46, 4  ;;  %v5613_v17 = vcombine.low %v2858_v55, %v2861_v2  ;;  %v562_v10 = vrot.slane %v560_v58, 4  ;;  %v7299_v46 = vld [vmem:[%s6931_s6 + $0xa0] sm:$0xf] }
  0x6b   : > { %6189 = vmatmul.mubr.msk.bf16.gmra.mrb[16].mxu1 %vm729_vm3, %v5328_v63  ;;  %v565_v11 = vrot.slane %v563_v54, 5  ;;  %v548_v14 = vsel %vm6957_vm4, %v543_v61, %v547_v48  ;;  %v571_v18 = vrot.slane %v569_v6, 5  ;;  %v579_v25 = vshll.u32 %v287_v52, 16  ;;  %v7288_v52 = vld [vmem:[%s6931_s6 + $0x9c] sm:$0xf] }
  0x6c   : > { %v575_v21 = vrot.slane %v573_v7, 4  ;;  %v558_v31 = vsel %vm6957_vm4, %v553_v41, %v557_v50  ;;  %6346 = vmatprep.mubr.msk.bf16.mxu0 %vm729_vm3, %v5613_v17  ;;  %v5597_v1 = vrot.slane %v5581_v57, 9  ;;  %v2864_v28 = vrot.slane %v7036_v33, 5 }
  0x6d   : > { %v566_v38 = vor.u32 %v565_v11, %v562_v10  ;;  %v5329_v42 = vcombine.low %v548_v14, %v558_v31  ;;  %v581_v45 = vrot.slane %v579_v25, 5  ;;  %v2867_v47 = vrot.slane %v7044_v40, 5  ;;  %v289_v10 = vld [vmem:[%s6931_s6 + $0xa4] sm:$0x1]  ;;  %v5583_v11 = vld [vmem:[%s6931_s6 + $0x48] sm:$0xe] }
  0x6e   : > { %v576_v44 = vor.u32 %v575_v21, %v571_v18  ;;  %v2865_v49 = vsel %vm7183_vm7, %v5597_v1, %v2864_v28  ;;  %v2866_v50 = vrot.slane %v2864_v28, 4  ;;  %v584_v51 = vshrl.u32 %v7267_v5, 16 }
  0x6f   : > { %v567_v48 = vrot.slane %v566_v38, 4  ;;  %6192 = vmatprep.mubr.msk.bf16.mxu1 %vm729_vm3, %v5329_v42  ;;  %v587_v15 = vshll.u32 %v7267_v5, 16  ;;  %v593_v62 = vshll.u32 %v7279_v30, 16  ;;  %v597_v40 = vshrl.u32 %v7279_v30, 16 }
  0x70   : > { %v577_v33 = vrot.slane %v576_v44, 4  ;;  %v2868_v56 = vsel %vm7183_vm7, %v2866_v50, %v2867_v47  ;;  %v586_v57 = vrot.slane %v584_v51, 4  ;;  %v603_v63 = vshll.u32 %v288_v60, 16 }
  0x71   : > { %v572_v55 = vsel %vm6957_vm4, %v567_v48, %v571_v18  ;;  %v5614_v54 = vcombine.low %v2865_v49, %v2868_v56  ;;  %v589_v61 = vrot.slane %v587_v15, 5  ;;  %v595_v2 = vrot.slane %v593_v62, 5  ;;  %v7325_v56 = vld [vmem:[%s6931_s6 + $0xac] sm:$0xf] }
  0x72   : > { %v582_v58 = vsel %vm6957_vm4, %v577_v33, %v581_v45  ;;  %v599_v7 = vrot.slane %v597_v40, 4  ;;  %v605_v41 = vrot.slane %v603_v63, 5  ;;  %v5598_v17 = vrot.slane %v5582_v26, 9  ;;  %v7320_v33 = vld [vmem:[%s6931_s6 + $0xa8] sm:$0xf] }
  0x73   : > { %v5330_v6 = vcombine.low %v572_v55, %v582_v58  ;;  %6347 = vmatmul.mubr.msk.bf16.gmra.mrb[4].mxu0 %vm729_vm3, %v5614_v54  ;;  %v590_v14 = vor.u32 %v589_v61, %v586_v57  ;;  %v2871_v18 = vrot.slane %v7061_v20, 5  ;;  %v2874_v21 = vrot.slane %v7066_v34, 5  ;;  %v290_v61 = vld [vmem:[%s6931_s6 + $0xb0] sm:$0x1] }
  0x74   : > { %v608_v25 = vshrl.u32 %v7288_v52, 16  ;;  %v600_v31 = vor.u32 %v599_v7, %v595_v2  ;;  %v611_v38 = vshll.u32 %v7288_v52, 16  ;;  %v617_v1 = vshll.u32 %v7299_v46, 16 }
  0x75   : > { %6193 = vmatmul.mubr.msk.bf16.gmra.mrb[20].mxu1 %vm729_vm3, %v5330_v6  ;;  %v621_v28 = vshrl.u32 %v7299_v46, 16  ;;  %v591_v60 = vrot.slane %v590_v14, 4  ;;  %v2872_v42 = vsel %vm7183_vm7, %v5598_v17, %v2871_v18  ;;  %v2873_v20 = vrot.slane %v2871_v18, 4  ;;  %v7340_v14 = vld [vmem:[%s6931_s6 + $0xb4] sm:$0xf] }
  0x76   : > { %v610_v44 = vrot.slane %v608_v25, 4  ;;  %v601_v34 = vrot.slane %v600_v31, 4  ;;  %v613_v45 = vrot.slane %v611_v38, 5  ;;  %v619_v47 = vrot.slane %v617_v1, 5 }
  0x77   : > { %v623_v26 = vrot.slane %v621_v28, 4  ;;  %v596_v48 = vsel %vm6957_vm4, %v591_v60, %v595_v2  ;;  %v2875_v49 = vsel %vm7183_vm7, %v2873_v20, %v2874_v21  ;;  %v627_v50 = vshll.u32 %v289_v10, 16  ;;  %v5584_v2 = vld [vmem:[%s6931_s6 + $0x54] sm:$0xe] }
  0x78   : > { %v5599_v51 = vrot.slane %v5583_v11, 9  ;;  %v606_v15 = vsel %vm6957_vm4, %v601_v34, %v605_v41  ;;  %v5615_v62 = vcombine.low %v2872_v42, %v2875_v49  ;;  %v614_v40 = vor.u32 %v613_v45, %v610_v44  ;;  %v7349_v42 = vld [vmem:[%s6931_s6 + $0xb8] sm:$0xf]  ;;  %v291_v49 = vld [vmem:[%s6931_s6 + $0xbc] sm:$0x1] }
  0x79   : > { %v624_v55 = vor.u32 %v623_v26, %v619_v47  ;;  %v5331_v57 = vcombine.low %v596_v48, %v606_v15  ;;  %v629_v63 = vrot.slane %v627_v50, 5  ;;  %v2878_v58 = vrot.slane %v7084_v8, 5 }
  0x7a   : > { %v2881_v54 = vrot.slane %v7092_v23, 5  ;;  %6350 = vmatprep.mubr.msk.bf16.mxu0 %vm729_vm3, %v5615_v62  ;;  %v615_v6 = vrot.slane %v614_v40, 4  ;;  %v632_v41 = vshrl.u32 %v7320_v33, 16  ;;  %v635_v17 = vshll.u32 %v7320_v33, 16 }
  0x7b   : > { %v625_v7 = vrot.slane %v624_v55, 4  ;;  %6196 = vmatprep.mubr.msk.bf16.mxu1 %vm729_vm3, %v5331_v57  ;;  %v2879_v10 = vsel %vm7183_vm7, %v5599_v51, %v2878_v58  ;;  %v2880_v11 = vrot.slane %v2878_v58, 4  ;;  %v641_v8 = vshll.u32 %v7325_v56, 16  ;;  %v5585_v55 = vld [vmem:[%s6931_s6 + $0x60] sm:$0xe] }
  0x7c   : > { %v645_v23 = vshrl.u32 %v7325_v56, 16  ;;  %v620_v18 = vsel %vm6957_vm4, %v615_v6, %v619_v47  ;;  %v634_v25 = vrot.slane %v632_v41, 4  ;;  %v637_v31 = vrot.slane %v635_v17, 5  ;;  %v5586_v6 = vld [vmem:[%s6931_s6 + $0x6c] sm:$0xe] }
  0x7d   : > { %v630_v21 = vsel %vm6957_vm4, %v625_v7, %v629_v63  ;;  %v2882_v1 = vsel %vm7183_vm7, %v2880_v11, %v2881_v54  ;;  %v643_v28 = vrot.slane %v641_v8, 5  ;;  %v651_v34 = vshll.u32 %v290_v61, 16  ;;  %v5522_v11 = vld [vmem:[%s6931_s6 + $0x70] sm:$0xf]  ;;  %v5523_v8 = vld [vmem:[%s6931_s6 + $0x74] sm:$0x1] }
  0x7e   : > { %v5332_v38 = vcombine.low %v620_v18, %v630_v21  ;;  %v647_v60 = vrot.slane %v645_v23, 4  ;;  %v5616_v20 = vcombine.low %v2879_v10, %v2882_v1  ;;  %v638_v44 = vor.u32 %v637_v31, %v634_v25 }
  0x7f   : > { %v5600_v45 = vrot.slane %v5584_v2, 9  ;;  %v2885_v26 = vrot.slane %v7115_v4, 5  ;;  %v2888_v48 = vrot.slane %v7121_v12, 5  ;;  %v656_v50 = vshrl.u32 %v7340_v14, 16 }
  0x80   : > { %6197 = vmatmul.mubr.msk.bf16.gmra.mrb[24].mxu1 %vm729_vm3, %v5332_v38  ;;  %v648_v47 = vor.u32 %v647_v60, %v643_v28  ;;  %6351 = vmatmul.mubr.msk.bf16.gmra.mrb[8].mxu0 %vm729_vm3, %v5616_v20  ;;  %v639_v51 = vrot.slane %v638_v44, 4  ;;  %v653_v15 = vrot.slane %v651_v34, 5  ;;  %v659_v62 = vshll.u32 %v7340_v14, 16 }
  0x81   : > { %v665_v40 = vshll.u32 %v7349_v42, 16  ;;  %v2886_v4 = vsel %vm7183_vm7, %v5600_v45, %v2885_v26  ;;  %v2887_v12 = vrot.slane %v2885_v26, 4  ;;  %v658_v63 = vrot.slane %v656_v50, 4 }
  0x82   : > { %v649_v57 = vrot.slane %v648_v47, 4  ;;  %v644_v58 = vsel %vm6957_vm4, %v639_v51, %v643_v28  ;;  %v661_v54 = vrot.slane %v659_v62, 5  ;;  %v669_v2 = vshrl.u32 %v7349_v42, 16  ;;  %v5587_v47 = vld [vmem:[%s6931_s6 + $0x78] sm:$0xe] }
  0x83   : > { %v667_v61 = vrot.slane %v665_v40, 5  ;;  %v2889_v41 = vsel %vm7183_vm7, %v2887_v12, %v2888_v48  ;;  %v675_v17 = vshll.u32 %v291_v49, 16  ;;  %v5601_v10 = vrot.slane %v5585_v55, 9  ;;  %v6801_v51 = vld [vmem:[%s6931_s6] sm:$0xf] }
  0x84   : > { %v654_v7 = vsel %vm6957_vm4, %v649_v57, %v653_v15  ;;  %v5617_v18 = vcombine.low %v2886_v4, %v2889_v41  ;;  %v662_v21 = vor.u32 %v661_v54, %v658_v63  ;;  %v671_v25 = vrot.slane %v669_v2, 4  ;;  %v7387_v15 = vld [vmem:[%s6931_s6 + $0x4] sm:$0xf]  ;;  %v7391_v40 = vld [vmem:[%s6931_s6 + $0x7c] sm:$0xf] }
  0x85   : > { %v5333_v23 = vcombine.low %v644_v58, %v654_v7  ;;  %v677_v31 = vrot.slane %v675_v17, 5  ;;  %v2892_v38 = vrot.slane %v7145_v59, 5  ;;  %v2895_v1 = vrot.slane %v7152_v9, 5  ;;  %v7394_v55 = vld [vmem:[%s6931_s6 + $0x80] sm:$0x1] }
  0x86   : > { %v5602_v28 = vrot.slane %v5586_v6, 9  ;;  %6354 = vmatprep.mubr.msk.bf16.mxu0 %vm729_vm3, %v5617_v18  ;;  %v663_v60 = vrot.slane %v662_v21, 4  ;;  %v672_v20 = vor.u32 %v671_v25, %v667_v61  ;;  %v2899_v44 = vrot.slane %v5522_v11, 5  ;;  %v5528_v57 = vld [vmem:[%s6931_s6 + $0x88] sm:$0xf] }
  0x87   : > { %6200 = vmatprep.mubr.msk.bf16.mxu1 %vm729_vm3, %v5333_v23  ;;  %v2902_v34 = vrot.slane %v5523_v8, 5  ;;  %v2893_v45 = vsel %vm7183_vm7, %v5601_v10, %v2892_v38  ;;  %v2894_v59 = vrot.slane %v2892_v38, 4  ;;  %v5351_v62 = vcombine.low %v6801_v51, %v7387_v15  ;;  %v5529_v54 = vld [vmem:[%s6931_s6 + $0x8c] sm:$0x1]  ;;  %v5531_v17 = vld [vmem:[%s6931_s6 + $0x94] sm:$0xf] }
  0x88   : > { %v668_v9 = vsel %vm6957_vm4, %v663_v60, %v667_v61  ;;  %v673_v26 = vrot.slane %v672_v20, 4  ;;  %v2900_v48 = vsel %vm7183_vm7, %v5602_v28, %v2899_v44  ;;  %v2901_v49 = vrot.slane %v2899_v44, 4  ;;  %v5588_v61 = vld [vmem:[%s6931_s6 + $0x84] sm:$0xe]  ;;  %v5589_v23 = vld [vmem:[%s6931_s6 + $0x90] sm:$0xe] }
  0x89   : > { %v2896_v50 = vsel %vm7183_vm7, %v2894_v59, %v2895_v1  ;;  %v5603_v58 = vrot.slane %v5587_v47, 9  ;;  %v2906_v7 = vrot.slane %v7391_v40, 5  ;;  %v2909_v41 = vrot.slane %v7394_v55, 5  ;;  %v5532_v25 = vld [vmem:[%s6931_s6 + $0x98] sm:$0x1] }
  0x8a   : > { %v678_v4 = vsel %vm6957_vm4, %v673_v26, %v677_v31  ;;  %v5618_v12 = vcombine.low %v2893_v45, %v2896_v50  ;;  %v2903_v63 = vsel %vm7183_vm7, %v2901_v49, %v2902_v34  ;;  %v5604_v10 = vrot.slane %v5588_v61, 9  ;;  %v5534_v31 = vld [vmem:[%s6931_s6 + $0xa0] sm:$0xf]  ;;  %v5535_v60 = vld [vmem:[%s6931_s6 + $0xa4] sm:$0x1] }
  0x8b   : > { %v5334_v2 = vcombine.low %v668_v9, %v678_v4  ;;  %v5619_v6 = vcombine.low %v2900_v48, %v2903_v63  ;;  %v2913_v11 = vrot.slane %v5528_v57, 5  ;;  %v2916_v8 = vrot.slane %v5529_v54, 5  ;;  %v5590_v20 = vld [vmem:[%s6931_s6 + $0x9c] sm:$0xe]  ;;  %v6803_v44 = vld [vmem:[%s6931_s6 + $0xc] sm:$0xf] }
  0x8c   : > { %6355 = vmatmul.mubr.msk.bf16.gmra.mrb[12].mxu0 %vm729_vm3, %v5618_v12  ;;  %v2907_v18 = vsel %vm7183_vm7, %v5603_v58, %v2906_v7  ;;  %v2908_v21 = vrot.slane %v2906_v7, 4  ;;  %v2920_v28 = vrot.slane %v5531_v17, 5  ;;  %v7421_v34 = vld [vmem:[%s6931_s6 + $0x10] sm:$0xf]  ;;  %v6805_v47 = vld [vmem:[%s6931_s6 + $0x18] sm:$0xf] }
  0x8d   : > { %6201 = vmatmul.mubr.msk.bf16.gmra.mrb[28].mxu1 %vm729_vm3, %v5334_v2  ;;  %6358 = vmatprep.mubr.msk.bf16.mxu0 %vm729_vm3, %v5619_v6  ;;  %v2914_v38 = vsel %vm7183_vm7, %v5604_v10, %v2913_v11  ;;  %v2915_v1 = vrot.slane %v2913_v11, 4  ;;  %v5352_v45 = vcombine.low %v6803_v44, %v7421_v34  ;;  %v7428_v9 = vld [vmem:[%s6931_s6 + $0x1c] sm:$0xf]  ;;  %v5605_v48 = vrot.slane %v5589_v23, 9  ;;  %v5537_v57 = vld [vmem:[%s6931_s6 + $0xac] sm:$0xf] }
  0x8e   : > { %6206 = vmatprep.mubr.msk.bf16.mxu1 %vm729_vm3, %v5351_v62  ;;  %v2910_v59 = vsel %vm7183_vm7, %v2908_v21, %v2909_v41  ;;  %v5353_v26 = vcombine.low %v6805_v47, %v7428_v9  ;;  %v2922_v51 = vrot.slane %v2920_v28, 4  ;;  %v2923_v62 = vrot.slane %v5532_v25, 5  ;;  %v6807_v54 = vld [vmem:[%s8707_s1 + $0x4] sm:$0x3]  ;;  %v5540_v2 = vld [vmem:[%s6931_s6 + $0xb8] sm:$0xf] }
  0x8f   : > { %v5620_v49 = vcombine.low %v2907_v18, %v2910_v59  ;;  %v2917_v50 = vsel %vm7183_vm7, %v2915_v1, %v2916_v8  ;;  %v5606_v12 = vrot.slane %v5590_v20, 9  ;;  %v2927_v63 = vrot.slane %v5534_v31, 5  ;;  %v7443_v7 = vld [vmem:[%s8707_s1 + $0x6] sm:$0x3]  ;;  %v5538_v10 = vld [vmem:[%s6931_s6 + $0xb0] sm:$0x1] }
  0x90   : > { %v5621_v4 = vcombine.low %v2914_v38, %v2917_v50  ;;  %v2930_v58 = vrot.slane %v5535_v60, 5  ;;  %v1497_v61 = vsel %vm778_vm0, %v6807_v54, 0  ;;  %v2921_v41 = vsel %vm7183_vm7, %v5605_v48, %v2920_v28  ;;  %v5591_v11 = vld [vmem:[%s6931_s6 + $0xa8] sm:$0xe]  ;;  %v5541_v25 = vld [vmem:[%s6931_s6 + $0xbc] sm:$0x1] }
  0x91   : > { %v2929_v6 = vrot.slane %v2927_v63, 4  ;;  %v2924_v17 = vsel %vm7183_vm7, %v2922_v51, %v2923_v62  ;;  %v2934_v8 = vrot.slane %v5537_v57, 5  ;;  %v2928_v23 = vsel %vm7183_vm7, %v5606_v12, %v2927_v63  ;;  %v5592_v31 = vld [vmem:[%s6931_s6 + $0xb4] sm:$0xe]  ;;  %v6808_v38 = vld [vmem:[%s6931_s6 + $0x24] sm:$0xf] }
  0x92   : > { %v2941_v21 = vrot.slane %v5540_v2, 5  ;;  %v7464_v1 = vld [vmem:[%s6931_s6 + $0x28] sm:$0xf]  ;;  %v5622_v60 = vcombine.low %v2921_v41, %v2924_v17  ;;  %v5607_v44 = vrot.slane %v5591_v11, 9  ;;  %v2937_v59 = vrot.slane %v5538_v10, 5 }
  0x93   : > { %v2931_v18 = vsel %vm7183_vm7, %v2929_v6, %v2930_v58  ;;  %v5354_v28 = vcombine.low %v6808_v38, %v7464_v1  ;;  %v6810_v47 = vld [vmem:[%s6931_s6 + $0x30] sm:$0xf]  ;;  %v2944_v51 = vrot.slane %v5541_v25, 5  ;;  %v5543_v62 = vld [vmem:[%s6931_s6 + $0xc4] sm:$0xf]  ;;  %v2329_v25 = vshrl.u32 %v7391_v40, 16 }
  0x94   : > { %6359 = vmatmul.mubr.msk.bf16.gmra.mrb[16].mxu0 %vm729_vm3, %v5620_v49  ;;  %v5623_v20 = vcombine.low %v2928_v23, %v2931_v18  ;;  %v5608_v49 = vrot.slane %v5592_v31, 9  ;;  %v2943_v50 = vrot.slane %v2941_v21, 4  ;;  %v2935_v57 = vsel %vm7183_vm7, %v5607_v44, %v2934_v8  ;;  %v5593_v12 = vld [vmem:[%s6931_s6 + $0xc0] sm:$0xe]  ;;  %v6812_v41 = vld [vmem:[%s6931_s6 + $0x3c] sm:$0xf] }
  0x95   : > { %6207 = vmatmul.mubr.msk.bf16.vlgmr.msra.gmra.mrb[0].mxu1 %vm729_vm3, %v5352_v45  ;;  %6362 = vmatprep.mubr.msk.bf16.mxu0 %vm729_vm3, %v5621_v4  ;;  %v2936_v45 = vrot.slane %v2934_v8, 4  ;;  %v2948_v63 = vrot.slane %v5543_v62, 5  ;;  %v5609_v6 = vrot.slane %v5593_v12, 9  ;;  %v7489_v17 = vld [vmem:[%s6931_s6 + $0x40] sm:$0xf]  ;;  %v5357_v18 = vcombine.low %v7096_v27, %v7099_v36  ;;  %v6764_v62 = vld [vmem:[%s6931_s6 + $0x24] sm:$0xff]  }
  0x96   : > { %6239 = vmatpush3.bf16.msra.mxu1 %v1497_v61  ;;  %6210 = vmatprep.mubr.msk.bf16.mxu1 %vm729_vm3, %v5353_v26  ;;  %v7469_v26 = vld [vmem:[%s6931_s6 + $0x34] sm:$0xf]  ;;  %v2942_v58 = vsel %vm7183_vm7, %v5608_v49, %v2941_v21  ;;  %v2945_v54 = vsel %vm7183_vm7, %v2943_v50, %v2944_v51  ;;  %v5544_v61 = vld [vmem:[%s6931_s6 + $0xc8] sm:$0x1]  ;;  %v5356_v10 = vcombine.low %v6812_v41, %v7489_v17  ;;  %v2325_v21 = vshll.u32 %v7391_v40, 16 }
  0x97   : > { %6737 = vmatprep.subr.msk.bf16.mxu1 %vm778_vm0, %v7443_v7  ;;  %v5355_v48 = vcombine.low %v6810_v47, %v7469_v26  ;;  %v2938_v4 = vsel %vm7183_vm7, %v2936_v45, %v2937_v59  ;;  %v5625_v11 = vcombine.low %v2942_v58, %v2945_v54  ;;  %v2950_v8 = vrot.slane %v2948_v63, 4  ;;  %v1235_v45 = vld [vmem:[%s6931_s6] sm:$0xe]  ;;  %v1236_v59 = vld [vmem:[%s6931_s6 + $0xc] sm:$0xe] }
  0x98   : > { %v5624_v2 = vcombine.low %v2935_v57, %v2938_v4  ;;  %v2951_v23 = vrot.slane %v5544_v61, 5  ;;  %v2949_v31 = vsel %vm7183_vm7, %v5609_v6, %v2948_v63  ;;  %v7504_v27 = vrot.slane %v2325_v21, 5  ;;  %v1239_v41 = vld [vmem:[%s6931_s6 + $0x30] sm:$0xe] }
  0x99   : > { %v2331_v36 = vrot.slane %v2329_v25, 4  ;;  %v5359_v44 = vcombine.low %v7156_v19, %v7162_v35  ;;  %v2335_v47 = vshll.u32 %v7394_v55, 16  ;;  %v5383_v19 = vrot.slane %v1235_v45, 9 }
  0x9a   : > { %v2952_v38 = vsel %vm7183_vm7, %v2950_v8, %v2951_v23  ;;  %8730 = vst [vmem:[#allocation3_spill] sm:$0xff] %v7504_v27  ;;  %v5384_v35 = vrot.slane %v1236_v59, 9  ;;  %v1302_v4 = vrot.slane %v7428_v9, 5  ;;  %v1309_v12 = vrot.slane %v7464_v1, 5  ;;  %v1240_v8 = vld [vmem:[%s6931_s6 + $0x3c] sm:$0xe] }
  0x9b   : > { %v5626_v40 = vcombine.low %v2949_v31, %v2952_v38  ;;  %v2332_v49 = vor.u32 %v2331_v36, %v7504_v27  ;;  %v7524_v51 = vrot.slane %v2335_v47, 5  ;;  %v5360_v58 = vcombine.low %v7177_v0, %v7190_v29  ;;  %v1241_v31 = vld [vmem:[%s6931_s6 + $0x48] sm:$0xe]  ;;  %v6818_v59 = vld [vmem:[%s6931_s6 + $0x38] sm:$0x1] }
  0x9c   : > { %6363 = vmatmul.mubr.msk.bf16.gmra.mrb[20].mxu0 %vm729_vm3, %v5622_v60  ;;  %v5358_v60 = vcombine.low %v7125_v24, %v7131_v37  ;;  %v6815_v24 = vld [vmem:[%s6931_s6 + $0x14] sm:$0x1]  ;;  %v4137_v54 = vsel %vm778_vm0, %v7248_v22, 0  ;;  %v5361_v61 = vcombine.low %v7209_v53, %v7216_v16  ;;  %v5362_v6 = vcombine.low %v7235_v39, %v7243_v43  ;;  %v6816_v16 = vld [vmem:[%s6931_s6 + $0x20] sm:$0x1] }
  0x9d   : > { %6211 = vmatmul.mubr.msk.bf16.gmra.mrb[4].mxu1 %vm729_vm3, %v5354_v28  ;;  %6366 = vmatprep.mubr.msk.bf16.mxu0 %vm729_vm3, %v5623_v20  ;;  %v1295_v28 = vrot.slane %v7421_v34, 5  ;;  %v6762_v20 = vld [vmem:[%s6931_s6 + $0x18] sm:$0xff]   ;;  %v6814_v34 = vld [vmem:[%s6931_s6 + $0x8] sm:$0x1]  ;;  %v1298_v37 = vrot.slane %v6815_v24, 5  ;;  %8731 = vst [vmem:[#allocation4_spill] sm:$0xff] %v7524_v51  ;;  %v5363_v9 = vcombine.low %v7267_v5, %v7279_v30 }
  0x9e   : > { %6214 = vmatprep.mubr.msk.bf16.mxu1 %vm729_vm3, %v5355_v48  ;;  %v1288_v48 = vrot.slane %v7387_v15, 5  ;;  %v1291_v50 = vrot.slane %v6814_v34, 5  ;;  %v1237_v15 = vld [vmem:[%s6931_s6 + $0x18] sm:$0xe]  ;;  %v7529_v63 = vrot.slane %v2332_v49, 4  ;;  %v1305_v22 = vrot.slane %v6816_v16, 5 }
  0x9f   : > { %v1297_v55 = vrot.slane %v1295_v28, 4  ;;  %v5385_v1 = vrot.slane %v1237_v15, 9  ;;  %v7551_v29 = vsel %vm7183_vm7, %v5384_v35, %v1295_v28  ;;  %v1311_v25 = vrot.slane %v1309_v12, 4  ;;  %v5708_v24 = vld [vmem:[%s6931_s6 + $0x18] sm:$0xf] }
  0xa0   : > { %v1290_v57 = vrot.slane %v1288_v48, 4  ;;  %8732 = vst [vmem:[#allocation5_spill] sm:$0xff] %v7529_v63  ;;  %v7547_v0 = vsel %vm7183_vm7, %v5383_v19, %v1288_v48  ;;  %v1319_v47 = vrot.slane %v6818_v59, 5  ;;  %v7588_v49 = vsel %vm778_vm0, %v7443_v7, 0  ;;  %v5709_v7 = vld [vmem:[%s6931_s6 + $0x1c] sm:$0xf] }
  0xa1   : > { %v7555_v53 = vsel %vm7183_vm7, %v1297_v55, %v1298_v37  ;;  %v7592_v34 = vsel %vm7183_vm7, %v5385_v1, %v1302_v4  ;;  %v6768_v37 = vld [vmem:[%s6931_s6 + $0x3c] sm:$0xff]   ;;  %v5388_v35 = vrot.slane %v1240_v8, 9  ;;  %v6819_v55 = vld [vmem:[%s6931_s6 + $0x44] sm:$0x1]  ;;  %v3658_v8 = vshll.u32 %v5708_v24, 16 }
  0xa2   : > { %v7566_v23 = vsel %vm7183_vm7, %v1290_v57, %v1291_v50  ;;  %v1242_v50 = vld [vmem:[%s6931_s6 + $0x54] sm:$0xe]  ;;  %v1326_v15 = vrot.slane %v6819_v55, 5  ;;  %v5712_v39 = vld [vmem:[%s6931_s6 + $0x28] sm:$0xf] }
  0xa3   : > { %v6826_v5 = vld [vmem:[%s6931_s6 + $0x70] sm:$0xf] }
  0xa4   : > { %6367 = vmatmul.mubr.msk.bf16.gmra.mrb[24].mxu0 %vm729_vm3, %v5624_v2  ;;  %v1238_v2 = vld [vmem:[%s6931_s6 + $0x24] sm:$0xe]  ;;  %v1351_v30 = vrot.slane %v6826_v5, 5 }
  0xa5   : > { %6215 = vmatmul.mubr.msk.bf16.gmra.mrb[8].mxu1 %vm729_vm3, %v5356_v10  ;;  %6370 = vmatprep.mubr.msk.bf16.mxu0 %vm729_vm3, %v5625_v11  ;;  %v1316_v10 = vrot.slane %v7469_v26, 5  ;;  %v6766_v11 = vld [vmem:[%s6931_s6 + $0x30] sm:$0xff]   ;;  %v5386_v21 = vrot.slane %v1238_v2, 9 }
  0xa6   : > { %6218 = vmatprep.mubr.msk.bf16.mxu1 %vm729_vm3, %v5357_v18  ;;  %v7562_v26 = vld [vmem:[%s8707_s1 + $0x10] sm:$0x3]  ;;  %v1304_v18 = vrot.slane %v1302_v4, 4  ;;  %v1353_v48 = vrot.slane %v1351_v30, 4 }
  0xa7   : > { %v1318_v45 = vrot.slane %v1316_v10, 4  ;;  %v7599_v19 = vsel %vm7183_vm7, %v5386_v21, %v1309_v12  ;;  %v3668_v21 = vshrl.u32 %v5709_v7, 16 }
  0xa8   : > { %v7608_v4 = vsel %vm7183_vm7, %v1304_v18, %v1305_v22  ;;  %v3655_v22 = vshrl.u32 %v5708_v24, 16  ;;  %v3664_v18 = vshll.u32 %v5709_v7, 16  ;;  %v5711_v24 = vld [vmem:[%s6931_s6 + $0x24] sm:$0xf] }
  0xa9   : > { %v7621_v1 = vsel %vm7183_vm7, %v1318_v45, %v1319_v47 }
  0xaa   : > { %v3657_v43 = vrot.slane %v3655_v22, 4  ;;  %v7663_v7 = vrot.slane %v3664_v18, 5  ;;  %v3682_v22 = vshll.u32 %v5711_v24, 16  ;;  %v3692_v18 = vshrl.u32 %v5712_v39, 16 }
  0xac   : > { %6371 = vmatmul.mubr.msk.bf16.gmra.mrb[28].mxu0 %vm729_vm3, %v5626_v40  ;;  %v6817_v40 = vld [vmem:[%s6931_s6 + $0x2c] sm:$0x1]  ;;  %v3684_v27 = vrot.slane %v3682_v22, 5 }
  0xad   : > { %6219 = vmatmul.mubr.msk.bf16.gmra.mrb[12].mxu1 %vm729_vm3, %v5358_v60  ;;  %6376 = vmatprep.mubr.msk.bf16.mxu0 %vm729_vm3, %v6762_v20  ;;  %v1312_v28 = vrot.slane %v6817_v40, 5  ;;  %v1323_v60 = vrot.slane %v7489_v17, 5  ;;  %v6822_v40 = vld [vmem:[%s6931_s6 + $0x50] sm:$0x1]  ;;  %v6827_v17 = vld [vmem:[%s6931_s6 + $0x74] sm:$0x1] }
  0xae   : > { %6222 = vmatprep.mubr.msk.bf16.mxu1 %vm729_vm3, %v5359_v44  ;;  %v5387_v44 = vrot.slane %v1239_v41, 9  ;;  %v5390_v41 = vrot.slane %v1242_v50, 9  ;;  %v1243_v50 = vld [vmem:[%s6931_s6 + $0x60] sm:$0xe]  ;;  %v5713_v20 = vld [vmem:[%s6931_s6 + $0x2c] sm:$0x1] }
  0xaf   : > { %v1325_v12 = vrot.slane %v1323_v60, 4  ;;  %v7634_v45 = vsel %vm7183_vm7, %v5388_v35, %v1323_v60  ;;  %v6823_v35 = vld [vmem:[%s6931_s6 + $0x5c] sm:$0x1] }
  0xb0   : > { %v7617_v2 = vsel %vm7183_vm7, %v5387_v44, %v1316_v10  ;;  %v1340_v55 = vrot.slane %v6823_v35, 5  ;;  %v1244_v35 = vld [vmem:[%s6931_s6 + $0x6c] sm:$0xe] }
  0xb1   : > { %v7638_v59 = vsel %vm7183_vm7, %v1325_v12, %v1326_v15  ;;  %v6824_v15 = vld [vmem:[%s6931_s6 + $0x64] sm:$0xf]  ;;  %v3670_v12 = vrot.slane %v3668_v21, 4  ;;  %v5392_v5 = vrot.slane %v1244_v35, 9 }
  0xb2   : > { %v6774_v21 = vld [vmem:[%s6931_s6 + $0x60] sm:$0xff]  }
  0xb4   : > { %6377 = vmatmul.mubr.msk.bf16.vlgmr.msra.gmra.mrb[0].mxu0 %vm729_vm3, %v6764_v62  ;;  %v6820_v62 = vld [vmem:[%s6931_s6 + $0x4c] sm:$0xf] }
  0xb5   : > { %6223 = vmatmul.mubr.msk.bf16.gmra.mrb[16].mxu1 %vm729_vm3, %v5360_v58  ;;  %6409 = vmatpush3.bf16.msra.mxu0 %v4137_v54  ;;  %v1330_v57 = vrot.slane %v6820_v62, 5  ;;  %v7612_v58 = vsel %vm7183_vm7, %v1311_v25, %v1312_v28  ;;  %v5389_v54 = vrot.slane %v1241_v31, 9  ;;  %v1333_v28 = vrot.slane %v6822_v40, 5 }
  0xb6   : > { %6226 = vmatprep.mubr.msk.bf16.mxu1 %vm729_vm3, %v5361_v61  ;;  %6380 = vmatprep.mubr.msk.bf16.mxu0 %vm729_vm3, %v6766_v11  ;;  %v6770_v61 = vld [vmem:[%s6931_s6 + $0x48] sm:$0xff]   ;;  %v6821_v11 = vld [vmem:[%s6931_s6 + $0x58] sm:$0xf]  ;;  %v1344_v62 = vrot.slane %v6824_v15, 5  ;;  %v5715_v15 = vld [vmem:[%s6931_s6 + $0x34] sm:$0xf] }
  0xb7   : > { %6743 = vmatprep.subr.msk.bf16.mxu0 %vm778_vm0, %v7562_v26  ;;  %v1337_v16 = vrot.slane %v6821_v11, 5  ;;  %v1332_v31 = vrot.slane %v1330_v57, 4  ;;  %v7642_v47 = vsel %vm7183_vm7, %v5389_v54, %v1330_v57  ;;  %v5710_v57 = vld [vmem:[%s6931_s6 + $0x20] sm:$0x1]  ;;  %v5714_v54 = vld [vmem:[%s6931_s6 + $0x30] sm:$0xf] }
  0xb8   : > { %v5391_v11 = vrot.slane %v1243_v50, 9  ;;  %v3706_v50 = vshll.u32 %v5714_v54, 16  ;;  %v3674_v25 = vshll.u32 %v5710_v57, 16  ;;  %v3712_v36 = vshll.u32 %v5715_v15, 16 }
  0xb9   : > { %v7653_v60 = vsel %vm7183_vm7, %v5390_v41, %v1337_v16  ;;  %v7669_v41 = vsel %vm7183_vm7, %v1332_v31, %v1333_v28  ;;  %v1346_v31 = vrot.slane %v1344_v62, 4  ;;  %v3703_v28 = vshrl.u32 %v5714_v54, 16 }
  0xba   : > { %v7711_v35 = vrot.slane %v3712_v36, 5 }
  0xbc   : > { %6381 = vmatmul.mubr.msk.bf16.gmra.mrb[4].mxu0 %vm729_vm3, %v6768_v37  ;;  %v1339_v37 = vrot.slane %v1337_v16, 4  ;;  %v6825_v16 = vld [vmem:[%s6931_s6 + $0x68] sm:$0x1] }
  0xbd   : > { %6227 = vmatmul.mubr.msk.bf16.gmra.mrb[20].mxu1 %vm729_vm3, %v5362_v6  ;;  %6384 = vmatprep.mubr.msk.bf16.mxu0 %vm729_vm3, %v6770_v61  ;;  %v3660_v6 = vrot.slane %v3658_v8, 5  ;;  %v6772_v61 = vld [vmem:[%s6931_s6 + $0x54] sm:$0xff]   ;;  %v1347_v40 = vrot.slane %v6825_v16, 5  ;;  %v3688_v8 = vshll.u32 %v5712_v39, 16  ;;  %v3671_v16 = vor.u32 %v3670_v12, %v7663_v7 }
  0xbe   : > { %6230 = vmatprep.mubr.msk.bf16.mxu1 %vm729_vm3, %v5363_v9  ;;  %v3679_v9 = vshrl.u32 %v5711_v24, 16  ;;  %v7678_v44 = vsel %vm7183_vm7, %v1339_v37, %v1340_v55  ;;  %v1354_v24 = vrot.slane %v6827_v17, 5  ;;  %v3716_v39 = vshrl.u32 %v5715_v15, 16 }
  0xbf   : > { %v3661_v10 = vor.u32 %v3660_v6, %v3657_v43  ;;  %v7684_v37 = vrot.slane %v3688_v8, 5  ;;  %v3694_v55 = vrot.slane %v3692_v18, 4  ;;  %v8733_v43 = vcombine.low %v7288_v52, %v7299_v46  ;;  %v6828_v8 = vld [vmem:[%s6931_s6 + $0x7c] sm:$0xf]  ;;  %v7720_v18 = vld [vmem:[%s6931_s6 + $0x38] sm:$0x1] }
  0xc0   : > { %v3681_v38 = vrot.slane %v3679_v9, 4  ;;  %v7693_v17 = vsel %vm7183_vm7, %v5391_v11, %v1344_v62  ;;  %v7697_v57 = vsel %vm7183_vm7, %v1346_v31, %v1347_v40  ;;  %v3705_v6 = vrot.slane %v3703_v28, 4  ;;  %8735 = vst [vmem:[#allocation6_spill] sm:$0xff] %v7720_v18 }
  0xc1   : > { %v3708_v12 = vrot.slane %v3706_v50, 5  ;;  %v8734_v52 = vcombine.low %v7320_v33, %v7325_v56  ;;  %v3662_v46 = vrot.slane %v3661_v10, 4  ;;  %v3672_v54 = vrot.slane %v3671_v16, 4  ;;  %v6776_v33 = vld [vmem:[%s6931_s6 + $0x6c] sm:$0xff]   ;;  %v1246_v16 = vld [vmem:[%s6931_s6 + $0x84] sm:$0xe] }
  0xc2   : > { %v3698_v62 = vshll.u32 %v5713_v20, 16  ;;  %v7705_v11 = vsel %vm7183_vm7, %v5392_v5, %v1351_v30  ;;  %v7709_v40 = vsel %vm7183_vm7, %v1353_v48, %v1354_v24  ;;  %v3718_v9 = vrot.slane %v3716_v39, 4  ;;  %v6777_v48 = vld [vmem:[%s6931_s6 + $0x78] sm:$0xff]  }
  0xc3   : > { %v3685_v10 = vor.u32 %v3684_v27, %v3681_v38  ;;  %v3695_v20 = vor.u32 %v3694_v55, %v7684_v37  ;;  %v1358_v30 = vrot.slane %v6828_v8, 5  ;;  %v3709_v38 = vor.u32 %v3708_v12, %v3705_v6  ;;  %v5717_v5 = vld [vmem:[%s6931_s6 + $0x3c] sm:$0xf] }
  0xc4   : > { %6385 = vmatmul.mubr.msk.bf16.gmra.mrb[8].mxu0 %vm729_vm3, %v6772_v61  ;;  %v3676_v61 = vrot.slane %v3674_v25, 5  ;;  %v1245_v25 = vld [vmem:[%s6931_s6 + $0x78] sm:$0xe]  ;;  %v7736_v50 = vrot.slane %v3698_v62, 5  ;;  %v3719_v39 = vor.u32 %v3718_v9, %v7711_v35  ;;  %v3722_v55 = vshll.u32 %v7720_v18, 16 }
  0xc5   : > { %6231 = vmatmul.mubr.msk.bf16.gmra.mrb[24].mxu1 %vm729_vm3, %v8733_v43  ;;  %6388 = vmatprep.mubr.msk.bf16.mxu0 %vm729_vm3, %v6774_v21  ;;  %v3667_v21 = vsel %vm6957_vm4, %v3662_v46, %v7663_v7  ;;  %v5393_v24 = vrot.slane %v1245_v25, 9  ;;  %v6829_v43 = vld [vmem:[%s6931_s6 + $0x88] sm:$0xf]  ;;  %v7744_v7 = vld [vmem:[%s6931_s6 + $0x40] sm:$0xf]  ;;  %v3686_v12 = vrot.slane %v3685_v10, 4  ;;  %v8737_v62 = vcombine.low %v7340_v14, %v7349_v42 }
  0xc6   : > { %6234 = vmatprep.mubr.msk.bf16.mxu1 %vm729_vm3, %v8734_v52  ;;  %v3677_v31 = vsel %vm6957_vm4, %v3672_v54, %v3676_v61  ;;  %v1365_v6 = vrot.slane %v6829_v43, 5  ;;  %8736 = vst [vmem:[#allocation7_spill] sm:$0xff] %v7744_v7  ;;  %v3696_v52 = vrot.slane %v3695_v20, 4  ;;  %v1360_v46 = vrot.slane %v1358_v30, 4  ;;  %v6830_v54 = vld [vmem:[%s6931_s6 + $0x80] sm:$0x1] }
  0xc7   : > { %v1361_v61 = vrot.slane %v6830_v54, 5  ;;  %v3710_v9 = vrot.slane %v3709_v38, 4  ;;  %v5394_v25 = vrot.slane %v1246_v16, 9  ;;  %v3727_v8 = vshrl.u32 %v5717_v5, 16  ;;  %v6778_v10 = vld [vmem:[%s6931_s6 + $0x84] sm:$0xff]  }
  0xc8   : > { %v3730_v43 = vshll.u32 %v5717_v5, 16  ;;  %v7758_v20 = vcombine.low %v3667_v21, %v3677_v31  ;;  %v7762_v14 = vsel %vm778_vm0, %v7562_v26, 0  ;;  %v3740_v38 = vshrl.u32 %v7744_v7, 16  ;;  %v6779_v21 = vld [vmem:[%s6931_s6 + $0x90] sm:$0xff]   ;;  %v6835_v18 = vld [vmem:[%s6931_s6 + $0xa0] sm:$0xf] }
  0xc9   : > { %v3720_v16 = vrot.slane %v3719_v39, 4  ;;  %v3724_v5 = vrot.slane %v3722_v55, 5  ;;  %v1367_v54 = vrot.slane %v1365_v6, 4  ;;  %v3691_v31 = vsel %vm6957_vm4, %v3686_v12, %v7684_v37 }
  0xca   : > { %v3701_v26 = vsel %vm6957_vm4, %v3696_v52, %v7736_v50  ;;  %v7777_v39 = vsel %vm7183_vm7, %v5393_v24, %v1358_v30  ;;  %v7781_v55 = vsel %vm7183_vm7, %v1360_v46, %v1361_v61  ;;  %v3715_v37 = vsel %vm6957_vm4, %v3710_v9, %v7711_v35  ;;  %v5723_v30 = vld [vmem:[%s6931_s6 + $0x54] sm:$0xf]  ;;  %v7798_v24 = vld [vmem:[%s6931_s6 + $0x58] sm:$0xf]  ;;  %v7803_v61 = vld [vmem:[%s6931_s6 + $0x90] sm:$0xe] }
  0xcb   : > { %v7794_v12 = vsel %vm7183_vm7, %v5394_v25, %v1365_v6  ;;  %v3729_v50 = vrot.slane %v3727_v8, 4  ;;  %v3732_v52 = vrot.slane %v3730_v43, 5  ;;  %v3742_v46 = vrot.slane %v3740_v38, 4 }
  0xcc   : > { %6389 = vmatmul.mubr.msk.bf16.gmra.mrb[12].mxu0 %vm729_vm3, %v6776_v33  ;;  %v8738_v33 = vcombine.low %v7547_v0, %v7566_v23  ;;  %v6831_v0 = vld [vmem:[%s6931_s6 + $0x8c] sm:$0x1]  ;;  %v3725_v36 = vsel %vm6957_vm4, %v3720_v16, %v3724_v5  ;;  %v3775_v25 = vshrl.u32 %v5723_v30, 16  ;;  %v3778_v8 = vshll.u32 %v5723_v30, 16 }
  0xcd   : > { %6235 = vmatmul.mubr.msk.bf16.gmra.mrb[28].mxu1 %vm729_vm3, %v8737_v62  ;;  %6392 = vmatprep.mubr.msk.bf16.mxu0 %vm729_vm3, %v6777_v48  ;;  %v3736_v48 = vshll.u32 %v7744_v7, 16  ;;  %v1368_v23 = vrot.slane %v6831_v0, 5  ;;  %v5720_v62 = vld [vmem:[%s6931_s6 + $0x48] sm:$0xf]  ;;  %v7787_v0 = vld [vmem:[%s6931_s6 + $0x4c] sm:$0xf]  ;;  %v8740_v38 = vcombine.low %v7551_v29, %v7555_v53  ;;  %v7821_v16 = vcombine.low %v3691_v31, %v3701_v26 }
  0xce   : > { %6240 = vmatprep.mubr.msk.bf16.mxu1 %vm729_vm3, %v8738_v33  ;;  %v7784_v33 = vld [vmem:[%s6931_s6 + $0x44] sm:$0x1]  ;;  %v3751_v27 = vshrl.u32 %v5720_v62, 16  ;;  %v3754_v15 = vshll.u32 %v5720_v62, 16  ;;  %v3760_v6 = vshll.u32 %v7787_v0, 16  ;;  %v3764_v9 = vshrl.u32 %v7787_v0, 16 }
  0xcf   : > { %8739 = vst [vmem:[#allocation8_spill] sm:$0xff] %v7784_v33  ;;  %v7800_v28 = vrot.slane %v3736_v48, 5  ;;  %v7809_v35 = vsel %vm7183_vm7, %v1367_v54, %v1368_v23  ;;  %v3784_v43 = vshll.u32 %v7798_v24, 16  ;;  %v3788_v48 = vshrl.u32 %v7798_v24, 16  ;;  %v5726_v31 = vld [vmem:[%s6931_s6 + $0x60] sm:$0xf] }
  0xd0   : > { %v3746_v5 = vshll.u32 %v7784_v33, 16  ;;  %v5395_v54 = vrot.slane %v7803_v61, 9  ;;  %v8741_v23 = vcombine.low %v7592_v34, %v7608_v4  ;;  %v7832_v29 = vcombine.low %v3715_v37, %v3725_v36  ;;  %v6780_v26 = vld [vmem:[%s6931_s6 + $0x9c] sm:$0xff]   ;;  %v6781_v30 = vld [vmem:[%s6931_s6 + $0xa8] sm:$0xff]  }
  0xd1   : > { %v3733_v53 = vor.u32 %v3732_v52, %v3729_v50  ;;  %v3753_v62 = vrot.slane %v3751_v27, 4  ;;  %v7843_v34 = vrot.slane %v3760_v6, 5  ;;  %v3766_v4 = vrot.slane %v3764_v9, 4  ;;  %v6832_v36 = vld [vmem:[%s8707_s1 + $0x8] sm:$0x3] }
  0xd2   : > { %v3777_v27 = vrot.slane %v3775_v25, 4  ;;  %v3780_v37 = vrot.slane %v3778_v8, 5  ;;  %v7852_v50 = vrot.slane %v3784_v43, 5  ;;  %v3790_v52 = vrot.slane %v3788_v48, 4  ;;  %v6833_v6 = vld [vmem:[%s6931_s6 + $0x94] sm:$0xf] }
  0xd3   : > { %v7858_v9 = vld [vmem:[%s6931_s6 + $0x64] sm:$0xf]  ;;  %v3799_v61 = vshrl.u32 %v5726_v31, 16  ;;  %v7860_v22 = vrot.slane %v3733_v53, 4  ;;  %v1379_v25 = vrot.slane %v6835_v18, 5  ;;  %v3767_v43 = vor.u32 %v3766_v4, %v7843_v34 }
  0xd4   : > { %6393 = vmatmul.mubr.msk.bf16.gmra.mrb[16].mxu0 %vm729_vm3, %v6778_v10  ;;  %8742 = vst [vmem:[#allocation9_spill] sm:$0xff] %v7858_v9  ;;  %v3802_v10 = vshll.u32 %v5726_v31, 16  ;;  %v3781_v31 = vor.u32 %v3780_v37, %v3777_v27  ;;  %v3791_v53 = vor.u32 %v3790_v52, %v7852_v50  ;;  %v8743_v18 = vcombine.low %v7599_v19, %v7612_v58  ;;  %v6782_v37 = vld [vmem:[%s6931_s6 + $0xb4] sm:$0xff]  }
  0xd5   : > { %6241 = vmatmul.mubr.msk.bf16.vlgmr.msra.gmra.mrb[0].mxu1 %vm729_vm3, %v8740_v38  ;;  %6396 = vmatprep.mubr.msk.bf16.mxu0 %vm729_vm3, %v6779_v21  ;;  %v3756_v21 = vrot.slane %v3754_v15, 5  ;;  %v7841_v38 = vld [vmem:[%s6931_s6 + $0x50] sm:$0x1]  ;;  %v7850_v15 = vld [vmem:[%s6931_s6 + $0x5c] sm:$0x1]  ;;  %v8744_v27 = vcombine.low %v7617_v2, %v7621_v1  ;;  %v1381_v52 = vrot.slane %v1379_v25, 4 }
  0xd6   : > { %6273 = vmatpush3.bf16.msra.mxu1 %v7588_v49  ;;  %6244 = vmatprep.mubr.msk.bf16.mxu1 %vm729_vm3, %v8741_v23  ;;  %v3743_v49 = vor.u32 %v3742_v46, %v7800_v28  ;;  %v7854_v46 = vrot.slane %v3746_v5, 5  ;;  %v1372_v23 = vrot.slane %v6833_v6, 5  ;;  %v3770_v48 = vshll.u32 %v7841_v38, 16  ;;  %v1248_v5 = vld [vmem:[%s6931_s6 + $0x9c] sm:$0xe] }
  0xd7   : > { %6739 = vmatprep.subr.msk.bf16.mxu1 %vm778_vm0, %v6832_v36  ;;  %v6834_v36 = vld [vmem:[%s6931_s6 + $0x98] sm:$0x1]  ;;  %v3757_v7 = vor.u32 %v3756_v21, %v3753_v62  ;;  %v3794_v6 = vshll.u32 %v7850_v15, 16  ;;  %v3812_v62 = vshrl.u32 %v7858_v9, 16  ;;  %v3804_v4 = vrot.slane %v3802_v10, 5 }
  0xd8   : > { %v1375_v33 = vrot.slane %v6834_v36, 5  ;;  %v3744_v8 = vrot.slane %v3743_v49, 4  ;;  %v3808_v36 = vshll.u32 %v7858_v9, 16  ;;  %v7879_v21 = vsel %vm7183_vm7, %v5395_v54, %v1372_v23  ;;  %v7890_v2 = vld [vmem:[%s6931_s6 + $0x68] sm:$0x1] }
  0xd9   : > { %v3801_v49 = vrot.slane %v3799_v61, 4  ;;  %v3758_v19 = vrot.slane %v3757_v7, 4  ;;  %v5396_v58 = vrot.slane %v1248_v5, 9  ;;  %v3768_v3 = vrot.slane %v3767_v43, 4  ;;  %8745 = vst [vmem:[#allocation10_spill] sm:$0xff] %v7890_v2  ;;  %v6783_v5 = vld [vmem:[%s6931_s6 + $0xc0] sm:$0xff]  }
  0xda   : > { %v3772_v54 = vrot.slane %v3770_v48, 5  ;;  %v3796_v63 = vrot.slane %v3794_v6, 5  ;;  %v1386_v61 = vrot.slane %v7325_v56, 5  ;;  %v3782_v10 = vrot.slane %v3781_v31, 4  ;;  %v1250_v31 = vld [vmem:[%s6931_s6 + $0xb4] sm:$0xe] }
  0xdb   : > { %v3792_v51 = vrot.slane %v3791_v53, 4  ;;  %v7892_v1 = vrot.slane %v3808_v36, 5  ;;  %v3814_v7 = vrot.slane %v3812_v62, 4  ;;  %v3739_v43 = vsel %vm6957_vm4, %v7860_v22, %v7800_v28  ;;  %v6837_v62 = vld [vmem:[%s6931_s6 + $0xb0] sm:$0x1] }
  0xdc   : > { %6397 = vmatmul.mubr.msk.bf16.gmra.mrb[20].mxu0 %vm729_vm3, %v6780_v26  ;;  %v1374_v26 = vrot.slane %v1372_v23, 4  ;;  %v1249_v23 = vld [vmem:[%s6931_s6 + $0xa8] sm:$0xe]  ;;  %v3749_v48 = vsel %vm6957_vm4, %v3744_v8, %v7854_v46  ;;  %v3805_v6 = vor.u32 %v3804_v4, %v3801_v49  ;;  %v3763_v53 = vsel %vm6957_vm4, %v3758_v19, %v7843_v34  ;;  %v5729_v46 = vld [vmem:[%s6931_s6 + $0x6c] sm:$0xf] }
  0xdd   : > { %6245 = vmatmul.mubr.msk.bf16.gmra.mrb[4].mxu1 %vm729_vm3, %v8743_v18  ;;  %6400 = vmatprep.mubr.msk.bf16.mxu0 %vm729_vm3, %v6781_v30  ;;  %v6836_v18 = vld [vmem:[%s6931_s6 + $0xa4] sm:$0x1]  ;;  %v7912_v36 = vsel %vm7183_vm7, %v5396_v58, %v1379_v25  ;;  %v5397_v28 = vrot.slane %v1249_v23, 9  ;;  %v1388_v8 = vrot.slane %v1386_v61, 4  ;;  %v3818_v49 = vshll.u32 %v7890_v2, 16 }
  0xde   : > { %6248 = vmatprep.mubr.msk.bf16.mxu1 %vm729_vm3, %v8744_v27  ;;  %v1382_v30 = vrot.slane %v6836_v18, 5  ;;  %v7904_v56 = vsel %vm7183_vm7, %v1374_v26, %v1375_v33  ;;  %v3773_v33 = vsel %vm6957_vm4, %v3768_v3, %v3772_v54  ;;  %v1389_v26 = vrot.slane %v6837_v62, 5  ;;  %v5732_v18 = vld [vmem:[%s6931_s6 + $0x78] sm:$0xf]  ;;  %v7967_v54 = vld [vmem:[%s6931_s6 + $0xbc] sm:$0x1] }
  0xdf   : > { %v3787_v34 = vsel %vm6957_vm4, %v3782_v10, %v7852_v50  ;;  %v3797_v25 = vsel %vm6957_vm4, %v3792_v51, %v3796_v63  ;;  %v3815_v4 = vor.u32 %v3814_v7, %v7892_v1  ;;  %v5398_v27 = vrot.slane %v1250_v31, 9  ;;  %v7941_v51 = vld [vmem:[%s6931_s6 + $0x70] sm:$0xf]  ;;  %v7971_v10 = vld [vmem:[%s6931_s6 + $0x7c] sm:$0xf] }
  0xe0   : > { %v7916_v22 = vsel %vm7183_vm7, %v1381_v52, %v1382_v30  ;;  %v8747_v3 = vcombine.low %v7634_v45, %v7638_v59  ;;  %v7937_v19 = vrot.slane %v3805_v6, 4  ;;  %v1393_v50 = vrot.slane %v7349_v42, 5  ;;  %8748 = vst [vmem:[#allocation12_spill] sm:$0xff] %v7941_v51  ;;  %8750 = vst [vmem:[#allocation13_spill] sm:$0xff] %v7971_v10  ;;  %v5735_v7 = vld [vmem:[%s6931_s6 + $0x84] sm:$0xf] }
  0xe1   : > { %8746 = vst [vmem:[#allocation11_spill] sm:$0xff] %v7916_v22  ;;  %v3823_v63 = vshrl.u32 %v5729_v46, 16  ;;  %v8749_v45 = vcombine.low %v7642_v47, %v7669_v41  ;;  %v7949_v58 = vcombine.low %v3763_v53, %v3773_v33  ;;  %v7955_v42 = vsel %vm7183_vm7, %v5397_v28, %v1386_v61  ;;  %v6784_v61 = vld [vmem:[%s6931_s6 + $0xcc] sm:$0xff]   ;;  %v7983_v31 = vld [vmem:[%s6931_s6 + $0x88] sm:$0xf] }
  0xe2   : > { %v7958_v30 = vcombine.low %v3787_v34, %v3797_v25  ;;  %v7962_v47 = vsel %vm7183_vm7, %v1388_v8, %v1389_v26  ;;  %v7964_v41 = vrot.slane %v3818_v49, 5  ;;  %v3832_v6 = vshll.u32 %v7941_v51, 16  ;;  %8751 = vst [vmem:[#allocation14_spill] sm:$0xff] %v7983_v31  ;;  %v5738_v62 = vld [vmem:[%s6931_s6 + $0x90] sm:$0xf] }
  0xe3   : > { %v7989_v28 = vrot.slane %v1393_v50, 4  ;;  %v7991_v33 = vrot.slane %v3823_v63, 4  ;;  %v3836_v8 = vshrl.u32 %v7941_v51, 16  ;;  %v3847_v26 = vshrl.u32 %v5732_v18, 16  ;;  %v7998_v25 = vld [vmem:[%s6931_s6 + $0x94] sm:$0xf] }
  0xe4   : > { %6401 = vmatmul.mubr.msk.bf16.gmra.mrb[24].mxu0 %vm729_vm3, %v6782_v37  ;;  %v7935_v37 = vcombine.low %v3739_v43, %v3749_v48  ;;  %v7979_v43 = vsel %vm7183_vm7, %v5398_v27, %v1393_v50  ;;  %v3826_v48 = vshll.u32 %v5729_v46, 16  ;;  %v3850_v49 = vshll.u32 %v5732_v18, 16  ;;  %8752 = vst [vmem:[#allocation15_spill] sm:$0xff] %v7998_v25  ;;  %v8036_v2 = vld [vmem:[%s6931_s6 + $0x8c] sm:$0x1] }
  0xe5   : > { %6249 = vmatmul.mubr.msk.bf16.gmra.mrb[8].mxu1 %vm729_vm3, %v8747_v3  ;;  %6404 = vmatprep.mubr.msk.bf16.mxu0 %vm729_vm3, %v6783_v5  ;;  %v7975_v5 = vrot.slane %v3815_v4, 4  ;;  %v3856_v46 = vshll.u32 %v7971_v10, 16  ;;  %v3860_v34 = vshrl.u32 %v7971_v10, 16  ;;  %v3871_v4 = vshrl.u32 %v5735_v7, 16 }
  0xe6   : > { %6252 = vmatprep.mubr.msk.bf16.mxu1 %vm729_vm3, %v8749_v45  ;;  %v3874_v27 = vshll.u32 %v5735_v7, 16  ;;  %v3880_v3 = vshll.u32 %v7983_v31, 16  ;;  %v3884_v50 = vshrl.u32 %v7983_v31, 16  ;;  %v8008_v45 = vld [vmem:[%s6931_s6 + $0x74] sm:$0x1]  ;;  %v3828_v18 = vrot.slane %v3826_v48, 5 }
  0xe7   : > { %v3895_v52 = vshrl.u32 %v5738_v62, 16  ;;  %v3898_v53 = vshll.u32 %v5738_v62, 16  ;;  %v8753_v7 = vcombine.low %v7653_v60, %v7678_v44  ;;  %v3838_v59 = vrot.slane %v3836_v8, 4  ;;  %v5741_v48 = vld [vmem:[%s6931_s6 + $0x9c] sm:$0xf] }
  0xe8   : > { %v3904_v63 = vshll.u32 %v7998_v25, 16  ;;  %v3908_v23 = vshrl.u32 %v7998_v25, 16  ;;  %v8754_v62 = vcombine.low %v7693_v17, %v7697_v57  ;;  %v8026_v44 = vld [vmem:[%s6931_s6 + $0x80] sm:$0x1]  ;;  %v3849_v60 = vrot.slane %v3847_v26, 4 }
  0xe9   : > { %8755 = vst [vmem:[#allocation16_spill] sm:$0xff] %v8026_v44  ;;  %v3873_v31 = vrot.slane %v3871_v4, 4  ;;  %v3876_v8 = vrot.slane %v3874_v27, 5  ;;  %v8030_v10 = vrot.slane %v3880_v3, 5  ;;  %v3886_v51 = vrot.slane %v3884_v50, 4 }
  0xea   : > { %v8033_v25 = vld [vmem:[%s6931_s6 + $0xa0] sm:$0xf]  ;;  %v3897_v17 = vrot.slane %v3895_v52, 4  ;;  %v3900_v57 = vrot.slane %v3898_v53, 5  ;;  %v3922_v9 = vshll.u32 %v5741_v48, 16  ;;  %v3829_v26 = vor.u32 %v3828_v18, %v7991_v33 }
  0xeb   : > { %v3866_v27 = vshll.u32 %v8026_v44, 16  ;;  %v8045_v3 = vld [vmem:[%s6931_s6 + $0x98] sm:$0x1]  ;;  %v3928_v50 = vshll.u32 %v8033_v25, 16  ;;  %v3932_v52 = vshrl.u32 %v8033_v25, 16  ;;  %v3877_v22 = vor.u32 %v3876_v8, %v3873_v31 }
  0xec   : > { %6405 = vmatmul.mubr.msk.bf16.gmra.mrb[28].mxu0 %vm729_vm3, %v6784_v61  ;;  %v8016_v61 = vrot.slane %v3832_v6, 5  ;;  %v3862_v6 = vrot.slane %v3860_v34, 4  ;;  %v3910_v34 = vrot.slane %v3908_v23, 4  ;;  %v3890_v33 = vshll.u32 %v8036_v2, 16 }
  0xed   : > { %6253 = vmatmul.mubr.msk.bf16.gmra.mrb[12].mxu1 %vm729_vm3, %v8753_v7  ;;  %6410 = vmatprep.mubr.msk.bf16.mxu0 %vm729_vm3, %v7758_v20  ;;  %v3852_v7 = vrot.slane %v3850_v49, 5  ;;  %v8028_v20 = vrot.slane %v3856_v46, 5  ;;  %v3842_v49 = vshll.u32 %v8008_v45, 16  ;;  %v8040_v46 = vrot.slane %v3904_v63, 5 }
  0xee   : > { %6256 = vmatprep.mubr.msk.bf16.mxu1 %vm729_vm3, %v8754_v62  ;;  %v3919_v62 = vshrl.u32 %v5741_v48, 16  ;;  %v3839_v4 = vor.u32 %v3838_v59, %v8016_v61  ;;  %v3887_v23 = vor.u32 %v3886_v51, %v8030_v10  ;;  %v3901_v59 = vor.u32 %v3900_v57, %v3897_v17  ;;  %v8078_v57 = vld [vmem:[%s6931_s6 + $0xa4] sm:$0x1] }
  0xef   : > { %v3853_v53 = vor.u32 %v3852_v7, %v3849_v60  ;;  %v3863_v48 = vor.u32 %v3862_v6, %v8028_v20  ;;  %v3924_v18 = vrot.slane %v3922_v9, 5  ;;  %v8756_v44 = vcombine.low %v7705_v11, %v7709_v40 }
  0xf0   : > { %v3921_v63 = vrot.slane %v3919_v62, 4  ;;  %v8757_v31 = vrot.slane %v7967_v54, 5  ;;  %v3844_v51 = vrot.slane %v3842_v49, 5  ;;  %v3911_v60 = vor.u32 %v3910_v34, %v8040_v46  ;;  %v8081_v34 = vld [vmem:[%s6931_s6 + $0xac] sm:$0xf] }
  0xf1   : > { %v3914_v9 = vshll.u32 %v8045_v3, 16  ;;  %v8758_v11 = vcombine.low %v7777_v39, %v7781_v55  ;;  %v3830_v40 = vrot.slane %v3829_v26, 4  ;;  %v8074_v54 = vrot.slane %v3928_v50, 5 }
  0xf2   : > { %v3854_v7 = vrot.slane %v3853_v53, 4  ;;  %v3864_v6 = vrot.slane %v3863_v48, 4  ;;  %v3868_v8 = vrot.slane %v3866_v27, 5  ;;  %v3892_v17 = vrot.slane %v3890_v33, 5  ;;  %v8091_v48 = vld [vmem:[%s6931_s6 + $0xb0] sm:$0x1] }
  0xf3   : > { %v3878_v39 = vrot.slane %v3877_v22, 4  ;;  %v3888_v55 = vrot.slane %v3887_v23, 4  ;;  %v3902_v62 = vrot.slane %v3901_v59, 4  ;;  %v3925_v49 = vor.u32 %v3924_v18, %v3921_v63 }
  0xf4   : > { %6411 = vmatmul.mubr.msk.bf16.vlgmr.msra.gmra.mrb[0].mxu0 %vm729_vm3, %v7821_v16  ;;  %v8064_v16 = vsel %vm7183_vm7, %v7989_v28, %v8757_v31  ;;  %v3934_v28 = vrot.slane %v3932_v52, 4  ;;  %v3916_v26 = vrot.slane %v3914_v9, 5  ;;  %v3835_v52 = vsel %vm6957_vm4, %v3830_v40, %v8016_v61 }
  0xf5   : > { %6257 = vmatmul.mubr.msk.bf16.gmra.mrb[16].mxu1 %vm729_vm3, %v8756_v44  ;;  %6443 = vmatpush3.bf16.msra.mxu0 %v7762_v14  ;;  %v3840_v14 = vrot.slane %v3839_v4, 4  ;;  %v5744_v44 = vld [vmem:[%s6931_s6 + $0xa8] sm:$0xf]  ;;  %v3938_v22 = vshll.u32 %v8078_v57, 16  ;;  %v3859_v33 = vsel %vm6957_vm4, %v3854_v7, %v8028_v20  ;;  %v3869_v23 = vsel %vm6957_vm4, %v3864_v6, %v3868_v8 }
  0xf6   : > { %6260 = vmatprep.mubr.msk.bf16.mxu1 %vm729_vm3, %v8758_v11  ;;  %6414 = vmatprep.mubr.msk.bf16.mxu0 %vm729_vm3, %v7832_v29  ;;  %v3912_v29 = vrot.slane %v3911_v60, 4  ;;  %v3943_v4 = vshrl.u32 %v5744_v44, 16  ;;  %v3946_v50 = vshll.u32 %v5744_v44, 16  ;;  %v3935_v53 = vor.u32 %v3934_v28, %v8074_v54  ;;  %v5793_v11 = vld [vmem:[%s6931_s6 + $0x48] sm:$0xe] }
  0xf7   : > { %v3845_v27 = vsel %vm6957_vm4, %v3840_v14, %v3844_v51  ;;  %v3952_v59 = vshll.u32 %v8081_v34, 16  ;;  %v3956_v61 = vshrl.u32 %v8081_v34, 16  ;;  %v3883_v63 = vsel %vm6957_vm4, %v3878_v39, %v8030_v10  ;;  %v8156_v39 = vld [vmem:[%s6931_s6 + $0xb8] sm:$0xf] }
  0xf8   : > { %v3893_v18 = vsel %vm6957_vm4, %v3888_v55, %v3892_v17  ;;  %v3907_v20 = vsel %vm6957_vm4, %v3902_v62, %v8040_v46  ;;  %v3926_v31 = vrot.slane %v3925_v49, 4  ;;  %v8759_v51 = vcombine.low %v7794_v12, %v7809_v35 }
  0xf9   : > { %v3945_v10 = vrot.slane %v3943_v4, 4  ;;  %v3948_v60 = vrot.slane %v3946_v50, 5  ;;  %v3962_v9 = vshll.u32 %v8091_v48, 16  ;;  %v8760_v46 = vcombine.low %v7879_v21, %v7904_v56  ;;  %v5747_v21 = vld [vmem:[%s6931_s6 + $0xb4] sm:$0xf] }
  0xfa   : > { %v5414_v12 = vcombine.low %v7955_v42, %v7962_v47  ;;  %v8761_v35 = vsel %vm6957_vm4, %v7975_v5, %v7964_v41  ;;  %v3936_v14 = vrot.slane %v3935_v53, 4  ;;  %v3940_v28 = vrot.slane %v3938_v22, 5  ;;  %v5795_v4 = vld [vmem:[%s6931_s6 + $0x60] sm:$0xe]  ;;  %v5796_v53 = vld [vmem:[%s6931_s6 + $0x6c] sm:$0xe] }
  0xfb   : > { %v5415_v56 = vcombine.low %v7979_v43, %v8064_v16  ;;  %v8139_v44 = vcombine.low %v3835_v52, %v3845_v27  ;;  %v8141_v42 = vrot.slane %v3952_v59, 5  ;;  %v3958_v47 = vrot.slane %v3956_v61, 4  ;;  %v8770_v16 = vld [vmem:[#allocation4_spill] sm:$0xff] }
  0xfc   : > { %6415 = vmatmul.mubr.msk.bf16.gmra.mrb[4].mxu0 %vm729_vm3, %v7935_v37  ;;  %v3917_v37 = vsel %vm6957_vm4, %v3912_v29, %v3916_v26  ;;  %v8143_v41 = vcombine.low %v3859_v33, %v3869_v23  ;;  %v8145_v5 = vcombine.low %v3883_v63, %v3893_v18  ;;  %v3931_v6 = vsel %vm6957_vm4, %v3926_v31, %v8074_v54  ;;  %v8763_v23 = vld [vmem:[#allocation11_spill] sm:$0xff]  ;;  %v5750_v63 = vld [vmem:[%s6931_s6 + $0xc0] sm:$0xf]  ;;  %v8765_v18 = vld [vmem:[#allocation9_spill] sm:$0xff] }
  0xfd   : > { %6261 = vmatmul.mubr.msk.bf16.gmra.mrb[20].mxu1 %vm729_vm3, %v8759_v51  ;;  %6418 = vmatprep.mubr.msk.bf16.mxu0 %vm729_vm3, %v7949_v58  ;;  %v8762_v58 = vsel %vm6957_vm4, %v7937_v19, %v7892_v1  ;;  %v8147_v7 = vcombine.low %v3907_v20, %v3917_v37  ;;  %v5809_v1 = vrot.slane %v5793_v11, 9  ;;  %v5794_v19 = vld [vmem:[%s6931_s6 + $0x54] sm:$0xe]  ;;  %v3949_v8 = vor.u32 %v3948_v60, %v3945_v10  ;;  %v8766_v31 = vld [vmem:[#allocation10_spill] sm:$0xff] }
  0xfe   : > { %6264 = vmatprep.mubr.msk.bf16.mxu1 %vm729_vm3, %v8760_v46  ;;  %v5763_v40 = vcombine.low %v8762_v58, %v8761_v35  ;;  %v8153_v17 = vrot.slane %v3962_v9, 5  ;;  %v3967_v55 = vshrl.u32 %v5747_v21, 16  ;;  %v3941_v62 = vsel %vm6957_vm4, %v3936_v14, %v3940_v28  ;;  %v8767_v9 = vld [vmem:[#allocation12_spill] sm:$0xff]  ;;  %v8205_v35 = vld [vmem:[%s6931_s6 + $0xbc] sm:$0x1] }
  0xff   : > { %v3970_v49 = vshll.u32 %v5747_v21, 16  ;;  %v4426_v29 = vrot.slane %v7787_v0, 5  ;;  %v4429_v26 = vrot.slane %v7841_v38, 5  ;;  %v3959_v50 = vor.u32 %v3958_v47, %v8141_v42  ;;  %v8208_v58 = vld [vmem:[%s6931_s6 + $0xc4] sm:$0xf] }
 0x100   : > { %v5810_v52 = vrot.slane %v5794_v19, 9  ;;  %v4433_v54 = vrot.slane %v7798_v24, 5  ;;  %v4436_v27 = vrot.slane %v7850_v15, 5  ;;  %v3976_v22 = vshll.u32 %v8156_v39, 16  ;;  %v5797_v19 = vld [vmem:[%s6931_s6 + $0x78] sm:$0xe] }
 0x101   : > { %v3980_v33 = vshrl.u32 %v8156_v39, 16  ;;  %v8173_v0 = vsel %vm7183_vm7, %v5809_v1, %v4426_v29  ;;  %v4428_v38 = vrot.slane %v4426_v29, 4  ;;  %v8764_v59 = vcombine.low %v7912_v36, %v8763_v23  ;;  %v8768_v23 = vld [vmem:[#allocation13_spill] sm:$0xff] }
 0x102   : > { %v8180_v24 = vcombine.low %v3931_v6, %v3941_v62  ;;  %v8184_v15 = vsel %vm7183_vm7, %v5810_v52, %v4433_v54  ;;  %v5811_v61 = vrot.slane %v5795_v4, 9  ;;  %v4440_v20 = vrot.slane %v8765_v18, 5  ;;  %v6785_v6 = vld [vmem:[%s6931_s6 + $0xc] sm:$0xff]  }
 0x103   : > { %v8190_v36 = vsel %vm7183_vm7, %v4428_v38, %v4429_v26  ;;  %v4443_v51 = vrot.slane %v8766_v31, 5  ;;  %v5812_v37 = vrot.slane %v5796_v53, 9  ;;  %v4447_v11 = vrot.slane %v8767_v9, 5 }
 0x104   : > { %6419 = vmatmul.mubr.msk.bf16.gmra.mrb[8].mxu0 %vm729_vm3, %v7958_v30  ;;  %v4435_v30 = vrot.slane %v4433_v54, 4  ;;  %v5826_v10 = vcombine.low %v8173_v0, %v8190_v36  ;;  %v4450_v46 = vrot.slane %v8008_v45, 5  ;;  %v8214_v14 = vsel %vm7183_vm7, %v5811_v61, %v4440_v20 }
 0x105   : > { %6265 = vmatmul.mubr.msk.bf16.gmra.mrb[24].mxu1 %vm729_vm3, %v8764_v59  ;;  %6422 = vmatprep.mubr.msk.bf16.mxu0 %vm729_vm3, %v5763_v40  ;;  %v4442_v28 = vrot.slane %v4440_v20, 4  ;;  %v8216_v21 = vrot.slane %v3967_v55, 4  ;;  %v3991_v47 = vshrl.u32 %v5750_v63, 16  ;;  %v8220_v45 = vsel %vm7183_vm7, %v5812_v37, %v4447_v11  ;;  %v5524_v55 = vld [vmem:[%s6931_s6 + $0x78] sm:$0xf]  ;;  %v8769_v59 = vld [vmem:[#allocation16_spill] sm:$0xff] }
 0x106   : > { %6268 = vmatprep.mubr.msk.bf16.mxu1 %vm729_vm3, %v5414_v12  ;;  %v8198_v60 = vsel %vm7183_vm7, %v4435_v30, %v4436_v27  ;;  %v8202_v12 = vrot.slane %v3949_v8, 4  ;;  %v4449_v1 = vrot.slane %v4447_v11, 4  ;;  %v8224_v8 = vrot.slane %v3959_v50, 4 }
 0x107   : > { %v5827_v40 = vcombine.low %v8184_v15, %v8198_v60  ;;  %v8226_v62 = vrot.slane %v3970_v49, 5  ;;  %v3994_v29 = vshll.u32 %v5750_v63, 16  ;;  %v8230_v26 = vsel %vm7183_vm7, %v4442_v28, %v4443_v51  ;;  %v8772_v28 = vld [vmem:[#allocation14_spill] sm:$0xff] }
 0x108   : > { %v8233_v4 = vrot.slane %v3976_v22, 5  ;;  %v8235_v52 = vrot.slane %v3980_v33, 4  ;;  %v5828_v54 = vcombine.low %v8214_v14, %v8230_v26  ;;  %v8241_v27 = vsel %vm7183_vm7, %v4449_v1, %v4450_v46  ;;  %v5798_v33 = vld [vmem:[%s6931_s6 + $0x84] sm:$0xe]  ;;  %v6786_v1 = vld [vmem:[%s6931_s6 + $0x18] sm:$0xff]  }
 0x109   : > { %v3986_v49 = vshll.u32 %v8205_v35, 16  ;;  %v4000_v50 = vshll.u32 %v8208_v58, 16  ;;  %v5829_v53 = vcombine.low %v8220_v45, %v8241_v27  ;;  %v5813_v22 = vrot.slane %v5797_v19, 9  ;;  %v6848_v60 = vld [vmem:[%s6931_s6 + $0xa0] sm:$0xf] }
 0x10a   : > { %v3993_v38 = vrot.slane %v3991_v47, 4  ;;  %v4457_v30 = vrot.slane %v8769_v59, 5  ;;  %v2316_v61 = vshrl.u32 %v5524_v55, 16  ;;  %v3996_v63 = vrot.slane %v3994_v29, 5  ;;  %v5753_v29 = vld [vmem:[%s6931_s6 + $0xcc] sm:$0xf] }
 0x10b   : > { %v4004_v18 = vshrl.u32 %v8208_v58, 16  ;;  %v2319_v43 = vshll.u32 %v5524_v55, 16  ;;  %v5814_v37 = vrot.slane %v5798_v33, 9  ;;  %v3955_v9 = vsel %vm6957_vm4, %v8202_v12, %v8141_v42  ;;  %v8284_v55 = vld [vmem:[%s6931_s6 + $0xd0] sm:$0xf] }
 0x10c   : > { %6423 = vmatmul.mubr.msk.bf16.gmra.mrb[12].mxu0 %vm729_vm3, %v8139_v44  ;;  %v4454_v44 = vrot.slane %v8768_v23, 5  ;;  %v2318_v51 = vrot.slane %v2316_v61, 4  ;;  %v3973_v11 = vor.u32 %v8226_v62, %v8216_v21  ;;  %v4461_v47 = vrot.slane %v8772_v28, 5  ;;  %v6787_v21 = vld [vmem:[%s6931_s6 + $0x24] sm:$0xff]   ;;  %v6852_v27 = vld [vmem:[%s6931_s6 + $0xac] sm:$0xf] }
 0x10d   : > { %6269 = vmatmul.mubr.msk.bf16.gmra.mrb[28].mxu1 %vm729_vm3, %v5415_v56  ;;  %6426 = vmatprep.mubr.msk.bf16.mxu0 %vm729_vm3, %v8143_v41  ;;  %v8771_v56 = vld [vmem:[#allocation5_spill] sm:$0xff]  ;;  %v2321_v46 = vrot.slane %v2319_v43, 5  ;;  %v3965_v19 = vsel %vm6957_vm4, %v8224_v8, %v8153_v17  ;;  %v4464_v12 = vrot.slane %v8036_v2, 5  ;;  %v8292_v62 = vrot.slane %v4000_v50, 5  ;;  %v5799_v8 = vld [vmem:[%s6931_s6 + $0x90] sm:$0xe] }
 0x10e   : > { %6274 = vmatprep.mubr.msk.bf16.mxu1 %vm729_vm3, %v6785_v6  ;;  %v2338_v41 = vsel %vm6957_vm4, %v8771_v56, %v8770_v16  ;;  %v8266_v20 = vsel %vm7183_vm7, %v5813_v22, %v4454_v44  ;;  %v4456_v31 = vrot.slane %v4454_v44, 4  ;;  %v3983_v6 = vor.u32 %v8235_v52, %v8233_v4  ;;  %v8298_v52 = vld [vmem:[%s6931_s6 + $0xc8] sm:$0x1]  ;;  %v8774_v16 = vld [vmem:[#allocation2_spill] sm:$0xff] }
 0x10f   : > { %v4006_v22 = vrot.slane %v4004_v18, 4  ;;  %v2322_v17 = vor.u32 %v2321_v46, %v2318_v51  ;;  %v3988_v23 = vrot.slane %v3986_v49, 5  ;;  %v3997_v44 = vor.u32 %v3996_v63, %v3993_v38  ;;  %v8775_v51 = vld [vmem:[#allocation3_spill] sm:$0xff] }
 0x110   : > { %v8288_v42 = vsel %vm7183_vm7, %v4456_v31, %v4457_v30  ;;  %v8302_v59 = vsel %vm7183_vm7, %v5814_v37, %v4461_v47  ;;  %v4463_v30 = vrot.slane %v4461_v47, 4  ;;  %v4015_v2 = vshrl.u32 %v5753_v29, 16 }
 0x111   : > { %v5830_v33 = vcombine.low %v8266_v20, %v8288_v42  ;;  %v4018_v50 = vshll.u32 %v5753_v29, 16  ;;  %v4024_v61 = vshll.u32 %v8284_v55, 16  ;;  %v2323_v18 = vrot.slane %v2322_v17, 4  ;;  %v6788_v29 = vld [vmem:[%s6931_s6 + $0x30] sm:$0xff]  }
 0x112   : > { %v4028_v49 = vshrl.u32 %v8284_v55, 16  ;;  %v8313_v38 = vsel %vm7183_vm7, %v4463_v30, %v4464_v12  ;;  %v5815_v63 = vrot.slane %v5799_v8, 9  ;;  %v4007_v56 = vor.u32 %v4006_v22, %v8292_v62 }
 0x113   : > { %v4010_v31 = vshll.u32 %v8298_v52, 16  ;;  %v5831_v37 = vcombine.low %v8302_v59, %v8313_v38  ;;  %v5769_v46 = vcombine.low %v3955_v9, %v3965_v19  ;;  %v3974_v28 = vrot.slane %v3973_v11, 4  ;;  %v5800_v11 = vld [vmem:[%s6931_s6 + $0x9c] sm:$0xe] }
 0x114   : > { %6427 = vmatmul.mubr.msk.bf16.gmra.mrb[16].mxu0 %vm729_vm3, %v8145_v5  ;;  %v8773_v5 = vld [vmem:[#allocation15_spill] sm:$0xff]  ;;  %v3984_v47 = vrot.slane %v3983_v6, 4  ;;  %v3998_v12 = vrot.slane %v3997_v44, 4  ;;  %v4471_v8 = vrot.slane %v8045_v3, 5  ;;  %v4017_v30 = vrot.slane %v4015_v2, 4  ;;  %v6789_v19 = vld [vmem:[%s6931_s6 + $0x3c] sm:$0xff]  }
 0x115   : > { %6275 = vmatmul.mubr.msk.bf16.vlgmr.msra.gmra.mrb[0].mxu1 %vm729_vm3, %v6786_v1  ;;  %6430 = vmatprep.mubr.msk.bf16.mxu0 %vm729_vm3, %v8147_v7  ;;  %v4468_v43 = vrot.slane %v8773_v5, 5  ;;  %v2328_v7 = vsel %vm6957_vm4, %v2323_v18, %v8775_v51  ;;  %v4020_v18 = vrot.slane %v4018_v50, 5  ;;  %v8336_v5 = vrot.slane %v4024_v61, 5 }
 0x116   : > { %6477 = vmatpush3.bf16.msra.mxu1 %v8774_v16  ;;  %6278 = vmatprep.mubr.msk.bf16.mxu1 %vm729_vm3, %v6787_v21  ;;  %v8325_v1 = vcombine.low %v2328_v7, %v2338_v41  ;;  %v8329_v21 = vld [vmem:[%s6931_s6 + $0xd4] sm:$0x1]  ;;  %v4030_v9 = vrot.slane %v4028_v49, 4  ;;  %v4008_v41 = vrot.slane %v4007_v56, 4  ;;  %v4012_v6 = vrot.slane %v4010_v31, 5 }
 0x117   : > { %v8333_v22 = vsel %vm7183_vm7, %v5815_v63, %v4468_v43  ;;  %v4470_v17 = vrot.slane %v4468_v43, 4  ;;  %v3979_v63 = vsel %vm6957_vm4, %v3974_v28, %v8233_v4  ;;  %v3989_v2 = vsel %vm6957_vm4, %v3984_v47, %v3988_v23  ;;  %v6839_v16 = vld [vmem:[%s6931_s6 + $0x1c] sm:$0xf]  ;;  %v5801_v28 = vld [vmem:[%s6931_s6 + $0xa8] sm:$0xe] }
 0x118   : > { %v4034_v50 = vshll.u32 %v8329_v21, 16  ;;  %v5816_v61 = vrot.slane %v5800_v11, 9  ;;  %v4475_v49 = vrot.slane %v8033_v25, 5  ;;  %v4003_v4 = vsel %vm6957_vm4, %v3998_v12, %v8292_v62  ;;  %v5789_v62 = vld [vmem:[%s6931_s6 + $0x18] sm:$0xe]  ;;  %v6790_v47 = vld [vmem:[%s6931_s6 + $0x48] sm:$0xff]  }
 0x119   : > { %v8342_v44 = vsel %vm7183_vm7, %v4470_v17, %v4471_v8  ;;  %v4031_v43 = vor.u32 %v4030_v9, %v8336_v5  ;;  %v4478_v23 = vrot.slane %v8078_v57, 5  ;;  %v4013_v25 = vsel %vm6957_vm4, %v4008_v41, %v4012_v6  ;;  %v6840_v11 = vld [vmem:[%s6931_s6 + $0x20] sm:$0x1] }
 0x11a   : > { %v5832_v3 = vcombine.low %v8333_v22, %v8342_v44  ;;  %v4398_v56 = vrot.slane %v6839_v16, 5  ;;  %v8368_v31 = vsel %vm7183_vm7, %v5816_v61, %v4475_v49  ;;  %v4477_v51 = vrot.slane %v4475_v49, 4  ;;  %v5802_v49 = vld [vmem:[%s6931_s6 + $0xb4] sm:$0xe] }
 0x11b   : > { %v5770_v7 = vcombine.low %v3979_v63, %v3989_v2  ;;  %v4032_v17 = vrot.slane %v4031_v43, 4  ;;  %v5817_v41 = vrot.slane %v5801_v28, 9  ;;  %v4482_v6 = vrot.slane %v8081_v34, 5  ;;  %v5790_v2 = vld [vmem:[%s6931_s6 + $0x24] sm:$0xe] }
 0x11c   : > { %6431 = vmatmul.mubr.msk.bf16.gmra.mrb[20].mxu0 %vm729_vm3, %v8180_v24  ;;  %v4021_v24 = vor.u32 %v4020_v18, %v4017_v30  ;;  %v8373_v57 = vsel %vm7183_vm7, %v4477_v51, %v4478_v23  ;;  %v6791_v30 = vld [vmem:[%s6931_s6 + $0x54] sm:$0xff]   ;;  %v5805_v18 = vrot.slane %v5789_v62, 9  ;;  %v4400_v9 = vrot.slane %v4398_v56, 4  ;;  %v6843_v28 = vld [vmem:[%s6931_s6 + $0x2c] sm:$0x1] }
 0x11d   : > { %6279 = vmatmul.mubr.msk.bf16.gmra.mrb[4].mxu1 %vm729_vm3, %v6788_v29  ;;  %6434 = vmatprep.mubr.msk.bf16.mxu0 %vm729_vm3, %v5769_v46  ;;  %v4036_v46 = vrot.slane %v4034_v50, 5  ;;  %v5771_v29 = vcombine.low %v4003_v4, %v4013_v25  ;;  %v5833_v8 = vcombine.low %v8368_v31, %v8373_v57  ;;  %v4485_v63 = vrot.slane %v8091_v48, 5  ;;  %v6841_v50 = vld [vmem:[%s6931_s6 + $0x28] sm:$0xf]  ;;  %v5791_v25 = vld [vmem:[%s6931_s6 + $0x30] sm:$0xe] }
 0x11e   : > { %6282 = vmatprep.mubr.msk.bf16.mxu1 %vm729_vm3, %v6789_v19  ;;  %v4022_v12 = vrot.slane %v4021_v24, 4  ;;  %v4401_v19 = vrot.slane %v6840_v11, 5  ;;  %v4405_v61 = vrot.slane %v6841_v50, 5  ;;  %v8396_v48 = vsel %vm7183_vm7, %v5817_v41, %v4482_v6  ;;  %v6793_v11 = vld [vmem:[%s6931_s6 + $0x6c] sm:$0xff]   ;;  %v8776_v41 = vld [vmem:[#allocation6_spill] sm:$0xff] }
 0x11f   : > { %v4037_v34 = vsel %vm6957_vm4, %v4032_v17, %v4036_v46  ;;  %v4484_v24 = vrot.slane %v4482_v6, 4  ;;  %v4399_v43 = vsel %vm7183_vm7, %v5805_v18, %v4398_v56  ;;  %v5806_v51 = vrot.slane %v5790_v2, 9  ;;  %v5803_v50 = vld [vmem:[%s6931_s6 + $0xc0] sm:$0xe]  ;;  %v6857_v31 = vld [vmem:[%s6931_s6 + $0xc8] sm:$0x1] }
 0x120   : > { %v4027_v4 = vsel %vm6957_vm4, %v4022_v12, %v8336_v5  ;;  %v4402_v23 = vsel %vm7183_vm7, %v4400_v9, %v4401_v19  ;;  %v6842_v5 = vld [vmem:[%s6931_s6 + $0x34] sm:$0xf]  ;;  %v6792_v12 = vld [vmem:[%s6931_s6 + $0x60] sm:$0xff]   ;;  %v5807_v18 = vrot.slane %v5791_v25, 9  ;;  %v4492_v9 = vrot.slane %v8205_v35, 5 }
 0x121   : > { %v4412_v16 = vrot.slane %v6842_v5, 5  ;;  %v8407_v62 = vsel %vm7183_vm7, %v4484_v24, %v4485_v63  ;;  %v5772_v46 = vcombine.low %v4027_v4, %v4037_v34  ;;  %v5822_v17 = vcombine.low %v4399_v43, %v4402_v23  ;;  %v5792_v24 = vld [vmem:[%s6931_s6 + $0x3c] sm:$0xe] }
 0x122   : > { %v5834_v56 = vcombine.low %v8396_v48, %v8407_v62  ;;  %v4415_v6 = vrot.slane %v8776_v41, 5  ;;  %v4406_v35 = vsel %vm7183_vm7, %v5806_v51, %v4405_v61  ;;  %v5819_v5 = vrot.slane %v5803_v50, 9 }
 0x123   : > { %v4414_v19 = vrot.slane %v4412_v16, 4  ;;  %v4413_v23 = vsel %vm7183_vm7, %v5807_v18, %v4412_v16  ;;  %v4499_v51 = vrot.slane %v8298_v52, 5  ;;  %v2479_v57 = vshll.u32 %v6857_v31, 16 }
 0x124   : > { %6435 = vmatmul.mubr.msk.bf16.gmra.mrb[24].mxu0 %vm729_vm3, %v5770_v7  ;;  %v5818_v7 = vrot.slane %v5802_v49, 9 }
 0x125   : > { %6283 = vmatmul.mubr.msk.bf16.gmra.mrb[8].mxu1 %vm729_vm3, %v6790_v47  ;;  %6438 = vmatprep.mubr.msk.bf16.mxu0 %vm729_vm3, %v5771_v29  ;;  %v4408_v47 = vrot.slane %v6843_v28, 5  ;;  %v4489_v29 = vrot.slane %v8156_v39, 5  ;;  %v8777_v39 = vld [vmem:[#allocation7_spill] sm:$0xff]  ;;  %v4416_v25 = vsel %vm7183_vm7, %v4414_v19, %v4415_v6  ;;  %v5808_v28 = vrot.slane %v5792_v24, 9 }
 0x126   : > { %6286 = vmatprep.mubr.msk.bf16.mxu1 %vm729_vm3, %v6791_v30  ;;  %v4407_v30 = vrot.slane %v4405_v61, 4  ;;  %v4419_v49 = vrot.slane %v8777_v39, 5  ;;  %v4496_v61 = vrot.slane %v8208_v58, 5  ;;  %v6844_v39 = vld [vmem:[%s6931_s6 + $0x70] sm:$0xf]  ;;  %v4503_v24 = vrot.slane %v8284_v55, 5 }
 0x127   : > { %v8419_v63 = vsel %vm7183_vm7, %v5818_v7, %v4489_v29  ;;  %v4491_v2 = vrot.slane %v4489_v29, 4  ;;  %v5521_v7 = vld [vmem:[%s6931_s6 + $0x6c] sm:$0xf]  ;;  %v8778_v29 = vld [vmem:[#allocation8_spill] sm:$0xff] }
 0x128   : > { %v4409_v34 = vsel %vm7183_vm7, %v4407_v30, %v4408_v47  ;;  %v4421_v47 = vrot.slane %v4419_v49, 4  ;;  %v6794_v30 = vld [vmem:[%s6931_s6 + $0x78] sm:$0xff]   ;;  %v8450_v16 = vsel %vm7183_vm7, %v5819_v5, %v4496_v61  ;;  %v4498_v18 = vrot.slane %v4496_v61, 4 }
 0x129   : > { %v8426_v4 = vsel %vm7183_vm7, %v4491_v2, %v4492_v9  ;;  %v5824_v9 = vcombine.low %v4413_v23, %v4416_v25  ;;  %v2292_v19 = vshrl.u32 %v5521_v7, 16  ;;  %v2295_v41 = vshll.u32 %v5521_v7, 16 }
 0x12a   : > { %v5835_v43 = vcombine.low %v8419_v63, %v8426_v4  ;;  %v8455_v58 = vsel %vm7183_vm7, %v4498_v18, %v4499_v51  ;;  %v4420_v6 = vsel %vm7183_vm7, %v5808_v28, %v4419_v49  ;;  %v4506_v49 = vrot.slane %v8329_v21, 5  ;;  %v6796_v51 = vld [vmem:[%s6931_s6 + $0x90] sm:$0xff]   ;;  %v6797_v21 = vld [vmem:[%s6931_s6 + $0x9c] sm:$0xff]  }
 0x12b   : > { %v5836_v50 = vcombine.low %v8450_v16, %v8455_v58  ;;  %v2294_v23 = vrot.slane %v2292_v19, 4  ;;  %v2297_v25 = vrot.slane %v2295_v41, 5  ;;  %v4505_v7 = vrot.slane %v4503_v24, 4 }
 0x12c   : > { %6439 = vmatmul.mubr.msk.bf16.gmra.mrb[28].mxu0 %vm729_vm3, %v5772_v46  ;;  %v5823_v46 = vcombine.low %v4406_v35, %v4409_v34  ;;  %v2301_v35 = vshll.u32 %v6844_v39, 16  ;;  %v2305_v34 = vshrl.u32 %v6844_v39, 16 }
 0x12d   : > { %6287 = vmatmul.mubr.msk.bf16.gmra.mrb[12].mxu1 %vm729_vm3, %v6792_v12  ;;  %6444 = vmatprep.mubr.msk.bf16.mxu0 %vm729_vm3, %v5822_v17  ;;  %v4422_v12 = vrot.slane %v8778_v29, 5  ;;  %v5804_v17 = vld [vmem:[%s6931_s6 + $0xcc] sm:$0xe]  ;;  %v8477_v55 = vsel %vm7183_vm7, %v4505_v7, %v4506_v49 }
 0x12e   : > { %6290 = vmatprep.mubr.msk.bf16.mxu1 %vm729_vm3, %v6793_v11  ;;  %v6795_v11 = vld [vmem:[%s6931_s6 + $0x84] sm:$0xff]   ;;  %v5820_v52 = vrot.slane %v5804_v17, 9  ;;  %v2307_v28 = vrot.slane %v2305_v34, 4  ;;  %v6845_v17 = vld [vmem:[%s6931_s6 + $0x74] sm:$0x1] }
 0x12f   : > { %v4423_v2 = vsel %vm7183_vm7, %v4421_v47, %v4422_v12  ;;  %v5527_v47 = vld [vmem:[%s6931_s6 + $0x84] sm:$0xf]  ;;  %v2298_v12 = vor.u32 %v2297_v25, %v2294_v23  ;;  %v6799_v34 = vld [vmem:[%s6931_s6 + $0xb4] sm:$0xff]  }
 0x130   : > { %v8472_v5 = vsel %vm7183_vm7, %v5820_v52, %v4503_v24  ;;  %v5825_v61 = vcombine.low %v4420_v6, %v4423_v2  ;;  %v2343_v18 = vshll.u32 %v5527_v47, 16  ;;  %v5530_v6 = vld [vmem:[%s6931_s6 + $0x90] sm:$0xf]  ;;  %v6798_v2 = vld [vmem:[%s6931_s6 + $0xa8] sm:$0xff]  }
 0x131   : > { %v5837_v29 = vcombine.low %v8472_v5, %v8477_v55  ;;  %v2299_v52 = vrot.slane %v2298_v12, 4  ;;  %v2364_v23 = vshrl.u32 %v5530_v6, 16  ;;  %v2367_v25 = vshll.u32 %v5530_v6, 16 }
 0x132   : > { %v2397_v12 = vshll.u32 %v6848_v60, 16 }
 0x133   : > { %v2369_v14 = vrot.slane %v2367_v25, 5  ;;  %v6851_v25 = vld [vmem:[%s6931_s6 + $0xa4] sm:$0x1] }
 0x134   : > { %6445 = vmatmul.mubr.msk.bf16.vlgmr.msra.gmra.mrb[0].mxu0 %vm729_vm3, %v5823_v46  ;;  %v2303_v46 = vrot.slane %v2301_v35, 5  ;;  %v5533_v35 = vld [vmem:[%s6931_s6 + $0x9c] sm:$0xf]  ;;  %v8519_v6 = vrot.slane %v2397_v12, 5 }
 0x135   : > { %6291 = vmatmul.mubr.msk.bf16.gmra.mrb[16].mxu1 %vm729_vm3, %v6794_v30  ;;  %6448 = vmatprep.mubr.msk.bf16.mxu0 %vm729_vm3, %v5824_v9  ;;  %v2311_v30 = vshll.u32 %v6845_v17, 16  ;;  %v2340_v9 = vshrl.u32 %v5527_v47, 16  ;;  %v2391_v47 = vshll.u32 %v5533_v35, 16  ;;  %v6849_v17 = vld [vmem:[%s6931_s6 + $0x8c] sm:$0x1] }
 0x136   : > { %6294 = vmatprep.mubr.msk.bf16.mxu1 %vm729_vm3, %v6795_v11  ;;  %v2308_v13 = vor.u32 %v2307_v28, %v2303_v46  ;;  %v6846_v11 = vld [vmem:[%s6931_s6 + $0x88] sm:$0xf]  ;;  %v2304_v7 = vsel %vm6957_vm4, %v2299_v52, %v2303_v46 }
 0x137   : > { %v2349_v19 = vshll.u32 %v6846_v11, 16  ;;  %v2353_v41 = vshrl.u32 %v6846_v11, 16  ;;  %v2313_v0 = vrot.slane %v2311_v30, 5  ;;  %v2342_v36 = vrot.slane %v2340_v9, 4 }
 0x138   : > { %v2309_v39 = vrot.slane %v2308_v13, 4  ;;  %v2359_v30 = vshll.u32 %v6849_v17, 16  ;;  %v2366_v9 = vrot.slane %v2364_v23, 4  ;;  %v2393_v11 = vrot.slane %v2391_v47, 5 }
 0x139   : > { %v8496_v24 = vrot.slane %v2349_v19, 5  ;;  %v2355_v49 = vrot.slane %v2353_v41, 4  ;;  %v6800_v19 = vld [vmem:[%s6931_s6 + $0xc0] sm:$0xff]  }
 0x13a   : > { %v2314_v46 = vsel %vm6957_vm4, %v2309_v39, %v2313_v0  ;;  %v5536_v39 = vld [vmem:[%s6931_s6 + $0xa8] sm:$0xf] }
 0x13b   : > { %v2356_v13 = vor.u32 %v2355_v49, %v8496_v24  ;;  %v5554_v41 = vcombine.low %v2304_v7, %v2314_v46  ;;  %v2407_v7 = vshll.u32 %v6851_v25, 16  ;;  %v2415_v45 = vshll.u32 %v5536_v39, 16 }
 0x13c   : > { %6449 = vmatmul.mubr.msk.bf16.gmra.mrb[4].mxu0 %vm729_vm3, %v5825_v61  ;;  %v6847_v61 = vld [vmem:[%s6931_s6 + $0x94] sm:$0xf] }
 0x13d   : > { %6295 = vmatmul.mubr.msk.bf16.gmra.mrb[20].mxu1 %vm729_vm3, %v6796_v51  ;;  %6452 = vmatprep.mubr.msk.bf16.mxu0 %vm729_vm3, %v5826_v10  ;;  %v2345_v10 = vrot.slane %v2343_v18, 5  ;;  %v2373_v51 = vshll.u32 %v6847_v61, 16  ;;  %v2377_v28 = vshrl.u32 %v6847_v61, 16  ;;  %v2357_v0 = vrot.slane %v2356_v13, 4 }
 0x13e   : > { %6298 = vmatprep.mubr.msk.bf16.mxu1 %vm729_vm3, %v6797_v21  ;;  %v2388_v21 = vshrl.u32 %v5533_v35, 16  ;;  %v6850_v35 = vld [vmem:[%s6931_s6 + $0x98] sm:$0x1]  ;;  %v2412_v61 = vshrl.u32 %v5536_v39, 16  ;;  %v5542_v39 = vld [vmem:[%s6931_s6 + $0xc0] sm:$0xf] }
 0x13f   : > { %v2346_v15 = vor.u32 %v2345_v10, %v2342_v36  ;;  %v8516_v26 = vrot.slane %v2373_v51, 5  ;;  %v2361_v36 = vrot.slane %v2359_v30, 5  ;;  %v2370_v10 = vor.u32 %v2369_v14, %v2366_v9  ;;  %v5539_v51 = vld [vmem:[%s6931_s6 + $0xb4] sm:$0xf] }
 0x140   : > { %v2390_v18 = vrot.slane %v2388_v21, 4  ;;  %v2425_v21 = vshrl.u32 %v6852_v27, 16  ;;  %v2436_v20 = vshrl.u32 %v5539_v51, 16  ;;  %v2439_v42 = vshll.u32 %v5539_v51, 16 }
 0x141   : > { %v2347_v52 = vrot.slane %v2346_v15, 4  ;;  %v2362_v46 = vsel %vm6957_vm4, %v2357_v0, %v2361_v36  ;;  %v2371_v15 = vrot.slane %v2370_v10, 4  ;;  %v2409_v30 = vrot.slane %v2407_v7, 5 }
 0x142   : > { %v2394_v23 = vor.u32 %v2393_v11, %v2390_v18  ;;  %v2414_v9 = vrot.slane %v2412_v61, 4  ;;  %v2427_v11 = vrot.slane %v2425_v21, 4  ;;  %v6856_v61 = vld [vmem:[%s6931_s6 + $0xbc] sm:$0x1] }
 0x143   : > { %v2352_v47 = vsel %vm6957_vm4, %v2347_v52, %v8496_v24  ;;  %v2376_v0 = vsel %vm6957_vm4, %v2371_v15, %v8516_v26  ;;  %v2455_v22 = vshll.u32 %v6856_v61, 16 }
 0x144   : > { %6453 = vmatmul.mubr.msk.bf16.gmra.mrb[8].mxu0 %vm729_vm3, %v5827_v40  ;;  %v2401_v40 = vshrl.u32 %v6848_v60, 16  ;;  %v2395_v17 = vrot.slane %v2394_v23, 4  ;;  %v5556_v24 = vcombine.low %v2352_v47, %v2362_v46 }
 0x145   : > { %6299 = vmatmul.mubr.msk.bf16.gmra.mrb[24].mxu1 %vm729_vm3, %v6798_v2  ;;  %6456 = vmatprep.mubr.msk.bf16.mxu0 %vm729_vm3, %v5828_v54  ;;  %v2379_v54 = vrot.slane %v2377_v28, 4 }
 0x146   : > { %6302 = vmatprep.mubr.msk.bf16.mxu1 %vm729_vm3, %v6799_v34  ;;  %v2403_v2 = vrot.slane %v2401_v40, 4  ;;  %v2383_v34 = vshll.u32 %v6850_v35, 16  ;;  %v2400_v10 = vsel %vm6957_vm4, %v2395_v17, %v8519_v6  ;;  %v2481_v17 = vrot.slane %v2479_v57, 5 }
 0x147   : > { %v2380_v49 = vor.u32 %v2379_v54, %v8516_v26  ;;  %v2417_v54 = vrot.slane %v2415_v45, 5  ;;  %v6854_v26 = vld [vmem:[%s6931_s6 + $0xb0] sm:$0x1] }
 0x148   : > { %v2404_v28 = vor.u32 %v2403_v2, %v8519_v6  ;;  %v2385_v60 = vrot.slane %v2383_v34, 5  ;;  %v2431_v35 = vshll.u32 %v6854_v26, 16  ;;  %v2460_v34 = vshrl.u32 %v5542_v39, 16 }
 0x149   : > { %v2381_v13 = vrot.slane %v2380_v49, 4  ;;  %v2418_v38 = vor.u32 %v2417_v54, %v2414_v9  ;;  %v2463_v6 = vshll.u32 %v5542_v39, 16  ;;  %v6855_v49 = vld [vmem:[%s6931_s6 + $0xc4] sm:$0xf] }
 0x14a   : > { %v2405_v14 = vrot.slane %v2404_v28, 4  ;;  %v2469_v23 = vshll.u32 %v6855_v49, 16  ;;  %v2473_v25 = vshrl.u32 %v6855_v49, 16  ;;  %v2433_v45 = vrot.slane %v2431_v35, 5 }
 0x14b   : > { %v2386_v36 = vsel %vm6957_vm4, %v2381_v13, %v2385_v60  ;;  %v2419_v51 = vrot.slane %v2418_v38, 4  ;;  %v2457_v60 = vrot.slane %v2455_v22, 5 }
 0x14c   : > { %6457 = vmatmul.mubr.msk.bf16.gmra.mrb[12].mxu0 %vm729_vm3, %v5829_v53  ;;  %v2421_v53 = vshll.u32 %v6852_v27, 16  ;;  %v2410_v59 = vsel %vm6957_vm4, %v2405_v14, %v2409_v30  ;;  %v5557_v44 = vcombine.low %v2376_v0, %v2386_v36  ;;  %v2462_v27 = vrot.slane %v2460_v34, 4 }
 0x14d   : > { %6303 = vmatmul.mubr.msk.bf16.gmra.mrb[28].mxu1 %vm729_vm3, %v6800_v19  ;;  %6460 = vmatprep.mubr.msk.bf16.mxu0 %vm729_vm3, %v5830_v33  ;;  %v6853_v33 = vld [vmem:[%s6931_s6 + $0xb8] sm:$0xf]  ;;  %v2438_v19 = vrot.slane %v2436_v20, 4  ;;  %v2471_v21 = vrot.slane %v2469_v23, 5  ;;  %v2475_v47 = vrot.slane %v2473_v25, 4  ;;  %s238_s6 = scalar_lea.vmem %s8710_s4, %s8780_s19 }
 0x14e   : > { %6324 = vmatprep.mubr.msk.bf16.mxu1 %vm729_vm3, %v5554_v41  ;;  %v2445_v12 = vshll.u32 %v6853_v33, 16  ;;  %v2449_v40 = vshrl.u32 %v6853_v33, 16  ;;  %v2423_v18 = vrot.slane %v2421_v53, 5  ;;  %v2441_v41 = vrot.slane %v2439_v42, 5 }
 0x14f   : > { %v2465_v53 = vrot.slane %v2463_v6, 5 }
 0x150   : > { %v2447_v52 = vrot.slane %v2445_v12, 5  ;;  %v2451_v2 = vrot.slane %v2449_v40, 4  ;;  %v2424_v20 = vsel %vm6957_vm4, %v2419_v51, %v2423_v18  ;;  %v2476_v12 = vor.u32 %v2475_v47, %v2471_v21 }
 0x151   : > { %v2466_v33 = vor.u32 %v2465_v53, %v2462_v27 }
 0x152   : > { %v2452_v7 = vor.u32 %v2451_v2, %v2447_v52  ;;  %v2477_v13 = vrot.slane %v2476_v12, 4  ;;  %v8626_v2 = vld [vmem:[%s8708_s2] ss:$0 sm:$0xff] }
 0x153   : > { %v2467_v40 = vrot.slane %v2466_v33, 4 }
 0x154   : > { %6461 = vmatmul.mubr.msk.bf16.gmra.mrb[16].mxu0 %vm729_vm3, %v5831_v37  ;;  %v2428_v37 = vor.u32 %v2427_v11, %v2423_v18  ;;  %v2453_v15 = vrot.slane %v2452_v7, 4  ;;  %v2482_v9 = vsel %vm6957_vm4, %v2477_v13, %v2481_v17 }
 0x155   : > { %6325 = vmatmul.mubr.msk.bf16.vlgmr.msra.gmra.mrb[16].mxu1 %vm729_vm3, %v8325_v1  ;;  %6464 = vmatprep.mubr.msk.bf16.mxu0 %vm729_vm3, %v5832_v3  ;;  %v2442_v1 = vor.u32 %v2441_v41, %v2438_v19  ;;  %v5558_v3 = vcombine.low %v2400_v10, %v2410_v59  ;;  %v2472_v30 = vsel %vm6957_vm4, %v2467_v40, %v2471_v21 }
 0x156   : > { %6328 = vmatprep.mubr.msk.bf16.mxu1 %vm729_vm3, %v5556_v24  ;;  %v2429_v28 = vrot.slane %v2428_v37, 4  ;;  %v2458_v48 = vsel %vm6957_vm4, %v2453_v15, %v2457_v60  ;;  %v5561_v14 = vcombine.low %v2472_v30, %v2482_v9 }
 0x157   : > { %v2443_v46 = vrot.slane %v2442_v1, 4 }
 0x158   : > { %v2434_v42 = vsel %vm6957_vm4, %v2429_v28, %v2433_v45 }
 0x159   : > { %v5559_v62 = vcombine.low %v2424_v20, %v2434_v42 }
 0x15c   : > { %6465 = vmatmul.mubr.msk.bf16.gmra.mrb[20].mxu0 %vm729_vm3, %v5833_v8  ;;  %v2448_v8 = vsel %vm6957_vm4, %v2443_v46, %v2447_v52 }
 0x15d   : > { %6329 = vmatmul.mubr.msk.bf16.gmra.mrb[20].mxu1 %vm729_vm3, %v5557_v44  ;;  %6468 = vmatprep.mubr.msk.bf16.mxu0 %vm729_vm3, %v5834_v56  ;;  %v5560_v56 = vcombine.low %v2448_v8, %v2458_v48 }
 0x15e   : > { %6332 = vmatprep.mubr.msk.bf16.mxu1 %vm729_vm3, %v5558_v3 }
 0x164   : > { %6469 = vmatmul.mubr.msk.bf16.gmra.mrb[24].mxu0 %vm729_vm3, %v5835_v43 }
 0x165   : > { %6333 = vmatmul.mubr.msk.bf16.gmra.mrb[24].mxu1 %vm729_vm3, %v5559_v62  ;;  %6472 = vmatprep.mubr.msk.bf16.mxu0 %vm729_vm3, %v5836_v50 }
 0x166   : > { %6336 = vmatprep.mubr.msk.bf16.mxu1 %vm729_vm3, %v5560_v56 }
 0x16c   : > { %6473 = vmatmul.mubr.msk.bf16.gmra.mrb[28].mxu0 %vm729_vm3, %v5837_v29 }
 0x16d   : > { %6337 = vmatmul.mubr.msk.bf16.gmra.mrb[28].mxu1 %vm729_vm3, %v5561_v14 }
 0x1e8   : > { %v6276_v63 = vpop.f32.mrb[0].mxu1 }
 0x1e9   : > { %v1892_v4 = vpop.f32.mrb[1].mxu1 }
 0x1ea   : > { %v6277_v43 = vpop.f32.mrb[2].mxu1 }
 0x1eb   : > { %v1895_v16 = vpop.f32.mrb[3].mxu1 }
 0x1f0   : > { %v6280_v58 = vpop.f32.mrb[4].mxu1 }
 0x1f1   : > { %v1908_v50 = vpop.f32.mrb[5].mxu1 }
 0x1f2   : > { %v6281_v54 = vpop.f32.mrb[6].mxu1 }
 0x1f3   : > { %v1911_v18 = vpop.f32.mrb[7].mxu1 }
 0x1f8   : > { %v8607_v11 = vpop.f32.mrb[8].mxu1 }
 0x1f9   : > { %v8609_v32 = vpop.f32.mrb[9].mxu1 }
 0x1fa   : > { %v8611_v24 = vpop.f32.mrb[10].mxu1 }
 0x1fb   : > { %v8613_v19 = vpop.f32.mrb[11].mxu1 }
 0x200   : > { %v8615_v5 = vpop.f32.mrb[12].mxu1 }
 0x201   : > { %v8617_v55 = vpop.f32.mrb[13].mxu1 }
 0x202   : > { %v8619_v29 = vpop.f32.mrb[14].mxu1 }
 0x203   : > { %v8621_v41 = vpop.f32.mrb[15].mxu1 }
 0x207   : > { %v6446_v52 = vpop.f32.mrb[0].mxu0 }
 0x208   : > { %v6478_v39 = vadd.f32 %v6446_v52, %v6276_v63  ;;  %v4643_v0 = vpop.f32.mrb[1].mxu0 }
 0x209   : > { %v6479_v36 = vadd.f32 %v4643_v0, %v1892_v4  ;;  %v6447_v10 = vpop.f32.mrb[2].mxu0 }
 0x20a   : > { %v4811_v59 = vadd.f32 %v6478_v39, %v8626_v2  ;;  %v6480_v38 = vadd.f32 %v6447_v10, %v6277_v43  ;;  %v4646_v37 = vpop.f32.mrb[3].mxu0 }
 0x20b   : > { %v4809_v26 = vadd.f32 %v6479_v36, %v8626_v2  ;;  %v6481_v35 = vadd.f32 %v4646_v37, %v1895_v16 }
 0x20c   : > { %v4875_v34 = vmul.f32 0.01, %v4811_v59  ;;  %v4812_v6 = vadd.f32 %v6480_v38, %v8626_v2  ;;  %vm4843_vm8 = vcmp.gt.f32.partialorder %v4811_v59, 0.0 }
 0x20d   : > { %vm4841_vm9 = vcmp.gt.f32.partialorder %v4809_v26, 0.0  ;;  %v4873_v49 = vmul.f32 0.01, %v4809_v26  ;;  %v4810_v23 = vadd.f32 %v6481_v35, %v8626_v2 }
 0x20e   : > { %vm4844_vm10 = vcmp.gt.f32.partialorder %v4812_v6, 0.0  ;;  %v4876_v25 = vmul.f32 0.01, %v4812_v6  ;;  %v4907_v22 = vsel %vm4843_vm8, %v4811_v59, %v4875_v34 }
 0x20f   : > { %v4905_v1 = vsel %vm4841_vm9, %v4809_v26, %v4873_v49  ;;  %vm4842_vm11 = vcmp.gt.f32.partialorder %v4810_v23, 0.0  ;;  %v4874_v7 = vmul.f32 0.01, %v4810_v23  ;;  %v6450_v61 = vpop.f32.mrb[4].mxu0  ;;  %v5137_v42 = vmul.f32 %v4907_v22, %v4907_v22 }
 0x210   : > { %v4908_v44 = vsel %vm4844_vm10, %v4812_v6, %v4876_v25  ;;  %v6482_v3 = vadd.f32 %v6450_v61, %v6280_v58  ;;  %v4659_v51 = vpop.f32.mrb[5].mxu0  ;;  %v5135_v28 = vmul.f32 %v4905_v1, %v4905_v1 }
 0x211   : > { %v5930_v45 = vpack.c.bf16 %v4908_v44, %v4907_v22  ;;  %v4906_v27 = vsel %vm4842_vm11, %v4810_v23, %v4874_v7  ;;  %v6483_v53 = vadd.f32 %v4659_v51, %v1908_v50  ;;  %v6451_v21 = vpop.f32.mrb[6].mxu0  ;;  %v5138_v13 = vmul.f32 %v4908_v44, %v4908_v44 }
 0x212   : > { %v5925_v47 = vpack.c.bf16 %v4906_v27, %v4905_v1  ;;  %v5097_v46 = vadd.f32 %v4906_v27, %v4905_v1  ;;  %v5136_v15 = vmul.f32 %v4906_v27, %v4906_v27  ;;  %v4815_v60 = vadd.f32 %v6482_v3, %v8626_v2  ;;  %v4662_v20 = vpop.f32.mrb[7].mxu0 }
 0x213   : > { %6002 = vst [vmem:[%s8636_s28 + $0x8] sm:$0xff] %v5930_v45   ;;  %v4813_v33 = vadd.f32 %v6483_v53, %v8626_v2  ;;  %v6484_v12 = vadd.f32 %v6451_v21, %v6281_v54  ;;  %v6485_v31 = vadd.f32 %v4662_v20, %v1911_v18 }
 0x214   : > { %5926 = vst [vmem:[%s8636_s28] sm:$0xff] %v5925_v47   ;;  %v5098_v57 = vadd.f32 %v5097_v46, %v4907_v22  ;;  %v5167_v8 = vadd.f32 %v5136_v15, %v5135_v28  ;;  %vm4847_vm12 = vcmp.gt.f32.partialorder %v4815_v60, 0.0  ;;  %v4879_v48 = vmul.f32 0.01, %v4815_v60 }
 0x215   : > { %vm4845_vm13 = vcmp.gt.f32.partialorder %v4813_v33, 0.0  ;;  %v4877_v62 = vmul.f32 0.01, %v4813_v33  ;;  %v4816_v56 = vadd.f32 %v6484_v12, %v8626_v2  ;;  %v4814_v40 = vadd.f32 %v6485_v31, %v8626_v2 }
 0x216   : > { %v5168_v17 = vadd.f32 %v5167_v8, %v5137_v42  ;;  %v5099_v30 = vadd.f32 %v5098_v57, %v4908_v44  ;;  %v4911_v9 = vsel %vm4847_vm12, %v4815_v60, %v4879_v48 }
 0x217   : > { %v4909_v14 = vsel %vm4845_vm13, %v4813_v33, %v4877_v62  ;;  %vm4848_vm14 = vcmp.gt.f32.partialorder %v4816_v56, 0.0  ;;  %v4880_v63 = vmul.f32 0.01, %v4816_v56  ;;  %v6454_v4 = vpop.f32.mrb[8].mxu0  ;;  %vm4846_vm15 = vcmp.gt.f32.partialorder %v4814_v40, 0.0 }
 0x218   : > { %v5100_v43 = vadd.f32 %v5099_v30, %v4909_v14  ;;  %v5139_v16 = vmul.f32 %v4909_v14, %v4909_v14  ;;  %v5169_v58 = vadd.f32 %v5168_v17, %v5138_v13  ;;  %v4675_v50 = vpop.f32.mrb[9].mxu0  ;;  %v4878_v18 = vmul.f32 0.01, %v4814_v40 }
 0x219   : > { %v4912_v54 = vsel %vm4848_vm14, %v4816_v56, %v4880_v63  ;;  %v6486_v52 = vadd.f32 %v6454_v4, %v8607_v11  ;;  %v6487_v39 = vadd.f32 %v4675_v50, %v8609_v32  ;;  %v6455_v0 = vpop.f32.mrb[10].mxu0  ;;  %v5141_v36 = vmul.f32 %v4911_v9, %v4911_v9 }
 0x21a   : > { %v5170_v10 = vadd.f32 %v5169_v58, %v5139_v16  ;;  %v5940_v59 = vpack.c.bf16 %v4912_v54, %v4911_v9  ;;  %v6488_v38 = vadd.f32 %v6455_v0, %v8611_v24  ;;  %v4678_v37 = vpop.f32.mrb[11].mxu0  ;;  %v4910_v26 = vsel %vm4846_vm15, %v4814_v40, %v4878_v18 }
 0x21b   : > { %v4819_v35 = vadd.f32 %v6486_v52, %v8626_v2  ;;  %v4817_v34 = vadd.f32 %v6487_v39, %v8626_v2  ;;  %v6489_v6 = vadd.f32 %v4678_v37, %v8613_v19  ;;  %v5935_v49 = vpack.c.bf16 %v4910_v26, %v4909_v14 }
 0x21c   : > { %6004 = vst [vmem:[%s8636_s28 + $0x18] sm:$0xff] %v5940_v59   ;;  %v5101_v11 = vadd.f32 %v5100_v43, %v4910_v26  ;;  %v5140_v23 = vmul.f32 %v4910_v26, %v4910_v26  ;;  %v4820_v32 = vadd.f32 %v6488_v38, %v8626_v2  ;;  %v5142_v22 = vmul.f32 %v4912_v54, %v4912_v54 }
 0x21d   : > { %vm4851_vm0 = vcmp.gt.f32.partialorder %v4819_v35, 0.0  ;;  %v4883_v25 = vmul.f32 0.01, %v4819_v35  ;;  %vm4849_vm1 = vcmp.gt.f32.partialorder %v4817_v34, 0.0  ;;  %v4881_v1 = vmul.f32 0.01, %v4817_v34 }
 0x21e   : > { %6003 = vst [vmem:[%s8636_s28 + $0x10] sm:$0xff] %v5935_v49   ;;  %v5102_v24 = vadd.f32 %v5101_v11, %v4911_v9  ;;  %v5171_v7 = vadd.f32 %v5170_v10, %v5140_v23  ;;  %vm4852_vm2 = vcmp.gt.f32.partialorder %v4820_v32, 0.0  ;;  %v4884_v61 = vmul.f32 0.01, %v4820_v32 }
 0x21f   : > { %v4913_v44 = vsel %vm4849_vm1, %v4817_v34, %v4881_v1  ;;  %v4818_v3 = vadd.f32 %v6489_v6, %v8626_v2  ;;  %v6458_v19 = vpop.f32.mrb[12].mxu0  ;;  %v4915_v28 = vsel %vm4851_vm0, %v4819_v35, %v4883_v25 }
 0x220   : > { %v5172_v51 = vadd.f32 %v5171_v7, %v5141_v36  ;;  %v5103_v45 = vadd.f32 %v5102_v24, %v4912_v54  ;;  %v5143_v27 = vmul.f32 %v4913_v44, %v4913_v44  ;;  %v4691_v53 = vpop.f32.mrb[13].mxu0  ;;  %v4916_v21 = vsel %vm4852_vm2, %v4820_v32, %v4884_v61 }
 0x221   : > { %vm4850_vm3 = vcmp.gt.f32.partialorder %v4818_v3, 0.0  ;;  %v4882_v47 = vmul.f32 0.01, %v4818_v3  ;;  %v6490_v46 = vadd.f32 %v6458_v19, %v8615_v5  ;;  %v6459_v15 = vpop.f32.mrb[14].mxu0  ;;  %v5950_v42 = vpack.c.bf16 %v4916_v21, %v4915_v28 }
 0x222   : > { %v5104_v60 = vadd.f32 %v5103_v45, %v4913_v44  ;;  %v5173_v20 = vadd.f32 %v5172_v51, %v5142_v22  ;;  %v4694_v33 = vpop.f32.mrb[15].mxu0  ;;  %v6491_v57 = vadd.f32 %v4691_v53, %v8617_v55  ;;  %v6492_v8 = vadd.f32 %v6459_v15, %v8619_v29 }
 0x223   : > { %v4914_v12 = vsel %vm4850_vm3, %v4818_v3, %v4882_v47  ;;  %v4823_v31 = vadd.f32 %v6490_v46, %v8626_v2  ;;  %6006 = vst [vmem:[%s8636_s28 + $0x28] sm:$0xff] %v5950_v42   ;;  %v5145_v13 = vmul.f32 %v4915_v28, %v4915_v28  ;;  %v6493_v63 = vadd.f32 %v4694_v33, %v8621_v41 }
 0x224   : > { %v5174_v48 = vadd.f32 %v5173_v20, %v5143_v27  ;;  %v5945_v62 = vpack.c.bf16 %v4914_v12, %v4913_v44  ;;  %v5105_v56 = vadd.f32 %v5104_v60, %v4914_v12  ;;  %v5144_v40 = vmul.f32 %v4914_v12, %v4914_v12 }
 0x225   : > { %v4887_v5 = vmul.f32 0.01, %v4823_v31  ;;  %v4821_v17 = vadd.f32 %v6491_v57, %v8626_v2  ;;  %v4824_v30 = vadd.f32 %v6492_v8, %v8626_v2  ;;  %vm4855_vm4 = vcmp.gt.f32.partialorder %v4823_v31, 0.0 }
 0x226   : > { %6005 = vst [vmem:[%s8636_s28 + $0x20] sm:$0xff] %v5945_v62   ;;  %v5106_v9 = vadd.f32 %v5105_v56, %v4915_v28  ;;  %v5175_v14 = vadd.f32 %v5174_v48, %v5144_v40  ;;  %v5146_v4 = vmul.f32 %v4916_v21, %v4916_v21  ;;  %v4822_v39 = vadd.f32 %v6493_v63, %v8626_v2 }
 0x227   : > { %vm4853_vm5 = vcmp.gt.f32.partialorder %v4821_v17, 0.0  ;;  %v4885_v55 = vmul.f32 0.01, %v4821_v17  ;;  %vm4856_vm6 = vcmp.gt.f32.partialorder %v4824_v30, 0.0  ;;  %v6462_v29 = vpop.f32.mrb[16].mxu0  ;;  %v4919_v18 = vsel %vm4855_vm4, %v4823_v31, %v4887_v5 }
 0x228   : > { %v5176_v43 = vadd.f32 %v5175_v14, %v5145_v13  ;;  %v5107_v16 = vadd.f32 %v5106_v9, %v4916_v21  ;;  %v4888_v58 = vmul.f32 0.01, %v4824_v30  ;;  %v6326_v50 = vpop.f32.mrb[16].mxu1  ;;  %v4707_v54 = vpop.f32.mrb[17].mxu0  ;;  %vm4854_vm7 = vcmp.gt.f32.partialorder %v4822_v39, 0.0 }
 0x229   : > { %v4917_v52 = vsel %vm4853_vm5, %v4821_v17, %v4885_v55  ;;  %v6494_v0 = vadd.f32 %v6462_v29, %v6326_v50  ;;  %v2682_v36 = vpop.f32.mrb[17].mxu1  ;;  %v6463_v10 = vpop.f32.mrb[18].mxu0  ;;  %v4886_v6 = vmul.f32 0.01, %v4822_v39  ;;  %v5149_v45 = vmul.f32 %v4919_v18, %v4919_v18 }
 0x22a   : > { %v5108_v59 = vadd.f32 %v5107_v16, %v4917_v52  ;;  %v5147_v41 = vmul.f32 %v4917_v52, %v4917_v52  ;;  %v5177_v38 = vadd.f32 %v5176_v43, %v5146_v4  ;;  %v4920_v37 = vsel %vm4856_vm6, %v4824_v30, %v4888_v58  ;;  %v6327_v26 = vpop.f32.mrb[18].mxu1  ;;  %v4710_v35 = vpop.f32.mrb[19].mxu0 }
 0x22b   : > { %v5960_v34 = vpack.c.bf16 %v4920_v37, %v4919_v18  ;;  %v2685_v49 = vpop.f32.mrb[19].mxu1  ;;  %v4827_v23 = vadd.f32 %v6494_v0, %v8626_v2  ;;  %v6495_v32 = vadd.f32 %v4707_v54, %v2682_v36  ;;  %v6496_v25 = vadd.f32 %v6463_v10, %v6327_v26 }
 0x22c   : > { %v5178_v11 = vadd.f32 %v5177_v38, %v5147_v41  ;;  %v4918_v1 = vsel %vm4854_vm7, %v4822_v39, %v4886_v6  ;;  %v6497_v24 = vadd.f32 %v4710_v35, %v2685_v49  ;;  %v5150_v46 = vmul.f32 %v4920_v37, %v4920_v37 }
 0x22d   : > { %6008 = vst [vmem:[%s8636_s28 + $0x38] sm:$0xff] %v5960_v34   ;;  %v5955_v7 = vpack.c.bf16 %v4918_v1, %v4917_v52  ;;  %v5109_v61 = vadd.f32 %v5108_v59, %v4918_v1  ;;  %v5148_v22 = vmul.f32 %v4918_v1, %v4918_v1  ;;  %vm4859_vm8 = vcmp.gt.f32.partialorder %v4827_v23, 0.0 }
 0x22e   : > { %v4891_v44 = vmul.f32 0.01, %v4827_v23  ;;  %v4825_v3 = vadd.f32 %v6495_v32, %v8626_v2  ;;  %v4828_v19 = vadd.f32 %v6496_v25, %v8626_v2  ;;  %v4826_v51 = vadd.f32 %v6497_v24, %v8626_v2 }
 0x22f   : > { %v6466_v28 = vpop.f32.mrb[20].mxu0  ;;  %6007 = vst [vmem:[%s8636_s28 + $0x30] sm:$0xff] %v5955_v7   ;;  %v5110_v27 = vadd.f32 %v5109_v61, %v4919_v18  ;;  %v5179_v53 = vadd.f32 %v5178_v11, %v5148_v22 }
 0x230   : > { %v6330_v21 = vpop.f32.mrb[20].mxu1  ;;  %v4723_v47 = vpop.f32.mrb[21].mxu0  ;;  %vm4857_vm9 = vcmp.gt.f32.partialorder %v4825_v3, 0.0  ;;  %v4889_v15 = vmul.f32 0.01, %v4825_v3  ;;  %vm4860_vm10 = vcmp.gt.f32.partialorder %v4828_v19, 0.0  ;;  %v4923_v33 = vsel %vm4859_vm8, %v4827_v23, %v4891_v44 }
 0x231   : > { %v2698_v60 = vpop.f32.mrb[21].mxu1  ;;  %v6467_v20 = vpop.f32.mrb[22].mxu0  ;;  %v5180_v42 = vadd.f32 %v5179_v53, %v5149_v45  ;;  %v5111_v12 = vadd.f32 %v5110_v27, %v4920_v37  ;;  %v4892_v31 = vmul.f32 0.01, %v4828_v19  ;;  %vm4858_vm11 = vcmp.gt.f32.partialorder %v4826_v51, 0.0 }
 0x232   : > { %v6331_v57 = vpop.f32.mrb[22].mxu1  ;;  %v4726_v8 = vpop.f32.mrb[23].mxu0  ;;  %v4921_v48 = vsel %vm4857_vm9, %v4825_v3, %v4889_v15  ;;  %v4890_v62 = vmul.f32 0.01, %v4826_v51  ;;  %v6498_v56 = vadd.f32 %v6466_v28, %v6330_v21  ;;  %v6499_v58 = vadd.f32 %v4723_v47, %v2698_v60 }
 0x233   : > { %v2701_v40 = vpop.f32.mrb[23].mxu1  ;;  %v5112_v13 = vadd.f32 %v5111_v12, %v4921_v48  ;;  %v5151_v5 = vmul.f32 %v4921_v48, %v4921_v48  ;;  %v5181_v17 = vadd.f32 %v5180_v42, %v5150_v46  ;;  %v4924_v30 = vsel %vm4860_vm10, %v4828_v19, %v4892_v31 }
 0x234   : > { %v5970_v9 = vpack.c.bf16 %v4924_v30, %v4923_v33  ;;  %v4922_v14 = vsel %vm4858_vm11, %v4826_v51, %v4890_v62  ;;  %v4831_v63 = vadd.f32 %v6498_v56, %v8626_v2  ;;  %v6500_v50 = vadd.f32 %v6467_v20, %v6331_v57 }
 0x235   : > { %v5182_v55 = vadd.f32 %v5181_v17, %v5151_v5  ;;  %v5965_v29 = vpack.c.bf16 %v4922_v14, %v4921_v48  ;;  %v5113_v4 = vadd.f32 %v5112_v13, %v4922_v14  ;;  %v5152_v43 = vmul.f32 %v4922_v14, %v4922_v14 }
 0x236   : > { %6010 = vst [vmem:[%s8636_s28 + $0x48] sm:$0xff] %v5970_v9   ;;  %vm4863_vm12 = vcmp.gt.f32.partialorder %v4831_v63, 0.0  ;;  %v4895_v16 = vmul.f32 0.01, %v4831_v63  ;;  %v5153_v18 = vmul.f32 %v4923_v33, %v4923_v33  ;;  %v6501_v0 = vadd.f32 %v4726_v8, %v2701_v40 }
 0x237   : > { %v6470_v54 = vpop.f32.mrb[24].mxu0  ;;  %6009 = vst [vmem:[%s8636_s28 + $0x40] sm:$0xff] %v5965_v29   ;;  %v5114_v52 = vadd.f32 %v5113_v4, %v4923_v33  ;;  %v5183_v39 = vadd.f32 %v5182_v55, %v5152_v43  ;;  %v5154_v59 = vmul.f32 %v4924_v30, %v4924_v30  ;;  %v4829_v41 = vadd.f32 %v6499_v58, %v8626_v2 }
 0x238   : > { %v6334_v36 = vpop.f32.mrb[24].mxu1  ;;  %v4739_v10 = vpop.f32.mrb[25].mxu0  ;;  %v4832_v38 = vadd.f32 %v6500_v50, %v8626_v2  ;;  %v4927_v6 = vsel %vm4863_vm12, %v4831_v63, %v4895_v16  ;;  %v4830_v11 = vadd.f32 %v6501_v0, %v8626_v2 }
 0x239   : > { %v6502_v37 = vadd.f32 %v6470_v54, %v6334_v36  ;;  %v2714_v26 = vpop.f32.mrb[25].mxu1  ;;  %v6471_v35 = vpop.f32.mrb[26].mxu0  ;;  %v5184_v34 = vadd.f32 %v5183_v39, %v5153_v18  ;;  %v5115_v49 = vadd.f32 %v5114_v52, %v4924_v30  ;;  %vm4861_vm13 = vcmp.gt.f32.partialorder %v4829_v41, 0.0 }
 0x23a   : > { %v6335_v23 = vpop.f32.mrb[26].mxu1  ;;  %v4742_v32 = vpop.f32.mrb[27].mxu0  ;;  %v4893_v25 = vmul.f32 0.01, %v4829_v41  ;;  %vm4864_vm14 = vcmp.gt.f32.partialorder %v4832_v38, 0.0  ;;  %vm4862_vm15 = vcmp.gt.f32.partialorder %v4830_v11, 0.0  ;;  %v6503_v19 = vadd.f32 %v4739_v10, %v2714_v26 }
 0x23b   : > { %v4896_v1 = vmul.f32 0.01, %v4832_v38  ;;  %v5185_v24 = vadd.f32 %v5184_v34, %v5154_v59  ;;  %v4894_v7 = vmul.f32 0.01, %v4830_v11  ;;  %v4835_v61 = vadd.f32 %v6502_v37, %v8626_v2  ;;  %v2717_v22 = vpop.f32.mrb[27].mxu1 }
 0x23c   : > { %v4925_v44 = vsel %vm4861_vm13, %v4829_v41, %v4893_v25  ;;  %v6504_v51 = vadd.f32 %v6471_v35, %v6335_v23  ;;  %v5157_v28 = vmul.f32 %v4927_v6, %v4927_v6  ;;  %v4833_v46 = vadd.f32 %v6503_v19, %v8626_v2 }
 0x23d   : > { %v4928_v3 = vsel %vm4864_vm14, %v4832_v38, %v4896_v1  ;;  %v5116_v45 = vadd.f32 %v5115_v49, %v4925_v44  ;;  %v5155_v27 = vmul.f32 %v4925_v44, %v4925_v44  ;;  %v4926_v21 = vsel %vm4862_vm15, %v4830_v11, %v4894_v7 }
 0x23e   : > { %v5980_v53 = vpack.c.bf16 %v4928_v3, %v4927_v6  ;;  %vm4867_vm0 = vcmp.gt.f32.partialorder %v4835_v61, 0.0  ;;  %v4899_v47 = vmul.f32 0.01, %v4835_v61  ;;  %v5975_v20 = vpack.c.bf16 %v4926_v21, %v4925_v44 }
 0x23f   : > { %v6474_v15 = vpop.f32.mrb[28].mxu0  ;;  %v5186_v60 = vadd.f32 %v5185_v24, %v5155_v27  ;;  %v5117_v42 = vadd.f32 %v5116_v45, %v4926_v21  ;;  %v5156_v33 = vmul.f32 %v4926_v21, %v4926_v21  ;;  %v5158_v57 = vmul.f32 %v4928_v3, %v4928_v3 }
 0x240   : > { %6012 = vst [vmem:[%s8636_s28 + $0x58] sm:$0xff] %v5980_v53   ;;  %v6338_v12 = vpop.f32.mrb[28].mxu1  ;;  %v4755_v31 = vpop.f32.mrb[29].mxu0  ;;  %vm4865_vm1 = vcmp.gt.f32.partialorder %v4833_v46, 0.0  ;;  %v4897_v8 = vmul.f32 0.01, %v4833_v46  ;;  %v4836_v48 = vadd.f32 %v6504_v51, %v8626_v2  ;;  %v4931_v5 = vsel %vm4867_vm0, %v4835_v61, %v4899_v47 }
 0x241   : > { %v2730_v62 = vpop.f32.mrb[29].mxu1  ;;  %v6475_v56 = vpop.f32.mrb[30].mxu0  ;;  %6011 = vst [vmem:[%s8636_s28 + $0x50] sm:$0xff] %v5975_v20   ;;  %v5118_v40 = vadd.f32 %v5117_v42, %v4927_v6  ;;  %v5187_v13 = vadd.f32 %v5186_v60, %v5156_v33  ;;  %v6505_v17 = vadd.f32 %v4742_v32, %v2717_v22  ;;  %v6506_v55 = vadd.f32 %v6474_v15, %v6338_v12 }
 0x242   : > { %v6339_v30 = vpop.f32.mrb[30].mxu1  ;;  %v4758_v9 = vpop.f32.mrb[31].mxu0  ;;  %v4929_v14 = vsel %vm4865_vm1, %v4833_v46, %v4897_v8  ;;  %vm4868_vm2 = vcmp.gt.f32.partialorder %v4836_v48, 0.0  ;;  %v4900_v63 = vmul.f32 0.01, %v4836_v48  ;;  %v6507_v18 = vadd.f32 %v4755_v31, %v2730_v62 }
 0x243   : > { %v2733_v29 = vpop.f32.mrb[31].mxu1  ;;  %v5188_v4 = vadd.f32 %v5187_v13, %v5157_v28  ;;  %v5119_v43 = vadd.f32 %v5118_v40, %v4928_v3  ;;  %v5159_v16 = vmul.f32 %v4929_v14, %v4929_v14  ;;  %v4834_v58 = vadd.f32 %v6505_v17, %v8626_v2 }
 0x244   : > { %v4932_v50 = vsel %vm4868_vm2, %v4836_v48, %v4900_v63  ;;  %v4839_v54 = vadd.f32 %v6506_v55, %v8626_v2  ;;  %v6508_v52 = vadd.f32 %v6475_v56, %v6339_v30  ;;  %v4837_v41 = vadd.f32 %v6507_v18, %v8626_v2 }
 0x245   : > { %v5120_v39 = vadd.f32 %v5119_v43, %v4929_v14  ;;  %v5189_v0 = vadd.f32 %v5188_v4, %v5158_v57  ;;  %v5990_v36 = vpack.c.bf16 %v4932_v50, %v4931_v5  ;;  %vm4866_vm3 = vcmp.gt.f32.partialorder %v4834_v58, 0.0 }
 0x246   : > { %v4898_v10 = vmul.f32 0.01, %v4834_v58  ;;  %v4840_v38 = vadd.f32 %v6508_v52, %v8626_v2  ;;  %v6509_v37 = vadd.f32 %v4758_v9, %v2733_v29  ;;  %v4903_v35 = vmul.f32 0.01, %v4839_v54 }
 0x247   : > { %v5190_v59 = vadd.f32 %v5189_v0, %v5159_v16  ;;  %6014 = vst [vmem:[%s8636_s28 + $0x68] sm:$0xff] %v5990_v36   ;;  %vm4871_vm4 = vcmp.gt.f32.partialorder %v4839_v54, 0.0  ;;  %vm4869_vm5 = vcmp.gt.f32.partialorder %v4837_v41, 0.0  ;;  %v4901_v11 = vmul.f32 0.01, %v4837_v41 }
 0x248   : > { %v4930_v26 = vsel %vm4866_vm3, %v4834_v58, %v4898_v10  ;;  %vm4872_vm6 = vcmp.gt.f32.partialorder %v4840_v38, 0.0  ;;  %v4904_v23 = vmul.f32 0.01, %v4840_v38  ;;  %v5161_v32 = vmul.f32 %v4931_v5, %v4931_v5 }
 0x249   : > { %v5985_v34 = vpack.c.bf16 %v4930_v26, %v4929_v14  ;;  %v5121_v6 = vadd.f32 %v5120_v39, %v4930_v26  ;;  %v5160_v49 = vmul.f32 %v4930_v26, %v4930_v26  ;;  %v4838_v24 = vadd.f32 %v6509_v37, %v8626_v2 }
 0x24a   : > { %v5162_v7 = vmul.f32 %v4932_v50, %v4932_v50  ;;  %v4935_v61 = vsel %vm4871_vm4, %v4839_v54, %v4903_v35  ;;  %v4933_v22 = vsel %vm4869_vm5, %v4837_v41, %v4901_v11  ;;  %v4936_v44 = vsel %vm4872_vm6, %v4840_v38, %v4904_v23 }
 0x24b   : > { %6013 = vst [vmem:[%s8636_s28 + $0x60] sm:$0xff] %v5985_v34   ;;  %v5122_v25 = vadd.f32 %v5121_v6, %v4931_v5  ;;  %v5191_v1 = vadd.f32 %v5190_v59, %v5160_v49  ;;  %v5163_v51 = vmul.f32 %v4933_v22, %v4933_v22  ;;  %v6000_v28 = vpack.c.bf16 %v4936_v44, %v4935_v61 }
 0x24c   : > { %vm4870_vm7 = vcmp.gt.f32.partialorder %v4838_v24, 0.0  ;;  %v4902_v45 = vmul.f32 0.01, %v4838_v24  ;;  %v5165_v2 = vmul.f32 %v4935_v61, %v4935_v61  ;;  %v5166_v33 = vmul.f32 %v4936_v44, %v4936_v44 }
 0x24d   : > { %v5192_v3 = vadd.f32 %v5191_v1, %v5161_v32  ;;  %v5123_v19 = vadd.f32 %v5122_v25, %v4932_v50  ;;  %6016 = vst [vmem:[%s8636_s28 + $0x78] sm:$0xff] %v6000_v28  }
 0x24e   : > { %v4934_v21 = vsel %vm4870_vm7, %v4838_v24, %v4902_v45 }
 0x24f   : > { %v5124_v27 = vadd.f32 %v5123_v19, %v4933_v22  ;;  %v5193_v53 = vadd.f32 %v5192_v3, %v5162_v7  ;;  %v5995_v46 = vpack.c.bf16 %v4934_v21, %v4933_v22  ;;  %v5164_v60 = vmul.f32 %v4934_v21, %v4934_v21 }
 0x251   : > { %v5194_v47 = vadd.f32 %v5193_v53, %v5163_v51  ;;  %v5125_v15 = vadd.f32 %v5124_v27, %v4934_v21  ;;  %6015 = vst [vmem:[%s8636_s28 + $0x70] sm:$0xff] %v5995_v46  }
 0x253   : > { %v5126_v20 = vadd.f32 %v5125_v15, %v4935_v61  ;;  %v5195_v42 = vadd.f32 %v5194_v47, %v5164_v60 }
 0x255   : > { %v5127_v12 = vadd.f32 %v5126_v20, %v4936_v44  ;;  %v5196_v31 = vadd.f32 %v5195_v42, %v5165_v2 }
 0x257   : > { %v5128_v57 = vrot.slane %v5127_v12, 4  ;;  %v5197_v8 = vadd.f32 %v5196_v31, %v5166_v33 }
 0x259   : > { %v5129_v48 = vadd.f32 %v5128_v57, %v5127_v12  ;;  %v5198_v62 = vrot.slane %v5197_v8, 4 }
 0x25b   : > { %v5130_v56 = vrot.slane %v5129_v48, 2  ;;  %v5199_v40 = vadd.f32 %v5198_v62, %v5197_v8 }
 0x25d   : > { %v5131_v13 = vadd.f32 %v5130_v56, %v5129_v48  ;;  %v5200_v5 = vrot.slane %v5199_v40, 2 }
 0x25f   : > { %v5132_v17 = vrot.slane %v5131_v13, 1  ;;  %v5201_v30 = vadd.f32 %v5200_v5, %v5199_v40 }
 0x261   : > { %v5133_v9 = vadd.f32 %v5132_v17, %v5131_v13  ;;  %v5202_v14 = vrot.slane %v5201_v30, 1 }
 0x263   : > { %5134 = vst [vmem:[%s238_s6] sm:$0x1] %v5133_v9  ;;  %v5203_v63 = vadd.f32 %v5202_v14, %v5201_v30 }
 0x265   : > { %5204 = vst [vmem:[%s241_s9] sm:$0x1] %v5203_v63 }
 0x266 PF: > { %s16_s18 = sadd.s32 1, %s6864_s18  }
 0x267   : > { %p13_p4 = scmp.ge.s32.totalorder %s16_s18, 4  }
 0x269   :  { %15 = sbr.rel (!%p13_p4) target bundleno = 1 (0x1), region = 96 }

// kernel: mynet_forward.5
= control target key start
LH: loop header
LB: loop body
LE: loop exit
PB: predicated region body
PF: predicated region fallthrough
CT: control target
= control target key end

     0   :  { %s7107_s24 = smov 0   ;;  %s8865_s0 = inlined_call_operand.vmem [shape: bf16[2,16,16,128], index: 0, kind: input, shape index: {}]   ;;  %s8866_s1 = inlined_call_operand.vmem [shape: f32[1,128], index: 1, kind: input, shape index: {}]   ;;  %s8867_s2 = inlined_call_operand.vmem [shape: f32[1,128], index: 2, kind: input, shape index: {}]   ;;  %s8868_s3 = inlined_call_operand.vmem [shape: bf16[1152,128], index: 3, kind: input, shape index: {}]   ;;  %s8869_s4 = inlined_call_operand.vmem [shape: f32[1,128], index: 4, kind: input, shape index: {}]   ;;  %s8870_s5 = inlined_call_operand.vmem [shape: bf16[2,256,128], index: 5, kind: output, shape index: {0}]   ;;  %s8871_s6 = inlined_call_operand.vmem [shape: f32[2,1,128], index: 6, kind: output, shape index: {1}]   ;;  %s8872_s7 = inlined_call_operand.vmem [shape: f32[2,1,128], index: 7, kind: output, shape index: {2}]  }
   0x1 LB: > { %s5806_s25 = sadd.s32 4294967295, %s7064_s24   ;;  %p5810_p0 = scmp.ge.s32.totalorder %s7064_s24, 1  ;;  %s7064_s24 = sphi %s7107_s24, %s18_s24  }
   0x2   : > { %p242_p1 = scmp.lt.s32.totalorder %s7064_s24, 3 }
   0x4   : > { %p243_p2 = pnand %p5810_p0, %p242_p1 }
   0x6   : > { %246 = sbr.rel (%p243_p2) target bundleno = 671 (0x29f), region = 40 }
   0xd   : > { %v6933_v0 = vld [vmem:[%s8868_s3 + $0x40] sm:$0xff]   ;;  %v7066_v2 = vmov 0   ;;  %v6935_v3 = vld [vmem:[%s8868_s3 + $0x48] sm:$0xff]   ;;  %v6937_v5 = vld [vmem:[%s8868_s3 + $0x50] sm:$0xff]   ;;  %p280_p3 = scmp.lt.s32.totalorder %s5806_s25, 1  ;;  %vm913_vm3 = vcmask 1043456  }
   0xe   : > { %v6934_v1 = vld [vmem:[%s8868_s3] sm:$0xff]   ;;  %455 = vst [vmem:[#allocation2] sm:$0xf] %v7066_v2  ;;  %456 = vst [vmem:[#allocation2 + $0x4] sm:$0xf] %v7066_v2  ;;  %6388 = vmatprep.subr.bf16.mxu0 %v6933_v0  ;;  %6908 = vmatprep.subr.bf16.mxu1 %v6933_v0  ;;  %v6936_v4 = vld [vmem:[%s8868_s3 + $0x8] sm:$0xff]  }
   0xf   : > { %457 = vst [vmem:[#allocation2 + $0x8] sm:$0x1] %v7066_v2  ;;  %458 = vst [vmem:[#allocation2 + $0xc] sm:$0xf] %v7066_v2  ;;  %6389 = vmatpush3.bf16.msra.mxu0 %v6934_v1  ;;  %6916 = vmatpush3.bf16.msra.mxu1 %v6934_v1  ;;  %v6938_v6 = vld [vmem:[%s8868_s3 + $0x10] sm:$0xff]   ;;  %v6939_v7 = vld [vmem:[%s8868_s3 + $0x58] sm:$0xff]  }
  0x10   : > { %459 = vst [vmem:[#allocation2 + $0x10] sm:$0xf] %v7066_v2  ;;  %460 = vst [vmem:[#allocation2 + $0x14] sm:$0x1] %v7066_v2  ;;  %6390 = vmatprep.subr.bf16.mxu0 %v6935_v3  ;;  %6909 = vmatprep.subr.bf16.mxu1 %v6935_v3  ;;  %s8924_s25 = smov (!%p280_p3, %s5806_s25), 1  ;;  %v6940_v8 = vld [vmem:[%s8868_s3 + $0x18] sm:$0xff]  }
  0x11   : > { %461 = vst [vmem:[#allocation2 + $0x18] sm:$0xf] %v7066_v2  ;;  %462 = vst [vmem:[#allocation2 + $0x1c] sm:$0xf] %v7066_v2  ;;  %v6941_v9 = vld [vmem:[%s8868_s3 + $0x60] sm:$0xff]   ;;  %s6148_s21 = sshll.u32 %s8924_s25, 7  ;;  %s292_s15 = scalar_lea.vmem %s8871_s6, %s8924_s25 }
  0x12   : > { %463 = vst [vmem:[#allocation2 + $0x20] sm:$0x1] %v7066_v2  ;;  %464 = vst [vmem:[#allocation2 + $0x24] sm:$0xf] %v7066_v2  ;;  %v6942_v10 = vld [vmem:[%s8868_s3 + $0x20] sm:$0xff]   ;;  %v6943_v11 = vld [vmem:[%s8868_s3 + $0x68] sm:$0xff]   ;;  %s7160_s30 = scalar_lea.vmem %s8865_s0, %s6148_s21  ;;  %s8802_s13 = scalar_lea.vmem %s8870_s5, %s6148_s21 }
  0x13   : > { %465 = vst [vmem:[#allocation2 + $0x28] sm:$0xf] %v7066_v2  ;;  %466 = vst [vmem:[#allocation2 + $0x2c] sm:$0x1] %v7066_v2  ;;  %6391 = vmatpush3.bf16.msra.mxu0 %v6936_v4  ;;  %6917 = vmatpush3.bf16.msra.mxu1 %v6936_v4  ;;  %vm1222_vm0 = vsmask.f32 3328  ;;  %s295_s18 = scalar_lea.vmem %s8872_s7, %s8924_s25 }
  0x14   : > { %467 = vst [vmem:[#allocation2 + $0x30] sm:$0xf] %v7066_v2  ;;  %468 = vst [vmem:[#allocation2 + $0x34] sm:$0xf] %v7066_v2  ;;  %6392 = vmatprep.subr.bf16.mxu0 %v6937_v5  ;;  %6910 = vmatprep.subr.bf16.mxu1 %v6937_v5  ;;  %vm1223_vm1 = vsmask.f32 7440 }
  0x15   : > { %469 = vst [vmem:[#allocation2 + $0x38] sm:$0x1] %v7066_v2  ;;  %470 = vst [vmem:[#allocation2 + $0x3c] sm:$0xf] %v7066_v2  ;;  %v1174_v12 = vld [vmem:[#allocation2] sm:$0xf] }
  0x16   : > { %471 = vst [vmem:[#allocation2 + $0x40] sm:$0xf] %v7066_v2  ;;  %472 = vst [vmem:[#allocation2 + $0x44] sm:$0x1] %v7066_v2  ;;  %v1175_v13 = vld [vmem:[#allocation2 + $0x4] sm:$0xf] }
  0x17   : > { %473 = vst [vmem:[#allocation2 + $0x48] sm:$0xf] %v7066_v2  ;;  %474 = vst [vmem:[#allocation2 + $0x4c] sm:$0xf] %v7066_v2  ;;  %6393 = vmatpush3.bf16.msra.mxu0 %v6938_v6  ;;  %6918 = vmatpush3.bf16.msra.mxu1 %v6938_v6  ;;  %v1176_v14 = vld [vmem:[#allocation2 + $0x8] sm:$0x1] }
  0x18   : > { %475 = vst [vmem:[#allocation2 + $0x50] sm:$0x1] %v7066_v2  ;;  %476 = vst [vmem:[#allocation2 + $0x54] sm:$0xf] %v7066_v2  ;;  %6394 = vmatprep.subr.bf16.mxu0 %v6939_v7  ;;  %6911 = vmatprep.subr.bf16.mxu1 %v6939_v7  ;;  %v1226_v15 = vshrl.u32 %v1174_v12, 16  ;;  %v1229_v16 = vshll.u32 %v1174_v12, 16 }
  0x19   : > { %477 = vst [vmem:[#allocation2 + $0x58] sm:$0xf] %v7066_v2  ;;  %478 = vst [vmem:[#allocation2 + $0x5c] sm:$0x1] %v7066_v2  ;;  %v1235_v17 = vshll.u32 %v1175_v13, 16  ;;  %v1239_v18 = vshrl.u32 %v1175_v13, 16 }
  0x1a   : > { %479 = vst [vmem:[#allocation2 + $0x60] sm:$0xf] %v7066_v2  ;;  %480 = vst [vmem:[#allocation2 + $0x64] sm:$0xf] %v7066_v2  ;;  %v1245_v19 = vshll.u32 %v1176_v14, 16  ;;  %v6944_v20 = vld [vmem:[%s8868_s3 + $0x28] sm:$0xff]  }
  0x1b   : > { %481 = vst [vmem:[#allocation2 + $0x68] sm:$0x1] %v7066_v2  ;;  %482 = vst [vmem:[#allocation2 + $0x6c] sm:$0xf] %v7066_v2  ;;  %6395 = vmatpush3.bf16.msra.mxu0 %v6940_v8  ;;  %6919 = vmatpush3.bf16.msra.mxu1 %v6940_v8  ;;  %v1228_v21 = vrot.slane %v1226_v15, 4  ;;  %v1231_v22 = vrot.slane %v1229_v16, 5 }
  0x1c   : > { %483 = vst [vmem:[#allocation2 + $0x70] sm:$0xf] %v7066_v2  ;;  %484 = vst [vmem:[#allocation2 + $0x74] sm:$0x1] %v7066_v2  ;;  %6396 = vmatprep.subr.bf16.mxu0 %v6941_v9  ;;  %6912 = vmatprep.subr.bf16.mxu1 %v6941_v9  ;;  %v6368_v23 = vld [vmem:[%s7160_s30 + $0x58] sm:$0xff]   ;;  %v6945_v24 = vld [vmem:[%s8868_s3 + $0x70] sm:$0xff]  }
  0x1d   : > { %485 = vst [vmem:[#allocation2 + $0x78] sm:$0xf] %v7066_v2  ;;  %486 = vst [vmem:[#allocation2 + $0x7c] sm:$0xf] %v7066_v2  ;;  %v1237_v25 = vrot.slane %v1235_v17, 5  ;;  %v1241_v26 = vrot.slane %v1239_v18, 4  ;;  %v6260_v27 = vunpack.c.l.bf16 %v6368_v23  ;;  %v1232_v29 = vor.u32 %v1231_v22, %v1228_v21 }
  0x1e   : > { %487 = vst [vmem:[#allocation2 + $0x80] sm:$0x1] %v7066_v2  ;;  %488 = vst [vmem:[#allocation2 + $0x84] sm:$0xf] %v7066_v2  ;;  %v7172_v28 = vld [vmem:[%s8866_s1] ss:$0 sm:$0xff]  ;;  %v6261_v30 = vunpack.c.h.bf16 %v6368_v23 }
  0x1f   : > { %489 = vst [vmem:[#allocation2 + $0x88] sm:$0xf] %v7066_v2  ;;  %490 = vst [vmem:[#allocation2 + $0x8c] sm:$0x1] %v7066_v2  ;;  %6397 = vmatpush3.bf16.msra.mxu0 %v6942_v10  ;;  %6920 = vmatpush3.bf16.msra.mxu1 %v6942_v10  ;;  %v7177_v31 = vld [vmem:[%s8867_s2] ss:$0 sm:$0xff]  ;;  %v1242_v33 = vor.u32 %v1241_v26, %v1237_v25  ;;  %v390_v35 = vmul.f32 %v6260_v27, %v7172_v28 }
  0x20   : > { %491 = vst [vmem:[#allocation2 + $0x90] sm:$0xf] %v7066_v2  ;;  %492 = vst [vmem:[#allocation2 + $0x94] sm:$0xf] %v7066_v2  ;;  %6398 = vmatprep.subr.bf16.mxu0 %v6943_v11  ;;  %6913 = vmatprep.subr.bf16.mxu1 %v6943_v11  ;;  %v1247_v34 = vrot.slane %v1245_v19, 5  ;;  %v6946_v36 = vld [vmem:[%s8868_s3 + $0x30] sm:$0xff]   ;;  %v391_v38 = vmul.f32 %v6261_v30, %v7172_v28 }
  0x21   : > { %493 = vst [vmem:[#allocation2 + $0x98] sm:$0x1] %v7066_v2  ;;  %494 = vst [vmem:[#allocation2 + $0x9c] sm:$0xf] %v7066_v2  ;;  %v1233_v37 = vrot.slane %v1232_v29, 4  ;;  %v6947_v39 = vld [vmem:[%s8868_s3 + $0x78] sm:$0xff]   ;;  %v429_v41 = vadd.f32 %v7177_v31, %v390_v35 }
  0x22   : > { %495 = vst [vmem:[#allocation2 + $0xa0] sm:$0xf] %v7066_v2  ;;  %496 = vst [vmem:[#allocation2 + $0xa4] sm:$0x1] %v7066_v2  ;;  %v1243_v40 = vrot.slane %v1242_v33, 4  ;;  %v6948_v42 = vld [vmem:[%s8868_s3 + $0x38] sm:$0xff]   ;;  %v430_v44 = vadd.f32 %v7177_v31, %v391_v38 }
  0x23   : > { %497 = vst [vmem:[#allocation2 + $0xa8] sm:$0xf] %v7066_v2  ;;  %498 = vst [vmem:[#allocation2 + $0xac] sm:$0xf] %v7066_v2  ;;  %6399 = vmatpush3.bf16.msra.mxu0 %v6944_v20  ;;  %6921 = vmatpush3.bf16.msra.mxu1 %v6944_v20  ;;  %vm589_vm4 = vsmask.f32 256  ;;  %v6172_v47 = vpack.c.bf16 %v429_v41, %v429_v41 }
  0x24   : > { %499 = vst [vmem:[#allocation2 + $0xb0] sm:$0x1] %v7066_v2  ;;  %500 = vst [vmem:[#allocation2 + $0xb4] sm:$0xf] %v7066_v2  ;;  %6400 = vmatprep.subr.bf16.mxu0 %v6945_v24  ;;  %6914 = vmatprep.subr.bf16.mxu1 %v6945_v24  ;;  %vm590_vm5 = vsmask.f32 4368  ;;  %v6173_v53 = vpack.c.bf16 %v430_v44, %v430_v44 }
  0x25   : > { %501 = vst [vmem:[#allocation2 + $0xb8] sm:$0xf] %v7066_v2  ;;  %502 = vst [vmem:[#allocation2 + $0xbc] sm:$0x1] %v7066_v2  ;;  %v6215_v45 = vld [vmem:[%s7160_s30] sm:$0xff]   ;;  %v780_v54 = vshrl.u32 %v6172_v47, 16 }
  0x26   : > { %503 = vst [vmem:[#allocation2 + $0xc0] sm:$0xf] %v7066_v2  ;;  %504 = vst [vmem:[#allocation2 + $0xc4] sm:$0xf] %v7066_v2  ;;  %v6950_v48 = vld [vmem:[%s8868_s3 + $0xc0] sm:$0xff]   ;;  %v6216_v50 = vunpack.c.l.bf16 %v6215_v45  ;;  %v6217_v51 = vunpack.c.h.bf16 %v6215_v45  ;;  %v783_v55 = vshll.u32 %v6172_v47, 16 }
  0x27   : > { %505 = vst [vmem:[#allocation2 + $0xc8] sm:$0x1] %v7066_v2  ;;  %506 = vst [vmem:[#allocation2 + $0xcc] sm:$0xf] %v7066_v2  ;;  %v6951_v49 = vld [vmem:[%s8868_s3 + $0x140] sm:$0xff]   ;;  %6401 = vmatpush3.bf16.msra.mxu0 %v6946_v36  ;;  %6922 = vmatpush3.bf16.msra.mxu1 %v6946_v36  ;;  %v788_v60 = vshrl.u32 %v6173_v53, 16 }
  0x28   : > { %507 = vst [vmem:[#allocation2 + $0xd0] sm:$0xf] %v7066_v2  ;;  %508 = vst [vmem:[#allocation2 + $0xd4] sm:$0x1] %v7066_v2  ;;  %vm914_vm6 = vsmask.f32 7938  ;;  %6402 = vmatprep.subr.bf16.mxu0 %v6947_v39  ;;  %6915 = vmatprep.subr.bf16.mxu1 %v6947_v39  ;;  %v368_v56 = vmul.f32 %v6216_v50, %v7172_v28  ;;  %v369_v57 = vmul.f32 %v6217_v51, %v7172_v28 }
  0x29   : > { %vm7181_vm2 = vmor %vm1222_vm0, %vm1223_vm1  ;;  %v6949_v58 = vld [vmem:[#allocation2] sm:$0xff]   ;;  %v791_v61 = vshll.u32 %v6173_v53, 16  ;;  %vm920_vm8 = vcmask 1040384   ;;  %v782_v62 = vrot.slane %v780_v54, 7  ;;  %v995_v63 = vld [vmem:[#allocation2 + $0x90] sm:$0xf] }
  0x2a   : > { %v1238_v43 = vsel %vm7181_vm2, %v1233_v37, %v1237_v25  ;;  %v1248_v46 = vsel %vm7181_vm2, %v1243_v40, %v1247_v34  ;;  %vm7213_vm7 = vmor %vm589_vm4, %vm590_vm5  ;;  %v407_v0 = vadd.f32 %v7177_v31, %v368_v56  ;;  %v408_v1 = vadd.f32 %v7177_v31, %v369_v57  ;;  %v6369_v2 = vld [vmem:[%s7160_s30 + $0x60] sm:$0xff]   ;;  %v999_v11 = vld [vmem:[#allocation2 + $0x98] sm:$0x1] }
  0x2b   : > { %v5865_v52 = vcombine.low %v1238_v43, %v1248_v46  ;;  %6403 = vmatpush3.bf16.msra.mxu0 %v6948_v42  ;;  %6923 = vmatpush3.bf16.msra.mxu1 %v6948_v42  ;;  %v790_v3 = vrot.slane %v788_v60, 7  ;;  %vm7222_vm9 = vmand %vm913_vm3, %vm914_vm6  ;;  %v6954_v5 = vld [vmem:[%s8868_s3 + $0x100] sm:$0xff]   ;;  %v6264_v6 = vunpack.c.l.bf16 %v6369_v2  ;;  %v6265_v7 = vunpack.c.h.bf16 %v6369_v2  ;;  %v6358_v18 = vld [vmem:[%s7160_s30 + $0x8] sm:$0xff]  }
  0x2c   : > { %v785_v8 = vor.u32 %v783_v55, %v782_v62  ;;  %v786_v9 = vrot.slane %v782_v62, 4  ;;  %vm7231_vm10 = vmand %vm920_vm8, %vm589_vm4  ;;  %6500 = vmatprep.subr.bf16.mxu1 %v6950_v48  ;;  %6612 = vmatprep.subr.bf16.mxu0 %v6951_v49  ;;  %v6150_v12 = vpack.c.bf16 %v407_v0, %v407_v0  ;;  %v6151_v13 = vpack.c.bf16 %v408_v1, %v408_v1  ;;  %v916_v26 = vld [vmem:[#allocation2 + $0xc] sm:$0xf]  ;;  %v922_v36 = vld [vmem:[#allocation2 + $0x14] sm:$0x1] }
  0x2d   : > { %4628 = vmatprep.mubr.bf16.mxu0 %v5865_v52  ;;  %v793_v14 = vor.u32 %v791_v61, %v790_v3  ;;  %v795_v15 = vrot.slane %v790_v3, 4  ;;  %v392_v16 = vmul.f32 %v6264_v6, %v7172_v28  ;;  %v393_v17 = vmul.f32 %v6265_v7, %v7172_v28  ;;  %v6963_v29 = vld [vmem:[%s8868_s3 + $0x148] sm:$0xff]   ;;  %v7263_v57 = vld [vmem:[%s7160_s30 + $0x10] sm:$0xff]   ;;  %v1002_v60 = vld [vmem:[#allocation2 + $0x9c] sm:$0xf] }
  0x2e   : > { %4629 = vmatmul.mubr.bf16.vlgmr.msra.gmra.mrb[0].mxu0 %v6949_v58  ;;  %v996_v19 = vsel %vm7222_vm9, %v785_v8, %v995_v63  ;;  %v593_v20 = vshrl.u32 %v6150_v12, 16  ;;  %v596_v21 = vshll.u32 %v6150_v12, 16  ;;  %v601_v22 = vshrl.u32 %v6151_v13, 16  ;;  %v6965_v47 = vld [vmem:[%s8868_s3 + $0x108] sm:$0xff]  }
  0x2f   : > { %v794_v23 = vsel %vm7213_vm7, %v786_v9, %v793_v14  ;;  %997 = vst [vmem:[#allocation2 + $0x90] sm:$0xf] %v996_v19  ;;  %v1000_v24 = vsel %vm7231_vm10, %v795_v15, %v999_v11  ;;  %v604_v25 = vshll.u32 %v6151_v13, 16  ;;  %6613 = vmatpush3.bf16.msra.mxu0 %v6954_v5  ;;  %v431_v27 = vadd.f32 %v7177_v31, %v392_v16  ;;  %v6370_v48 = vld [vmem:[%s7160_s30 + $0x68] sm:$0xff]  }
  0x30   : > { %998 = vst [vmem:[#allocation2 + $0x94] sm:$0xf] %v794_v23  ;;  %1001 = vst [vmem:[#allocation2 + $0x98] sm:$0x1] %v1000_v24  ;;  %v595_v30 = vrot.slane %v593_v20, 7  ;;  %v603_v33 = vrot.slane %v601_v22, 7  ;;  %v432_v34 = vadd.f32 %v7177_v31, %v393_v17  ;;  %v6220_v35 = vunpack.c.l.bf16 %v6358_v18  ;;  %6614 = vmatprep.subr.bf16.mxu0 %v6963_v29 }
  0x31   : > { %v6174_v37 = vpack.c.bf16 %v431_v27, %v431_v27  ;;  %v6221_v38 = vunpack.c.h.bf16 %v6358_v18  ;;  %v6268_v62 = vunpack.c.l.bf16 %v6370_v48  ;;  %v6269_v63 = vunpack.c.h.bf16 %v6370_v48  ;;  %v1006_v24 = vld [vmem:[#allocation2 + $0xa4] sm:$0x1] }
  0x32   : > { %v598_v39 = vor.u32 %v596_v21, %v595_v30  ;;  %v599_v40 = vrot.slane %v595_v30, 4  ;;  %v606_v41 = vor.u32 %v604_v25, %v603_v33  ;;  %v608_v42 = vrot.slane %v603_v33, 4 }
  0x33   : > { %v6175_v43 = vpack.c.bf16 %v432_v34, %v432_v34  ;;  %v797_v44 = vshrl.u32 %v6174_v37, 16  ;;  %v800_v45 = vshll.u32 %v6174_v37, 16  ;;  %v370_v46 = vmul.f32 %v6220_v35, %v7172_v28  ;;  %6615 = vmatpush3.bf16.msra.mxu0 %v6965_v47 }
  0x34   : > { %v607_v49 = vsel %vm7213_vm7, %v599_v40, %v606_v41  ;;  %v917_v50 = vsel %vm7222_vm9, %v598_v39, %v916_v26  ;;  %v923_v51 = vsel %vm7231_vm10, %v608_v42, %v922_v36  ;;  %v371_v52 = vmul.f32 %v6221_v38, %v7172_v28 }
  0x35   : > { %918 = vst [vmem:[#allocation2 + $0xc] sm:$0xf] %v917_v50  ;;  %919 = vst [vmem:[#allocation2 + $0x10] sm:$0xf] %v607_v49  ;;  %v799_v53 = vrot.slane %v797_v44, 7  ;;  %v805_v54 = vshrl.u32 %v6175_v43, 16  ;;  %v409_v56 = vadd.f32 %v7177_v31, %v370_v46  ;;  %v6224_v0 = vunpack.c.l.bf16 %v7263_v57 }
  0x36   : > { %924 = vst [vmem:[#allocation2 + $0x14] sm:$0x1] %v923_v51  ;;  %v808_v55 = vshll.u32 %v6175_v43, 16  ;;  %v1210_v58 = vld [vmem:[#allocation2 + $0x90] sm:$0xf]  ;;  %v410_v61 = vadd.f32 %v7177_v31, %v371_v52  ;;  %v394_v33 = vmul.f32 %v6268_v62, %v7172_v28  ;;  %v395_v34 = vmul.f32 %v6269_v63, %v7172_v28 }
  0x37   : > { %v1211_v1 = vld [vmem:[#allocation2 + $0x94] sm:$0xf]  ;;  %v1212_v2 = vld [vmem:[#allocation2 + $0x98] sm:$0x1]  ;;  %v1514_v3 = vshrl.u32 %v1210_v58, 16  ;;  %v1517_v5 = vshll.u32 %v1210_v58, 16  ;;  %v802_v6 = vor.u32 %v800_v45, %v799_v53  ;;  %v7267_v7 = vpack.c.bf16 %v409_v56, %v409_v56 }
  0x38   : > { %v1523_v8 = vshll.u32 %v1211_v1, 16  ;;  %v1527_v9 = vshrl.u32 %v1211_v1, 16  ;;  %v1533_v11 = vshll.u32 %v1212_v2, 16  ;;  %v7269_v12 = vpack.c.bf16 %v410_v61, %v410_v61  ;;  %v6952_v48 = vld [vmem:[#allocation2 + $0x90] sm:$0xff]   ;;  %v6956_v56 = vld [vmem:[%s8868_s3 + $0xc8] sm:$0xff]  }
  0x39   : > { %v1516_v13 = vrot.slane %v1514_v3, 4  ;;  %v1519_v14 = vrot.slane %v1517_v5, 5  ;;  %v803_v15 = vrot.slane %v799_v53, 4  ;;  %v807_v16 = vrot.slane %v805_v54, 7  ;;  %v925_v61 = vld [vmem:[#allocation2 + $0x18] sm:$0xf] }
  0x3a   : > { %v1525_v17 = vrot.slane %v1523_v8, 5  ;;  %v1529_v18 = vrot.slane %v1527_v9, 4  ;;  %v1535_v19 = vrot.slane %v1533_v11, 5  ;;  %v1003_v20 = vsel %vm7222_vm9, %v802_v6, %v1002_v60  ;;  %v6957_v6 = vld [vmem:[%s8868_s3 + $0x88] sm:$0xff]  }
  0x3b   : > { %v1520_v21 = vor.u32 %v1519_v14, %v1516_v13  ;;  %v810_v22 = vor.u32 %v808_v55, %v807_v16  ;;  %v812_v23 = vrot.slane %v807_v16, 4  ;;  %1004 = vst [vmem:[#allocation2 + $0x9c] sm:$0xf] %v1003_v20  ;;  %v610_v25 = vshrl.u32 %v7267_v7, 16  ;;  %v6953_v55 = vld [vmem:[%s8868_s3 + $0x80] sm:$0xff]  }
  0x3c   : > { %v1530_v26 = vor.u32 %v1529_v18, %v1525_v17  ;;  %v1177_v27 = vld [vmem:[#allocation2 + $0xc] sm:$0xf]  ;;  %v1178_v29 = vld [vmem:[#allocation2 + $0x10] sm:$0xf]  ;;  %v6225_v35 = vunpack.c.h.bf16 %v7263_v57  ;;  %v613_v60 = vshll.u32 %v7267_v7, 16  ;;  %v618_v1 = vshrl.u32 %v7269_v12, 16 }
  0x3d   : > { %v1179_v30 = vld [vmem:[#allocation2 + $0x14] sm:$0x1]  ;;  %v1521_v36 = vrot.slane %v1520_v21, 4  ;;  %v1250_v37 = vshrl.u32 %v1177_v27, 16  ;;  %v1253_v38 = vshll.u32 %v1177_v27, 16  ;;  %v1259_v39 = vshll.u32 %v1178_v29, 16 }
  0x3e   : > { %v1531_v40 = vrot.slane %v1530_v26, 4  ;;  %v1263_v41 = vshrl.u32 %v1178_v29, 16  ;;  %v1269_v42 = vshll.u32 %v1179_v30, 16  ;;  %v811_v43 = vsel %vm7213_vm7, %v803_v15, %v810_v22  ;;  %v929_v13 = vld [vmem:[#allocation2 + $0x20] sm:$0x1]  ;;  %v6973_v7 = vld [vmem:[%s8868_s3 + $0x150] sm:$0xff]  }
  0x3f   : > { %v1526_v44 = vsel %vm7181_vm2, %v1521_v36, %v1525_v17  ;;  %v1252_v45 = vrot.slane %v1250_v37, 4  ;;  %v1255_v46 = vrot.slane %v1253_v38, 5  ;;  %v1261_v47 = vrot.slane %v1259_v39, 5  ;;  %1005 = vst [vmem:[#allocation2 + $0xa0] sm:$0xf] %v811_v43  ;;  %6616 = vmatprep.subr.bf16.mxu0 %v6973_v7  ;;  %v6960_v36 = vld [vmem:[%s8868_s3 + $0x90] sm:$0xff]  }
  0x40   : > { %v1536_v49 = vsel %vm7181_vm2, %v1531_v40, %v1535_v19  ;;  %v1265_v50 = vrot.slane %v1263_v41, 4  ;;  %v1271_v51 = vrot.slane %v1269_v42, 5  ;;  %v1007_v52 = vsel %vm7231_vm10, %v812_v23, %v1006_v24  ;;  %v6955_v23 = vld [vmem:[#allocation2 + $0xc] sm:$0xff]   ;;  %v6962_v40 = vld [vmem:[%s8868_s3 + $0xd8] sm:$0xff]  }
  0x41   : > { %v5877_v53 = vcombine.low %v1526_v44, %v1536_v49  ;;  %v1256_v54 = vor.u32 %v1255_v46, %v1252_v45  ;;  %1008 = vst [vmem:[#allocation2 + $0xa4] sm:$0x1] %v1007_v52  ;;  %v612_v58 = vrot.slane %v610_v25, 7  ;;  %v621_v2 = vshll.u32 %v7269_v12, 16  ;;  %v6958_v12 = vld [vmem:[%s8868_s3 + $0xd0] sm:$0xff]  }
  0x42   : > { %v1266_v62 = vor.u32 %v1265_v50, %v1261_v47  ;;  %v1213_v63 = vld [vmem:[#allocation2 + $0x9c] sm:$0xf]  ;;  %v433_v3 = vadd.f32 %v7177_v31, %v394_v33  ;;  %v620_v16 = vrot.slane %v618_v1, 7  ;;  %v434_v17 = vadd.f32 %v7177_v31, %v395_v34  ;;  %v7322_v43 = vld [vmem:[%s7160_s30 + $0x70] sm:$0xff]   ;;  %v1009_v52 = vld [vmem:[#allocation2 + $0xa8] sm:$0xf] }
  0x43   : > { %4724 = vmatprep.mubr.bf16.mxu1 %v5877_v53  ;;  %v1257_v5 = vrot.slane %v1256_v54, 4  ;;  %v1538_v8 = vshrl.u32 %v1213_v63, 16  ;;  %v1541_v9 = vshll.u32 %v1213_v63, 16  ;;  %v615_v11 = vor.u32 %v613_v60, %v612_v58  ;;  %v6976_v60 = vld [vmem:[%s8868_s3 + $0x110] sm:$0xff]  }
  0x44   : > { %v1267_v14 = vrot.slane %v1266_v62, 4  ;;  %4725 = vmatmul.mubr.bf16.vlgmr.msra.gmra.mrb[0].mxu1 %v6952_v48  ;;  %v616_v15 = vrot.slane %v612_v58, 4  ;;  %v623_v25 = vor.u32 %v621_v2, %v620_v16  ;;  %v625_v26 = vrot.slane %v620_v16, 4  ;;  %v1013_v1 = vld [vmem:[#allocation2 + $0xb0] sm:$0x1]  ;;  %6617 = vmatpush3.bf16.msra.mxu0 %v6976_v60 }
  0x45   : > { %v1262_v18 = vsel %vm7181_vm2, %v1257_v5, %v1261_v47  ;;  %6501 = vmatpush3.bf16.msra.mxu1 %v6953_v55  ;;  %v1540_v19 = vrot.slane %v1538_v8, 4  ;;  %v1543_v20 = vrot.slane %v1541_v9, 5  ;;  %v926_v21 = vsel %vm7222_vm9, %v615_v11, %v925_v61 }
  0x46   : > { %v1272_v22 = vsel %vm7181_vm2, %v1267_v14, %v1271_v51  ;;  %6502 = vmatprep.subr.bf16.mxu1 %v6956_v56  ;;  %v1214_v24 = vld [vmem:[#allocation2 + $0xa0] sm:$0xf]  ;;  %927 = vst [vmem:[#allocation2 + $0x18] sm:$0xf] %v926_v21  ;;  %v6176_v27 = vpack.c.bf16 %v433_v3, %v433_v3  ;;  %v624_v38 = vsel %vm7213_vm7, %v616_v15, %v623_v25  ;;  %v6964_v56 = vld [vmem:[%s8868_s3 + $0x98] sm:$0xff]   ;;  %v6272_v8 = vunpack.c.l.bf16 %v7322_v43 }
  0x47   : > { %v5866_v29 = vcombine.low %v1262_v18, %v1272_v22  ;;  %v1544_v30 = vor.u32 %v1543_v20, %v1540_v19  ;;  %v1547_v33 = vshll.u32 %v1214_v24, 16  ;;  %v1551_v34 = vshrl.u32 %v1214_v24, 16  ;;  %928 = vst [vmem:[#allocation2 + $0x1c] sm:$0xf] %v624_v38  ;;  %v6959_v7 = vld [vmem:[#allocation2 + $0x9c] sm:$0xff]  }
  0x48   : > { %v1215_v37 = vld [vmem:[#allocation2 + $0xa4] sm:$0x1]  ;;  %v930_v39 = vsel %vm7231_vm10, %v625_v26, %v929_v13  ;;  %v6177_v41 = vpack.c.bf16 %v434_v17, %v434_v17  ;;  %v814_v42 = vshrl.u32 %v6176_v27, 16  ;;  %v817_v49 = vshll.u32 %v6176_v27, 16 }
  0x49   : > { %4636 = vmatprep.mubr.bf16.mxu0 %v5866_v29  ;;  %6503 = vmatpush3.bf16.msra.mxu1 %v6957_v6  ;;  %v1545_v44 = vrot.slane %v1544_v30, 4  ;;  %v1549_v45 = vrot.slane %v1547_v33, 5  ;;  %v1553_v46 = vrot.slane %v1551_v34, 4  ;;  %v1557_v47 = vshll.u32 %v1215_v37, 16  ;;  %931 = vst [vmem:[#allocation2 + $0x20] sm:$0x1] %v930_v39 }
  0x4a   : > { %4637 = vmatmul.mubr.bf16.gmra.mrb[4].mxu0 %v6955_v23  ;;  %6504 = vmatprep.subr.bf16.mxu1 %v6958_v12  ;;  %v816_v48 = vrot.slane %v814_v42, 7  ;;  %v822_v50 = vshrl.u32 %v6177_v41, 16  ;;  %v825_v51 = vshll.u32 %v6177_v41, 16  ;;  %v372_v58 = vmul.f32 %v6224_v0, %v7172_v28  ;;  %v6966_v6 = vld [vmem:[%s8868_s3 + $0xe0] sm:$0xff]   ;;  %v7360_v37 = vld [vmem:[%s7160_s30 + $0x18] sm:$0xff]  }
  0x4b   : > { %v1550_v53 = vsel %vm7181_vm2, %v1545_v44, %v1549_v45  ;;  %v1554_v54 = vor.u32 %v1553_v46, %v1549_v45  ;;  %v1559_v55 = vrot.slane %v1557_v47, 5  ;;  %v373_v2 = vmul.f32 %v6225_v35, %v7172_v28  ;;  %v6968_v27 = vld [vmem:[%s8868_s3 + $0xa0] sm:$0xff]  }
  0x4c   : > { %v819_v61 = vor.u32 %v817_v49, %v816_v48  ;;  %v820_v62 = vrot.slane %v816_v48, 4  ;;  %v824_v63 = vrot.slane %v822_v50, 7  ;;  %v411_v0 = vadd.f32 %v7177_v31, %v372_v58  ;;  %v932_v47 = vld [vmem:[#allocation2 + $0x24] sm:$0xf]  ;;  %v6971_v48 = vld [vmem:[%s8868_s3 + $0xa8] sm:$0xff]   ;;  %v6972_v58 = vld [vmem:[%s8868_s3 + $0xf0] sm:$0xff]  }
  0x4d   : > { %v1555_v3 = vrot.slane %v1554_v54, 4  ;;  %v1180_v5 = vld [vmem:[#allocation2 + $0x18] sm:$0xf]  ;;  %6505 = vmatpush3.bf16.msra.mxu1 %v6960_v36  ;;  %v6273_v9 = vunpack.c.h.bf16 %v7322_v43  ;;  %v412_v15 = vadd.f32 %v7177_v31, %v373_v2  ;;  %v6970_v36 = vld [vmem:[%s8868_s3 + $0xe8] sm:$0xff]   ;;  %v396_v41 = vmul.f32 %v6272_v8, %v7172_v28  ;;  %v6975_v2 = vld [vmem:[%s8868_s3 + $0xb0] sm:$0xff]  }
  0x4e   : > { %v1274_v11 = vshrl.u32 %v1180_v5, 16  ;;  %v1277_v13 = vshll.u32 %v1180_v5, 16  ;;  %6506 = vmatprep.subr.bf16.mxu1 %v6962_v40  ;;  %v827_v57 = vor.u32 %v825_v51, %v824_v63  ;;  %v829_v35 = vrot.slane %v824_v63, 4  ;;  %v1181_v18 = vld [vmem:[#allocation2 + $0x1c] sm:$0xf] }
  0x4f   : > { %v1560_v14 = vsel %vm7181_vm2, %v1555_v3, %v1559_v55  ;;  %v1010_v12 = vsel %vm7222_vm9, %v819_v61, %v1009_v52  ;;  %v6154_v16 = vpack.c.bf16 %v411_v0, %v411_v0  ;;  %v1283_v23 = vshll.u32 %v1181_v18, 16  ;;  %v6961_v3 = vld [vmem:[#allocation2 + $0x18] sm:$0xff]  }
  0x50   : > { %v5878_v17 = vcombine.low %v1550_v53, %v1560_v14  ;;  %v1182_v19 = vld [vmem:[#allocation2 + $0x20] sm:$0x1]  ;;  %v1276_v20 = vrot.slane %v1274_v11, 4  ;;  %v1279_v21 = vrot.slane %v1277_v13, 5  ;;  %v828_v22 = vsel %vm7213_vm7, %v820_v62, %v827_v57  ;;  %1011 = vst [vmem:[#allocation2 + $0xa8] sm:$0xf] %v1010_v12 }
  0x51   : > { %v1287_v24 = vshrl.u32 %v1181_v18, 16  ;;  %v1293_v25 = vshll.u32 %v1182_v19, 16  ;;  %6507 = vmatpush3.bf16.msra.mxu1 %v6964_v56  ;;  %1012 = vst [vmem:[#allocation2 + $0xac] sm:$0xf] %v828_v22  ;;  %v1014_v26 = vsel %vm7231_vm10, %v829_v35, %v1013_v1  ;;  %v6155_v30 = vpack.c.bf16 %v412_v15, %v412_v15  ;;  %v936_v56 = vld [vmem:[#allocation2 + $0x2c] sm:$0x1] }
  0x52   : > { %4732 = vmatprep.mubr.bf16.mxu1 %v5878_v17  ;;  %v1280_v29 = vor.u32 %v1279_v21, %v1276_v20  ;;  %1015 = vst [vmem:[#allocation2 + $0xb0] sm:$0x1] %v1014_v26  ;;  %6508 = vmatprep.subr.bf16.mxu1 %v6966_v6  ;;  %v627_v33 = vshrl.u32 %v6154_v16, 16  ;;  %v630_v34 = vshll.u32 %v6154_v16, 16  ;;  %v1285_v38 = vrot.slane %v1283_v23, 5  ;;  %v6978_v11 = vld [vmem:[%s8868_s3 + $0xf8] sm:$0xff]  }
  0x53   : > { %v1289_v39 = vrot.slane %v1287_v24, 4  ;;  %v1295_v40 = vrot.slane %v1293_v25, 5  ;;  %4733 = vmatmul.mubr.bf16.gmra.mrb[4].mxu1 %v6959_v7  ;;  %v635_v44 = vshrl.u32 %v6155_v30, 16  ;;  %v638_v45 = vshll.u32 %v6155_v30, 16  ;;  %v6361_v18 = vld [vmem:[%s7160_s30 + $0x20] sm:$0xff]   ;;  %v6984_v19 = vld [vmem:[%s8868_s3 + $0x158] sm:$0xff]  }
  0x54   : > { %v1281_v42 = vrot.slane %v1280_v29, 4  ;;  %v629_v43 = vrot.slane %v627_v33, 7  ;;  %v397_v49 = vmul.f32 %v6273_v9, %v7172_v28  ;;  %v435_v50 = vadd.f32 %v7177_v31, %v396_v41  ;;  %v6979_v24 = vld [vmem:[%s8868_s3 + $0xb8] sm:$0xff]   ;;  %6618 = vmatprep.subr.bf16.mxu0 %v6984_v19 }
  0x55   : > { %v1290_v46 = vor.u32 %v1289_v39, %v1285_v38  ;;  %6509 = vmatpush3.bf16.msra.mxu1 %v6968_v27  ;;  %v6228_v51 = vunpack.c.l.bf16 %v7360_v37  ;;  %v637_v55 = vrot.slane %v635_v44, 7  ;;  %v6229_v1 = vunpack.c.h.bf16 %v7360_v37  ;;  %v6985_v37 = vld [vmem:[%s8868_s3 + $0x118] sm:$0xff]  }
  0x56   : > { %v1286_v52 = vsel %vm7181_vm2, %v1281_v42, %v1285_v38  ;;  %v632_v53 = vor.u32 %v630_v34, %v629_v43  ;;  %v633_v54 = vrot.slane %v629_v43, 4  ;;  %6510 = vmatprep.subr.bf16.mxu1 %v6970_v36  ;;  %v436_v62 = vadd.f32 %v7177_v31, %v397_v49  ;;  %v6981_v42 = vld [vmem:[%s8868_s3 + $0x1c0] sm:$0xff]   ;;  %6619 = vmatpush3.bf16.msra.mxu0 %v6985_v37 }
  0x57   : > { %v1291_v60 = vrot.slane %v1290_v46, 4  ;;  %v1216_v61 = vld [vmem:[#allocation2 + $0xa8] sm:$0xf]  ;;  %v6178_v63 = vpack.c.bf16 %v435_v50, %v435_v50  ;;  %v640_v8 = vor.u32 %v638_v45, %v637_v55  ;;  %v642_v9 = vrot.slane %v637_v55, 4 }
  0x58   : > { %v1217_v5 = vld [vmem:[#allocation2 + $0xac] sm:$0xf]  ;;  %v1562_v6 = vshrl.u32 %v1216_v61, 16  ;;  %v1565_v0 = vshll.u32 %v1216_v61, 16  ;;  %v933_v14 = vsel %vm7222_vm9, %v632_v53, %v932_v47  ;;  %v6179_v27 = vpack.c.bf16 %v436_v62, %v436_v62  ;;  %v6989_v47 = vld [vmem:[%s8868_s3 + $0x160] sm:$0xff]  }
  0x59   : > { %v1296_v13 = vsel %vm7181_vm2, %v1291_v60, %v1295_v40  ;;  %v1218_v7 = vld [vmem:[#allocation2 + $0xb0] sm:$0x1]  ;;  %v1571_v57 = vshll.u32 %v1217_v5, 16  ;;  %v1575_v35 = vshrl.u32 %v1217_v5, 16  ;;  %6511 = vmatpush3.bf16.msra.mxu1 %v6971_v48  ;;  %934 = vst [vmem:[#allocation2 + $0x24] sm:$0xf] %v933_v14  ;;  %v641_v22 = vsel %vm7213_vm7, %v633_v54, %v640_v8  ;;  %6620 = vmatprep.subr.bf16.mxu0 %v6989_v47 }
  0x5a   : > { %v5867_v12 = vcombine.low %v1286_v52, %v1296_v13  ;;  %v1564_v15 = vrot.slane %v1562_v6, 4  ;;  %v1567_v16 = vrot.slane %v1565_v0, 5  ;;  %v1581_v17 = vshll.u32 %v1218_v7, 16  ;;  %6512 = vmatprep.subr.bf16.mxu1 %v6972_v58  ;;  %935 = vst [vmem:[#allocation2 + $0x28] sm:$0xf] %v641_v22  ;;  %v7413_v53 = vld [vmem:[%s7160_s30 + $0x28] sm:$0xff]  }
  0x5b   : > { %v1573_v20 = vrot.slane %v1571_v57, 5  ;;  %v1577_v21 = vrot.slane %v1575_v35, 4  ;;  %v937_v23 = vsel %vm7231_vm10, %v642_v9, %v936_v56  ;;  %v831_v29 = vshrl.u32 %v6178_v63, 16  ;;  %v1016_v52 = vld [vmem:[#allocation2 + $0xb4] sm:$0xf]  ;;  %v6967_v56 = vld [vmem:[#allocation2 + $0xa8] sm:$0xff]  }
  0x5c   : > { %4644 = vmatprep.mubr.bf16.mxu0 %v5867_v12  ;;  %v1568_v25 = vor.u32 %v1567_v16, %v1564_v15  ;;  %v1583_v26 = vrot.slane %v1581_v17, 5  ;;  %938 = vst [vmem:[#allocation2 + $0x2c] sm:$0x1] %v937_v23  ;;  %v834_v33 = vshll.u32 %v6178_v63, 16  ;;  %v374_v34 = vmul.f32 %v6228_v51, %v7172_v28  ;;  %v1020_v35 = vld [vmem:[#allocation2 + $0xbc] sm:$0x1] }
  0x5d   : > { %4645 = vmatmul.mubr.bf16.gmra.mrb[8].mxu0 %v6961_v3  ;;  %v1578_v30 = vor.u32 %v1577_v21, %v1573_v20  ;;  %v375_v36 = vmul.f32 %v6229_v1, %v7172_v28  ;;  %6513 = vmatpush3.bf16.msra.mxu1 %v6975_v2  ;;  %v833_v39 = vrot.slane %v831_v29, 7  ;;  %v839_v40 = vshrl.u32 %v6179_v27, 16  ;;  %v7424_v17 = vld [vmem:[#allocation2] sm:$0xe] }
  0x5e   : > { %v1569_v38 = vrot.slane %v1568_v25, 4  ;;  %v842_v41 = vshll.u32 %v6179_v27, 16  ;;  %6514 = vmatprep.subr.bf16.mxu1 %v6978_v11  ;;  %v413_v44 = vadd.f32 %v7177_v31, %v374_v34  ;;  %v6232_v46 = vunpack.c.l.bf16 %v6361_v18  ;;  %v6991_v25 = vld [vmem:[%s8868_s3 + $0x120] sm:$0xff]  }
  0x5f   : > { %v1579_v43 = vrot.slane %v1578_v30, 4  ;;  %v414_v45 = vadd.f32 %v7177_v31, %v375_v36  ;;  %v836_v49 = vor.u32 %v834_v33, %v833_v39  ;;  %v837_v50 = vrot.slane %v833_v39, 4  ;;  %v939_v30 = vld [vmem:[#allocation2 + $0x30] sm:$0xf]  ;;  %6621 = vmatpush3.bf16.msra.mxu0 %v6991_v25 }
  0x60   : > { %v1574_v48 = vsel %vm7181_vm2, %v1569_v38, %v1573_v20  ;;  %v841_v51 = vrot.slane %v839_v40, 7  ;;  %v1183_v55 = vld [vmem:[#allocation2 + $0x24] sm:$0xf]  ;;  %v6156_v58 = vpack.c.bf16 %v413_v44, %v413_v44  ;;  %v6233_v61 = vunpack.c.h.bf16 %v6361_v18 }
  0x61   : > { %v1584_v54 = vsel %vm7181_vm2, %v1579_v43, %v1583_v26  ;;  %v6157_v60 = vpack.c.bf16 %v414_v45, %v414_v45  ;;  %6515 = vmatpush3.bf16.msra.mxu1 %v6979_v24  ;;  %v1298_v63 = vshrl.u32 %v1183_v55, 16  ;;  %v1301_v1 = vshll.u32 %v1183_v55, 16  ;;  %v1184_v3 = vld [vmem:[#allocation2 + $0x28] sm:$0xf]  ;;  %v1690_v43 = vld [vmem:[#allocation2 + $0x4] sm:$0xf] }
  0x62   : > { %v5879_v62 = vcombine.low %v1574_v48, %v1584_v54  ;;  %v844_v2 = vor.u32 %v842_v41, %v841_v51  ;;  %6724 = vmatprep.subr.bf16.mxu1 %v6981_v42  ;;  %v1017_v6 = vsel %vm7222_vm9, %v836_v49, %v1016_v52  ;;  %v376_v0 = vmul.f32 %v6232_v46, %v7172_v28  ;;  %v943_v41 = vld [vmem:[#allocation2 + $0x38] sm:$0x1] }
  0x63   : > { %v1185_v5 = vld [vmem:[#allocation2 + $0x2c] sm:$0x1]  ;;  %v377_v8 = vmul.f32 %v6233_v61, %v7172_v28  ;;  %vm1785_vm11 = vcmask 1042432   ;;  %vm1786_vm12 = vcmask 1046532   ;;  %v6236_v9 = vunpack.c.l.bf16 %v7413_v53  ;;  %1018 = vst [vmem:[#allocation2 + $0xb4] sm:$0xf] %v1017_v6 }
  0x64   : > { %4740 = vmatprep.mubr.bf16.mxu1 %v5879_v62  ;;  %v1300_v11 = vrot.slane %v1298_v63, 4  ;;  %v1303_v13 = vrot.slane %v1301_v1, 5  ;;  %v1307_v7 = vshll.u32 %v1184_v3, 16  ;;  %v1311_v57 = vshrl.u32 %v1184_v3, 16  ;;  %v946_v3 = vld [vmem:[#allocation2 + $0x3c] sm:$0xf]  ;;  %vm7446_vm13 = vmor %vm1785_vm11, %vm1786_vm12 }
  0x65   : > { %v1317_v14 = vshll.u32 %v1185_v5, 16  ;;  %4741 = vmatmul.mubr.bf16.gmra.mrb[8].mxu1 %v6967_v56  ;;  %v845_v12 = vsel %vm7213_vm7, %v837_v50, %v844_v2  ;;  %v846_v15 = vrot.slane %v841_v51, 4  ;;  %v644_v16 = vshrl.u32 %v6156_v58, 16  ;;  %v6969_v50 = vld [vmem:[#allocation2 + $0x24] sm:$0xff]  }
  0x66   : > { %v1304_v28 = vor.u32 %v1303_v13, %v1300_v11  ;;  %v1309_v18 = vrot.slane %v1307_v7, 5  ;;  %v1313_v19 = vrot.slane %v1311_v57, 4  ;;  %1019 = vst [vmem:[#allocation2 + $0xb8] sm:$0xf] %v845_v12  ;;  %v647_v20 = vshll.u32 %v6156_v58, 16 }
  0x67   : > { %v1319_v21 = vrot.slane %v1317_v14, 5  ;;  %v1021_v22 = vsel %vm7231_vm10, %v846_v15, %v1020_v35  ;;  %v646_v23 = vrot.slane %v644_v16, 7  ;;  %v652_v24 = vshrl.u32 %v6157_v60, 16  ;;  %v1691_v5 = vld [vmem:[#allocation2 + $0x8] sm:$0x1] }
  0x68   : > { %v1305_v26 = vrot.slane %v1304_v28, 4  ;;  %v1314_v27 = vor.u32 %v1313_v19, %v1309_v18  ;;  %1022 = vst [vmem:[#allocation2 + $0xbc] sm:$0x1] %v1021_v22  ;;  %v655_v29 = vshll.u32 %v6157_v60, 16  ;;  %v415_v33 = vadd.f32 %v7177_v31, %v376_v0  ;;  %v6996_v15 = vld [vmem:[%s8868_s3 + $0x168] sm:$0xff]  }
  0x69   : > { %v649_v34 = vor.u32 %v647_v20, %v646_v23  ;;  %v650_v36 = vrot.slane %v646_v23, 4  ;;  %v654_v37 = vrot.slane %v652_v24, 7  ;;  %v416_v38 = vadd.f32 %v7177_v31, %v377_v8  ;;  %v950_v22 = vld [vmem:[#allocation2 + $0x44] sm:$0x1]  ;;  %6622 = vmatprep.subr.bf16.mxu0 %v6996_v15  ;;  %v6997_v24 = vld [vmem:[%s8868_s3 + $0x128] sm:$0xff]   ;;  %v7003_v15 = vld [vmem:[%s8868_s3 + $0x170] sm:$0xff]  }
  0x6a   : > { %v1310_v39 = vsel %vm7181_vm2, %v1305_v26, %v1309_v18  ;;  %v1315_v40 = vrot.slane %v1314_v27, 4  ;;  %v6158_v42 = vpack.c.bf16 %v415_v33, %v415_v33  ;;  %v5881_v44 = vrot.slane %v7424_v17, 9  ;;  %v1219_v45 = vld [vmem:[#allocation2 + $0xb4] sm:$0xf]  ;;  %6623 = vmatpush3.bf16.msra.mxu0 %v6997_v24 }
  0x6b   : > { %v657_v46 = vor.u32 %v655_v29, %v654_v37  ;;  %v659_v47 = vrot.slane %v654_v37, 4  ;;  %v940_v48 = vsel %vm7222_vm9, %v649_v34, %v939_v30  ;;  %v6159_v49 = vpack.c.bf16 %v416_v38, %v416_v38  ;;  %v1692_v38 = vld [vmem:[#allocation2 + $0xc] sm:$0xe]  ;;  %6624 = vmatprep.subr.bf16.mxu0 %v7003_v15 }
  0x6c   : > { %v1320_v31 = vsel %vm7181_vm2, %v1315_v40, %v1319_v21  ;;  %v1586_v51 = vshrl.u32 %v1219_v45, 16  ;;  %v1589_v52 = vshll.u32 %v1219_v45, 16  ;;  %941 = vst [vmem:[#allocation2 + $0x30] sm:$0xf] %v940_v48  ;;  %v661_v54 = vshrl.u32 %v6158_v42, 16 }
  0x6d   : > { %v5868_v55 = vcombine.low %v1310_v39, %v1320_v31  ;;  %v1220_v56 = vld [vmem:[#allocation2 + $0xb8] sm:$0xf]  ;;  %v658_v58 = vsel %vm7213_vm7, %v650_v36, %v657_v46  ;;  %v944_v60 = vsel %vm7231_vm10, %v659_v47, %v943_v41  ;;  %v664_v61 = vshll.u32 %v6158_v42, 16  ;;  %v1693_v39 = vld [vmem:[#allocation2 + $0x10] sm:$0xf] }
  0x6e   : > { %v1588_v62 = vrot.slane %v1586_v51, 4  ;;  %v1591_v63 = vrot.slane %v1589_v52, 5  ;;  %v1595_v1 = vshll.u32 %v1220_v56, 16  ;;  %v1599_v2 = vshrl.u32 %v1220_v56, 16  ;;  %942 = vst [vmem:[#allocation2 + $0x34] sm:$0xf] %v658_v58 }
  0x6f   : > { %945 = vst [vmem:[#allocation2 + $0x38] sm:$0x1] %v944_v60  ;;  %4652 = vmatprep.mubr.bf16.mxu0 %v5868_v55  ;;  %v1221_v0 = vld [vmem:[#allocation2 + $0xbc] sm:$0x1]  ;;  %v663_v8 = vrot.slane %v661_v54, 7  ;;  %v669_v11 = vshrl.u32 %v6159_v49, 16  ;;  %v6237_v45 = vunpack.c.h.bf16 %v7413_v53 }
  0x70   : > { %v672_v13 = vshll.u32 %v6159_v49, 16  ;;  %v1790_v7 = vrot.slane %v1690_v43, 5  ;;  %4653 = vmatmul.mubr.bf16.gmra.mrb[12].mxu0 %v6969_v50  ;;  %v1592_v57 = vor.u32 %v1591_v63, %v1588_v62  ;;  %v1597_v35 = vrot.slane %v1595_v1, 5  ;;  %v6974_v31 = vld [vmem:[#allocation2 + $0xb4] sm:$0xff]   ;;  %v6980_v54 = vld [vmem:[#allocation2 + $0xc] sm:$0xff]  }
  0x71   : > { %v1601_v14 = vrot.slane %v1599_v2, 4  ;;  %v1605_v12 = vshll.u32 %v1221_v0, 16  ;;  %v666_v16 = vor.u32 %v664_v61, %v663_v8  ;;  %v667_v17 = vrot.slane %v663_v8, 4  ;;  %v1694_v56 = vld [vmem:[#allocation2 + $0x14] sm:$0x1] }
  0x72   : > { %v671_v28 = vrot.slane %v669_v11, 7  ;;  %v7455_v18 = vsel %vm7446_vm13, %v5881_v44, %v1790_v7  ;;  %v1593_v19 = vrot.slane %v1592_v57, 4  ;;  %v1792_v23 = vrot.slane %v1790_v7, 4  ;;  %v7480_v61 = vld [vmem:[%s8866_s1] ss:$0 sm:$0xff]  ;;  %v7487_v1 = vld [vmem:[%s7160_s30 + $0x30] sm:$0xff]  }
  0x73   : > { %v1602_v20 = vor.u32 %v1601_v14, %v1597_v35  ;;  %v1607_v21 = vrot.slane %v1605_v12, 5  ;;  %v1186_v25 = vld [vmem:[#allocation2 + $0x30] sm:$0xf]  ;;  %v947_v29 = vsel %vm7222_vm9, %v666_v16, %v946_v3  ;;  %v1793_v30 = vrot.slane %v1691_v5, 5  ;;  %v7492_v11 = vld [vmem:[%s8867_s2] ss:$0 sm:$0xff] }
  0x74   : > { %v674_v26 = vor.u32 %v672_v13, %v671_v28  ;;  %v676_v27 = vrot.slane %v671_v28, 4  ;;  %v1598_v33 = vsel %vm7181_vm2, %v1593_v19, %v1597_v35  ;;  %v1322_v36 = vshrl.u32 %v1186_v25, 16  ;;  %948 = vst [vmem:[#allocation2 + $0x3c] sm:$0xf] %v947_v29 }
  0x75   : > { %v1603_v34 = vrot.slane %v1602_v20, 4  ;;  %v1325_v37 = vshll.u32 %v1186_v25, 16  ;;  %v1187_v40 = vld [vmem:[#allocation2 + $0x34] sm:$0xf]  ;;  %v7470_v44 = vsel %vm7446_vm13, %v1792_v23, %v1793_v30  ;;  %v378_v62 = vmul.f32 %v7480_v61, %v6236_v9 }
  0x76   : > { %v1188_v41 = vld [vmem:[#allocation2 + $0x38] sm:$0x1]  ;;  %v675_v42 = vsel %vm7213_vm7, %v667_v17, %v674_v26  ;;  %v951_v43 = vsel %vm7231_vm10, %v676_v27, %v950_v22  ;;  %v1324_v47 = vrot.slane %v1322_v36, 4  ;;  %v1331_v49 = vshll.u32 %v1187_v40, 16  ;;  %v6982_v22 = vld [vmem:[%s8868_s3 + $0x180] sm:$0xff]  }
  0x77   : > { %v1608_v46 = vsel %vm7181_vm2, %v1603_v34, %v1607_v21  ;;  %v1327_v48 = vrot.slane %v1325_v37, 5  ;;  %949 = vst [vmem:[#allocation2 + $0x40] sm:$0xf] %v675_v42  ;;  %952 = vst [vmem:[#allocation2 + $0x44] sm:$0x1] %v951_v43  ;;  %v1335_v51 = vshrl.u32 %v1187_v40, 16  ;;  %v5897_v55 = vcombine.low %v7455_v18, %v7470_v44 }
  0x78   : > { %v5880_v50 = vcombine.low %v1598_v33, %v1608_v46  ;;  %v1341_v52 = vshll.u32 %v1188_v41, 16  ;;  %v1333_v60 = vrot.slane %v1331_v49, 5  ;;  %v379_v63 = vmul.f32 %v7480_v61, %v6237_v45  ;;  %v6986_v33 = vld [vmem:[#allocation2 + $0x18] sm:$0xff]   ;;  %v6990_v34 = vld [vmem:[%s8868_s3 + $0x1c8] sm:$0xff]   ;;  %v6977_v37 = vld [vmem:[#allocation2 + $0x30] sm:$0xff]  }
  0x79   : > { %v1328_v58 = vor.u32 %v1327_v48, %v1324_v47  ;;  %v1337_v2 = vrot.slane %v1335_v51, 4  ;;  %v5882_v5 = vrot.slane %v1692_v38, 9  ;;  %v1797_v0 = vrot.slane %v1693_v39, 5  ;;  %v953_v45 = vld [vmem:[#allocation2 + $0x48] sm:$0xf] }
  0x7a   : > { %4748 = vmatprep.mubr.bf16.mxu1 %v5880_v50  ;;  %v1343_v3 = vrot.slane %v1341_v52, 5  ;;  %v417_v53 = vadd.f32 %v7492_v11, %v378_v62  ;;  %v418_v9 = vadd.f32 %v7492_v11, %v379_v63  ;;  %v1800_v13 = vrot.slane %v1694_v56, 5  ;;  %v957_v52 = vld [vmem:[#allocation2 + $0x50] sm:$0x1] }
  0x7b   : > { %v1329_v8 = vrot.slane %v1328_v58, 4  ;;  %4749 = vmatmul.mubr.bf16.gmra.mrb[12].mxu1 %v6974_v31  ;;  %v1338_v7 = vor.u32 %v1337_v2, %v1333_v60  ;;  %v1189_v57 = vld [vmem:[#allocation2 + $0x3c] sm:$0xf]  ;;  %v7498_v35 = vsel %vm7446_vm13, %v5882_v5, %v1797_v0  ;;  %v1799_v14 = vrot.slane %v1797_v0, 4  ;;  %v1695_v31 = vld [vmem:[#allocation2 + $0x18] sm:$0xe] }
  0x7c   : > { %4789 = vmatprep.mubr.bf16.mxu1 %v6980_v54  ;;  %v6240_v12 = vunpack.c.l.bf16 %v7487_v1  ;;  %v1346_v17 = vshrl.u32 %v1189_v57, 16  ;;  %v1349_v28 = vshll.u32 %v1189_v57, 16  ;;  %v6160_v18 = vpack.c.bf16 %v417_v53, %v417_v53  ;;  %v1696_v58 = vld [vmem:[#allocation2 + $0x1c] sm:$0xf]  ;;  %v1697_v2 = vld [vmem:[#allocation2 + $0x20] sm:$0x1] }
  0x7d   : > { %v1334_v16 = vsel %vm7181_vm2, %v1329_v8, %v1333_v60  ;;  %v1339_v19 = vrot.slane %v1338_v7, 4  ;;  %v6161_v23 = vpack.c.bf16 %v418_v9, %v418_v9  ;;  %v7511_v24 = vsel %vm7446_vm13, %v1799_v14, %v1800_v13 }
  0x7e   : > { %v1190_v20 = vld [vmem:[#allocation2 + $0x40] sm:$0xf]  ;;  %v1191_v21 = vld [vmem:[#allocation2 + $0x44] sm:$0x1]  ;;  %v6241_v25 = vunpack.c.h.bf16 %v7487_v1  ;;  %v1348_v26 = vrot.slane %v1346_v17, 4  ;;  %v1351_v27 = vrot.slane %v1349_v28, 5  ;;  %v5898_v54 = vcombine.low %v7498_v35, %v7511_v24 }
  0x7f   : > { %v1355_v29 = vshll.u32 %v1190_v20, 16  ;;  %v1359_v30 = vshrl.u32 %v1190_v20, 16  ;;  %v1344_v36 = vsel %vm7181_vm2, %v1339_v19, %v1343_v3  ;;  %v1365_v38 = vshll.u32 %v1191_v21, 16  ;;  %v6992_v3 = vld [vmem:[%s8868_s3 + $0x188] sm:$0xff]   ;;  %v7004_v35 = vld [vmem:[%s8868_s3 + $0x130] sm:$0xff]   ;;  %v6364_v28 = vld [vmem:[%s7160_s30 + $0x38] sm:$0xff]  }
  0x80   : > { %v678_v39 = vshrl.u32 %v6160_v18, 16  ;;  %v681_v40 = vshll.u32 %v6160_v18, 16  ;;  %v5869_v41 = vcombine.low %v1334_v16, %v1344_v36  ;;  %v1352_v42 = vor.u32 %v1351_v27, %v1348_v26  ;;  %v1698_v18 = vld [vmem:[#allocation2 + $0x24] sm:$0xe]  ;;  %v6983_v20 = vld [vmem:[#allocation2 + $0x3c] sm:$0xff]   ;;  %6625 = vmatpush3.bf16.msra.mxu0 %v7004_v35 }
  0x81   : > { %v1357_v43 = vrot.slane %v1355_v29, 5  ;;  %v1361_v44 = vrot.slane %v1359_v30, 4  ;;  %v1367_v46 = vrot.slane %v1365_v38, 5  ;;  %v686_v48 = vshrl.u32 %v6161_v23, 16  ;;  %v1699_v24 = vld [vmem:[#allocation2 + $0x28] sm:$0xf] }
  0x82   : > { %v680_v47 = vrot.slane %v678_v39, 7  ;;  %v689_v49 = vshll.u32 %v6161_v23, 16  ;;  %4660 = vmatprep.mubr.bf16.mxu0 %v5869_v41  ;;  %v1353_v50 = vrot.slane %v1352_v42, 4  ;;  %v380_v56 = vmul.f32 %v7480_v61, %v6240_v12  ;;  %v6988_v12 = vld [vmem:[#allocation2 + $0x24] sm:$0xff]  }
  0x83   : > { %v1362_v51 = vor.u32 %v1361_v44, %v1357_v43  ;;  %4790 = vmatmul.mubr.bf16.vlgmr.msra.gmra.mrb[16].mxu1 %v5897_v55  ;;  %4661 = vmatmul.mubr.bf16.gmra.mrb[16].mxu0 %v6977_v37  ;;  %v688_v63 = vrot.slane %v686_v48, 7  ;;  %v381_v1 = vmul.f32 %v7480_v61, %v6241_v25  ;;  %v6999_v55 = vld [vmem:[%s8868_s3 + $0x1d0] sm:$0xff]   ;;  %v5883_v53 = vrot.slane %v1695_v31, 9  ;;  %v7008_v31 = vld [vmem:[%s8868_s3 + $0x198] sm:$0xff]  }
  0x84   : > { %6725 = vmatpush3.bf16.msra.mxu1 %v6982_v22  ;;  %v683_v60 = vor.u32 %v681_v40, %v680_v47  ;;  %v684_v62 = vrot.slane %v680_v47, 4  ;;  %v1358_v5 = vsel %vm7181_vm2, %v1353_v50, %v1357_v43  ;;  %4797 = vmatprep.mubr.bf16.mxu1 %v6986_v33  ;;  %v419_v8 = vadd.f32 %v7492_v11, %v380_v56  ;;  %v7000_v25 = vld [vmem:[%s8868_s3 + $0x190] sm:$0xff]   ;;  %v7007_v33 = vld [vmem:[%s8868_s3 + $0x1d8] sm:$0xff]  }
  0x85   : > { %v1363_v0 = vrot.slane %v1362_v51, 4  ;;  %6726 = vmatprep.subr.bf16.mxu1 %v6990_v34  ;;  %v691_v9 = vor.u32 %v689_v49, %v688_v63  ;;  %v693_v13 = vrot.slane %v688_v63, 4  ;;  %v420_v57 = vadd.f32 %v7492_v11, %v381_v1  ;;  %v960_v37 = vld [vmem:[#allocation2 + $0x54] sm:$0xf]  ;;  %v1700_v49 = vld [vmem:[#allocation2 + $0x2c] sm:$0x1] }
  0x86   : > { %v954_v7 = vsel %vm7222_vm9, %v683_v60, %v953_v45  ;;  %v6162_v15 = vpack.c.bf16 %v419_v8, %v419_v8  ;;  %v1804_v16 = vrot.slane %v1696_v58, 5  ;;  %v1807_v17 = vrot.slane %v1697_v2, 5  ;;  %v964_v45 = vld [vmem:[#allocation2 + $0x5c] sm:$0x1] }
  0x87   : > { %v1368_v14 = vsel %vm7181_vm2, %v1363_v0, %v1367_v46  ;;  %955 = vst [vmem:[#allocation2 + $0x48] sm:$0xf] %v954_v7  ;;  %v692_v21 = vsel %vm7213_vm7, %v684_v62, %v691_v9  ;;  %v958_v22 = vsel %vm7231_vm10, %v693_v13, %v957_v52  ;;  %v6163_v23 = vpack.c.bf16 %v420_v57, %v420_v57  ;;  %v6994_v62 = vld [vmem:[#allocation2 + $0x30] sm:$0xff]   ;;  %v7010_v2 = vld [vmem:[%s8868_s3 + $0x178] sm:$0xff]  }
  0x88   : > { %v5870_v19 = vcombine.low %v1358_v5, %v1368_v14  ;;  %6727 = vmatpush3.bf16.msra.mxu1 %v6992_v3  ;;  %956 = vst [vmem:[#allocation2 + $0x4c] sm:$0xf] %v692_v21  ;;  %959 = vst [vmem:[#allocation2 + $0x50] sm:$0x1] %v958_v22  ;;  %v695_v26 = vshrl.u32 %v6162_v15, 16  ;;  %v698_v27 = vshll.u32 %v6162_v15, 16  ;;  %v7550_v29 = vsel %vm7446_vm13, %v5883_v53, %v1804_v16 }
  0x89   : > { %v1806_v30 = vrot.slane %v1804_v16, 4  ;;  %6728 = vmatprep.subr.bf16.mxu1 %v6999_v55  ;;  %v703_v34 = vshrl.u32 %v6163_v23, 16  ;;  %v706_v36 = vshll.u32 %v6163_v23, 16  ;;  %v6244_v38 = vunpack.c.l.bf16 %v6364_v28  ;;  %v7011_v8 = vld [vmem:[%s8868_s3 + $0x138] sm:$0xff]   ;;  %6626 = vmatprep.subr.bf16.mxu0 %v7010_v2 }
  0x8a   : > { %4668 = vmatprep.mubr.bf16.mxu0 %v5870_v19  ;;  %v6245_v39 = vunpack.c.h.bf16 %v6364_v28  ;;  %v697_v40 = vrot.slane %v695_v26, 7  ;;  %v5884_v42 = vrot.slane %v1698_v18, 9  ;;  %v1811_v43 = vrot.slane %v1699_v24, 5  ;;  %6627 = vmatpush3.bf16.msra.mxu0 %v7011_v8  ;;  %v1703_v2 = vld [vmem:[#allocation2 + $0x38] sm:$0x1] }
  0x8b   : > { %4798 = vmatmul.mubr.bf16.gmra.mrb[20].mxu1 %v5898_v54  ;;  %v1808_v41 = vsel %vm7446_vm13, %v1806_v30, %v1807_v17  ;;  %4669 = vmatmul.mubr.bf16.gmra.mrb[20].mxu0 %v6983_v20  ;;  %v705_v44 = vrot.slane %v703_v34, 7  ;;  %v382_v47 = vmul.f32 %v7480_v61, %v6244_v38  ;;  %v1814_v0 = vrot.slane %v1700_v49, 5  ;;  %v7582_v17 = vld [vmem:[%s7160_s30 + $0x40] sm:$0xff]   ;;  %v971_v38 = vld [vmem:[#allocation2 + $0x68] sm:$0x1] }
  0x8c   : > { %4805 = vmatprep.mubr.bf16.mxu1 %v6988_v12  ;;  %v5899_v46 = vcombine.low %v7550_v29, %v1808_v41  ;;  %v383_v48 = vmul.f32 %v7480_v61, %v6245_v39  ;;  %v700_v50 = vor.u32 %v698_v27, %v697_v40  ;;  %v701_v51 = vrot.slane %v697_v40, 4  ;;  %6729 = vmatpush3.bf16.msra.mxu1 %v7000_v25  ;;  %v7014_v25 = vld [vmem:[%s8868_s3 + $0x1e0] sm:$0xff]  }
  0x8d   : > { %v7565_v52 = vsel %vm7446_vm13, %v5884_v42, %v1811_v43  ;;  %v1813_v54 = vrot.slane %v1811_v43, 4  ;;  %v708_v58 = vor.u32 %v706_v36, %v705_v44  ;;  %v710_v60 = vrot.slane %v705_v44, 4  ;;  %6730 = vmatprep.subr.bf16.mxu1 %v7007_v33  ;;  %v967_v30 = vld [vmem:[#allocation2 + $0x60] sm:$0xf] }
  0x8e   : > { %v1192_v56 = vld [vmem:[#allocation2 + $0x48] sm:$0xf]  ;;  %v421_v63 = vadd.f32 %v7492_v11, %v382_v47  ;;  %v422_v1 = vadd.f32 %v7492_v11, %v383_v48  ;;  %v961_v5 = vsel %vm7222_vm9, %v700_v50, %v960_v37  ;;  %v7592_v34 = vld [vmem:[%s8868_s3 + $0x200] sm:$0xff]   ;;  %v6248_v40 = vunpack.c.l.bf16 %v7582_v17 }
  0x8f   : > { %v1370_v3 = vshrl.u32 %v1192_v56, 16  ;;  %v1373_v55 = vshll.u32 %v1192_v56, 16  ;;  %v1193_v53 = vld [vmem:[#allocation2 + $0x4c] sm:$0xf]  ;;  %v1194_v9 = vld [vmem:[#allocation2 + $0x50] sm:$0x1]  ;;  %v709_v13 = vsel %vm7213_vm7, %v701_v51, %v708_v58  ;;  %v965_v7 = vsel %vm7231_vm10, %v710_v60, %v964_v45  ;;  %6860 = vmatprep.subr.bf16.mxu0 %v7592_v34 }
  0x90   : > { %962 = vst [vmem:[#allocation2 + $0x54] sm:$0xf] %v961_v5  ;;  %v6164_v57 = vpack.c.bf16 %v421_v63, %v421_v63  ;;  %v6165_v35 = vpack.c.bf16 %v422_v1, %v422_v1  ;;  %v1379_v15 = vshll.u32 %v1193_v53, 16  ;;  %v1383_v16 = vshrl.u32 %v1193_v53, 16  ;;  %963 = vst [vmem:[#allocation2 + $0x58] sm:$0xf] %v709_v13  ;;  %6731 = vmatpush3.bf16.msra.mxu1 %v7008_v31 }
  0x91   : > { %v1372_v14 = vrot.slane %v1370_v3, 4  ;;  %v1375_v12 = vrot.slane %v1373_v55, 5  ;;  %966 = vst [vmem:[#allocation2 + $0x5c] sm:$0x1] %v965_v7  ;;  %v1389_v28 = vshll.u32 %v1194_v9, 16  ;;  %v1815_v33 = vsel %vm7446_vm13, %v1813_v54, %v1814_v0  ;;  %6732 = vmatprep.subr.bf16.mxu1 %v7014_v25  ;;  %v7016_v41 = vld [vmem:[%s8868_s3 + $0x1a0] sm:$0xff]  }
  0x92   : > { %v712_v18 = vshrl.u32 %v6164_v57, 16  ;;  %v715_v19 = vshll.u32 %v6164_v57, 16  ;;  %v720_v20 = vshrl.u32 %v6165_v35, 16  ;;  %v1381_v22 = vrot.slane %v1379_v15, 5  ;;  %v1701_v51 = vld [vmem:[#allocation2 + $0x30] sm:$0xe] }
  0x93   : > { %v1376_v21 = vor.u32 %v1375_v12, %v1372_v14  ;;  %v1385_v23 = vrot.slane %v1383_v16, 4  ;;  %4806 = vmatmul.mubr.bf16.gmra.mrb[24].mxu1 %v5899_v46  ;;  %v723_v24 = vshll.u32 %v6165_v35, 16  ;;  %v1391_v26 = vrot.slane %v1389_v28, 5  ;;  %v6998_v46 = vld [vmem:[#allocation2 + $0x3c] sm:$0xff]   ;;  %v7019_v54 = vld [vmem:[%s8868_s3 + $0x1e8] sm:$0xff]  }
  0x94   : > { %4813 = vmatprep.mubr.bf16.mxu1 %v6994_v62  ;;  %v714_v27 = vrot.slane %v712_v18, 7  ;;  %v722_v29 = vrot.slane %v720_v20, 7  ;;  %v5900_v39 = vcombine.low %v7565_v52, %v1815_v33  ;;  %v6249_v31 = vunpack.c.h.bf16 %v7582_v17  ;;  %v1702_v52 = vld [vmem:[#allocation2 + $0x34] sm:$0xf]  ;;  %6733 = vmatpush3.bf16.msra.mxu1 %v7016_v41  ;;  %v7612_v3 = vld [vmem:[%s7160_s30 + $0x48] sm:$0xff]  }
  0x95   : > { %v1377_v36 = vrot.slane %v1376_v21, 4  ;;  %v1386_v37 = vor.u32 %v1385_v23, %v1381_v22  ;;  %v384_v50 = vmul.f32 %v7480_v61, %v6248_v40  ;;  %v6987_v5 = vld [vmem:[#allocation2 + $0x48] sm:$0xff]   ;;  %6734 = vmatprep.subr.bf16.mxu1 %v7019_v54  ;;  %v5885_v28 = vrot.slane %v1701_v51, 9  ;;  %v7623_v23 = vld [vmem:[%s7160_s30 + $0x50] sm:$0xff]  }
  0x96   : > { %v717_v42 = vor.u32 %v715_v19, %v714_v27  ;;  %v718_v43 = vrot.slane %v714_v27, 4  ;;  %v725_v44 = vor.u32 %v723_v24, %v722_v29  ;;  %v727_v45 = vrot.slane %v722_v29, 4  ;;  %v7002_v54 = vld [vmem:[#allocation2 + $0x48] sm:$0xff]  }
  0x97   : > { %v1382_v47 = vsel %vm7181_vm2, %v1377_v36, %v1381_v22  ;;  %v1387_v48 = vrot.slane %v1386_v37, 4  ;;  %v1195_v49 = vld [vmem:[#allocation2 + $0x54] sm:$0xf]  ;;  %v1196_v56 = vld [vmem:[#allocation2 + $0x58] sm:$0xf]  ;;  %v385_v15 = vmul.f32 %v7480_v61, %v6249_v31  ;;  %v423_v17 = vadd.f32 %v7492_v11, %v384_v50  ;;  %v7021_v37 = vld [vmem:[%s8868_s3 + $0x1a8] sm:$0xff]  }
  0x98   : > { %v1197_v58 = vld [vmem:[#allocation2 + $0x5c] sm:$0x1]  ;;  %v1394_v60 = vshrl.u32 %v1195_v49, 16  ;;  %v1397_v62 = vshll.u32 %v1195_v49, 16  ;;  %v726_v63 = vsel %vm7213_vm7, %v718_v43, %v725_v44  ;;  %v968_v1 = vsel %vm7222_vm9, %v717_v42, %v967_v30  ;;  %6735 = vmatpush3.bf16.msra.mxu1 %v7021_v37 }
  0x99   : > { %v1392_v55 = vsel %vm7181_vm2, %v1387_v48, %v1391_v26  ;;  %v1403_v0 = vshll.u32 %v1196_v56, 16  ;;  %v1407_v8 = vshrl.u32 %v1196_v56, 16  ;;  %v1413_v53 = vshll.u32 %v1197_v58, 16  ;;  %969 = vst [vmem:[#allocation2 + $0x60] sm:$0xf] %v968_v1 }
  0x9a   : > { %970 = vst [vmem:[#allocation2 + $0x64] sm:$0xf] %v726_v63  ;;  %v5871_v9 = vcombine.low %v1382_v47, %v1392_v55  ;;  %v1396_v13 = vrot.slane %v1394_v60, 4  ;;  %v1399_v7 = vrot.slane %v1397_v62, 5  ;;  %v972_v57 = vsel %vm7231_vm10, %v727_v45, %v971_v38  ;;  %v6993_v45 = vld [vmem:[#allocation2 + $0x54] sm:$0xff]  }
  0x9b   : > { %v1405_v35 = vrot.slane %v1403_v0, 5  ;;  %v1409_v14 = vrot.slane %v1407_v8, 4  ;;  %v1415_v12 = vrot.slane %v1413_v53, 5  ;;  %973 = vst [vmem:[#allocation2 + $0x68] sm:$0x1] %v972_v57  ;;  %4814 = vmatmul.mubr.bf16.gmra.mrb[28].mxu1 %v5900_v39  ;;  %v1818_v18 = vrot.slane %v1702_v52, 5 }
  0x9c   : > { %4676 = vmatprep.mubr.bf16.mxu0 %v5871_v9  ;;  %v1400_v16 = vor.u32 %v1399_v7, %v1396_v13  ;;  %4821 = vmatprep.mubr.bf16.mxu1 %v6998_v46  ;;  %v424_v20 = vadd.f32 %v7492_v11, %v385_v15  ;;  %v1821_v21 = vrot.slane %v1703_v2, 5  ;;  %v6252_v22 = vunpack.c.l.bf16 %v7612_v3  ;;  %v1704_v56 = vld [vmem:[#allocation2 + $0x3c] sm:$0xe]  ;;  %v974_v1 = vld [vmem:[#allocation2 + $0x6c] sm:$0xf] }
  0x9d   : > { %4677 = vmatmul.mubr.bf16.gmra.mrb[24].mxu0 %v6987_v5  ;;  %v1410_v19 = vor.u32 %v1409_v14, %v1405_v35  ;;  %v6166_v25 = vpack.c.bf16 %v423_v17, %v423_v17  ;;  %v1819_v26 = vsel %vm7446_vm13, %v5885_v28, %v1818_v18  ;;  %v1820_v27 = vrot.slane %v1818_v18, 4  ;;  %v978_v53 = vld [vmem:[#allocation2 + $0x74] sm:$0x1]  ;;  %v1705_v7 = vld [vmem:[#allocation2 + $0x40] sm:$0xf] }
  0x9e   : > { %v1401_v24 = vrot.slane %v1400_v16, 4  ;;  %v6167_v30 = vpack.c.bf16 %v424_v20, %v424_v20  ;;  %v6253_v33 = vunpack.c.h.bf16 %v7612_v3  ;;  %v386_v36 = vmul.f32 %v7480_v61, %v6252_v22  ;;  %v1706_v28 = vld [vmem:[#allocation2 + $0x44] sm:$0x1] }
  0x9f   : > { %v1411_v29 = vrot.slane %v1410_v19, 4  ;;  %v1822_v41 = vsel %vm7446_vm13, %v1820_v27, %v1821_v21  ;;  %v6256_v42 = vunpack.c.l.bf16 %v7623_v23  ;;  %v6257_v43 = vunpack.c.h.bf16 %v7623_v23 }
  0xa0   : > { %v1406_v38 = vsel %vm7181_vm2, %v1401_v24, %v1405_v35  ;;  %v1198_v39 = vld [vmem:[#allocation2 + $0x60] sm:$0xf]  ;;  %v729_v51 = vshrl.u32 %v6166_v25, 16  ;;  %v732_v52 = vshll.u32 %v6166_v25, 16  ;;  %v737_v55 = vshrl.u32 %v6167_v30, 16 }
  0xa1   : > { %v1199_v40 = vld [vmem:[#allocation2 + $0x64] sm:$0xf]  ;;  %v1416_v44 = vsel %vm7181_vm2, %v1411_v29, %v1415_v12  ;;  %v1418_v46 = vshrl.u32 %v1198_v39, 16  ;;  %v1421_v47 = vshll.u32 %v1198_v39, 16  ;;  %v740_v5 = vshll.u32 %v6167_v30, 16 }
  0xa2   : > { %v1427_v48 = vshll.u32 %v1199_v40, 16  ;;  %v5872_v49 = vcombine.low %v1406_v38, %v1416_v44  ;;  %v1200_v31 = vld [vmem:[#allocation2 + $0x68] sm:$0x1]  ;;  %v1431_v50 = vshrl.u32 %v1199_v40, 16  ;;  %v731_v3 = vrot.slane %v729_v51, 7  ;;  %v6995_v37 = vld [vmem:[#allocation2 + $0x60] sm:$0xff]  }
  0xa3   : > { %v1420_v58 = vrot.slane %v1418_v46, 4  ;;  %v1423_v60 = vrot.slane %v1421_v47, 5  ;;  %v1437_v63 = vshll.u32 %v1200_v31, 16  ;;  %v5901_v9 = vcombine.low %v1819_v26, %v1822_v41  ;;  %v1707_v24 = vld [vmem:[#allocation2 + $0x48] sm:$0xe]  ;;  %v7024_v41 = vld [vmem:[%s8868_s3 + $0x1f0] sm:$0xff]  }
  0xa4   : > { %v1429_v62 = vrot.slane %v1427_v48, 5  ;;  %4684 = vmatprep.mubr.bf16.mxu0 %v5872_v49  ;;  %v1433_v2 = vrot.slane %v1431_v50, 4  ;;  %v387_v13 = vmul.f32 %v7480_v61, %v6253_v33  ;;  %v734_v35 = vor.u32 %v732_v52, %v731_v3  ;;  %v7647_v30 = vld [vmem:[#allocation2 + $0x4c] sm:$0xf]  ;;  %v7649_v33 = vld [vmem:[#allocation2 + $0x50] sm:$0x1]  ;;  %6736 = vmatprep.subr.bf16.mxu1 %v7024_v41 }
  0xa5   : > { %4685 = vmatmul.mubr.bf16.gmra.mrb[28].mxu0 %v6993_v45  ;;  %v1424_v0 = vor.u32 %v1423_v60, %v1420_v58  ;;  %v1439_v8 = vrot.slane %v1437_v63, 5  ;;  %v735_v14 = vrot.slane %v731_v3, 4  ;;  %v739_v12 = vrot.slane %v737_v55, 7  ;;  %4822 = vmatmul.mubr.bf16.gmra.mrb[32].mxu1 %v5901_v9  ;;  %v7026_v58 = vld [vmem:[%s8868_s3 + $0x1b0] sm:$0xff]   ;;  %v981_v60 = vld [vmem:[#allocation2 + $0x78] sm:$0xf] }
  0xa6   : > { %v1434_v57 = vor.u32 %v1433_v2, %v1429_v62  ;;  %v425_v16 = vadd.f32 %v7492_v11, %v386_v36  ;;  %v426_v17 = vadd.f32 %v7492_v11, %v387_v13  ;;  %v5886_v18 = vrot.slane %v1704_v56, 9  ;;  %4829 = vmatprep.mubr.bf16.mxu1 %v7002_v54  ;;  %v7006_v55 = vld [vmem:[#allocation2 + $0x54] sm:$0xff]   ;;  %6737 = vmatpush3.bf16.msra.mxu1 %v7026_v58  ;;  %v988_v41 = vld [vmem:[#allocation2 + $0x84] sm:$0xf]  ;;  %v1712_v58 = vld [vmem:[#allocation2 + $0x5c] sm:$0x1] }
  0xa7   : > { %v1425_v15 = vrot.slane %v1424_v0, 4  ;;  %v742_v20 = vor.u32 %v740_v5, %v739_v12  ;;  %v744_v21 = vrot.slane %v739_v12, 4  ;;  %v975_v22 = vsel %vm7222_vm9, %v734_v35, %v974_v1 }
  0xa8   : > { %v1435_v19 = vrot.slane %v1434_v57, 4  ;;  %976 = vst [vmem:[#allocation2 + $0x6c] sm:$0xf] %v975_v22  ;;  %v6168_v26 = vpack.c.bf16 %v425_v16, %v425_v16  ;;  %v6169_v27 = vpack.c.bf16 %v426_v17, %v426_v17  ;;  %v1825_v29 = vrot.slane %v1705_v7, 5  ;;  %v1710_v16 = vld [vmem:[#allocation2 + $0x54] sm:$0xe] }
  0xa9   : > { %v1430_v25 = vsel %vm7181_vm2, %v1425_v15, %v1429_v62  ;;  %v743_v38 = vsel %vm7213_vm7, %v735_v14, %v742_v20  ;;  %v979_v39 = vsel %vm7231_vm10, %v744_v21, %v978_v53  ;;  %v1828_v40 = vrot.slane %v1706_v28, 5  ;;  %v1711_v20 = vld [vmem:[#allocation2 + $0x58] sm:$0xf] }
  0xaa   : > { %v1440_v36 = vsel %vm7181_vm2, %v1435_v19, %v1439_v8  ;;  %977 = vst [vmem:[#allocation2 + $0x70] sm:$0xf] %v743_v38  ;;  %980 = vst [vmem:[#allocation2 + $0x74] sm:$0x1] %v979_v39  ;;  %v746_v45 = vshrl.u32 %v6168_v26, 16  ;;  %v749_v46 = vshll.u32 %v6168_v26, 16  ;;  %v1826_v49 = vsel %vm7446_vm13, %v5886_v18, %v1825_v29 }
  0xab   : > { %v5873_v44 = vcombine.low %v1430_v25, %v1440_v36  ;;  %v754_v47 = vshrl.u32 %v6169_v27, 16  ;;  %v757_v48 = vshll.u32 %v6169_v27, 16  ;;  %v1827_v31 = vrot.slane %v1825_v29, 4 }
  0xac   : > { %v388_v50 = vmul.f32 %v7480_v61, %v6256_v42  ;;  %v748_v51 = vrot.slane %v746_v45, 7  ;;  %v389_v54 = vmul.f32 %v7480_v61, %v6257_v43  ;;  %v5887_v56 = vrot.slane %v1707_v24, 9  ;;  %v985_v43 = vld [vmem:[#allocation2 + $0x80] sm:$0x1] }
  0xad   : > { %4692 = vmatprep.mubr.bf16.mxu0 %v5873_v44  ;;  %v756_v52 = vrot.slane %v754_v47, 7  ;;  %v1829_v62 = vsel %vm7446_vm13, %v1827_v31, %v1828_v40  ;;  %v1832_v63 = vrot.slane %v7647_v30, 5  ;;  %v1835_v1 = vrot.slane %v7649_v33, 5  ;;  %v992_v31 = vld [vmem:[#allocation2 + $0x8c] sm:$0x1] }
  0xae   : > { %4693 = vmatmul.mubr.bf16.gmra.mrb[32].mxu0 %v6995_v37  ;;  %v427_v42 = vadd.f32 %v7492_v11, %v388_v50  ;;  %v751_v2 = vor.u32 %v749_v46, %v748_v51  ;;  %v752_v23 = vrot.slane %v748_v51, 4  ;;  %v5902_v0 = vcombine.low %v1826_v49, %v1829_v62  ;;  %v2636_v62 = vld [vmem:[#allocation2 + $0xc] sm:$0xe] }
  0xaf   : > { %v759_v3 = vor.u32 %v757_v48, %v756_v52  ;;  %v761_v61 = vrot.slane %v756_v52, 4  ;;  %v1201_v5 = vld [vmem:[#allocation2 + $0x6c] sm:$0xf]  ;;  %v428_v8 = vadd.f32 %v7492_v11, %v389_v54  ;;  %v7685_v11 = vsel %vm7446_vm13, %v5887_v56, %v1832_v63 }
  0xb0   : > { %v6170_v53 = vpack.c.bf16 %v427_v42, %v427_v42  ;;  %v1442_v9 = vshrl.u32 %v1201_v5, 16  ;;  %v1445_v13 = vshll.u32 %v1201_v5, 16  ;;  %v982_v57 = vsel %vm7222_vm9, %v751_v2, %v981_v60  ;;  %4830 = vmatmul.mubr.bf16.gmra.mrb[36].mxu1 %v5902_v0  ;;  %v2124_v5 = vld [vmem:[#allocation2 + $0xc] sm:$0xf] }
  0xb1   : > { %v760_v7 = vsel %vm7213_vm7, %v752_v23, %v759_v3  ;;  %v1202_v35 = vld [vmem:[#allocation2 + $0x70] sm:$0xf]  ;;  %v1203_v14 = vld [vmem:[#allocation2 + $0x74] sm:$0x1]  ;;  %983 = vst [vmem:[#allocation2 + $0x78] sm:$0xf] %v982_v57  ;;  %v986_v12 = vsel %vm7231_vm10, %v761_v61, %v985_v43  ;;  %v6171_v15 = vpack.c.bf16 %v428_v8, %v428_v8  ;;  %4837 = vmatprep.mubr.bf16.mxu1 %v7006_v55 }
  0xb2   : > { %984 = vst [vmem:[#allocation2 + $0x7c] sm:$0xf] %v760_v7  ;;  %v1444_v17 = vrot.slane %v1442_v9, 4  ;;  %v1447_v28 = vrot.slane %v1445_v13, 5  ;;  %v1451_v18 = vshll.u32 %v1202_v35, 16  ;;  %v1455_v19 = vshrl.u32 %v1202_v35, 16 }
  0xb3   : > { %987 = vst [vmem:[#allocation2 + $0x80] sm:$0x1] %v986_v12  ;;  %v1461_v21 = vshll.u32 %v1203_v14, 16  ;;  %v763_v22 = vshrl.u32 %v6170_v53, 16  ;;  %v766_v24 = vshll.u32 %v6170_v53, 16  ;;  %v771_v25 = vshrl.u32 %v6171_v15, 16 }
  0xb4   : > { %v1448_v26 = vor.u32 %v1447_v28, %v1444_v17  ;;  %v1453_v27 = vrot.slane %v1451_v18, 5  ;;  %v1457_v29 = vrot.slane %v1455_v19, 4  ;;  %v774_v30 = vshll.u32 %v6171_v15, 16  ;;  %v7012_v61 = vld [vmem:[#allocation2 + $0x60] sm:$0xff]   ;;  %v2637_v43 = vld [vmem:[#allocation2 + $0x10] sm:$0xf] }
  0xb5   : > { %v1463_v33 = vrot.slane %v1461_v21, 5  ;;  %v765_v36 = vrot.slane %v763_v22, 7  ;;  %v773_v37 = vrot.slane %v771_v25, 7  ;;  %v1834_v38 = vrot.slane %v1832_v63, 4  ;;  %v2638_v55 = vld [vmem:[#allocation2 + $0x14] sm:$0x1] }
  0xb6   : > { %v1449_v39 = vrot.slane %v1448_v26, 4  ;;  %v1458_v40 = vor.u32 %v1457_v29, %v1453_v27  ;;  %v5888_v44 = vrot.slane %v1710_v16, 9  ;;  %v1839_v45 = vrot.slane %v1711_v20, 5  ;;  %v7001_v8 = vld [vmem:[#allocation2 + $0x6c] sm:$0xff]   ;;  %v7029_v12 = vld [vmem:[%s8868_s3 + $0x1f8] sm:$0xff]  }
  0xb7   : > { %v768_v46 = vor.u32 %v766_v24, %v765_v36  ;;  %v769_v47 = vrot.slane %v765_v36, 4  ;;  %v776_v48 = vor.u32 %v774_v30, %v773_v37  ;;  %v778_v49 = vrot.slane %v773_v37, 4  ;;  %v7701_v13 = vld [vmem:[#allocation2 + $0x10] sm:$0xf]  ;;  %6738 = vmatprep.subr.bf16.mxu1 %v7029_v12  ;;  %v7716_v36 = vld [vmem:[%s7160_s30 + $0x78] sm:$0xff]  }
  0xb8   : > { %v1454_v50 = vsel %vm7181_vm2, %v1449_v39, %v1453_v27  ;;  %v1459_v51 = vrot.slane %v1458_v40, 4  ;;  %v1204_v52 = vld [vmem:[#allocation2 + $0x78] sm:$0xf]  ;;  %v1836_v56 = vsel %vm7446_vm13, %v1834_v38, %v1835_v1  ;;  %v7693_v60 = vsel %vm7446_vm13, %v5888_v44, %v1839_v45 }
  0xb9   : > { %v1205_v54 = vld [vmem:[#allocation2 + $0x7c] sm:$0xf]  ;;  %v1466_v63 = vshrl.u32 %v1204_v52, 16  ;;  %v1469_v2 = vshll.u32 %v1204_v52, 16  ;;  %v777_v53 = vsel %vm7213_vm7, %v769_v47, %v776_v48  ;;  %v989_v9 = vsel %vm7222_vm9, %v768_v46, %v988_v41  ;;  %v1713_v52 = vld [vmem:[#allocation2 + $0x60] sm:$0xe] }
  0xba   : > { %v1206_v42 = vld [vmem:[#allocation2 + $0x80] sm:$0x1]  ;;  %v1475_v23 = vshll.u32 %v1205_v54, 16  ;;  %v1479_v3 = vshrl.u32 %v1205_v54, 16  ;;  %v1464_v0 = vsel %vm7181_vm2, %v1459_v51, %v1463_v33  ;;  %990 = vst [vmem:[#allocation2 + $0x84] sm:$0xf] %v989_v9  ;;  %v993_v17 = vsel %vm7231_vm10, %v778_v49, %v992_v31 }
  0xbb   : > { %v1485_v1 = vshll.u32 %v1206_v42, 16  ;;  %v5874_v7 = vcombine.low %v1454_v50, %v1464_v0  ;;  %v1468_v57 = vrot.slane %v1466_v63, 4  ;;  %v1471_v35 = vrot.slane %v1469_v2, 5  ;;  %991 = vst [vmem:[#allocation2 + $0x88] sm:$0xf] %v777_v53  ;;  %v7031_v27 = vld [vmem:[%s8868_s3 + $0x1b8] sm:$0xff]  }
  0xbc   : > { %v1477_v14 = vrot.slane %v1475_v23, 5  ;;  %v1481_v15 = vrot.slane %v1479_v3, 4  ;;  %v5903_v28 = vcombine.low %v7685_v11, %v1836_v56  ;;  %994 = vst [vmem:[#allocation2 + $0x8c] sm:$0x1] %v993_v17  ;;  %v1841_v19 = vrot.slane %v1839_v45, 4  ;;  %6739 = vmatpush3.bf16.msra.mxu1 %v7031_v27  ;;  %v7005_v44 = vld [vmem:[#allocation2 + $0x78] sm:$0xff]  }
  0xbd   : > { %v1487_v16 = vrot.slane %v1485_v1, 5  ;;  %4700 = vmatprep.mubr.bf16.mxu0 %v5874_v7  ;;  %v1472_v18 = vor.u32 %v1471_v35, %v1468_v57  ;;  %v1842_v20 = vrot.slane %v1712_v58, 5  ;;  %v5945_v21 = vrot.slane %v2636_v62, 9  ;;  %v2126_v45 = vld [vmem:[#allocation2 + $0x14] sm:$0x1]  ;;  %v7013_v2 = vld [vmem:[#allocation2 + $0x6c] sm:$0xff]  }
  0xbe   : > { %4701 = vmatmul.mubr.bf16.gmra.mrb[36].mxu0 %v7001_v8  ;;  %v1482_v22 = vor.u32 %v1481_v15, %v1477_v14  ;;  %4838 = vmatmul.mubr.bf16.gmra.mrb[40].mxu1 %v5903_v28  ;;  %v2734_v24 = vrot.slane %v2637_v43, 5  ;;  %v2737_v25 = vrot.slane %v2638_v55, 5  ;;  %v2173_v26 = vshrl.u32 %v2124_v5, 16  ;;  %v1714_v54 = vld [vmem:[#allocation2 + $0x64] sm:$0xf] }
  0xbf   : > { %v1473_v29 = vrot.slane %v1472_v18, 4  ;;  %4845 = vmatprep.mubr.bf16.mxu1 %v7012_v61  ;;  %v1843_v11 = vsel %vm7446_vm13, %v1841_v19, %v1842_v20  ;;  %v2176_v30 = vshll.u32 %v2124_v5, 16  ;;  %v2182_v33 = vshll.u32 %v7701_v13, 16  ;;  %v1715_v5 = vld [vmem:[#allocation2 + $0x68] sm:$0x1] }
  0xc0   : > { %v1483_v37 = vrot.slane %v1482_v22, 4  ;;  %v5904_v38 = vcombine.low %v7693_v60, %v1843_v11  ;;  %v7721_v39 = vsel %vm7446_vm13, %v5945_v21, %v2734_v24  ;;  %v2736_v40 = vrot.slane %v2734_v24, 4  ;;  %v2639_v9 = vld [vmem:[#allocation2 + $0x18] sm:$0xe]  ;;  %v2640_v7 = vld [vmem:[#allocation2 + $0x1c] sm:$0xf] }
  0xc1   : > { %v1478_v41 = vsel %vm7181_vm2, %v1473_v29, %v1477_v14  ;;  %v2175_v46 = vrot.slane %v2173_v26, 4  ;;  %v2178_v47 = vrot.slane %v2176_v30, 5  ;;  %v7725_v48 = vrot.slane %v2182_v33, 5  ;;  %v1207_v31 = vld [vmem:[#allocation2 + $0x84] sm:$0xf] }
  0xc2   : > { %v1488_v49 = vsel %vm7181_vm2, %v1483_v37, %v1487_v16  ;;  %v1208_v50 = vld [vmem:[#allocation2 + $0x88] sm:$0xf]  ;;  %v7731_v51 = vsel %vm7446_vm13, %v2736_v40, %v2737_v25  ;;  %v6276_v56 = vunpack.c.l.bf16 %v7716_v36  ;;  %v6277_v58 = vunpack.c.h.bf16 %v7716_v36  ;;  %v2641_v15 = vld [vmem:[#allocation2 + $0x20] sm:$0x1]  ;;  %v2127_v18 = vld [vmem:[#allocation2 + $0x18] sm:$0xf] }
  0xc3   : > { %v5875_v60 = vcombine.low %v1478_v41, %v1488_v49  ;;  %v1490_v62 = vshrl.u32 %v1207_v31, 16  ;;  %v1493_v42 = vshll.u32 %v1207_v31, 16  ;;  %v1499_v63 = vshll.u32 %v1208_v50, 16  ;;  %v1209_v23 = vld [vmem:[#allocation2 + $0x8c] sm:$0x1]  ;;  %v7009_v31 = vld [vmem:[#allocation2 + $0x84] sm:$0xff]  }
  0xc4   : > { %v1503_v3 = vshrl.u32 %v1208_v50, 16  ;;  %v5961_v61 = vcombine.low %v7721_v39, %v7731_v51  ;;  %v2179_v43 = vor.u32 %v2178_v47, %v2175_v46  ;;  %v2186_v55 = vshrl.u32 %v7701_v13, 16  ;;  %v2128_v29 = vld [vmem:[#allocation2 + $0x1c] sm:$0xf]  ;;  %v2129_v11 = vld [vmem:[#allocation2 + $0x20] sm:$0x1] }
  0xc5   : > { %4708 = vmatprep.mubr.bf16.mxu0 %v5875_v60  ;;  %v1492_v0 = vrot.slane %v1490_v62, 4  ;;  %v1495_v8 = vrot.slane %v1493_v42, 5  ;;  %v1501_v1 = vrot.slane %v1499_v63, 5  ;;  %v1509_v53 = vshll.u32 %v1209_v23, 16  ;;  %v1716_v40 = vld [vmem:[#allocation2 + $0x6c] sm:$0xe] }
  0xc6   : > { %4709 = vmatmul.mubr.bf16.gmra.mrb[40].mxu0 %v7005_v44  ;;  %v1505_v57 = vrot.slane %v1503_v3, 4  ;;  %4846 = vmatmul.mubr.bf16.gmra.mrb[44].mxu1 %v5904_v38  ;;  %v2180_v35 = vrot.slane %v2179_v43, 4  ;;  %v2188_v14 = vrot.slane %v2186_v55, 4  ;;  %v2192_v12 = vshll.u32 %v2126_v45, 16  ;;  %v1717_v41 = vld [vmem:[#allocation2 + $0x70] sm:$0xf] }
  0xc7   : > { %v1496_v16 = vor.u32 %v1495_v8, %v1492_v0  ;;  %v1511_v17 = vrot.slane %v1509_v53, 5  ;;  %4853 = vmatprep.mubr.bf16.mxu1 %v7013_v2  ;;  %v5889_v28 = vrot.slane %v1713_v52, 9  ;;  %v1846_v13 = vrot.slane %v1714_v54, 5  ;;  %v1718_v60 = vld [vmem:[#allocation2 + $0x74] sm:$0x1]  ;;  %v7018_v39 = vld [vmem:[#allocation2 + $0x84] sm:$0xff]  }
  0xc8   : > { %v1506_v19 = vor.u32 %v1505_v57, %v1501_v1  ;;  %v2185_v20 = vsel %vm7181_vm2, %v2180_v35, %v7725_v48  ;;  %v2189_v21 = vor.u32 %v2188_v14, %v7725_v48  ;;  %v2194_v22 = vrot.slane %v2192_v12, 5  ;;  %v7017_v48 = vld [vmem:[#allocation2 + $0x78] sm:$0xff]   ;;  %v2642_v23 = vld [vmem:[#allocation2 + $0x24] sm:$0xe]  ;;  %v2643_v3 = vld [vmem:[#allocation2 + $0x28] sm:$0xf] }
  0xc9   : > { %v1497_v24 = vrot.slane %v1496_v16, 4  ;;  %v1847_v25 = vsel %vm7446_vm13, %v5889_v28, %v1846_v13  ;;  %v1848_v26 = vrot.slane %v1846_v13, 4  ;;  %v1849_v27 = vrot.slane %v1715_v5, 5  ;;  %v2644_v8 = vld [vmem:[#allocation2 + $0x2c] sm:$0x1] }
  0xca   : > { %v1507_v30 = vrot.slane %v1506_v19, 4  ;;  %v2190_v33 = vrot.slane %v2189_v21, 4  ;;  %v5946_v37 = vrot.slane %v2639_v9, 9  ;;  %v2741_v38 = vrot.slane %v2640_v7, 5  ;;  %v2130_v57 = vld [vmem:[#allocation2 + $0x24] sm:$0xf] }
  0xcb   : > { %v1502_v44 = vsel %vm7181_vm2, %v1497_v24, %v1501_v1  ;;  %v1850_v45 = vsel %vm7446_vm13, %v1848_v26, %v1849_v27  ;;  %v2744_v46 = vrot.slane %v2641_v15, 5  ;;  %v2197_v47 = vshrl.u32 %v2127_v18, 16  ;;  %v2131_v16 = vld [vmem:[#allocation2 + $0x28] sm:$0xf]  ;;  %v2132_v19 = vld [vmem:[#allocation2 + $0x2c] sm:$0x1] }
  0xcc   : > { %v1512_v49 = vsel %vm7181_vm2, %v1507_v30, %v1511_v17  ;;  %v2195_v50 = vsel %vm7181_vm2, %v2190_v33, %v2194_v22  ;;  %v5905_v52 = vcombine.low %v1847_v25, %v1850_v45  ;;  %v7754_v54 = vsel %vm7446_vm13, %v5946_v37, %v2741_v38  ;;  %v1719_v25 = vld [vmem:[#allocation2 + $0x78] sm:$0xe]  ;;  %v1720_v51 = vld [vmem:[#allocation2 + $0x7c] sm:$0xf] }
  0xcd   : > { %v5876_v62 = vcombine.low %v1502_v44, %v1512_v49  ;;  %v7756_v42 = vcombine.low %v2185_v20, %v2195_v50  ;;  %v2743_v63 = vrot.slane %v2741_v38, 4  ;;  %v2199_v2 = vrot.slane %v2197_v47, 4  ;;  %v7020_v38 = vld [vmem:[%s8868_s3 + $0x208] sm:$0xff]  }
  0xce   : > { %4854 = vmatmul.mubr.bf16.gmra.mrb[48].mxu1 %v5905_v52  ;;  %v2200_v43 = vshll.u32 %v2127_v18, 16  ;;  %v2206_v55 = vshll.u32 %v2128_v29, 16  ;;  %v2210_v5 = vshrl.u32 %v2128_v29, 16  ;;  %v2216_v0 = vshll.u32 %v2129_v11, 16  ;;  %v2646_v52 = vld [vmem:[#allocation2 + $0x34] sm:$0xf] }
  0xcf   : > { %4716 = vmatprep.mubr.bf16.mxu0 %v5876_v62  ;;  %v2745_v1 = vsel %vm7446_vm13, %v2743_v63, %v2744_v46  ;;  %4861 = vmatprep.mubr.bf16.mxu1 %v7017_v48  ;;  %v5890_v53 = vrot.slane %v1716_v40, 9  ;;  %v1853_v9 = vrot.slane %v1717_v41, 5  ;;  %v1856_v7 = vrot.slane %v1718_v60, 5  ;;  %v1721_v40 = vld [vmem:[#allocation2 + $0x80] sm:$0x1] }
  0xd0   : > { %4717 = vmatmul.mubr.bf16.gmra.mrb[44].mxu0 %v7009_v31  ;;  %v5962_v35 = vcombine.low %v7754_v54, %v2745_v1  ;;  %v2202_v14 = vrot.slane %v2200_v43, 5  ;;  %v2208_v12 = vrot.slane %v2206_v55, 5  ;;  %v2212_v15 = vrot.slane %v2210_v5, 4  ;;  %v2645_v41 = vld [vmem:[#allocation2 + $0x30] sm:$0xe] }
  0xd1   : > { %4950 = vmatprep.mubr.bf16.mxu0 %v5961_v61  ;;  %v2218_v17 = vrot.slane %v2216_v0, 5  ;;  %v1854_v28 = vsel %vm7446_vm13, %v5890_v53, %v1853_v9  ;;  %v1855_v13 = vrot.slane %v1853_v9, 4  ;;  %v5947_v18 = vrot.slane %v2642_v23, 9  ;;  %v2133_v5 = vld [vmem:[#allocation2 + $0x30] sm:$0xf] }
  0xd2   : > { %v2203_v20 = vor.u32 %v2202_v14, %v2199_v2  ;;  %v2213_v21 = vor.u32 %v2212_v15, %v2208_v12  ;;  %v2748_v22 = vrot.slane %v2643_v3, 5  ;;  %v2751_v24 = vrot.slane %v2644_v8, 5  ;;  %v2647_v2 = vld [vmem:[#allocation2 + $0x38] sm:$0x1]  ;;  %v7025_v0 = vld [vmem:[%s8868_s3 + $0x210] sm:$0xff]  }
  0xd3   : > { %v1857_v26 = vsel %vm7446_vm13, %v1855_v13, %v1856_v7  ;;  %v2221_v27 = vshrl.u32 %v2130_v57, 16  ;;  %v2224_v29 = vshll.u32 %v2130_v57, 16  ;;  %v2230_v11 = vshll.u32 %v2131_v16, 16  ;;  %v2134_v7 = vld [vmem:[#allocation2 + $0x34] sm:$0xf] }
  0xd4   : > { %v2204_v61 = vrot.slane %v2203_v20, 4  ;;  %v2214_v30 = vrot.slane %v2213_v21, 4  ;;  %v5906_v33 = vcombine.low %v1854_v28, %v1857_v26  ;;  %v7770_v37 = vsel %vm7446_vm13, %v5947_v18, %v2748_v22  ;;  %v2135_v15 = vld [vmem:[#allocation2 + $0x38] sm:$0x1]  ;;  %v1723_v18 = vld [vmem:[#allocation2 + $0x88] sm:$0xf] }
  0xd5   : > { %v2750_v44 = vrot.slane %v2748_v22, 4  ;;  %v2223_v45 = vrot.slane %v2221_v27, 4  ;;  %v2226_v46 = vrot.slane %v2224_v29, 5  ;;  %v2232_v47 = vrot.slane %v2230_v11, 5  ;;  %v7030_v26 = vld [vmem:[%s8868_s3 + $0x218] sm:$0xff]  }
  0xd6   : > { %v2209_v48 = vsel %vm7181_vm2, %v2204_v61, %v2208_v12  ;;  %v2219_v49 = vsel %vm7181_vm2, %v2214_v30, %v2218_v17  ;;  %4862 = vmatmul.mubr.bf16.gmra.mrb[52].mxu1 %v5906_v33  ;;  %v2234_v31 = vshrl.u32 %v2131_v16, 16  ;;  %v2240_v50 = vshll.u32 %v2132_v19, 16  ;;  %v7022_v16 = vld [vmem:[#allocation2 + $0x90] sm:$0xff]   ;;  %v1722_v17 = vld [vmem:[#allocation2 + $0x84] sm:$0xe] }
  0xd7   : > { %v5930_v54 = vcombine.low %v2209_v48, %v2219_v49  ;;  %v7781_v60 = vsel %vm7446_vm13, %v2750_v44, %v2751_v24  ;;  %v2227_v62 = vor.u32 %v2226_v46, %v2223_v45  ;;  %4869 = vmatprep.mubr.bf16.mxu1 %v7018_v39  ;;  %v5891_v63 = vrot.slane %v1719_v25, 9  ;;  %v1724_v19 = vld [vmem:[#allocation2 + $0x8c] sm:$0x1]  ;;  %v2648_v25 = vld [vmem:[#allocation2 + $0x3c] sm:$0xe] }
  0xd8   : > { %4951 = vmatmul.mubr.bf16.vlgmr.msra.gmra.mrb[48].mxu0 %v7756_v42  ;;  %v5963_v23 = vcombine.low %v7770_v37, %v7781_v60  ;;  %v2236_v3 = vrot.slane %v2234_v31, 4  ;;  %v2242_v43 = vrot.slane %v2240_v50, 5  ;;  %v1860_v55 = vrot.slane %v1720_v51, 5  ;;  %v2649_v51 = vld [vmem:[#allocation2 + $0x40] sm:$0xf] }
  0xd9   : > { %4958 = vmatprep.mubr.bf16.mxu0 %v5962_v35  ;;  %6861 = vmatpush3.bf16.msra.mxu0 %v7592_v34  ;;  %v2228_v8 = vrot.slane %v2227_v62, 4  ;;  %v1863_v1 = vrot.slane %v1721_v40, 5  ;;  %v5948_v53 = vrot.slane %v2645_v41, 9  ;;  %v2755_v9 = vrot.slane %v2646_v52, 5  ;;  %v2650_v40 = vld [vmem:[#allocation2 + $0x44] sm:$0x1] }
  0xda   : > { %v2237_v42 = vor.u32 %v2236_v3, %v2232_v47  ;;  %6862 = vmatprep.subr.bf16.mxu0 %v7020_v38  ;;  %v1861_v57 = vsel %vm7446_vm13, %v5891_v63, %v1860_v55  ;;  %v1862_v14 = vrot.slane %v1860_v55, 4  ;;  %v2758_v12 = vrot.slane %v2647_v2, 5  ;;  %v2137_v63 = vld [vmem:[#allocation2 + $0x40] sm:$0xf]  ;;  %v2138_v55 = vld [vmem:[#allocation2 + $0x44] sm:$0x1] }
  0xdb   : > { %v2233_v35 = vsel %vm7181_vm2, %v2228_v8, %v2232_v47  ;;  %v7796_v34 = vsel %vm7446_vm13, %v5948_v53, %v2755_v9  ;;  %v2757_v28 = vrot.slane %v2755_v9, 4  ;;  %v2245_v13 = vshrl.u32 %v2133_v5, 16  ;;  %v2136_v47 = vld [vmem:[#allocation2 + $0x3c] sm:$0xf]  ;;  %v1726_v8 = vld [vmem:[#allocation2 + $0x94] sm:$0xf] }
  0xdc   : > { %v2238_v20 = vrot.slane %v2237_v42, 4  ;;  %v1864_v21 = vsel %vm7446_vm13, %v1862_v14, %v1863_v1  ;;  %v2248_v22 = vshll.u32 %v2133_v5, 16  ;;  %v2254_v24 = vshll.u32 %v2134_v7, 16  ;;  %v1727_v42 = vld [vmem:[#allocation2 + $0x98] sm:$0x1] }
  0xdd   : > { %v5907_v27 = vcombine.low %v1861_v57, %v1864_v21  ;;  %v7805_v29 = vsel %vm7446_vm13, %v2757_v28, %v2758_v12  ;;  %6863 = vmatpush3.bf16.msra.mxu0 %v7020_v38  ;;  %v2247_v11 = vrot.slane %v2245_v13, 4  ;;  %v2258_v39 = vshrl.u32 %v2134_v7, 16  ;;  %v7023_v7 = vld [vmem:[#allocation2 + $0x9c] sm:$0xff]  }
  0xde   : > { %v2243_v61 = vsel %vm7181_vm2, %v2238_v20, %v2242_v43  ;;  %v5964_v30 = vcombine.low %v7796_v34, %v7805_v29  ;;  %v2250_v33 = vrot.slane %v2248_v22, 5  ;;  %v2256_v37 = vrot.slane %v2254_v24, 5  ;;  %6864 = vmatprep.subr.bf16.mxu0 %v7025_v0  ;;  %v7036_v20 = vld [vmem:[%s8868_s3 + $0x228] sm:$0xff]   ;;  %v2141_v34 = vld [vmem:[#allocation2 + $0x50] sm:$0x1] }
  0xdf   : > { %v5931_v41 = vcombine.low %v2233_v35, %v2243_v61  ;;  %4870 = vmatmul.mubr.bf16.gmra.mrb[56].mxu1 %v5907_v27  ;;  %v2260_v44 = vrot.slane %v2258_v39, 4  ;;  %v2264_v45 = vshll.u32 %v2135_v15, 16  ;;  %v5892_v46 = vrot.slane %v1722_v17, 9  ;;  %v2652_v17 = vld [vmem:[#allocation2 + $0x4c] sm:$0xf] }
  0xe0   : > { %4959 = vmatmul.mubr.bf16.gmra.mrb[52].mxu0 %v5930_v54  ;;  %v2251_v38 = vor.u32 %v2250_v33, %v2247_v11  ;;  %4877 = vmatprep.mubr.bf16.mxu1 %v7022_v16  ;;  %v1867_v48 = vrot.slane %v1723_v18, 5  ;;  %v1870_v49 = vrot.slane %v1724_v19, 5  ;;  %v5949_v31 = vrot.slane %v2648_v25, 9  ;;  %v1725_v54 = vld [vmem:[#allocation2 + $0x90] sm:$0xe]  ;;  %v7027_v29 = vld [vmem:[#allocation2 + $0xa8] sm:$0xff]  }
  0xe1   : > { %4966 = vmatprep.mubr.bf16.mxu0 %v5963_v23  ;;  %v2261_v50 = vor.u32 %v2260_v44, %v2256_v37  ;;  %v2266_v52 = vrot.slane %v2264_v45, 5  ;;  %v2762_v60 = vrot.slane %v2649_v51, 5  ;;  %v2765_v62 = vrot.slane %v2650_v40, 5  ;;  %6865 = vmatpush3.bf16.msra.mxu0 %v7025_v0  ;;  %v7033_v23 = vld [vmem:[%s8868_s3 + $0x220] sm:$0xff]   ;;  %v2651_v16 = vld [vmem:[#allocation2 + $0x48] sm:$0xe] }
  0xe2   : > { %v2252_v2 = vrot.slane %v2251_v38, 4  ;;  %v1868_v3 = vsel %vm7446_vm13, %v5892_v46, %v1867_v48  ;;  %v1869_v43 = vrot.slane %v1867_v48, 4  ;;  %v2269_v5 = vshrl.u32 %v2136_v47, 16  ;;  %6866 = vmatprep.subr.bf16.mxu0 %v7030_v26  ;;  %v2653_v19 = vld [vmem:[#allocation2 + $0x50] sm:$0x1] }
  0xe3   : > { %v2262_v1 = vrot.slane %v2261_v50, 4  ;;  %v7818_v53 = vsel %vm7446_vm13, %v5949_v31, %v2762_v60  ;;  %v2764_v0 = vrot.slane %v2762_v60, 4  ;;  %v2272_v9 = vshll.u32 %v2136_v47, 16  ;;  %v2139_v27 = vld [vmem:[#allocation2 + $0x48] sm:$0xf] }
  0xe4   : > { %v2257_v57 = vsel %vm7181_vm2, %v2252_v2, %v2256_v37  ;;  %v1871_v14 = vsel %vm7446_vm13, %v1869_v43, %v1870_v49  ;;  %v2271_v12 = vrot.slane %v2269_v5, 4  ;;  %v2278_v15 = vshll.u32 %v2137_v63, 16  ;;  %v2140_v33 = vld [vmem:[#allocation2 + $0x4c] sm:$0xf]  ;;  %v1729_v2 = vld [vmem:[#allocation2 + $0xa0] sm:$0xf] }
  0xe5   : > { %v2267_v35 = vsel %vm7181_vm2, %v2262_v1, %v2266_v52  ;;  %v5908_v28 = vcombine.low %v1868_v3, %v1871_v14  ;;  %v7828_v13 = vsel %vm7446_vm13, %v2764_v0, %v2765_v62  ;;  %v2274_v18 = vrot.slane %v2272_v9, 5  ;;  %6867 = vmatpush3.bf16.msra.mxu0 %v7030_v26  ;;  %v1730_v3 = vld [vmem:[#allocation2 + $0xa4] sm:$0x1] }
  0xe6   : > { %v5932_v21 = vcombine.low %v2257_v57, %v2267_v35  ;;  %v5965_v22 = vcombine.low %v7818_v53, %v7828_v13  ;;  %v2280_v24 = vrot.slane %v2278_v15, 5  ;;  %v2282_v25 = vshrl.u32 %v2137_v63, 16  ;;  %6868 = vmatprep.subr.bf16.mxu0 %v7033_v23  ;;  %v7042_v15 = vld [vmem:[%s8868_s3 + $0x238] sm:$0xff]  }
  0xe7   : > { %4878 = vmatmul.mubr.bf16.gmra.mrb[60].mxu1 %v5908_v28  ;;  %v2275_v11 = vor.u32 %v2274_v18, %v2271_v12  ;;  %v2288_v39 = vshll.u32 %v2138_v55, 16  ;;  %v5893_v51 = vrot.slane %v1725_v54, 9  ;;  %v1874_v61 = vrot.slane %v1726_v8, 5  ;;  %v2654_v8 = vld [vmem:[#allocation2 + $0x54] sm:$0xe] }
  0xe8   : > { %4967 = vmatmul.mubr.bf16.gmra.mrb[56].mxu0 %v5931_v41  ;;  %v2284_v26 = vrot.slane %v2282_v25, 4  ;;  %4885 = vmatprep.mubr.bf16.mxu1 %v7023_v7  ;;  %v1877_v37 = vrot.slane %v1727_v42, 5  ;;  %v5950_v40 = vrot.slane %v2651_v16, 9  ;;  %v2769_v44 = vrot.slane %v2652_v17, 5  ;;  %v7039_v41 = vld [vmem:[%s8868_s3 + $0x230] sm:$0xff]  }
  0xe9   : > { %4974 = vmatprep.mubr.bf16.mxu0 %v5964_v30  ;;  %v2276_v45 = vrot.slane %v2275_v11, 4  ;;  %v2290_v46 = vrot.slane %v2288_v39, 5  ;;  %v1875_v47 = vsel %vm7446_vm13, %v5893_v51, %v1874_v61  ;;  %v1876_v38 = vrot.slane %v1874_v61, 4  ;;  %6869 = vmatpush3.bf16.msra.mxu0 %v7033_v23  ;;  %v1728_v30 = vld [vmem:[#allocation2 + $0x9c] sm:$0xe] }
  0xea   : > { %v2285_v48 = vor.u32 %v2284_v26, %v2280_v24  ;;  %v7845_v49 = vsel %vm7446_vm13, %v5950_v40, %v2769_v44  ;;  %v2771_v31 = vrot.slane %v2769_v44, 4  ;;  %v2772_v50 = vrot.slane %v2653_v19, 5  ;;  %6870 = vmatprep.subr.bf16.mxu0 %v7036_v20  ;;  %v2655_v23 = vld [vmem:[#allocation2 + $0x58] sm:$0xf]  ;;  %v2656_v18 = vld [vmem:[#allocation2 + $0x5c] sm:$0x1] }
  0xeb   : > { %v2281_v52 = vsel %vm7181_vm2, %v2276_v45, %v2280_v24  ;;  %v1878_v60 = vsel %vm7446_vm13, %v1876_v38, %v1877_v37  ;;  %v2293_v62 = vshrl.u32 %v2139_v27, 16  ;;  %v2296_v63 = vshll.u32 %v2139_v27, 16  ;;  %v2142_v19 = vld [vmem:[#allocation2 + $0x54] sm:$0xf]  ;;  %v2144_v40 = vld [vmem:[#allocation2 + $0x5c] sm:$0x1] }
  0xec   : > { %v2286_v43 = vrot.slane %v2285_v48, 4  ;;  %v5909_v55 = vcombine.low %v1875_v47, %v1878_v60  ;;  %v7853_v5 = vsel %vm7446_vm13, %v2771_v31, %v2772_v50  ;;  %v2302_v54 = vshll.u32 %v2140_v33, 16  ;;  %v7028_v45 = vld [vmem:[#allocation2 + $0xb4] sm:$0xff]   ;;  %v1731_v47 = vld [vmem:[#allocation2 + $0xa8] sm:$0xe] }
  0xed   : > { %v5966_v1 = vcombine.low %v7845_v49, %v7853_v5  ;;  %v2295_v0 = vrot.slane %v2293_v62, 4  ;;  %v2298_v9 = vrot.slane %v2296_v63, 5  ;;  %v2306_v7 = vshrl.u32 %v2140_v33, 16  ;;  %6871 = vmatpush3.bf16.msra.mxu0 %v7036_v20  ;;  %v2143_v33 = vld [vmem:[#allocation2 + $0x58] sm:$0xf] }
  0xee   : > { %v2291_v42 = vsel %vm7181_vm2, %v2286_v43, %v2290_v46  ;;  %v2304_v57 = vrot.slane %v2302_v54, 5  ;;  %v2312_v14 = vshll.u32 %v2141_v34, 16  ;;  %v5894_v12 = vrot.slane %v1728_v30, 9  ;;  %6872 = vmatprep.subr.bf16.mxu0 %v7039_v41  ;;  %v1732_v38 = vld [vmem:[#allocation2 + $0xac] sm:$0xf] }
  0xef   : > { %v5933_v16 = vcombine.low %v2281_v52, %v2291_v42  ;;  %4886 = vmatmul.mubr.bf16.gmra.mrb[64].mxu1 %v5909_v55  ;;  %v2299_v17 = vor.u32 %v2298_v9, %v2295_v0  ;;  %v2308_v35 = vrot.slane %v2306_v7, 4  ;;  %v1881_v28 = vrot.slane %v1729_v2, 5  ;;  %v1733_v34 = vld [vmem:[#allocation2 + $0xb0] sm:$0x1]  ;;  %v2658_v63 = vld [vmem:[#allocation2 + $0x64] sm:$0xf] }
  0xf0   : > { %4975 = vmatmul.mubr.bf16.gmra.mrb[60].mxu0 %v5932_v21  ;;  %v2314_v20 = vrot.slane %v2312_v14, 5  ;;  %4893 = vmatprep.mubr.bf16.mxu1 %v7027_v29  ;;  %v1884_v24 = vrot.slane %v1730_v3, 5  ;;  %v5951_v25 = vrot.slane %v2654_v8, 9  ;;  %v2776_v27 = vrot.slane %v2655_v23, 5  ;;  %v2657_v29 = vld [vmem:[#allocation2 + $0x60] sm:$0xe] }
  0xf1   : > { %4982 = vmatprep.mubr.bf16.mxu0 %v5965_v22  ;;  %v2300_v11 = vrot.slane %v2299_v17, 4  ;;  %v2309_v39 = vor.u32 %v2308_v35, %v2304_v57  ;;  %v1882_v51 = vsel %vm7446_vm13, %v5894_v12, %v1881_v28  ;;  %v1883_v61 = vrot.slane %v1881_v28, 4  ;;  %6873 = vmatpush3.bf16.msra.mxu0 %v7039_v41  ;;  %v2659_v2 = vld [vmem:[#allocation2 + $0x68] sm:$0x1]  ;;  %v2145_v7 = vld [vmem:[#allocation2 + $0x60] sm:$0xf] }
  0xf2   : > { %v7869_v21 = vsel %vm7446_vm13, %v5951_v25, %v2776_v27  ;;  %v2778_v26 = vrot.slane %v2776_v27, 4  ;;  %v2779_v37 = vrot.slane %v2656_v18, 5  ;;  %v2317_v44 = vshrl.u32 %v2142_v19, 16  ;;  %6874 = vmatprep.subr.bf16.mxu0 %v7042_v15  ;;  %v2146_v17 = vld [vmem:[#allocation2 + $0x64] sm:$0xf] }
  0xf3   : > { %v2305_v53 = vsel %vm7181_vm2, %v2300_v11, %v2304_v57  ;;  %v2310_v13 = vrot.slane %v2309_v39, 4  ;;  %v1885_v22 = vsel %vm7446_vm13, %v1883_v61, %v1884_v24  ;;  %v2320_v46 = vshll.u32 %v2142_v19, 16  ;;  %v2147_v5 = vld [vmem:[#allocation2 + $0x68] sm:$0x1]  ;;  %v1734_v11 = vld [vmem:[#allocation2 + $0xb4] sm:$0xe] }
  0xf4   : > { %v5910_v41 = vcombine.low %v1882_v51, %v1885_v22  ;;  %v7877_v48 = vsel %vm7446_vm13, %v2778_v26, %v2779_v37  ;;  %v2319_v31 = vrot.slane %v2317_v44, 4  ;;  %v2326_v50 = vshll.u32 %v2143_v33, 16  ;;  %v1735_v26 = vld [vmem:[#allocation2 + $0xb8] sm:$0xf] }
  0xf5   : > { %v2315_v30 = vsel %vm7181_vm2, %v2310_v13, %v2314_v20  ;;  %v5967_v52 = vcombine.low %v7869_v21, %v7877_v48  ;;  %v2322_v60 = vrot.slane %v2320_v46, 5  ;;  %v2330_v62 = vshrl.u32 %v2143_v33, 16  ;;  %6875 = vmatpush3.bf16.msra.mxu0 %v7042_v15 }
  0xf6   : > { %v5934_v3 = vcombine.low %v2305_v53, %v2315_v30  ;;  %v2328_v43 = vrot.slane %v2326_v50, 5  ;;  %v2336_v55 = vshll.u32 %v2144_v40, 16  ;;  %v5895_v54 = vrot.slane %v1731_v47, 9  ;;  %v1736_v53 = vld [vmem:[#allocation2 + $0xbc] sm:$0x1] }
  0xf7   : > { %4894 = vmatmul.mubr.bf16.gmra.mrb[68].mxu1 %v5910_v41  ;;  %v2323_v8 = vor.u32 %v2322_v60, %v2319_v31  ;;  %v2332_v23 = vrot.slane %v2330_v62, 4  ;;  %v1888_v0 = vrot.slane %v1732_v38, 5  ;;  %v1891_v9 = vrot.slane %v1733_v34, 5  ;;  %v7055_v47 = vld [vmem:[%s8866_s1] ss:$0 sm:$0xff] }
  0xf8   : > { %4983 = vmatmul.mubr.bf16.gmra.mrb[64].mxu0 %v5933_v16  ;;  %v2338_v42 = vrot.slane %v2336_v55, 5  ;;  %4901 = vmatprep.mubr.bf16.mxu1 %v7028_v45  ;;  %v5952_v57 = vrot.slane %v2657_v29, 9  ;;  %v2783_v14 = vrot.slane %v2658_v63, 5  ;;  %v2786_v12 = vrot.slane %v2659_v2, 5  ;;  %v2660_v41 = vld [vmem:[#allocation2 + $0x6c] sm:$0xe] }
  0xf9   : > { %4990 = vmatprep.mubr.bf16.mxu0 %v5966_v1  ;;  %v2324_v15 = vrot.slane %v2323_v8, 4  ;;  %v2333_v35 = vor.u32 %v2332_v23, %v2328_v43  ;;  %v1889_v28 = vsel %vm7446_vm13, %v5895_v54, %v1888_v0  ;;  %v1890_v18 = vrot.slane %v1888_v0, 4  ;;  %v2661_v30 = vld [vmem:[#allocation2 + $0x70] sm:$0xf]  ;;  %v7056_v63 = vld [vmem:[%s8867_s2] ss:$0 sm:$0xff] }
  0xfa   : > { %v7890_v19 = vsel %vm7446_vm13, %v5952_v57, %v2783_v14  ;;  %v2785_v16 = vrot.slane %v2783_v14, 4  ;;  %v2341_v20 = vshrl.u32 %v2145_v7, 16  ;;  %v2344_v24 = vshll.u32 %v2145_v7, 16  ;;  %v2662_v55 = vld [vmem:[#allocation2 + $0x74] sm:$0x1] }
  0xfb   : > { %v2329_v25 = vsel %vm7181_vm2, %v2324_v15, %v2328_v43  ;;  %v2334_v27 = vrot.slane %v2333_v35, 4  ;;  %v1892_v49 = vsel %vm7446_vm13, %v1890_v18, %v1891_v9  ;;  %v2350_v1 = vshll.u32 %v2146_v17, 16  ;;  %v2148_v7 = vld [vmem:[#allocation2 + $0x6c] sm:$0xf]  ;;  %v2149_v15 = vld [vmem:[#allocation2 + $0x70] sm:$0xf] }
  0xfc   : > { %v5911_v39 = vcombine.low %v1889_v28, %v1892_v49  ;;  %v7898_v51 = vsel %vm7446_vm13, %v2785_v16, %v2786_v12  ;;  %v2343_v61 = vrot.slane %v2341_v20, 4  ;;  %v2346_v33 = vrot.slane %v2344_v24, 5  ;;  %v1023_v16 = vld [vmem:[#allocation2 + $0xc0] sm:$0xf]  ;;  %v2150_v24 = vld [vmem:[#allocation2 + $0x74] sm:$0x1] }
  0xfd   : > { %v2339_v37 = vsel %vm7181_vm2, %v2334_v27, %v2338_v42  ;;  %v5968_v40 = vcombine.low %v7890_v19, %v7898_v51  ;;  %v2352_v44 = vrot.slane %v2350_v1, 5  ;;  %v2354_v45 = vshrl.u32 %v2146_v17, 16 }
  0xfe   : > { %v5935_v13 = vcombine.low %v2329_v25, %v2339_v37  ;;  %v2347_v22 = vor.u32 %v2346_v33, %v2343_v61  ;;  %v2360_v46 = vshll.u32 %v2147_v5, 16  ;;  %v398_v38 = vmul.f32 %v7055_v47, %v6276_v56 }
  0xff   : > { %4902 = vmatmul.mubr.bf16.gmra.mrb[72].mxu1 %v5911_v39  ;;  %v2356_v31 = vrot.slane %v2354_v45, 4  ;;  %v399_v50 = vmul.f32 %v7055_v47, %v6277_v58  ;;  %v5896_v34 = vrot.slane %v1734_v11, 9  ;;  %v1895_v29 = vrot.slane %v1735_v26, 5  ;;  %v3069_v11 = vld [vmem:[#allocation2 + $0x18] sm:$0xf] }
 0x100   : > { %4991 = vmatmul.mubr.bf16.gmra.mrb[68].mxu0 %v5934_v3  ;;  %v2348_v60 = vrot.slane %v2347_v22, 4  ;;  %v2362_v62 = vrot.slane %v2360_v46, 5  ;;  %v437_v2 = vadd.f32 %v7056_v63, %v398_v38  ;;  %v1898_v43 = vrot.slane %v1736_v53, 5  ;;  %v3071_v38 = vld [vmem:[#allocation2 + $0x20] sm:$0x1] }
 0x101   : > { %4998 = vmatprep.mubr.bf16.mxu0 %v5967_v52  ;;  %v2357_v56 = vor.u32 %v2356_v31, %v2352_v44  ;;  %v438_v36 = vadd.f32 %v7056_v63, %v399_v50  ;;  %v7919_v58 = vsel %vm7446_vm13, %v5896_v34, %v1895_v29  ;;  %v1897_v3 = vrot.slane %v1895_v29, 4  ;;  %v7921_v54 = vpop.f32.mrb[0].mxu0 }
 0x102   : > { %v2353_v8 = vsel %vm7181_vm2, %v2348_v60, %v2352_v44  ;;  %v6180_v23 = vpack.c.bf16 %v437_v2, %v437_v2  ;;  %v5953_v0 = vrot.slane %v2660_v41, 9  ;;  %v2790_v9 = vrot.slane %v2661_v30, 5  ;;  %v7937_v25 = vpop.f32.mrb[1].mxu0  ;;  %v3070_v44 = vld [vmem:[#allocation2 + $0x1c] sm:$0xf] }
 0x103   : > { %v2358_v42 = vrot.slane %v2357_v56, 4  ;;  %v6181_v57 = vpack.c.bf16 %v438_v36, %v438_v36  ;;  %v7927_v21 = vsel %vm7446_vm13, %v1897_v3, %v1898_v43  ;;  %v2793_v48 = vrot.slane %v2662_v55, 5  ;;  %v7939_v39 = vpop.f32.mrb[2].mxu0  ;;  %v2665_v43 = vld [vmem:[#allocation2 + $0x80] sm:$0x1] }
 0x104   : > { %v848_v52 = vshrl.u32 %v6180_v23, 16  ;;  %v851_v14 = vshll.u32 %v6180_v23, 16  ;;  %v5912_v12 = vcombine.low %v7919_v58, %v7927_v21  ;;  %v7933_v17 = vsel %vm7446_vm13, %v5953_v0, %v2790_v9  ;;  %v7945_v45 = vpop.f32.mrb[3].mxu0 }
 0x105   : > { %v2363_v35 = vsel %vm7181_vm2, %v2358_v42, %v2362_v62  ;;  %v856_v28 = vshrl.u32 %v6181_v57, 16  ;;  %v859_v18 = vshll.u32 %v6181_v57, 16  ;;  %v2792_v20 = vrot.slane %v2790_v9, 4  ;;  %v2663_v62 = vld [vmem:[#allocation2 + $0x78] sm:$0xe] }
 0x106   : > { %v5936_v27 = vcombine.low %v2353_v8, %v2363_v35  ;;  %v850_v49 = vrot.slane %v848_v52, 7  ;;  %v2365_v5 = vshrl.u32 %v2148_v7, 16  ;;  %v2368_v1 = vshll.u32 %v2148_v7, 16  ;;  %v2151_v57 = vld [vmem:[#allocation2 + $0x78] sm:$0xf] }
 0x107   : > { %v7941_v61 = vrot.slane %v856_v28, 7  ;;  %v2794_v33 = vsel %vm7446_vm13, %v2792_v20, %v2793_v48  ;;  %v2374_v26 = vshll.u32 %v2149_v15, 16  ;;  %v2378_v37 = vshrl.u32 %v2149_v15, 16  ;;  %v2152_v15 = vld [vmem:[#allocation2 + $0x7c] sm:$0xf] }
 0x108   : > { %4999 = vmatmul.mubr.bf16.gmra.mrb[72].mxu0 %v5935_v13  ;;  %v853_v53 = vor.u32 %v851_v14, %v850_v49  ;;  %v854_v22 = vrot.slane %v850_v49, 4  ;;  %v5969_v46 = vcombine.low %v7933_v17, %v2794_v33  ;;  %v2367_v47 = vrot.slane %v2365_v5, 4  ;;  %v2153_v20 = vld [vmem:[#allocation2 + $0x80] sm:$0x1]  ;;  %v3073_v33 = vld [vmem:[#allocation2 + $0x28] sm:$0xf] }
 0x109   : > { %5006 = vmatprep.mubr.bf16.mxu0 %v5968_v40  ;;  %v861_v41 = vor.u32 %v859_v18, %v7941_v61  ;;  %v863_v31 = vrot.slane %v7941_v61, 4  ;;  %v2370_v50 = vrot.slane %v2368_v1, 5  ;;  %v2376_v34 = vrot.slane %v2374_v26, 5  ;;  %v2664_v40 = vld [vmem:[#allocation2 + $0x7c] sm:$0xf] }
 0x10a   : > { %v1024_v29 = vsel %vm7222_vm9, %v853_v53, %v1023_v16  ;;  %v2380_v13 = vrot.slane %v2378_v37, 4  ;;  %v2384_v30 = vshll.u32 %v2150_v24, 16  ;;  %v3118_v60 = vshrl.u32 %v3069_v11, 16  ;;  %v3072_v24 = vld [vmem:[#allocation2 + $0x24] sm:$0xf] }
 0x10b   : > { %v862_v63 = vsel %vm7213_vm7, %v854_v22, %v861_v41  ;;  %1025 = vst [vmem:[#allocation2 + $0xc0] sm:$0xf] %v1024_v29  ;;  %v2371_v2 = vor.u32 %v2370_v50, %v2367_v47  ;;  %v3121_v19 = vshll.u32 %v3069_v11, 16  ;;  %v3127_v51 = vshll.u32 %v3070_v44, 16  ;;  %v3074_v53 = vld [vmem:[#allocation2 + $0x2c] sm:$0x1] }
 0x10c   : > { %1026 = vst [vmem:[#allocation2 + $0xc4] sm:$0xf] %v862_v63  ;;  %v2381_v55 = vor.u32 %v2380_v13, %v2376_v34  ;;  %v2386_v56 = vrot.slane %v2384_v30, 5  ;;  %v3120_v36 = vrot.slane %v3118_v60, 4  ;;  %v3131_v3 = vshrl.u32 %v3070_v44, 16 }
 0x10d   : > { %v2372_v4 = vrot.slane %v2371_v2, 4  ;;  %v3123_v8 = vrot.slane %v3121_v19, 5  ;;  %v3129_v23 = vrot.slane %v3127_v51, 5  ;;  %v3137_v0 = vshll.u32 %v3071_v38, 16  ;;  %v2667_v60 = vld [vmem:[#allocation2 + $0x88] sm:$0xf] }
 0x10e   : > { %v2382_v9 = vrot.slane %v2381_v55, 4  ;;  %v3133_v7 = vrot.slane %v3131_v3, 4  ;;  %v5954_v42 = vrot.slane %v2663_v62, 9  ;;  %v2797_v59 = vrot.slane %v2664_v40, 5  ;;  %v2668_v51 = vld [vmem:[#allocation2 + $0x8c] sm:$0x1] }
 0x10f   : > { %v2377_v48 = vsel %vm7181_vm2, %v2372_v4, %v2376_v34  ;;  %v3124_v52 = vor.u32 %v3123_v8, %v3120_v36  ;;  %v3139_v14 = vrot.slane %v3137_v0, 5  ;;  %v2800_v17 = vrot.slane %v2665_v43, 5  ;;  %v2154_v40 = vld [vmem:[#allocation2 + $0x84] sm:$0xf] }
 0x110   : > { %5007 = vmatmul.mubr.bf16.gmra.mrb[76].mxu0 %v5936_v27  ;;  %v2387_v35 = vsel %vm7181_vm2, %v2382_v9, %v2386_v56  ;;  %v3134_v28 = vor.u32 %v3133_v7, %v3129_v23  ;;  %v2798_v18 = vsel %vm7446_vm13, %v5954_v42, %v2797_v59  ;;  %v2799_v16 = vrot.slane %v2797_v59, 4  ;;  %v7034_v59 = vld [vmem:[#allocation2 + $0x18] sm:$0xff]  }
 0x111   : > { %5014 = vmatprep.mubr.bf16.mxu0 %v5969_v46  ;;  %v5937_v49 = vcombine.low %v2377_v48, %v2387_v35  ;;  %v3125_v5 = vrot.slane %v3124_v52, 4  ;;  %v2389_v1 = vshrl.u32 %v2151_v57, 16  ;;  %v2392_v11 = vshll.u32 %v2151_v57, 16  ;;  %v2666_v46 = vld [vmem:[#allocation2 + $0x84] sm:$0xe] }
 0x112   : > { %v3135_v26 = vrot.slane %v3134_v28, 4  ;;  %v2801_v27 = vsel %vm7446_vm13, %v2799_v16, %v2800_v17  ;;  %v2398_v37 = vshll.u32 %v2152_v15, 16  ;;  %v2402_v44 = vshrl.u32 %v2152_v15, 16  ;;  %v2155_v48 = vld [vmem:[#allocation2 + $0x88] sm:$0xf] }
 0x113   : > { %v7032_v22 = vld [vmem:[#allocation2 + $0xc0] sm:$0xff]   ;;  %v3130_v47 = vsel %vm7181_vm2, %v3125_v5, %v3129_v23  ;;  %v5970_v38 = vcombine.low %v2798_v18, %v2801_v27  ;;  %v2391_v41 = vrot.slane %v2389_v1, 4  ;;  %v2394_v50 = vrot.slane %v2392_v11, 5  ;;  %v2156_v15 = vld [vmem:[#allocation2 + $0x8c] sm:$0x1] }
 0x114   : > { %v3140_v34 = vsel %vm7181_vm2, %v3135_v26, %v3139_v14  ;;  %v2400_v29 = vrot.slane %v2398_v37, 5  ;;  %v2404_v13 = vrot.slane %v2402_v44, 4  ;;  %v2408_v30 = vshll.u32 %v2153_v20, 16  ;;  %4909 = vmatprep.mubr.bf16.mxu1 %v7032_v22  ;;  %v3075_v28 = vld [vmem:[#allocation2 + $0x30] sm:$0xf] }
 0x115   : > { %v5993_v62 = vcombine.low %v3130_v47, %v3140_v34  ;;  %v2395_v63 = vor.u32 %v2394_v50, %v2391_v41  ;;  %v3142_v2 = vshrl.u32 %v3072_v24, 16  ;;  %v3145_v19 = vshll.u32 %v3072_v24, 16  ;;  %4910 = vmatmul.mubr.bf16.gmra.mrb[76].mxu1 %v5912_v12  ;;  %v2669_v22 = vld [vmem:[#allocation2 + $0x90] sm:$0xe] }
 0x116   : > { %v2405_v43 = vor.u32 %v2404_v13, %v2400_v29  ;;  %v2410_v55 = vrot.slane %v2408_v30, 5  ;;  %v3151_v56 = vshll.u32 %v3073_v33, 16  ;;  %v3155_v36 = vshrl.u32 %v3073_v33, 16 }
 0x117   : > { %5111 = vmatprep.mubr.bf16.mxu1 %v5993_v62  ;;  %v2396_v3 = vrot.slane %v2395_v63, 4  ;;  %v3144_v4 = vrot.slane %v3142_v2, 4  ;;  %v3147_v8 = vrot.slane %v3145_v19, 5  ;;  %v3161_v23 = vshll.u32 %v3074_v53, 16  ;;  %v3077_v53 = vld [vmem:[#allocation2 + $0x38] sm:$0x1] }
 0x118   : > { %5015 = vmatmul.mubr.bf16.gmra.mrb[80].mxu0 %v5937_v49  ;;  %v2406_v0 = vrot.slane %v2405_v43, 4  ;;  %v3153_v9 = vrot.slane %v3151_v56, 5  ;;  %v3157_v7 = vrot.slane %v3155_v36, 4  ;;  %v5955_v42 = vrot.slane %v2666_v46, 9  ;;  %v3076_v49 = vld [vmem:[#allocation2 + $0x34] sm:$0xf] }
 0x119   : > { %5022 = vmatprep.mubr.bf16.mxu0 %v5970_v38  ;;  %v2401_v58 = vsel %vm7181_vm2, %v2396_v3, %v2400_v29  ;;  %v3148_v21 = vor.u32 %v3147_v8, %v3144_v4  ;;  %v3163_v12 = vrot.slane %v3161_v23, 5  ;;  %v2804_v57 = vrot.slane %v2667_v60, 5  ;;  %v2670_v46 = vld [vmem:[#allocation2 + $0x94] sm:$0xf]  ;;  %v7984_v60 = vpop.f32.mrb[0].mxu1  ;;  %v7035_v8 = vld [vmem:[#allocation2 + $0x24] sm:$0xff]  }
 0x11a   : > { %v2411_v52 = vsel %vm7181_vm2, %v2406_v0, %v2410_v55  ;;  %v3158_v14 = vor.u32 %v3157_v7, %v3153_v9  ;;  %v2807_v17 = vrot.slane %v2668_v51, 5  ;;  %v2413_v35 = vshrl.u32 %v2154_v40, 16  ;;  %v2671_v51 = vld [vmem:[#allocation2 + $0x98] sm:$0x1]  ;;  %v2157_v3 = vld [vmem:[#allocation2 + $0x90] sm:$0xf] }
 0x11b   : > { %v5938_v18 = vcombine.low %v2401_v58, %v2411_v52  ;;  %v3149_v16 = vrot.slane %v3148_v21, 4  ;;  %v2805_v20 = vsel %vm7446_vm13, %v5955_v42, %v2804_v57  ;;  %v2806_v24 = vrot.slane %v2804_v57, 4  ;;  %v2158_v52 = vld [vmem:[#allocation2 + $0x94] sm:$0xf] }
 0x11c   : > { %v3159_v5 = vrot.slane %v3158_v14, 4  ;;  %v2415_v1 = vrot.slane %v2413_v35, 4  ;;  %v2416_v11 = vshll.u32 %v2154_v40, 16  ;;  %v2422_v33 = vshll.u32 %v2155_v48, 16  ;;  %v7986_v40 = vpop.f32.mrb[1].mxu1 }
 0x11d   : > { %v3154_v26 = vsel %vm7181_vm2, %v3149_v16, %v3153_v9  ;;  %v2808_v27 = vsel %vm7446_vm13, %v2806_v24, %v2807_v17  ;;  %v2426_v37 = vshrl.u32 %v2155_v48, 16  ;;  %v2432_v44 = vshll.u32 %v2156_v15, 16  ;;  %5112 = vmatmul.mubr.bf16.vlgmr.msra.gmra.mrb[80].mxu1 %v7034_v59  ;;  %v7988_v4 = vpop.f32.mrb[2].mxu1 }
 0x11e   : > { %v3164_v47 = vsel %vm7181_vm2, %v3159_v5, %v3163_v12  ;;  %v5971_v38 = vcombine.low %v2805_v20, %v2808_v27  ;;  %v2418_v41 = vrot.slane %v2416_v11, 5  ;;  %v2424_v50 = vrot.slane %v2422_v33, 5  ;;  %v7992_v17 = vpop.f32.mrb[3].mxu1  ;;  %v3078_v20 = vld [vmem:[#allocation2 + $0x3c] sm:$0xf]  ;;  %v7998_v33 = vpop.f32.mrb[4].mxu0 }
 0x11f   : > { %v5994_v34 = vcombine.low %v3154_v26, %v3164_v47  ;;  %v2428_v29 = vrot.slane %v2426_v37, 4  ;;  %v2434_v13 = vrot.slane %v2432_v44, 5  ;;  %v3166_v30 = vshrl.u32 %v3075_v28, 16  ;;  %v3079_v11 = vld [vmem:[#allocation2 + $0x40] sm:$0xf] }
 0x120   : > { %5023 = vmatmul.mubr.bf16.gmra.mrb[84].mxu0 %v5938_v18  ;;  %v2419_v62 = vor.u32 %v2418_v41, %v2415_v1  ;;  %v3169_v63 = vshll.u32 %v3075_v28, 16  ;;  %v3175_v2 = vshll.u32 %v3076_v49, 16  ;;  %v3179_v19 = vshrl.u32 %v3076_v49, 16  ;;  %v2159_v18 = vld [vmem:[#allocation2 + $0x98] sm:$0x1]  ;;  %v7037_v41 = vld [vmem:[#allocation2 + $0x30] sm:$0xff]  }
 0x121   : > { %5119 = vmatprep.mubr.bf16.mxu1 %v5994_v34  ;;  %5030 = vmatprep.mubr.bf16.mxu0 %v5971_v38  ;;  %v2429_v43 = vor.u32 %v2428_v29, %v2424_v50  ;;  %v3168_v55 = vrot.slane %v3166_v30, 4  ;;  %v3185_v56 = vshll.u32 %v3077_v53, 16  ;;  %v5956_v36 = vrot.slane %v2669_v22, 9  ;;  %v8002_v53 = vpop.f32.mrb[5].mxu0 }
 0x122   : > { %v2420_v23 = vrot.slane %v2419_v62, 4  ;;  %v3171_v0 = vrot.slane %v3169_v63, 5  ;;  %v3177_v9 = vrot.slane %v3175_v2, 5  ;;  %v3181_v7 = vrot.slane %v3179_v19, 4  ;;  %v8008_v34 = vpop.f32.mrb[6].mxu0 }
 0x123   : > { %v2430_v42 = vrot.slane %v2429_v43, 4  ;;  %v3187_v59 = vrot.slane %v3185_v56, 5  ;;  %v2811_v58 = vrot.slane %v2670_v46, 5  ;;  %v2814_v21 = vrot.slane %v2671_v51, 5  ;;  %v3080_v46 = vld [vmem:[#allocation2 + $0x44] sm:$0x1] }
 0x124   : > { %v2425_v12 = vsel %vm7181_vm2, %v2420_v23, %v2424_v50  ;;  %v3172_v57 = vor.u32 %v3171_v0, %v3168_v55  ;;  %v3182_v48 = vor.u32 %v3181_v7, %v3177_v9  ;;  %v2437_v14 = vshrl.u32 %v2157_v3, 16  ;;  %v2672_v63 = vld [vmem:[#allocation2 + $0x9c] sm:$0xe]  ;;  %v2673_v2 = vld [vmem:[#allocation2 + $0xa0] sm:$0xf] }
 0x125   : > { %v2435_v15 = vsel %vm7181_vm2, %v2430_v42, %v2434_v13  ;;  %v2812_v35 = vsel %vm7446_vm13, %v5956_v36, %v2811_v58  ;;  %v2813_v28 = vrot.slane %v2811_v58, 4  ;;  %v2440_v16 = vshll.u32 %v2157_v3, 16  ;;  %5120 = vmatmul.mubr.bf16.gmra.mrb[84].mxu1 %v7035_v8  ;;  %v2674_v56 = vld [vmem:[#allocation2 + $0xa4] sm:$0x1]  ;;  %v2160_v0 = vld [vmem:[#allocation2 + $0x9c] sm:$0xf] }
 0x126   : > { %v5939_v24 = vcombine.low %v2425_v12, %v2435_v15  ;;  %v3173_v49 = vrot.slane %v3172_v57, 4  ;;  %v3183_v5 = vrot.slane %v3182_v48, 4  ;;  %v2439_v1 = vrot.slane %v2437_v14, 4  ;;  %v8014_v14 = vpop.f32.mrb[4].mxu1 }
 0x127   : > { %v2815_v26 = vsel %vm7446_vm13, %v2813_v28, %v2814_v21  ;;  %v2442_v27 = vrot.slane %v2440_v16, 5  ;;  %v2446_v37 = vshll.u32 %v2158_v52, 16  ;;  %v2450_v44 = vshrl.u32 %v2158_v52, 16  ;;  %v2161_v21 = vld [vmem:[#allocation2 + $0xa0] sm:$0xf]  ;;  %v8016_v16 = vpop.f32.mrb[5].mxu1 }
 0x128   : > { %5031 = vmatmul.mubr.bf16.gmra.mrb[88].mxu0 %v5939_v24  ;;  %v3178_v22 = vsel %vm7181_vm2, %v3173_v49, %v3177_v9  ;;  %v3188_v47 = vsel %vm7181_vm2, %v3183_v5, %v3187_v59  ;;  %v5972_v38 = vcombine.low %v2812_v35, %v2815_v26  ;;  %v2456_v50 = vshll.u32 %v2159_v18, 16  ;;  %v8010_v9 = vpop.f32.mrb[7].mxu0  ;;  %v2162_v49 = vld [vmem:[#allocation2 + $0xa4] sm:$0x1] }
 0x129   : > { %v5995_v29 = vcombine.low %v3178_v22, %v3188_v47  ;;  %v2443_v13 = vor.u32 %v2442_v27, %v2439_v1  ;;  %v2448_v30 = vrot.slane %v2446_v37, 5  ;;  %v2452_v62 = vrot.slane %v2450_v44, 4  ;;  %v3082_v22 = vld [vmem:[#allocation2 + $0x4c] sm:$0xf] }
 0x12a   : > { %5038 = vmatprep.mubr.bf16.mxu0 %v5972_v38  ;;  %v2458_v19 = vrot.slane %v2456_v50, 5  ;;  %v3190_v51 = vshrl.u32 %v3078_v20, 16  ;;  %v3193_v43 = vshll.u32 %v3078_v20, 16  ;;  %v3199_v55 = vshll.u32 %v3079_v11, 16  ;;  %v7038_v38 = vld [vmem:[#allocation2 + $0x3c] sm:$0xff]  }
 0x12b   : > { %5127 = vmatprep.mubr.bf16.mxu1 %v5995_v29  ;;  %v2444_v36 = vrot.slane %v2443_v13, 4  ;;  %v2453_v3 = vor.u32 %v2452_v62, %v2448_v30  ;;  %v3203_v8 = vshrl.u32 %v3079_v11, 16  ;;  %v3209_v23 = vshll.u32 %v3080_v46, 16  ;;  %v3081_v11 = vld [vmem:[#allocation2 + $0x48] sm:$0xf] }
 0x12c   : > { %v3192_v7 = vrot.slane %v3190_v51, 4  ;;  %v3195_v42 = vrot.slane %v3193_v43, 5  ;;  %v3201_v59 = vrot.slane %v3199_v55, 5  ;;  %v5957_v58 = vrot.slane %v2672_v63, 9  ;;  %v3083_v63 = vld [vmem:[#allocation2 + $0x50] sm:$0x1] }
 0x12d   : > { %v2449_v12 = vsel %vm7181_vm2, %v2444_v36, %v2448_v30  ;;  %v2454_v57 = vrot.slane %v2453_v3, 4  ;;  %v3205_v48 = vrot.slane %v3203_v8, 4  ;;  %v3211_v52 = vrot.slane %v3209_v23, 5  ;;  %5128 = vmatmul.mubr.bf16.gmra.mrb[88].mxu1 %v7037_v41  ;;  %v2677_v36 = vld [vmem:[#allocation2 + $0xb0] sm:$0x1]  ;;  %v8028_v3 = vpop.f32.mrb[6].mxu1 }
 0x12e   : > { %v3196_v15 = vor.u32 %v3195_v42, %v3192_v7  ;;  %v2818_v35 = vrot.slane %v2673_v2, 5  ;;  %v2821_v28 = vrot.slane %v2674_v56, 5  ;;  %v2461_v18 = vshrl.u32 %v2160_v0, 16  ;;  %v2675_v2 = vld [vmem:[#allocation2 + $0xa8] sm:$0xe] }
 0x12f   : > { %v2459_v20 = vsel %vm7181_vm2, %v2454_v57, %v2458_v19  ;;  %v3206_v24 = vor.u32 %v3205_v48, %v3201_v59  ;;  %v2464_v5 = vshll.u32 %v2160_v0, 16  ;;  %v2470_v1 = vshll.u32 %v2161_v21, 16  ;;  %v2676_v56 = vld [vmem:[#allocation2 + $0xac] sm:$0xf]  ;;  %v2163_v42 = vld [vmem:[#allocation2 + $0xa8] sm:$0xf] }
 0x130   : > { %v5940_v26 = vcombine.low %v2449_v12, %v2459_v20  ;;  %v3197_v27 = vrot.slane %v3196_v15, 4  ;;  %v2819_v37 = vsel %vm7446_vm13, %v5957_v58, %v2818_v35  ;;  %v2820_v44 = vrot.slane %v2818_v35, 4  ;;  %v2164_v48 = vld [vmem:[#allocation2 + $0xac] sm:$0xf] }
 0x131   : > { %v3207_v47 = vrot.slane %v3206_v24, 4  ;;  %v2463_v41 = vrot.slane %v2461_v18, 4  ;;  %v2466_v50 = vrot.slane %v2464_v5, 5  ;;  %v2472_v46 = vrot.slane %v2470_v1, 5  ;;  %v8032_v18 = vpop.f32.mrb[8].mxu0 }
 0x132   : > { %5039 = vmatmul.mubr.bf16.gmra.mrb[92].mxu0 %v5940_v26  ;;  %v3202_v29 = vsel %vm7181_vm2, %v3197_v27, %v3201_v59  ;;  %v2822_v13 = vsel %vm7446_vm13, %v2820_v44, %v2821_v28  ;;  %v2474_v30 = vshrl.u32 %v2161_v21, 16  ;;  %v2480_v62 = vshll.u32 %v2162_v49, 16  ;;  %v8030_v59 = vpop.f32.mrb[7].mxu1  ;;  %v8036_v1 = vpop.f32.mrb[9].mxu0 }
 0x133   : > { %v3212_v19 = vsel %vm7181_vm2, %v3207_v47, %v3211_v52  ;;  %v5973_v51 = vcombine.low %v2819_v37, %v2822_v13  ;;  %v2467_v43 = vor.u32 %v2466_v50, %v2463_v41  ;;  %v3214_v55 = vshrl.u32 %v3081_v11, 16  ;;  %v8038_v44 = vpop.f32.mrb[10].mxu0 }
 0x134   : > { %v5996_v8 = vcombine.low %v3202_v29, %v3212_v19  ;;  %v2476_v23 = vrot.slane %v2474_v30, 4  ;;  %v2482_v0 = vrot.slane %v2480_v62, 5  ;;  %v3217_v7 = vshll.u32 %v3081_v11, 16  ;;  %v3084_v62 = vld [vmem:[#allocation2 + $0x54] sm:$0xf] }
 0x135   : > { %5046 = vmatprep.mubr.bf16.mxu0 %v5973_v51  ;;  %v2468_v58 = vrot.slane %v2467_v43, 4  ;;  %v3216_v21 = vrot.slane %v3214_v55, 4  ;;  %v3223_v12 = vshll.u32 %v3082_v22, 16  ;;  %v3227_v57 = vshrl.u32 %v3082_v22, 16  ;;  %v7040_v43 = vld [vmem:[#allocation2 + $0x48] sm:$0xff]  }
 0x136   : > { %5135 = vmatprep.mubr.bf16.mxu1 %v5996_v8  ;;  %v2477_v52 = vor.u32 %v2476_v23, %v2472_v46  ;;  %v3219_v15 = vrot.slane %v3217_v7, 5  ;;  %v3233_v35 = vshll.u32 %v3083_v63, 16  ;;  %v5958_v28 = vrot.slane %v2675_v2, 9  ;;  %v8044_v63 = vpop.f32.mrb[11].mxu0  ;;  %v3086_v7 = vld [vmem:[#allocation2 + $0x5c] sm:$0x1] }
 0x137   : > { %5136 = vmatmul.mubr.bf16.gmra.mrb[92].mxu1 %v7038_v38  ;;  %v2473_v20 = vsel %vm7181_vm2, %v2468_v58, %v2472_v46  ;;  %v3225_v24 = vrot.slane %v3223_v12, 5  ;;  %v3229_v49 = vrot.slane %v3227_v57, 4  ;;  %v2825_v5 = vrot.slane %v2676_v56, 5  ;;  %v2165_v38 = vld [vmem:[#allocation2 + $0xb0] sm:$0x1] }
 0x138   : > { %v2478_v11 = vrot.slane %v2477_v52, 4  ;;  %v3220_v26 = vor.u32 %v3219_v15, %v3216_v21  ;;  %v3235_v27 = vrot.slane %v3233_v35, 5  ;;  %v2828_v37 = vrot.slane %v2677_v36, 5  ;;  %v3085_v56 = vld [vmem:[#allocation2 + $0x58] sm:$0xf]  ;;  %v8052_v15 = vpop.f32.mrb[8].mxu1 }
 0x139   : > { %v3230_v22 = vor.u32 %v3229_v49, %v3225_v24  ;;  %v2826_v47 = vsel %vm7446_vm13, %v5958_v28, %v2825_v5  ;;  %v2827_v41 = vrot.slane %v2825_v5, 4  ;;  %v2485_v50 = vshrl.u32 %v2163_v42, 16  ;;  %v2679_v52 = vld [vmem:[#allocation2 + $0xb8] sm:$0xf] }
 0x13a   : > { %v2483_v46 = vsel %vm7181_vm2, %v2478_v11, %v2482_v0  ;;  %v3221_v29 = vrot.slane %v3220_v26, 4  ;;  %v2488_v13 = vshll.u32 %v2163_v42, 16  ;;  %v2494_v30 = vshll.u32 %v2164_v48, 16  ;;  %v2678_v42 = vld [vmem:[#allocation2 + $0xb4] sm:$0xe] }
 0x13b   : > { %v5941_v2 = vcombine.low %v2473_v20, %v2483_v46  ;;  %v3231_v19 = vrot.slane %v3230_v22, 4  ;;  %v2829_v51 = vsel %vm7446_vm13, %v2827_v41, %v2828_v37  ;;  %v2487_v55 = vrot.slane %v2485_v50, 4  ;;  %v2680_v37 = vld [vmem:[#allocation2 + $0xbc] sm:$0x1]  ;;  %v2166_v41 = vld [vmem:[#allocation2 + $0xb4] sm:$0xf] }
 0x13c   : > { %v3226_v36 = vsel %vm7181_vm2, %v3221_v29, %v3225_v24  ;;  %v5974_v8 = vcombine.low %v2826_v47, %v2829_v51  ;;  %v2490_v23 = vrot.slane %v2488_v13, 5  ;;  %v2496_v0 = vrot.slane %v2494_v30, 5  ;;  %v2167_v13 = vld [vmem:[#allocation2 + $0xb8] sm:$0xf]  ;;  %v8054_v30 = vpop.f32.mrb[9].mxu1 }
 0x13d   : > { %5047 = vmatmul.mubr.bf16.gmra.mrb[96].mxu0 %v5941_v2  ;;  %v3236_v58 = vsel %vm7181_vm2, %v3231_v19, %v3235_v27  ;;  %v2498_v21 = vshrl.u32 %v2164_v48, 16  ;;  %v2504_v12 = vshll.u32 %v2165_v38, 16  ;;  %v3238_v57 = vshrl.u32 %v3084_v62, 16 }
 0x13e   : > { %v5997_v35 = vcombine.low %v3226_v36, %v3236_v58  ;;  %5054 = vmatprep.mubr.bf16.mxu0 %v5974_v8  ;;  %v2491_v28 = vor.u32 %v2490_v23, %v2487_v55  ;;  %v3241_v20 = vshll.u32 %v3084_v62, 16  ;;  %v3247_v24 = vshll.u32 %v3085_v56, 16  ;;  %v8060_v23 = vpop.f32.mrb[10].mxu1 }
 0x13f   : > { %v2500_v49 = vrot.slane %v2498_v21, 4  ;;  %v2506_v5 = vrot.slane %v2504_v12, 5  ;;  %v3240_v11 = vrot.slane %v3238_v57, 4  ;;  %v3251_v26 = vshrl.u32 %v3085_v56, 16  ;;  %v8064_v57 = vpop.f32.mrb[11].mxu1 }
 0x140   : > { %5143 = vmatprep.mubr.bf16.mxu1 %v5997_v35  ;;  %v2492_v22 = vrot.slane %v2491_v28, 4  ;;  %v3243_v47 = vrot.slane %v3241_v20, 5  ;;  %v3249_v27 = vrot.slane %v3247_v24, 5  ;;  %v3257_v48 = vshll.u32 %v3086_v7, 16  ;;  %v7041_v20 = vld [vmem:[#allocation2 + $0x54] sm:$0xff]  }
 0x141   : > { %5144 = vmatmul.mubr.bf16.gmra.mrb[96].mxu1 %v7040_v43  ;;  %v2501_v38 = vor.u32 %v2500_v49, %v2496_v0  ;;  %v3253_v50 = vrot.slane %v3251_v26, 4  ;;  %v5959_v46 = vrot.slane %v2678_v42, 9  ;;  %v2832_v29 = vrot.slane %v2679_v52, 5  ;;  %v2168_v43 = vld [vmem:[#allocation2 + $0xbc] sm:$0x1] }
 0x142   : > { %v2497_v62 = vsel %vm7181_vm2, %v2492_v22, %v2496_v0  ;;  %v3244_v2 = vor.u32 %v3243_v47, %v3240_v11  ;;  %v3259_v19 = vrot.slane %v3257_v48, 5  ;;  %v2835_v51 = vrot.slane %v2680_v37, 5  ;;  %v3087_v49 = vld [vmem:[#allocation2 + $0x60] sm:$0xf]  ;;  %v3088_v11 = vld [vmem:[#allocation2 + $0x64] sm:$0xf] }
 0x143   : > { %v2502_v55 = vrot.slane %v2501_v38, 4  ;;  %v3254_v56 = vor.u32 %v3253_v50, %v3249_v27  ;;  %v2833_v36 = vsel %vm7446_vm13, %v5959_v46, %v2832_v29  ;;  %v2834_v8 = vrot.slane %v2832_v29, 4  ;;  %v8062_v7 = vpop.f32.mrb[12].mxu0  ;;  %v3089_v48 = vld [vmem:[#allocation2 + $0x68] sm:$0x1] }
 0x144   : > { %v3245_v42 = vrot.slane %v3244_v2, 4  ;;  %v2509_v58 = vshrl.u32 %v2166_v41, 16  ;;  %v2512_v21 = vshll.u32 %v2166_v41, 16  ;;  %v2518_v12 = vshll.u32 %v2167_v13, 16  ;;  %v8066_v0 = vpop.f32.mrb[13].mxu0 }
 0x145   : > { %v2507_v52 = vsel %vm7181_vm2, %v2502_v55, %v2506_v5  ;;  %v3255_v35 = vrot.slane %v3254_v56, 4  ;;  %v2836_v28 = vsel %vm7446_vm13, %v2834_v8, %v2835_v51  ;;  %v2522_v24 = vshrl.u32 %v2167_v13, 16  ;;  %v8074_v41 = vpop.f32.mrb[14].mxu0  ;;  %v1027_v8 = vld [vmem:[#allocation2 + $0xc8] sm:$0x1] }
 0x146   : > { %v5942_v26 = vcombine.low %v2497_v62, %v2507_v52  ;;  %v3250_v37 = vsel %vm7181_vm2, %v3245_v42, %v3249_v27  ;;  %v5975_v22 = vcombine.low %v2833_v36, %v2836_v28  ;;  %v2511_v47 = vrot.slane %v2509_v58, 4  ;;  %v8078_v29 = vpop.f32.mrb[15].mxu0 }
 0x147   : > { %v3260_v5 = vsel %vm7181_vm2, %v3255_v35, %v3259_v19  ;;  %v2514_v38 = vrot.slane %v2512_v21, 5  ;;  %v2520_v50 = vrot.slane %v2518_v12, 5  ;;  %v2524_v46 = vrot.slane %v2522_v24, 4  ;;  %v2169_v24 = vld [vmem:[#allocation2 + $0xc0] sm:$0xf] }
 0x148   : > { %5055 = vmatmul.mubr.bf16.gmra.mrb[100].mxu0 %v5942_v26  ;;  %v5998_v13 = vcombine.low %v3250_v37, %v3260_v5  ;;  %v2528_v2 = vshll.u32 %v2168_v43, 16  ;;  %v3262_v62 = vshrl.u32 %v3087_v49, 16  ;;  %v3265_v51 = vshll.u32 %v3087_v49, 16  ;;  %v2682_v26 = vld [vmem:[#allocation2 + $0xc4] sm:$0xf] }
 0x149   : > { %5062 = vmatprep.mubr.bf16.mxu0 %v5975_v22  ;;  %v2515_v27 = vor.u32 %v2514_v38, %v2511_v47  ;;  %v2525_v55 = vor.u32 %v2524_v46, %v2520_v50  ;;  %v3271_v56 = vshll.u32 %v3088_v11, 16  ;;  %v3275_v36 = vshrl.u32 %v3088_v11, 16  ;;  %v2681_v47 = vld [vmem:[#allocation2 + $0xc0] sm:$0xe] }
 0x14a   : > { %5151 = vmatprep.mubr.bf16.mxu1 %v5998_v13  ;;  %v2530_v42 = vrot.slane %v2528_v2, 5  ;;  %v3264_v58 = vrot.slane %v3262_v62, 4  ;;  %v3267_v19 = vrot.slane %v3265_v51, 5  ;;  %v3281_v21 = vshll.u32 %v3089_v48, 16  ;;  %v2170_v48 = vld [vmem:[#allocation2 + $0xc4] sm:$0xf] }
 0x14b   : > { %5152 = vmatmul.mubr.bf16.gmra.mrb[100].mxu1 %v7041_v20  ;;  %v2516_v12 = vrot.slane %v2515_v27, 4  ;;  %v2526_v52 = vrot.slane %v2525_v55, 4  ;;  %v3273_v35 = vrot.slane %v3271_v56, 5  ;;  %v3277_v28 = vrot.slane %v3275_v36, 4  ;;  %v3090_v36 = vld [vmem:[#allocation2 + $0x6c] sm:$0xf] }
 0x14c   : > { %v3268_v43 = vor.u32 %v3267_v19, %v3264_v58  ;;  %v1028_v49 = vsel %vm7231_vm10, %v863_v31, %v1027_v8  ;;  %v3283_v20 = vrot.slane %v3281_v21, 5  ;;  %v8092_v10 = vadd.f32 %v7937_v25, %v7921_v54  ;;  %v7043_v25 = vld [vmem:[#allocation2 + $0x60] sm:$0xff]   ;;  %v3091_v21 = vld [vmem:[#allocation2 + $0x70] sm:$0xf] }
 0x14d   : > { %v2521_v11 = vsel %vm7181_vm2, %v2516_v12, %v2520_v50  ;;  %v2531_v37 = vsel %vm7181_vm2, %v2526_v52, %v2530_v42  ;;  %v3278_v22 = vor.u32 %v3277_v28, %v3273_v35  ;;  %1029 = vst [vmem:[#allocation2 + $0xc8] sm:$0x1] %v1028_v49  ;;  %v2533_v61 = vshrl.u32 %v2169_v24, 16 }
 0x14e   : > { %v8088_v5 = vpop.f32.mrb[12].mxu1  ;;  %v5943_v38 = vcombine.low %v2521_v11, %v2531_v37  ;;  %v3269_v46 = vrot.slane %v3268_v43, 4  ;;  %v2839_v13 = vrot.slane %v2682_v26, 5  ;;  %v2536_v2 = vshll.u32 %v2169_v24, 16  ;;  %v3092_v26 = vld [vmem:[#allocation2 + $0x74] sm:$0x1] }
 0x14f   : > { %v8094_v31 = vpop.f32.mrb[13].mxu1  ;;  %v3279_v50 = vrot.slane %v3278_v22, 4  ;;  %v5960_v27 = vrot.slane %v2681_v47, 9  ;;  %v2535_v55 = vrot.slane %v2533_v61, 4  ;;  %v2542_v56 = vshll.u32 %v2170_v48, 16 }
 0x150   : > { %v8096_v62 = vpop.f32.mrb[14].mxu1  ;;  %5063 = vmatmul.mubr.bf16.gmra.mrb[104].mxu0 %v5943_v38  ;;  %v3274_v51 = vsel %vm7181_vm2, %v3269_v46, %v3273_v35  ;;  %v2538_v42 = vrot.slane %v2536_v2, 5  ;;  %v2546_v58 = vshrl.u32 %v2170_v48, 16  ;;  %v8106_v19 = vadd.f32 %v7945_v45, %v7939_v39  ;;  %v3581_v47 = vld [vmem:[#allocation2 + $0x18] sm:$0xe] }
 0x151   : > { %v8100_v8 = vpop.f32.mrb[15].mxu1  ;;  %v3284_v54 = vsel %vm7181_vm2, %v3279_v50, %v3283_v20  ;;  %v2544_v52 = vrot.slane %v2542_v56, 5  ;;  %v8110_v35 = vadd.f32 %v7986_v40, %v7984_v60  ;;  %v8114_v28 = vadd.f32 %v7992_v17, %v7988_v4  ;;  %v3582_v60 = vld [vmem:[#allocation2 + $0x1c] sm:$0xf]  ;;  %v3583_v38 = vld [vmem:[#allocation2 + $0x20] sm:$0x1] }
 0x152   : > { %v5999_v12 = vcombine.low %v3274_v51, %v3284_v54  ;;  %v2841_v24 = vrot.slane %v2839_v13, 4  ;;  %v2539_v43 = vor.u32 %v2538_v42, %v2535_v55  ;;  %v2548_v49 = vrot.slane %v2546_v58, 4  ;;  %v3584_v55 = vld [vmem:[#allocation2 + $0x24] sm:$0xe]  ;;  %v3585_v42 = vld [vmem:[#allocation2 + $0x28] sm:$0xf] }
 0x153   : > { %8883 = vst [vmem:[#allocation4_spill] sm:$0xff] %v8110_v35  ;;  %8884 = vst [vmem:[#allocation5_spill] sm:$0xff] %v8114_v28  ;;  %v3286_v11 = vshrl.u32 %v3090_v36, 16  ;;  %v2840_v39 = vsel %vm7446_vm13, %v5960_v27, %v2839_v13  ;;  %v3289_v22 = vshll.u32 %v3090_v36, 16  ;;  %v3295_v20 = vshll.u32 %v3091_v21, 16 }
 0x154   : > { %5159 = vmatprep.mubr.bf16.mxu1 %v5999_v12  ;;  %v2683_v37 = vld [vmem:[#allocation2 + $0xc8] sm:$0x1]  ;;  %v2540_v48 = vrot.slane %v2539_v43, 4  ;;  %v2549_v4 = vor.u32 %v2548_v49, %v2544_v52  ;;  %v3299_v51 = vshrl.u32 %v3091_v21, 16  ;;  %v3586_v58 = vld [vmem:[#allocation2 + $0x2c] sm:$0x1] }
 0x155   : > { %v2171_v45 = vld [vmem:[#allocation2 + $0xc8] sm:$0x1]  ;;  %v2842_v40 = vrot.slane %v2683_v37, 5  ;;  %5160 = vmatmul.mubr.bf16.gmra.mrb[104].mxu1 %v7043_v25  ;;  %v3288_v61 = vrot.slane %v3286_v11, 4  ;;  %v3291_v50 = vrot.slane %v3289_v22, 5  ;;  %v3297_v2 = vrot.slane %v3295_v20, 5 }
 0x156   : > { %v2552_v17 = vshll.u32 %v2171_v45, 16  ;;  %v8118_v46 = vpop.f32.mrb[16].mxu1  ;;  %v8120_v56 = vpop.f32.mrb[16].mxu0  ;;  %v2545_v36 = vsel %vm7181_vm2, %v2540_v48, %v2544_v52  ;;  %v2550_v54 = vrot.slane %v2549_v4, 4  ;;  %v3301_v11 = vrot.slane %v3299_v51, 4 }
 0x157   : > { %v8122_v13 = vpop.f32.mrb[17].mxu1  ;;  %v2843_v27 = vsel %vm7446_vm13, %v2841_v24, %v2842_v40  ;;  %v8128_v12 = vpop.f32.mrb[17].mxu0  ;;  %v3292_v49 = vor.u32 %v3291_v50, %v3288_v61  ;;  %v3305_v37 = vshll.u32 %v3092_v26, 16  ;;  %v6009_v52 = vrot.slane %v3581_v47, 9 }
 0x158   : > { %v2554_v25 = vrot.slane %v2552_v17, 5  ;;  %v8130_v43 = vpop.f32.mrb[18].mxu1  ;;  %v5976_v21 = vcombine.low %v2840_v39, %v2843_v27  ;;  %v8132_v45 = vpop.f32.mrb[18].mxu0  ;;  %v3679_v20 = vrot.slane %v3582_v60, 5  ;;  %v3682_v40 = vrot.slane %v3583_v38, 5 }
 0x159   : > { %v8134_v22 = vpop.f32.mrb[19].mxu1  ;;  %v8138_v48 = vpop.f32.mrb[19].mxu0  ;;  %v3293_v17 = vrot.slane %v3292_v49, 4  ;;  %v3302_v28 = vor.u32 %v3301_v11, %v3297_v2  ;;  %v3307_v39 = vrot.slane %v3305_v37, 5  ;;  %v8144_v50 = vadd.f32 %v8002_v53, %v7998_v33  ;;  %v3093_v27 = vld [vmem:[#allocation2 + $0x78] sm:$0xf] }
 0x15a   : > { %v2555_v24 = vsel %vm7181_vm2, %v2550_v54, %v2554_v25  ;;  %5070 = vmatprep.mubr.bf16.mxu0 %v5976_v21  ;;  %v3680_v26 = vsel %vm7446_vm13, %v6009_v52, %v3679_v20  ;;  %v3681_v61 = vrot.slane %v3679_v20, 4  ;;  %v6010_v51 = vrot.slane %v3584_v55, 9  ;;  %v3094_v54 = vld [vmem:[#allocation2 + $0x7c] sm:$0xf]  ;;  %v3095_v53 = vld [vmem:[#allocation2 + $0x80] sm:$0x1] }
 0x15b   : > { %v5944_v4 = vcombine.low %v2545_v36, %v2555_v24  ;;  %v3298_v47 = vsel %vm7181_vm2, %v3293_v17, %v3297_v2  ;;  %v3303_v60 = vrot.slane %v3302_v28, 4  ;;  %v3686_v38 = vrot.slane %v3585_v42, 5  ;;  %v3587_v55 = vld [vmem:[#allocation2 + $0x30] sm:$0xe]  ;;  %v3588_v37 = vld [vmem:[#allocation2 + $0x34] sm:$0xf] }
 0x15c   : > { %v3689_v36 = vrot.slane %v3586_v58, 5  ;;  %v3683_v25 = vsel %vm7446_vm13, %v3681_v61, %v3682_v40  ;;  %v8152_v21 = vadd.f32 %v8010_v9, %v8008_v34  ;;  %v8156_v33 = vadd.f32 %v8016_v16, %v8014_v14  ;;  %v7044_v2 = vld [vmem:[#allocation2 + $0x6c] sm:$0xff]   ;;  %v3589_v34 = vld [vmem:[#allocation2 + $0x38] sm:$0x1]  ;;  %v3590_v52 = vld [vmem:[#allocation2 + $0x3c] sm:$0xe] }
 0x15d   : > { %5071 = vmatmul.mubr.bf16.gmra.mrb[108].mxu0 %v5944_v4  ;;  %v3308_v28 = vsel %vm7181_vm2, %v3303_v60, %v3307_v39  ;;  %v6025_v42 = vcombine.low %v3680_v26, %v3683_v25  ;;  %v3687_v58 = vsel %vm7446_vm13, %v6010_v51, %v3686_v38  ;;  %v3688_v11 = vrot.slane %v3686_v38, 4  ;;  %v3591_v20 = vld [vmem:[#allocation2 + $0x40] sm:$0xf] }
 0x15e   : > { %8885 = vst [vmem:[#allocation6_spill] sm:$0xff] %v8156_v33  ;;  %v8158_v49 = vpop.f32.mrb[20].mxu1  ;;  %v8164_v9 = vpop.f32.mrb[20].mxu0  ;;  %v6000_v14 = vcombine.low %v3298_v47, %v3308_v28  ;;  %v8170_v16 = vadd.f32 %v8030_v59, %v8028_v3  ;;  %v3310_v39 = vshrl.u32 %v3093_v27, 16  ;;  %v3313_v26 = vshll.u32 %v3093_v27, 16 }
 0x15f   : > { %v8166_v24 = vpop.f32.mrb[21].mxu1  ;;  %v8172_v40 = vpop.f32.mrb[21].mxu0  ;;  %6876 = vmatprep.mubr.bf16.mxu0 %v6025_v42  ;;  %v3690_v17 = vsel %vm7446_vm13, %v3688_v11, %v3689_v36  ;;  %v3319_v61 = vshll.u32 %v3094_v54, 16  ;;  %v3323_v59 = vshrl.u32 %v3094_v54, 16  ;;  %v3329_v60 = vshll.u32 %v3095_v53, 16 }
 0x160   : > { %8886 = vst [vmem:[#allocation7_spill] sm:$0xff] %v8170_v16  ;;  %v8174_v4 = vpop.f32.mrb[22].mxu1  ;;  %v8178_v51 = vpop.f32.mrb[22].mxu0  ;;  %5167 = vmatprep.mubr.bf16.mxu1 %v6000_v14  ;;  %v6026_v3 = vcombine.low %v3687_v58, %v3690_v17  ;;  %v3312_v25 = vrot.slane %v3310_v39, 4  ;;  %v3315_v28 = vrot.slane %v3313_v26, 5  ;;  %v6011_v16 = vrot.slane %v3587_v55, 9 }
 0x161   : > { %8887 = vst [vmem:[#allocation8_spill] sm:$0xff] %v8174_v4  ;;  %v8180_v47 = vpop.f32.mrb[23].mxu1  ;;  %v8182_v38 = vpop.f32.mrb[23].mxu0  ;;  %5168 = vmatmul.mubr.bf16.gmra.mrb[108].mxu1 %v7044_v2  ;;  %v3321_v42 = vrot.slane %v3319_v61, 5  ;;  %v3592_v33 = vld [vmem:[#allocation2 + $0x44] sm:$0x1]  ;;  %v8186_v14 = vadd.f32 %v8036_v1, %v8032_v18  ;;  %v8198_v1 = vadd.f32 %v8044_v63, %v8038_v44 }
 0x162   : > { %v3325_v36 = vrot.slane %v3323_v59, 4  ;;  %v3331_v11 = vrot.slane %v3329_v60, 5  ;;  %v3693_v27 = vrot.slane %v3588_v37, 5  ;;  %v3696_v35 = vrot.slane %v3589_v34, 5  ;;  %v3096_v55 = vld [vmem:[#allocation2 + $0x84] sm:$0xf] }
 0x163   : > { %v3316_v4 = vor.u32 %v3315_v28, %v3312_v25  ;;  %v6012_v54 = vrot.slane %v3590_v52, 9  ;;  %v3700_v53 = vrot.slane %v3591_v20, 5  ;;  %v3703_v39 = vrot.slane %v3592_v33, 5  ;;  %v3097_v61 = vld [vmem:[#allocation2 + $0x88] sm:$0xf] }
 0x164   : > { %v3326_v58 = vor.u32 %v3325_v36, %v3321_v42  ;;  %v3694_v2 = vsel %vm7446_vm13, %v6011_v16, %v3693_v27  ;;  %v3695_v17 = vrot.slane %v3693_v27, 4  ;;  %v8202_v33 = vadd.f32 %v8054_v30, %v8052_v15  ;;  %v3098_v16 = vld [vmem:[#allocation2 + $0x8c] sm:$0x1]  ;;  %v3593_v52 = vld [vmem:[#allocation2 + $0x48] sm:$0xe]  ;;  %v7045_v15 = vld [vmem:[#allocation2 + $0x78] sm:$0xff]  }
 0x165   : > { %6877 = vmatmul.mubr.bf16.vlgmr.msra.gmra.mrb[112].mxu0 %v6026_v3  ;;  %v3317_v26 = vrot.slane %v3316_v4, 4  ;;  %v3701_v37 = vsel %vm7446_vm13, %v6012_v54, %v3700_v53  ;;  %v3702_v34 = vrot.slane %v3700_v53, 4  ;;  %v3594_v28 = vld [vmem:[#allocation2 + $0x4c] sm:$0xf]  ;;  %v3595_v36 = vld [vmem:[#allocation2 + $0x50] sm:$0x1] }
 0x166   : > { %v8192_v3 = vpop.f32.mrb[24].mxu1  ;;  %v3327_v59 = vrot.slane %v3326_v58, 4  ;;  %v3697_v18 = vsel %vm7446_vm13, %v3695_v17, %v3696_v35  ;;  %8888 = vst [vmem:[#allocation9_spill] sm:$0xff] %v8202_v33  ;;  %v8212_v35 = vadd.f32 %v8064_v57, %v8060_v23  ;;  %v3334_v23 = vshrl.u32 %v3096_v55, 16  ;;  %v3596_v53 = vld [vmem:[#allocation2 + $0x54] sm:$0xe] }
 0x167   : > { %v8204_v20 = vpop.f32.mrb[25].mxu1  ;;  %v3322_v4 = vsel %vm7181_vm2, %v3317_v26, %v3321_v42  ;;  %v6027_v60 = vcombine.low %v3694_v2, %v3697_v18  ;;  %v3704_v25 = vsel %vm7446_vm13, %v3702_v34, %v3703_v39  ;;  %v8223_v42 = vld [vmem:[%s8869_s4] ss:$0 sm:$0xff]  ;;  %v3337_v57 = vshll.u32 %v3096_v55, 16  ;;  %v3597_v39 = vld [vmem:[#allocation2 + $0x58] sm:$0xf] }
 0x168   : > { %8889 = vst [vmem:[#allocation10_spill] sm:$0xff] %v8212_v35  ;;  %v8214_v44 = vpop.f32.mrb[26].mxu1  ;;  %v3332_v63 = vsel %vm7181_vm2, %v3327_v59, %v3331_v11  ;;  %v6028_v30 = vcombine.low %v3701_v37, %v3704_v25  ;;  %v3343_v58 = vshll.u32 %v3097_v61, 16  ;;  %v3347_v2 = vshrl.u32 %v3097_v61, 16  ;;  %v3598_v18 = vld [vmem:[#allocation2 + $0x5c] sm:$0x1] }
 0x169   : > { %v8218_v27 = vpop.f32.mrb[27].mxu1  ;;  %v6001_v54 = vcombine.low %v3322_v4, %v3332_v63  ;;  %6880 = vmatprep.mubr.bf16.mxu0 %v6027_v60  ;;  %v3353_v17 = vshll.u32 %v3098_v16, 16  ;;  %v6013_v11 = vrot.slane %v3593_v52, 9  ;;  %v3336_v26 = vrot.slane %v3334_v23, 4 }
 0x16a   : > { %v3339_v37 = vrot.slane %v3337_v57, 5  ;;  %v3707_v34 = vrot.slane %v3594_v28, 5  ;;  %v3710_v59 = vrot.slane %v3595_v36, 5  ;;  %v8227_v25 = vadd.f32 %v8092_v10, %v8223_v42  ;;  %v3099_v28 = vld [vmem:[#allocation2 + $0x90] sm:$0xf] }
 0x16b   : > { %5175 = vmatprep.mubr.bf16.mxu1 %v6001_v54  ;;  %v3345_v4 = vrot.slane %v3343_v58, 5  ;;  %v3349_v55 = vrot.slane %v3347_v2, 4  ;;  %v8231_v61 = vadd.f32 %v8066_v0, %v8062_v7  ;;  %v3355_v54 = vrot.slane %v3353_v17, 5  ;;  %v3100_v57 = vld [vmem:[#allocation2 + $0x94] sm:$0xf] }
 0x16c   : > { %5176 = vmatmul.mubr.bf16.gmra.mrb[112].mxu1 %v7045_v15  ;;  %v3340_v52 = vor.u32 %v3339_v37, %v3336_v26  ;;  %v3708_v60 = vsel %vm7446_vm13, %v6013_v11, %v3707_v34  ;;  %v3709_v63 = vrot.slane %v3707_v34, 4  ;;  %v3714_v15 = vrot.slane %v3597_v39, 5 }
 0x16d   : > { %6881 = vmatmul.mubr.bf16.gmra.mrb[116].mxu0 %v6028_v30  ;;  %v6014_v30 = vrot.slane %v3596_v53, 9  ;;  %v3350_v10 = vor.u32 %v3349_v55, %v3345_v4  ;;  %v3717_v23 = vrot.slane %v3598_v18, 5  ;;  %v8247_v11 = vadd.f32 %v8078_v29, %v8074_v41 }
 0x16e   : > { %v8233_v16 = vpop.f32.mrb[28].mxu1  ;;  %v3341_v0 = vrot.slane %v3340_v52, 4  ;;  %v3711_v2 = vsel %vm7446_vm13, %v3709_v63, %v3710_v59  ;;  %v8251_v53 = vadd.f32 %v8094_v31, %v8088_v5  ;;  %v3716_v18 = vrot.slane %v3714_v15, 4  ;;  %v7046_v31 = vld [vmem:[#allocation2 + $0x84] sm:$0xff]   ;;  %v3101_v52 = vld [vmem:[#allocation2 + $0x98] sm:$0x1] }
 0x16f   : > { %v8237_v36 = vpop.f32.mrb[29].mxu1  ;;  %v3351_v26 = vrot.slane %v3350_v10, 4  ;;  %v6029_v37 = vcombine.low %v3708_v60, %v3711_v2  ;;  %v3715_v34 = vsel %vm7446_vm13, %v6014_v30, %v3714_v15  ;;  %v8263_v41 = vadd.f32 %v8106_v19, %v8223_v42  ;;  %v3599_v60 = vld [vmem:[#allocation2 + $0x60] sm:$0xe]  ;;  %v3600_v15 = vld [vmem:[#allocation2 + $0x64] sm:$0xf] }
 0x170   : > { %8890 = vst [vmem:[#allocation11_spill] sm:$0xff] %v8237_v36  ;;  %v8239_v58 = vpop.f32.mrb[24].mxu0  ;;  %v8241_v7 = vpop.f32.mrb[30].mxu1  ;;  %8892 = vst [vmem:[#allocation13_spill] sm:$0xff] %v8251_v53  ;;  %v8267_v29 = vadd.f32 %v8144_v50, %v8223_v42  ;;  %v3346_v5 = vsel %vm7181_vm2, %v3341_v0, %v3345_v4  ;;  %v8273_v59 = vadd.f32 %v8100_v8, %v8096_v62  ;;  %v3358_v30 = vshrl.u32 %v3099_v28, 16 }
 0x171   : > { %8891 = vst [vmem:[#allocation12_spill] sm:$0xff] %v8241_v7  ;;  %v8253_v17 = vpop.f32.mrb[25].mxu0  ;;  %v8255_v39 = vpop.f32.mrb[31].mxu1  ;;  %v3356_v19 = vsel %vm7181_vm2, %v3351_v26, %v3355_v54  ;;  %6884 = vmatprep.mubr.bf16.mxu0 %v6029_v37  ;;  %v3718_v50 = vsel %vm7446_vm13, %v3716_v18, %v3717_v23  ;;  %v3361_v10 = vshll.u32 %v3099_v28, 16  ;;  %v3601_v4 = vld [vmem:[#allocation2 + $0x68] sm:$0x1]  ;;  %v8283_v0 = vadd.f32 %v8152_v21, %v8223_v42 }
 0x172   : > { %8893 = vst [vmem:[#allocation14_spill] sm:$0xff] %v8255_v39  ;;  %v8259_v55 = vpop.f32.mrb[26].mxu0  ;;  %8894 = vst [vmem:[#allocation15_spill] sm:$0xff] %v8273_v59  ;;  %v6002_v62 = vcombine.low %v3346_v5, %v3356_v19  ;;  %v6030_v8 = vcombine.low %v3715_v34, %v3718_v50  ;;  %v3367_v2 = vshll.u32 %v3100_v57, 16  ;;  %v3602_v59 = vld [vmem:[#allocation2 + $0x6c] sm:$0xe]  ;;  %v8287_v34 = vadd.f32 %v8128_v12, %v8120_v56 }
 0x173   : > { %v8275_v63 = vpop.f32.mrb[27].mxu0  ;;  %v3360_v53 = vrot.slane %v3358_v30, 4  ;;  %v3363_v35 = vrot.slane %v3361_v10, 5  ;;  %v3371_v33 = vshrl.u32 %v3100_v57, 16  ;;  %v3377_v54 = vshll.u32 %v3101_v52, 16 }
 0x174   : > { %v3603_v26 = vld [vmem:[#allocation2 + $0x70] sm:$0xf]  ;;  %5183 = vmatprep.mubr.bf16.mxu1 %v6002_v62  ;;  %v3369_v23 = vrot.slane %v3367_v2, 5  ;;  %v6015_v37 = vrot.slane %v3599_v60, 9  ;;  %v3721_v28 = vrot.slane %v3600_v15, 5  ;;  %v3724_v18 = vrot.slane %v3601_v4, 5 }
 0x175   : > { %6885 = vmatmul.mubr.bf16.gmra.mrb[120].mxu0 %v6030_v8  ;;  %v3604_v39 = vld [vmem:[#allocation2 + $0x74] sm:$0x1]  ;;  %5184 = vmatmul.mubr.bf16.gmra.mrb[116].mxu1 %v7046_v31  ;;  %v3364_v7 = vor.u32 %v3363_v35, %v3360_v53  ;;  %v3373_v21 = vrot.slane %v3371_v33, 4  ;;  %v3379_v36 = vrot.slane %v3377_v54, 5  ;;  %v3102_v5 = vld [vmem:[#allocation2 + $0x9c] sm:$0xf]  ;;  %v8297_v35 = vadd.f32 %v8186_v14, %v8223_v42 }
 0x176   : > { %v3722_v57 = vsel %vm7446_vm13, %v6015_v37, %v3721_v28  ;;  %v3723_v52 = vrot.slane %v3721_v28, 4  ;;  %v6016_v50 = vrot.slane %v3602_v59, 9  ;;  %v3728_v60 = vrot.slane %v3603_v26, 5  ;;  %v3103_v54 = vld [vmem:[#allocation2 + $0xa0] sm:$0xf] }
 0x177   : > { %v3365_v33 = vrot.slane %v3364_v7, 4  ;;  %v3374_v53 = vor.u32 %v3373_v21, %v3369_v23  ;;  %v3731_v31 = vrot.slane %v3604_v39, 5  ;;  %v8309_v4 = vadd.f32 %v8138_v48, %v8132_v45  ;;  %v3104_v28 = vld [vmem:[#allocation2 + $0xa4] sm:$0x1] }
 0x178   : > { %v8289_v19 = vpop.f32.mrb[28].mxu0  ;;  %v8301_v12 = vpop.f32.mrb[32].mxu1  ;;  %v3725_v10 = vsel %vm7446_vm13, %v3723_v52, %v3724_v18  ;;  %v3729_v59 = vsel %vm7446_vm13, %v6016_v50, %v3728_v60  ;;  %v3730_v15 = vrot.slane %v3728_v60, 4  ;;  %v6518_v2 = vadd.f32 %v8122_v13, %v8118_v46  ;;  %v3605_v18 = vld [vmem:[#allocation2 + $0x78] sm:$0xe]  ;;  %v7047_v13 = vld [vmem:[#allocation2 + $0x90] sm:$0xff]  }
 0x179   : > { %v8293_v30 = vpop.f32.mrb[29].mxu0  ;;  %v8313_v7 = vpop.f32.mrb[33].mxu1  ;;  %v3370_v39 = vsel %vm7181_vm2, %v3365_v33, %v3369_v23  ;;  %v3375_v62 = vrot.slane %v3374_v53, 4  ;;  %v6031_v8 = vcombine.low %v3722_v57, %v3725_v10  ;;  %v8323_v37 = vadd.f32 %v8198_v1, %v8223_v42  ;;  %v3606_v50 = vld [vmem:[#allocation2 + $0x7c] sm:$0xf] }
 0x17a   : > { %v8299_v56 = vpop.f32.mrb[30].mxu0  ;;  %v8319_v26 = vpop.f32.mrb[34].mxu1  ;;  %v3732_v45 = vsel %vm7446_vm13, %v3730_v15, %v3731_v31  ;;  %v6521_v48 = vadd.f32 %v8134_v22, %v8130_v43  ;;  %v3382_v23 = vshrl.u32 %v3102_v5, 16  ;;  %v8334_v1 = vadd.f32 %v6518_v2, %v8227_v25  ;;  %v3607_v60 = vld [vmem:[#allocation2 + $0x80] sm:$0x1] }
 0x17b   : > { %v8311_v14 = vpop.f32.mrb[31].mxu0  ;;  %v8329_v21 = vpop.f32.mrb[35].mxu1  ;;  %v3380_v46 = vsel %vm7181_vm2, %v3375_v62, %v3379_v36  ;;  %6888 = vmatprep.mubr.bf16.mxu0 %v6031_v8  ;;  %v6032_v57 = vcombine.low %v3729_v59, %v3732_v45  ;;  %v3385_v52 = vshll.u32 %v3102_v5, 16  ;;  %v3391_v53 = vshll.u32 %v3103_v54, 16  ;;  %v3608_v31 = vld [vmem:[#allocation2 + $0x84] sm:$0xe] }
 0x17c   : > { %8895 = vst [vmem:[#allocation16_spill] sm:$0xff] %v8334_v1  ;;  %v6003_v33 = vcombine.low %v3370_v39, %v3380_v46  ;;  %v8337_v43 = vadd.f32 %v6521_v48, %v8263_v41  ;;  %v3384_v22 = vrot.slane %v3382_v23, 4  ;;  %v3395_v15 = vshrl.u32 %v3103_v54, 16  ;;  %v3609_v8 = vld [vmem:[#allocation2 + $0x88] sm:$0xf] }
 0x17d   : > { %6889 = vmatmul.mubr.bf16.gmra.mrb[124].mxu0 %v6032_v57  ;;  %v3387_v10 = vrot.slane %v3385_v52, 5  ;;  %v3401_v36 = vshll.u32 %v3104_v28, 16  ;;  %v6017_v62 = vrot.slane %v3605_v18, 9  ;;  %v3393_v59 = vrot.slane %v3391_v53, 5  ;;  %v3610_v39 = vld [vmem:[#allocation2 + $0x8c] sm:$0x1] }
 0x17e   : > { %8896 = vst [vmem:[#allocation17_spill] sm:$0xff] %v8337_v43  ;;  %5191 = vmatprep.mubr.bf16.mxu1 %v6003_v33  ;;  %v3735_v25 = vrot.slane %v3606_v50, 5  ;;  %v3738_v2 = vrot.slane %v3607_v60, 5  ;;  %v8341_v5 = vadd.f32 %v8172_v40, %v8164_v9  ;;  %v8347_v45 = vadd.f32 %v8231_v61, %v8223_v42 }
 0x17f   : > { %5192 = vmatmul.mubr.bf16.gmra.mrb[120].mxu1 %v7047_v13  ;;  %v3388_v54 = vor.u32 %v3387_v10, %v3384_v22  ;;  %v3397_v48 = vrot.slane %v3395_v15, 4  ;;  %v6018_v28 = vrot.slane %v3608_v31, 9  ;;  %v3403_v18 = vrot.slane %v3401_v36, 5  ;;  %v3105_v13 = vld [vmem:[#allocation2 + $0xa8] sm:$0xf] }
 0x180   : > { %v3736_v46 = vsel %vm7446_vm13, %v6017_v62, %v3735_v25  ;;  %v3737_v57 = vrot.slane %v3735_v25, 4  ;;  %v3742_v9 = vrot.slane %v3609_v8, 5  ;;  %v3745_v60 = vrot.slane %v3610_v39, 5  ;;  %v3106_v15 = vld [vmem:[#allocation2 + $0xac] sm:$0xf] }
 0x181   : > { %v8343_v41 = vpop.f32.mrb[32].mxu0  ;;  %v3389_v52 = vrot.slane %v3388_v54, 4  ;;  %v3398_v50 = vor.u32 %v3397_v48, %v3393_v59  ;;  %v8357_v61 = vadd.f32 %v8182_v38, %v8178_v51  ;;  %v6524_v10 = vadd.f32 %v8166_v24, %v8158_v49  ;;  %v3107_v25 = vld [vmem:[#allocation2 + $0xb0] sm:$0x1]  ;;  %v8898_v24 = vld [vmem:[#allocation8_spill] sm:$0xff] }
 0x182   : > { %v8349_v23 = vpop.f32.mrb[33].mxu0  ;;  %v3739_v22 = vsel %vm7446_vm13, %v3737_v57, %v3738_v2  ;;  %v3743_v53 = vsel %vm7446_vm13, %v6018_v28, %v3742_v9  ;;  %v3744_v31 = vrot.slane %v3742_v9, 4  ;;  %v8371_v51 = vadd.f32 %v8247_v11, %v8223_v42  ;;  %v3611_v11 = vld [vmem:[#allocation2 + $0x90] sm:$0xe]  ;;  %v3612_v28 = vld [vmem:[#allocation2 + $0x94] sm:$0xf] }
 0x183   : > { %v8353_v40 = vpop.f32.mrb[34].mxu0  ;;  %v8367_v36 = vpop.f32.mrb[36].mxu1  ;;  %v3394_v38 = vsel %vm7181_vm2, %v3389_v52, %v3393_v59  ;;  %v3399_v62 = vrot.slane %v3398_v50, 4  ;;  %v6033_v8 = vcombine.low %v3736_v46, %v3739_v22  ;;  %v8380_v49 = vadd.f32 %v6524_v10, %v8267_v29  ;;  %v7048_v46 = vld [vmem:[#allocation2 + $0x9c] sm:$0xff]  }
 0x184   : > { %v8359_v33 = vpop.f32.mrb[35].mxu0  ;;  %v8375_v2 = vpop.f32.mrb[37].mxu1  ;;  %v3746_v39 = vsel %vm7446_vm13, %v3744_v31, %v3745_v60  ;;  %v6527_v54 = vadd.f32 %v8180_v47, %v8898_v24  ;;  %v3406_v48 = vshrl.u32 %v3105_v13, 16  ;;  %v3409_v52 = vshll.u32 %v3105_v13, 16  ;;  %v3613_v60 = vld [vmem:[#allocation2 + $0x98] sm:$0x1] }
 0x185   : > { %8897 = vst [vmem:[#allocation18_spill] sm:$0xff] %v8380_v49  ;;  %v8384_v57 = vpop.f32.mrb[38].mxu1  ;;  %v3404_v59 = vsel %vm7181_vm2, %v3399_v62, %v3403_v18  ;;  %6892 = vmatprep.mubr.bf16.mxu0 %v6033_v8  ;;  %v6034_v9 = vcombine.low %v3743_v53, %v3746_v39  ;;  %v3415_v50 = vshll.u32 %v3106_v15, 16  ;;  %v3419_v10 = vshrl.u32 %v3106_v15, 16  ;;  %v3614_v24 = vld [vmem:[#allocation2 + $0x9c] sm:$0xe] }
 0x186   : > { %v8388_v22 = vpop.f32.mrb[39].mxu1  ;;  %v6004_v29 = vcombine.low %v3394_v38, %v3404_v59  ;;  %v8391_v31 = vadd.f32 %v6527_v54, %v8283_v0  ;;  %v3408_v47 = vrot.slane %v3406_v48, 4  ;;  %v3615_v49 = vld [vmem:[#allocation2 + $0xa0] sm:$0xf]  ;;  %v3411_v43 = vrot.slane %v3409_v52, 5 }
 0x187   : > { %6893 = vmatmul.mubr.bf16.gmra.mrb[128].mxu0 %v6034_v9  ;;  %v3417_v1 = vrot.slane %v3415_v50, 5  ;;  %v3425_v18 = vshll.u32 %v3107_v25, 16  ;;  %v6019_v62 = vrot.slane %v3611_v11, 9  ;;  %v3421_v53 = vrot.slane %v3419_v10, 4  ;;  %v3616_v38 = vld [vmem:[#allocation2 + $0xa4] sm:$0x1] }
 0x188   : > { %5199 = vmatprep.mubr.bf16.mxu1 %v6004_v29  ;;  %v3749_v13 = vrot.slane %v3612_v28, 5  ;;  %v3752_v8 = vrot.slane %v3613_v60, 5  ;;  %v8395_v39 = vadd.f32 %v8253_v17, %v8239_v58  ;;  %v8399_v0 = vadd.f32 %v8287_v34, %v8223_v42  ;;  %v7049_v60 = vld [vmem:[#allocation2 + $0xa8] sm:$0xff]  }
 0x189   : > { %5200 = vmatmul.mubr.bf16.gmra.mrb[124].mxu1 %v7048_v46  ;;  %v3412_v15 = vor.u32 %v3411_v43, %v3408_v47  ;;  %v6020_v54 = vrot.slane %v3614_v24, 9  ;;  %v3756_v48 = vrot.slane %v3615_v49, 5  ;;  %v3422_v59 = vor.u32 %v3421_v53, %v3417_v1  ;;  %v3108_v46 = vld [vmem:[#allocation2 + $0xb4] sm:$0xf]  ;;  %v3617_v53 = vld [vmem:[#allocation2 + $0xa8] sm:$0xe] }
 0x18a   : > { %v3427_v25 = vrot.slane %v3425_v18, 5  ;;  %v3750_v11 = vsel %vm7446_vm13, %v6019_v62, %v3749_v13  ;;  %v3751_v28 = vrot.slane %v3749_v13, 4  ;;  %v3759_v52 = vrot.slane %v3616_v38, 5  ;;  %v3109_v18 = vld [vmem:[#allocation2 + $0xb8] sm:$0xf] }
 0x18b   : > { %v3413_v9 = vrot.slane %v3412_v15, 4  ;;  %v3757_v58 = vsel %vm7446_vm13, %v6020_v54, %v3756_v48  ;;  %v3758_v17 = vrot.slane %v3756_v48, 4  ;;  %v3423_v50 = vrot.slane %v3422_v59, 4  ;;  %v3110_v62 = vld [vmem:[#allocation2 + $0xbc] sm:$0x1] }
 0x18c   : > { %v3753_v34 = vsel %vm7446_vm13, %v3751_v28, %v3752_v8  ;;  %v8409_v43 = vadd.f32 %v8275_v63, %v8259_v55  ;;  %v6530_v49 = vadd.f32 %v8204_v20, %v8192_v3  ;;  %v6533_v24 = vadd.f32 %v8218_v27, %v8214_v44  ;;  %v3619_v13 = vld [vmem:[#allocation2 + $0xb0] sm:$0x1]  ;;  %v3620_v8 = vld [vmem:[#allocation2 + $0xb4] sm:$0xe]  ;;  %v3621_v54 = vld [vmem:[#allocation2 + $0xb8] sm:$0xf] }
 0x18d   : > { %v3418_v29 = vsel %vm7181_vm2, %v3413_v9, %v3417_v1  ;;  %v6035_v47 = vcombine.low %v3750_v11, %v3753_v34  ;;  %v3760_v10 = vsel %vm7446_vm13, %v3758_v17, %v3759_v52  ;;  %v8421_v55 = vadd.f32 %v8309_v4, %v8223_v42  ;;  %v3618_v1 = vld [vmem:[#allocation2 + $0xac] sm:$0xf]  ;;  %v3622_v4 = vld [vmem:[#allocation2 + $0xbc] sm:$0x1] }
 0x18e   : > { %v3428_v3 = vsel %vm7181_vm2, %v3423_v50, %v3427_v25  ;;  %v6036_v20 = vcombine.low %v3757_v58, %v3760_v10  ;;  %v8426_v63 = vadd.f32 %v6530_v49, %v8297_v35  ;;  %v8429_v44 = vadd.f32 %v6533_v24, %v8323_v37 }
 0x18f   : > { %v6005_v38 = vcombine.low %v3418_v29, %v3428_v3  ;;  %6896 = vmatprep.mubr.bf16.mxu0 %v6035_v47  ;;  %v3430_v27 = vshrl.u32 %v3108_v46, 16  ;;  %v3433_v15 = vshll.u32 %v3108_v46, 16  ;;  %v3439_v25 = vshll.u32 %v3109_v18, 16 }
 0x190   : > { %8899 = vst [vmem:[#allocation8_spill] sm:$0xff] %v8426_v63  ;;  %8900 = vst [vmem:[#allocation19_spill] sm:$0xff] %v8429_v44  ;;  %6897 = vmatmul.mubr.bf16.gmra.mrb[132].mxu0 %v6036_v20  ;;  %v3443_v35 = vshrl.u32 %v3109_v18, 16  ;;  %v3449_v11 = vshll.u32 %v3110_v62, 16  ;;  %v6021_v28 = vrot.slane %v3617_v53, 9  ;;  %v3763_v52 = vrot.slane %v3618_v1, 5 }
 0x191   : > { %v8431_v48 = vpop.f32.mrb[36].mxu0  ;;  %v8433_v59 = vpop.f32.mrb[40].mxu1  ;;  %5207 = vmatprep.mubr.bf16.mxu1 %v6005_v38  ;;  %v3432_v37 = vrot.slane %v3430_v27, 4  ;;  %v3435_v17 = vrot.slane %v3433_v15, 5  ;;  %v3766_v50 = vrot.slane %v3619_v13, 5  ;;  %v8445_v46 = vadd.f32 %v8341_v5, %v8223_v42 }
 0x192   : > { %v8435_v9 = vpop.f32.mrb[37].mxu0  ;;  %v8437_v58 = vpop.f32.mrb[41].mxu1  ;;  %5208 = vmatmul.mubr.bf16.gmra.mrb[128].mxu1 %v7049_v60  ;;  %v3441_v29 = vrot.slane %v3439_v25, 5  ;;  %v3445_v47 = vrot.slane %v3443_v35, 4  ;;  %v8449_v10 = vadd.f32 %v8293_v30, %v8289_v19  ;;  %v3764_v53 = vsel %vm7446_vm13, %v6021_v28, %v3763_v52  ;;  %v8901_v30 = vld [vmem:[#allocation11_spill] sm:$0xff] }
 0x193   : > { %v8439_v34 = vpop.f32.mrb[38].mxu0  ;;  %v8441_v49 = vpop.f32.mrb[42].mxu1  ;;  %v3436_v62 = vor.u32 %v3435_v17, %v3432_v37  ;;  %v3765_v3 = vrot.slane %v3763_v52, 4  ;;  %v6022_v20 = vrot.slane %v3620_v8, 9  ;;  %v3451_v5 = vrot.slane %v3449_v11, 5  ;;  %v7050_v28 = vld [vmem:[#allocation2 + $0xb4] sm:$0xff]  }
 0x194   : > { %v8451_v24 = vpop.f32.mrb[39].mxu0  ;;  %v8453_v18 = vpop.f32.mrb[43].mxu1  ;;  %v3446_v1 = vor.u32 %v3445_v47, %v3441_v29  ;;  %v3770_v13 = vrot.slane %v3621_v54, 5  ;;  %v3773_v60 = vrot.slane %v3622_v4, 5  ;;  %v8461_v19 = vadd.f32 %v8311_v14, %v8299_v56  ;;  %v3111_v25 = vld [vmem:[#allocation2 + $0xc0] sm:$0xf] }
 0x195   : > { %v3437_v38 = vrot.slane %v3436_v62, 4  ;;  %v3767_v27 = vsel %vm7446_vm13, %v3765_v3, %v3766_v50  ;;  %v6536_v15 = vadd.f32 %v8901_v30, %v8233_v16  ;;  %v3112_v4 = vld [vmem:[#allocation2 + $0xc4] sm:$0xf]  ;;  %v8469_v11 = vadd.f32 %v8357_v61, %v8223_v42  ;;  %v8903_v16 = vld [vmem:[#allocation12_spill] sm:$0xff]  ;;  %v8904_v17 = vld [vmem:[#allocation14_spill] sm:$0xff] }
 0x196   : > { %v3447_v35 = vrot.slane %v3446_v1, 4  ;;  %v6037_v37 = vcombine.low %v3764_v53, %v3767_v27  ;;  %v3771_v8 = vsel %vm7446_vm13, %v6022_v20, %v3770_v13  ;;  %v3772_v54 = vrot.slane %v3770_v13, 4  ;;  %v3113_v50 = vld [vmem:[#allocation2 + $0xc8] sm:$0x1]  ;;  %v3623_v47 = vld [vmem:[#allocation2 + $0xc0] sm:$0xe] }
 0x197   : > { %v3442_v56 = vsel %vm7181_vm2, %v3437_v38, %v3441_v29  ;;  %v8474_v14 = vadd.f32 %v6536_v15, %v8347_v45  ;;  %v6539_v52 = vadd.f32 %v8904_v17, %v8903_v16  ;;  %v3454_v29 = vshrl.u32 %v3111_v25, 16  ;;  %v3624_v45 = vld [vmem:[#allocation2 + $0xc4] sm:$0xf]  ;;  %v3625_v16 = vld [vmem:[#allocation2 + $0xc8] sm:$0x1] }
 0x198   : > { %v3452_v3 = vsel %vm7181_vm2, %v3447_v35, %v3451_v5  ;;  %6900 = vmatprep.mubr.bf16.mxu0 %v6037_v37  ;;  %v3774_v61 = vsel %vm7446_vm13, %v3772_v54, %v3773_v60  ;;  %v3457_v20 = vshll.u32 %v3111_v25, 16  ;;  %v3463_v15 = vshll.u32 %v3112_v4, 16 }
 0x199   : > { %8902 = vst [vmem:[#allocation11_spill] sm:$0xff] %v8474_v14  ;;  %v8478_v62 = vpop.f32.mrb[40].mxu0  ;;  %v8480_v53 = vpop.f32.mrb[44].mxu1  ;;  %v6006_v38 = vcombine.low %v3442_v56, %v3452_v3  ;;  %v6038_v27 = vcombine.low %v3771_v8, %v3774_v61  ;;  %v8491_v30 = vadd.f32 %v6539_v52, %v8371_v51  ;;  %v3456_v35 = vrot.slane %v3454_v29, 4  ;;  %v3626_v3 = vld [vmem:[#allocation2 + $0xcc] sm:$0xe] }
 0x19a   : > { %v8486_v1 = vpop.f32.mrb[41].mxu0  ;;  %v8488_v13 = vpop.f32.mrb[45].mxu1  ;;  %v3459_v60 = vrot.slane %v3457_v20, 5  ;;  %v3467_v37 = vshrl.u32 %v3112_v4, 16  ;;  %v3473_v25 = vshll.u32 %v3113_v50, 16  ;;  %v3465_v8 = vrot.slane %v3463_v15, 5 }
 0x19b   : > { %8905 = vst [vmem:[#allocation12_spill] sm:$0xff] %v8491_v30  ;;  %v8493_v17 = vpop.f32.mrb[42].mxu0  ;;  %v8495_v5 = vpop.f32.mrb[46].mxu1  ;;  %5215 = vmatprep.mubr.bf16.mxu1 %v6006_v38  ;;  %6901 = vmatmul.mubr.bf16.gmra.mrb[136].mxu0 %v6038_v27  ;;  %v8503_v51 = vadd.f32 %v8349_v23, %v8343_v41  ;;  %v8507_v56 = vadd.f32 %v8359_v33, %v8353_v40  ;;  %v6023_v52 = vrot.slane %v3623_v47, 9  ;;  %v3777_v29 = vrot.slane %v3624_v45, 5 }
 0x19c   : > { %v8497_v54 = vpop.f32.mrb[43].mxu0  ;;  %v8499_v14 = vpop.f32.mrb[47].mxu1  ;;  %v8511_v4 = vadd.f32 %v8395_v39, %v8223_v42  ;;  %5216 = vmatmul.mubr.bf16.gmra.mrb[132].mxu1 %v7050_v28  ;;  %v3460_v50 = vor.u32 %v3459_v60, %v3456_v35  ;;  %v3469_v61 = vrot.slane %v3467_v37, 4  ;;  %v3627_v20 = vld [vmem:[#allocation2 + $0xd0] sm:$0xf]  ;;  %v8515_v41 = vadd.f32 %v8409_v43, %v8223_v42 }
 0x19d   : > { %v3628_v38 = vld [vmem:[#allocation2 + $0xd4] sm:$0x1]  ;;  %v3475_v23 = vrot.slane %v3473_v25, 5  ;;  %v3780_v27 = vrot.slane %v3625_v16, 5  ;;  %v6542_v40 = vadd.f32 %v8313_v7, %v8301_v12  ;;  %v3778_v39 = vsel %vm7446_vm13, %v6023_v52, %v3777_v29  ;;  %v3114_v15 = vld [vmem:[#allocation2 + $0xcc] sm:$0xf] }
 0x19e   : > { %v3461_v33 = vrot.slane %v3460_v50, 4  ;;  %v3470_v47 = vor.u32 %v3469_v61, %v3465_v8  ;;  %v3779_v28 = vrot.slane %v3777_v29, 4  ;;  %v6024_v35 = vrot.slane %v3626_v3, 9  ;;  %v3115_v43 = vld [vmem:[#allocation2 + $0xd0] sm:$0xf] }
 0x19f   : > { %v8522_v45 = vadd.f32 %v6542_v40, %v8399_v0  ;;  %v3784_v60 = vrot.slane %v3627_v20, 5  ;;  %v3787_v37 = vrot.slane %v3628_v38, 5  ;;  %v6545_v25 = vadd.f32 %v8329_v21, %v8319_v26  ;;  %v3116_v61 = vld [vmem:[#allocation2 + $0xd4] sm:$0x1]  ;;  %v7051_v40 = vld [vmem:[#allocation2 + $0xc0] sm:$0xff]  }
 0x1a0   : > { %v3466_v16 = vsel %vm7181_vm2, %v3461_v33, %v3465_v8  ;;  %v3471_v12 = vrot.slane %v3470_v47, 4  ;;  %v3781_v7 = vsel %vm7446_vm13, %v3779_v28, %v3780_v27  ;;  %v3478_v29 = vshrl.u32 %v3114_v15, 16 }
 0x1a1   : > { %8906 = vst [vmem:[#allocation14_spill] sm:$0xff] %v8522_v45  ;;  %v8524_v30 = vpop.f32.mrb[48].mxu1  ;;  %v6039_v0 = vcombine.low %v3778_v39, %v3781_v7  ;;  %v3785_v3 = vsel %vm7446_vm13, %v6024_v35, %v3784_v60  ;;  %v3786_v50 = vrot.slane %v3784_v60, 4  ;;  %v8541_v27 = vadd.f32 %v6545_v25, %v8421_v55 }
 0x1a2   : > { %v8532_v52 = vpop.f32.mrb[49].mxu1  ;;  %v3476_v8 = vsel %vm7181_vm2, %v3471_v12, %v3475_v23  ;;  %v3481_v26 = vshll.u32 %v3114_v15, 16  ;;  %v3487_v21 = vshll.u32 %v3115_v43, 16  ;;  %v3480_v35 = vrot.slane %v3478_v29, 4 }
 0x1a3   : > { %v6470_v20 = vpop.f32.mrb[44].mxu0  ;;  %v8536_v38 = vpop.f32.mrb[50].mxu1  ;;  %v6007_v39 = vcombine.low %v3466_v16, %v3476_v8  ;;  %6904 = vmatprep.mubr.bf16.mxu0 %v6039_v0  ;;  %v3788_v28 = vsel %vm7446_vm13, %v3786_v50, %v3787_v37  ;;  %v3491_v60 = vshrl.u32 %v3115_v43, 16  ;;  %v3497_v23 = vshll.u32 %v3116_v61, 16 }
 0x1a4   : > { %v6471_v33 = vpop.f32.mrb[45].mxu0  ;;  %v6568_v47 = vpop.f32.mrb[51].mxu1  ;;  %v6040_v45 = vcombine.low %v3785_v3, %v3788_v28  ;;  %v3483_v44 = vrot.slane %v3481_v26, 5  ;;  %v3489_v63 = vrot.slane %v3487_v21, 5  ;;  %v6460_v15 = vadd.f32 %v8435_v9, %v8431_v48  ;;  %v8907_v26 = vld [vmem:[#allocation16_spill] sm:$0xff] }
 0x1a5   : > { %v6473_v7 = vpop.f32.mrb[46].mxu0  ;;  %5223 = vmatprep.mubr.bf16.mxu1 %v6007_v39  ;;  %v3493_v55 = vrot.slane %v3491_v60, 4  ;;  %v6463_v16 = vadd.f32 %v8451_v24, %v8439_v34  ;;  %v6548_v6 = vadd.f32 %v8375_v2, %v8367_v36  ;;  %v6551_v43 = vadd.f32 %v8388_v22, %v8384_v57 }
 0x1a6   : > { %v6474_v12 = vpop.f32.mrb[47].mxu0  ;;  %5224 = vmatmul.mubr.bf16.gmra.mrb[136].mxu1 %v7051_v40  ;;  %6905 = vmatmul.mubr.bf16.gmra.mrb[140].mxu0 %v6040_v45  ;;  %v3484_v37 = vor.u32 %v3483_v44, %v3480_v35  ;;  %v6466_v25 = vadd.f32 %v8486_v1, %v8478_v62  ;;  %v4687_v0 = vadd.f32 %v8449_v10, %v8223_v42  ;;  %v3499_v48 = vrot.slane %v3497_v23, 5  ;;  %v8908_v35 = vld [vmem:[#allocation17_spill] sm:$0xff] }
 0x1a7   : > { %v3494_v3 = vor.u32 %v3493_v55, %v3489_v63  ;;  %v8558_v9 = vadd.f32 %v6548_v6, %v8445_v46  ;;  %v4690_v36 = vadd.f32 %v8461_v19, %v8223_v42  ;;  %v8563_v44 = vadd.f32 %v6551_v43, %v8469_v11 }
 0x1a8   : > { %v3485_v2 = vrot.slane %v3484_v37, 4  ;;  %v6469_v57 = vadd.f32 %v8497_v54, %v8493_v17  ;;  %v6554_v10 = vadd.f32 %v8437_v58, %v8433_v59  ;;  %v6557_v46 = vadd.f32 %v8453_v18, %v8441_v49  ;;  %v7052_v49 = vld [vmem:[#allocation2 + $0xcc] sm:$0xff]  }
 0x1a9   : > { %v6570_v34 = vpop.f32.mrb[52].mxu1  ;;  %v3495_v24 = vrot.slane %v3494_v3, 4  ;;  %v6472_v62 = vadd.f32 %v6471_v33, %v6470_v20  ;;  %v4695_v19 = vadd.f32 %v8503_v51, %v8223_v42  ;;  %v6475_v50 = vadd.f32 %v6474_v12, %v6473_v7 }
 0x1aa   : > { %v6571_v22 = vpop.f32.mrb[53].mxu1  ;;  %v3490_v11 = vsel %vm7181_vm2, %v3485_v2, %v3489_v63  ;;  %v6560_v17 = vadd.f32 %v8488_v13, %v8480_v53  ;;  %v4698_v59 = vadd.f32 %v8507_v56, %v8223_v42  ;;  %v8582_v18 = vadd.f32 %v6554_v10, %v8511_v4 }
 0x1ab   : > { %v6628_v1 = vpop.f32.mrb[48].mxu0  ;;  %v6573_v45 = vpop.f32.mrb[54].mxu1  ;;  %v3500_v58 = vsel %vm7181_vm2, %v3495_v24, %v3499_v48  ;;  %v8585_v51 = vadd.f32 %v6557_v46, %v8515_v41  ;;  %v4703_v20 = vadd.f32 %v6460_v15, %v8223_v42  ;;  %v6563_v56 = vadd.f32 %v8499_v14, %v8495_v5 }
 0x1ac   : > { %v6629_v54 = vpop.f32.mrb[49].mxu0  ;;  %v6574_v61 = vpop.f32.mrb[55].mxu1  ;;  %v6008_v29 = vcombine.low %v3490_v11, %v3500_v58  ;;  %v8588_v53 = vadd.f32 %v6560_v17, %v4687_v0  ;;  %v6566_v40 = vadd.f32 %v8532_v52, %v8524_v30  ;;  %v6569_v4 = vadd.f32 %v6568_v47, %v8536_v38 }
 0x1ad   : > { %v6631_v63 = vpop.f32.mrb[50].mxu0  ;;  %v6630_v13 = vadd.f32 %v6629_v54, %v6628_v1  ;;  %v4706_v41 = vadd.f32 %v6463_v16, %v8223_v42  ;;  %v6572_v33 = vadd.f32 %v6571_v22, %v6570_v34  ;;  %v6575_v39 = vadd.f32 %v6574_v61, %v6573_v45  ;;  %v8909_v34 = vld [vmem:[#allocation18_spill] sm:$0xff] }
 0x1ae   : > { %v6632_v8 = vpop.f32.mrb[51].mxu0  ;;  %5231 = vmatprep.mubr.bf16.mxu1 %v6008_v29  ;;  %v8599_v28 = vadd.f32 %v6563_v56, %v4690_v36  ;;  %v8604_v14 = vadd.f32 %v6566_v40, %v4695_v19  ;;  %v8606_v5 = vadd.f32 %v6569_v4, %v4698_v59  ;;  %v4711_v23 = vadd.f32 %v6466_v25, %v8223_v42  ;;  %v8912_v40 = vld [vmem:[#allocation4_spill] sm:$0xff] }
 0x1af   : > { %v6633_v32 = vadd.f32 %v6632_v8, %v6631_v63  ;;  %v8597_v21 = vadd.f32 %v6630_v13, %v8907_v26  ;;  %5232 = vmatmul.mubr.bf16.gmra.mrb[140].mxu1 %v7052_v49  ;;  %v8608_v30 = vadd.f32 %v6572_v33, %v4703_v20  ;;  %v8610_v52 = vadd.f32 %v6575_v39, %v4706_v41  ;;  %v8910_v63 = vld [vmem:[#allocation8_spill] sm:$0xff]  ;;  %v8911_v13 = vld [vmem:[#allocation19_spill] sm:$0xff] }
 0x1b0   : > { %v4714_v43 = vadd.f32 %v6469_v57, %v8223_v42  ;;  %v4719_v1 = vadd.f32 %v6472_v62, %v8223_v42  ;;  %v4722_v61 = vadd.f32 %v6475_v50, %v8223_v42  ;;  %v4727_v4 = vadd.f32 %v8912_v40, %v8223_v42 }
 0x1b1   : > { %v8602_v60 = vadd.f32 %v6633_v32, %v8908_v35 }
 0x1b2   : > { %v6576_v38 = vpop.f32.mrb[56].mxu1 }
 0x1b3   : > { %v6634_v47 = vpop.f32.mrb[52].mxu0  ;;  %v6577_v7 = vpop.f32.mrb[57].mxu1 }
 0x1b4   : > { %v6635_v12 = vpop.f32.mrb[53].mxu0  ;;  %v6578_v55 = vadd.f32 %v6577_v7, %v6576_v38  ;;  %v6579_v15 = vpop.f32.mrb[58].mxu1  ;;  %v8913_v38 = vld [vmem:[#allocation5_spill] sm:$0xff] }
 0x1b5   : > { %v6636_v16 = vadd.f32 %v6635_v12, %v6634_v47  ;;  %v6637_v6 = vpop.f32.mrb[54].mxu0  ;;  %v6580_v37 = vpop.f32.mrb[59].mxu1  ;;  %v4730_v47 = vadd.f32 %v8913_v38, %v8223_v42 }
 0x1b6   : > { %v6638_v0 = vpop.f32.mrb[55].mxu0  ;;  %v8614_v3 = vadd.f32 %v6578_v55, %v4711_v23  ;;  %v6581_v48 = vadd.f32 %v6580_v37, %v6579_v15  ;;  %v8914_v55 = vld [vmem:[#allocation11_spill] sm:$0xff]  ;;  %v8915_v37 = vld [vmem:[#allocation12_spill] sm:$0xff] }
 0x1b7   : > { %v8617_v36 = vadd.f32 %v6636_v16, %v8909_v34  ;;  %v6639_v2 = vadd.f32 %v6638_v0, %v6637_v6 }
 0x1b8   : > { %v8619_v22 = vadd.f32 %v6581_v48, %v4714_v43 }
 0x1b9   : > { %v8622_v25 = vadd.f32 %v6639_v2, %v8391_v31  ;;  %v8916_v2 = vld [vmem:[#allocation6_spill] sm:$0xff] }
 0x1ba   : > { %v6582_v24 = vpop.f32.mrb[60].mxu1 }
 0x1bb   : > { %v6640_v10 = vpop.f32.mrb[56].mxu0  ;;  %v6583_v46 = vpop.f32.mrb[61].mxu1 }
 0x1bc   : > { %v6641_v45 = vpop.f32.mrb[57].mxu0  ;;  %v6584_v57 = vadd.f32 %v6583_v46, %v6582_v24  ;;  %v6585_v19 = vpop.f32.mrb[62].mxu1  ;;  %v4735_v24 = vadd.f32 %v8916_v2, %v8223_v42 }
 0x1bd   : > { %v6642_v11 = vadd.f32 %v6641_v45, %v6640_v10  ;;  %v6643_v17 = vpop.f32.mrb[58].mxu0  ;;  %v6586_v54 = vpop.f32.mrb[63].mxu1 }
 0x1be   : > { %v6644_v59 = vpop.f32.mrb[59].mxu0  ;;  %v8626_v58 = vadd.f32 %v6584_v57, %v4719_v1  ;;  %v6587_v49 = vadd.f32 %v6586_v54, %v6585_v19 }
 0x1bf   : > { %v8629_v31 = vadd.f32 %v6642_v11, %v8910_v63  ;;  %v6645_v29 = vadd.f32 %v6644_v59, %v6643_v17  ;;  %v8917_v11 = vld [vmem:[#allocation7_spill] sm:$0xff] }
 0x1c0   : > { %v8631_v20 = vadd.f32 %v6587_v49, %v4722_v61  ;;  %v4738_v17 = vadd.f32 %v8917_v11, %v8223_v42  ;;  %v8918_v49 = vld [vmem:[#allocation14_spill] sm:$0xff]  ;;  %v7057_v42 = vld [vmem:[%s8869_s4] ss:$0 sm:$0xff] }
 0x1c1   : > { %v8634_v62 = vadd.f32 %v6645_v29, %v8911_v13 }
 0x1c2   : > { %v6588_v8 = vpop.f32.mrb[64].mxu1 }
 0x1c3   : > { %v6646_v56 = vpop.f32.mrb[60].mxu0  ;;  %v6589_v32 = vpop.f32.mrb[65].mxu1 }
 0x1c4   : > { %v6647_v50 = vpop.f32.mrb[61].mxu0  ;;  %v6590_v41 = vadd.f32 %v6589_v32, %v6588_v8  ;;  %v6591_v26 = vpop.f32.mrb[66].mxu1 }
 0x1c5   : > { %v6648_v33 = vadd.f32 %v6647_v50, %v6646_v56  ;;  %v6649_v39 = vpop.f32.mrb[62].mxu0  ;;  %v6592_v35 = vpop.f32.mrb[67].mxu1 }
 0x1c6   : > { %v6650_v7 = vpop.f32.mrb[63].mxu0  ;;  %v8640_v23 = vadd.f32 %v6590_v41, %v4727_v4  ;;  %v6593_v12 = vadd.f32 %v6592_v35, %v6591_v26  ;;  %v8919_v4 = vld [vmem:[#allocation9_spill] sm:$0xff] }
 0x1c7   : > { %v8643_v15 = vadd.f32 %v6648_v33, %v8914_v55  ;;  %v6651_v16 = vadd.f32 %v6650_v7, %v6649_v39  ;;  %v4743_v50 = vadd.f32 %v7057_v42, %v8919_v4 }
 0x1c8   : > { %v8645_v6 = vadd.f32 %v6593_v12, %v4730_v47  ;;  %v8920_v47 = vld [vmem:[#allocation10_spill] sm:$0xff] }
 0x1c9   : > { %v8648_v43 = vadd.f32 %v6651_v16, %v8915_v37  ;;  %v4746_v7 = vadd.f32 %v7057_v42, %v8920_v47 }
 0x1ca   : > { %v6594_v0 = vpop.f32.mrb[68].mxu1 }
 0x1cb   : > { %v6652_v48 = vpop.f32.mrb[64].mxu0  ;;  %v6595_v34 = vpop.f32.mrb[69].mxu1 }
 0x1cc   : > { %v6653_v10 = vpop.f32.mrb[65].mxu0  ;;  %v6596_v46 = vadd.f32 %v6595_v34, %v6594_v0  ;;  %v6597_v1 = vpop.f32.mrb[70].mxu1 }
 0x1cd   : > { %v6654_v45 = vadd.f32 %v6653_v10, %v6652_v48  ;;  %v6655_v57 = vpop.f32.mrb[66].mxu0  ;;  %v6598_v19 = vpop.f32.mrb[71].mxu1 }
 0x1ce   : > { %v6656_v54 = vpop.f32.mrb[67].mxu0  ;;  %v8654_v61 = vadd.f32 %v6596_v46, %v4735_v24  ;;  %v6599_v59 = vadd.f32 %v6598_v19, %v6597_v1 }
 0x1cf   : > { %v8657_v63 = vadd.f32 %v6654_v45, %v8918_v49  ;;  %v6657_v29 = vadd.f32 %v6656_v54, %v6655_v57 }
 0x1d0   : > { %v8659_v13 = vadd.f32 %v6599_v59, %v4738_v17 }
 0x1d1   : > { %v8662_v8 = vadd.f32 %v6657_v29, %v8541_v27 }
 0x1d2   : > { %v6600_v56 = vpop.f32.mrb[72].mxu1 }
 0x1d3   : > { %v6658_v32 = vpop.f32.mrb[68].mxu0  ;;  %v6601_v40 = vpop.f32.mrb[73].mxu1 }
 0x1d4   : > { %v6659_v41 = vpop.f32.mrb[69].mxu0  ;;  %v6602_v26 = vadd.f32 %v6601_v40, %v6600_v56  ;;  %v6603_v33 = vpop.f32.mrb[74].mxu1 }
 0x1d5   : > { %v6660_v39 = vadd.f32 %v6659_v41, %v6658_v32  ;;  %v6661_v35 = vpop.f32.mrb[70].mxu0  ;;  %v6604_v38 = vpop.f32.mrb[75].mxu1 }
 0x1d6   : > { %v6662_v12 = vpop.f32.mrb[71].mxu0  ;;  %v8669_v27 = vadd.f32 %v6602_v26, %v4743_v50  ;;  %v6605_v55 = vadd.f32 %v6604_v38, %v6603_v33  ;;  %v8922_v26 = vld [vmem:[#allocation15_spill] sm:$0xff] }
 0x1d7   : > { %v8672_v16 = vadd.f32 %v6660_v39, %v8558_v9  ;;  %v6663_v37 = vadd.f32 %v6662_v12, %v6661_v35  ;;  %v4754_v33 = vadd.f32 %v7057_v42, %v8922_v26 }
 0x1d8   : > { %v8674_v0 = vadd.f32 %v6605_v55, %v4746_v7 }
 0x1d9   : > { %v8677_v48 = vadd.f32 %v6663_v37, %v8563_v44 }
 0x1db   : > { %v6664_v34 = vpop.f32.mrb[72].mxu0 }
 0x1dc   : > { %v6665_v2 = vpop.f32.mrb[73].mxu0 }
 0x1dd   : > { %v6666_v24 = vadd.f32 %v6665_v2, %v6664_v34  ;;  %v6667_v10 = vpop.f32.mrb[74].mxu0 }
 0x1de   : > { %v6668_v46 = vpop.f32.mrb[75].mxu0 }
 0x1df   : > { %v8680_v1 = vadd.f32 %v6666_v24, %v8582_v18  ;;  %v6669_v45 = vadd.f32 %v6668_v46, %v6667_v10  ;;  %v8921_v18 = vld [vmem:[#allocation13_spill] sm:$0xff] }
 0x1e0   : > { %v4751_v32 = vadd.f32 %v7057_v42, %v8921_v18 }
 0x1e1   : > { %v8683_v57 = vadd.f32 %v6669_v45, %v8585_v51 }
 0x1e3   : > { %v6670_v9 = vpop.f32.mrb[76].mxu0 }
 0x1e4   : > { %v6671_v19 = vpop.f32.mrb[77].mxu0 }
 0x1e5   : > { %v6672_v11 = vadd.f32 %v6671_v19, %v6670_v9  ;;  %v6673_v17 = vpop.f32.mrb[78].mxu0 }
 0x1e6   : > { %v6674_v54 = vpop.f32.mrb[79].mxu0 }
 0x1e7   : > { %v8686_v44 = vadd.f32 %v6672_v11, %v8588_v53  ;;  %v6675_v59 = vadd.f32 %v6674_v54, %v6673_v17 }
 0x1e8   : > { %v6606_v29 = vpop.f32.mrb[76].mxu1 }
 0x1e9   : > { %v8689_v49 = vadd.f32 %v6675_v59, %v8599_v28  ;;  %v6607_v56 = vpop.f32.mrb[77].mxu1 }
 0x1ea   : > { %v6608_v40 = vadd.f32 %v6607_v56, %v6606_v29  ;;  %v6609_v51 = vpop.f32.mrb[78].mxu1 }
 0x1eb   : > { %v6676_v4 = vpop.f32.mrb[80].mxu0  ;;  %v6610_v41 = vpop.f32.mrb[79].mxu1 }
 0x1ec   : > { %v6677_v50 = vpop.f32.mrb[81].mxu0  ;;  %v8693_v39 = vadd.f32 %v6608_v40, %v4751_v32  ;;  %v6611_v53 = vadd.f32 %v6610_v41, %v6609_v51 }
 0x1ed   : > { %v6678_v35 = vadd.f32 %v6677_v50, %v6676_v4  ;;  %v6679_v38 = vpop.f32.mrb[82].mxu0 }
 0x1ee   : > { %v6680_v47 = vpop.f32.mrb[83].mxu0  ;;  %v8698_v7 = vadd.f32 %v6611_v53, %v4754_v33 }
 0x1ef   : > { %v8696_v28 = vadd.f32 %v6678_v35, %v8604_v14  ;;  %v6681_v12 = vadd.f32 %v6680_v47, %v6679_v38 }
 0x1f0   : > { %v6740_v37 = vpop.f32.mrb[80].mxu1 }
 0x1f1   : > { %v8701_v55 = vadd.f32 %v6681_v12, %v8606_v5  ;;  %v6741_v34 = vpop.f32.mrb[81].mxu1 }
 0x1f2   : > { %v6742_v24 = vadd.f32 %v6741_v34, %v6740_v37  ;;  %v6743_v42 = vpop.f32.mrb[82].mxu1 }
 0x1f3   : > { %v6682_v2 = vpop.f32.mrb[84].mxu0  ;;  %v6744_v46 = vpop.f32.mrb[83].mxu1 }
 0x1f4   : > { %v6683_v10 = vpop.f32.mrb[85].mxu0  ;;  %v6745_v19 = vadd.f32 %v6744_v46, %v6743_v42  ;;  %v8704_v11 = vadd.f32 %v6742_v24, %v8597_v21 }
 0x1f5   : > { %v6684_v45 = vadd.f32 %v6683_v10, %v6682_v2  ;;  %v6685_v9 = vpop.f32.mrb[86].mxu0 }
 0x1f6   : > { %v6686_v14 = vpop.f32.mrb[87].mxu0  ;;  %v8710_v5 = vadd.f32 %v6745_v19, %v8602_v60 }
 0x1f7   : > { %v8707_v17 = vadd.f32 %v6684_v45, %v8608_v30  ;;  %v6687_v54 = vadd.f32 %v6686_v14, %v6685_v9 }
 0x1f8   : > { %v6746_v29 = vpop.f32.mrb[84].mxu1 }
 0x1f9   : > { %v8713_v59 = vadd.f32 %v6687_v54, %v8610_v52  ;;  %v6747_v56 = vpop.f32.mrb[85].mxu1 }
 0x1fa   : > { %v6748_v32 = vadd.f32 %v6747_v56, %v6746_v29  ;;  %v6749_v40 = vpop.f32.mrb[86].mxu1 }
 0x1fb   : > { %v6688_v18 = vpop.f32.mrb[88].mxu0  ;;  %v6750_v51 = vpop.f32.mrb[87].mxu1 }
 0x1fc   : > { %v6689_v4 = vpop.f32.mrb[89].mxu0  ;;  %v6751_v41 = vadd.f32 %v6750_v51, %v6749_v40  ;;  %v8716_v30 = vadd.f32 %v6748_v32, %v8617_v36 }
 0x1fd   : > { %v6690_v21 = vadd.f32 %v6689_v4, %v6688_v18  ;;  %v6691_v50 = vpop.f32.mrb[90].mxu0 }
 0x1fe   : > { %v6692_v26 = vpop.f32.mrb[91].mxu0  ;;  %v8722_v52 = vadd.f32 %v6751_v41, %v8622_v25 }
 0x1ff   : > { %v8719_v60 = vadd.f32 %v6690_v21, %v8614_v3  ;;  %v6693_v33 = vadd.f32 %v6692_v26, %v6691_v50 }
 0x200   : > { %v6752_v53 = vpop.f32.mrb[88].mxu1 }
 0x201   : > { %v8725_v35 = vadd.f32 %v6693_v33, %v8619_v22  ;;  %v6753_v38 = vpop.f32.mrb[89].mxu1 }
 0x202   : > { %v6754_v47 = vadd.f32 %v6753_v38, %v6752_v53  ;;  %v6755_v12 = vpop.f32.mrb[90].mxu1 }
 0x203   : > { %v6756_v37 = vpop.f32.mrb[91].mxu1 }
 0x204   : > { %v6757_v2 = vadd.f32 %v6756_v37, %v6755_v12  ;;  %v8728_v36 = vadd.f32 %v6754_v47, %v8629_v31 }
 0x205   : > { %v6694_v34 = vpop.f32.mrb[92].mxu0 }
 0x206   : > { %v6695_v24 = vpop.f32.mrb[93].mxu0  ;;  %v8731_v10 = vadd.f32 %v6757_v2, %v8634_v62 }
 0x207   : > { %v6696_v3 = vadd.f32 %v6695_v24, %v6694_v34  ;;  %v6697_v42 = vpop.f32.mrb[94].mxu0 }
 0x208   : > { %v6698_v25 = vpop.f32.mrb[95].mxu0 }
 0x209   : > { %v8734_v22 = vadd.f32 %v6696_v3, %v8626_v58  ;;  %v6699_v46 = vadd.f32 %v6698_v25, %v6697_v42 }
 0x20a   : > { %v6758_v45 = vpop.f32.mrb[92].mxu1 }
 0x20b   : > { %v8737_v9 = vadd.f32 %v6699_v46, %v8631_v20  ;;  %v6759_v19 = vpop.f32.mrb[93].mxu1 }
 0x20c   : > { %v6760_v14 = vadd.f32 %v6759_v19, %v6758_v45  ;;  %v6761_v54 = vpop.f32.mrb[94].mxu1 }
 0x20d   : > { %v6762_v31 = vpop.f32.mrb[95].mxu1 }
 0x20e   : > { %v6763_v29 = vadd.f32 %v6762_v31, %v6761_v54  ;;  %v8740_v56 = vadd.f32 %v6760_v14, %v8643_v15 }
 0x210   : > { %v6700_v18 = vpop.f32.mrb[96].mxu0  ;;  %v8743_v62 = vadd.f32 %v6763_v29, %v8648_v43 }
 0x211   : > { %v6701_v32 = vpop.f32.mrb[97].mxu0 }
 0x212   : > { %v6702_v58 = vadd.f32 %v6701_v32, %v6700_v18  ;;  %v6703_v40 = vpop.f32.mrb[98].mxu0 }
 0x213   : > { %v6704_v4 = vpop.f32.mrb[99].mxu0 }
 0x214   : > { %v8746_v51 = vadd.f32 %v6702_v58, %v8640_v23  ;;  %v6705_v20 = vadd.f32 %v6704_v4, %v6703_v40  ;;  %v6764_v21 = vpop.f32.mrb[96].mxu1 }
 0x215   : > { %v6765_v50 = vpop.f32.mrb[97].mxu1 }
 0x216   : > { %v8749_v41 = vadd.f32 %v6705_v20, %v8645_v6  ;;  %v6766_v26 = vadd.f32 %v6765_v50, %v6764_v21  ;;  %v6767_v15 = vpop.f32.mrb[98].mxu1 }
 0x217   : > { %v6768_v33 = vpop.f32.mrb[99].mxu1 }
 0x218   : > { %v6769_v53 = vadd.f32 %v6768_v33, %v6767_v15  ;;  %v8752_v43 = vadd.f32 %v6766_v26, %v8657_v63 }
 0x21a   : > { %v8755_v38 = vadd.f32 %v6769_v53, %v8662_v8 }
 0x21b   : > { %v6706_v47 = vpop.f32.mrb[100].mxu0 }
 0x21c   : > { %v6707_v12 = vpop.f32.mrb[101].mxu0 }
 0x21d   : > { %v6708_v23 = vadd.f32 %v6707_v12, %v6706_v47  ;;  %v6709_v37 = vpop.f32.mrb[102].mxu0 }
 0x21e   : > { %v6710_v34 = vpop.f32.mrb[103].mxu0  ;;  %v6770_v2 = vpop.f32.mrb[100].mxu1 }
 0x21f   : > { %v8758_v24 = vadd.f32 %v6708_v23, %v8654_v61  ;;  %v6711_v6 = vadd.f32 %v6710_v34, %v6709_v37  ;;  %v6771_v3 = vpop.f32.mrb[101].mxu1 }
 0x220   : > { %v6772_v42 = vadd.f32 %v6771_v3, %v6770_v2  ;;  %v6773_v25 = vpop.f32.mrb[102].mxu1 }
 0x221   : > { %v8761_v46 = vadd.f32 %v6711_v6, %v8659_v13  ;;  %v6774_v63 = vpop.f32.mrb[103].mxu1 }
 0x222   : > { %v6775_v45 = vadd.f32 %v6774_v63, %v6773_v25  ;;  %v8764_v8 = vadd.f32 %v6772_v42, %v8672_v16 }
 0x223   : > { %v6712_v19 = vpop.f32.mrb[104].mxu0 }
 0x224   : > { %v6713_v14 = vpop.f32.mrb[105].mxu0  ;;  %v8767_v54 = vadd.f32 %v6775_v45, %v8677_v48 }
 0x225   : > { %v6714_v31 = vadd.f32 %v6713_v14, %v6712_v19  ;;  %v6715_v61 = vpop.f32.mrb[106].mxu0 }
 0x226   : > { %v6716_v29 = vpop.f32.mrb[107].mxu0 }
 0x227   : > { %v8770_v18 = vadd.f32 %v6714_v31, %v8669_v27  ;;  %v6717_v32 = vadd.f32 %v6716_v29, %v6715_v61 }
 0x228   : > { %v6776_v58 = vpop.f32.mrb[104].mxu1 }
 0x229   : > { %v8773_v13 = vadd.f32 %v6717_v32, %v8674_v0  ;;  %v6777_v40 = vpop.f32.mrb[105].mxu1 }
 0x22a   : > { %v6778_v4 = vadd.f32 %v6777_v40, %v6776_v58  ;;  %v6779_v16 = vpop.f32.mrb[106].mxu1 }
 0x22b   : > { %v6780_v20 = vpop.f32.mrb[107].mxu1 }
 0x22c   : > { %v6781_v21 = vadd.f32 %v6780_v20, %v6779_v16  ;;  %v8776_v50 = vadd.f32 %v6778_v4, %v8680_v1 }
 0x22e   : > { %v8779_v48 = vadd.f32 %v6781_v21, %v8683_v57 }
 0x230   : > { %v6718_v26 = vpop.f32.mrb[108].mxu0 }
 0x231   : > { %v6719_v15 = vpop.f32.mrb[109].mxu0 }
 0x232   : > { %v6720_v27 = vadd.f32 %v6719_v15, %v6718_v26  ;;  %v6721_v33 = vpop.f32.mrb[110].mxu0 }
 0x233   : > { %v6722_v53 = vpop.f32.mrb[111].mxu0 }
 0x234   : > { %v8782_v47 = vadd.f32 %v6720_v27, %v8693_v39  ;;  %v6723_v0 = vadd.f32 %v6722_v53, %v6721_v33  ;;  %v6782_v23 = vpop.f32.mrb[108].mxu1 }
 0x235   : > { %v6783_v37 = vpop.f32.mrb[109].mxu1 }
 0x236   : > { %v8785_v12 = vadd.f32 %v6723_v0, %v8698_v7  ;;  %v6784_v34 = vadd.f32 %v6783_v37, %v6782_v23  ;;  %v6785_v2 = vpop.f32.mrb[110].mxu1 }
 0x237   : > { %v6786_v3 = vpop.f32.mrb[111].mxu1 }
 0x238   : > { %v6878_v1 = vpop.f32.mrb[112].mxu0  ;;  %v6787_v25 = vadd.f32 %v6786_v3, %v6785_v2  ;;  %v8790_v39 = vadd.f32 %v6784_v34, %v8686_v44 }
 0x239   : > { %v5283_v57 = vadd.f32 %v6878_v1, %v8716_v30  ;;  %v5274_v6 = vpop.f32.mrb[113].mxu0 }
 0x23a   : > { %v5275_v42 = vadd.f32 %v5274_v6, %v8704_v11  ;;  %v6879_v63 = vpop.f32.mrb[114].mxu0  ;;  %v8795_v31 = vadd.f32 %v6787_v25, %v8689_v49 }
 0x23b   : > { %v5286_v7 = vadd.f32 %v6879_v63, %v8722_v52  ;;  %v5277_v45 = vpop.f32.mrb[115].mxu0  ;;  %v5403_v61 = vmax.f32 %v5283_v57, 0.0 }
 0x23c   : > { %v5401_v19 = vmax.f32 %v5275_v42, 0.0  ;;  %v5278_v14 = vadd.f32 %v5277_v45, %v8710_v5 }
 0x23d   : > { %v5404_v30 = vmax.f32 %v5286_v7, 0.0  ;;  %v5633_v16 = vmul.f32 %v5403_v61, %v5403_v61 }
 0x23e   : > { %v5402_v44 = vmax.f32 %v5278_v14, 0.0  ;;  %v5631_v52 = vmul.f32 %v5401_v19, %v5401_v19 }
 0x23f   : > { %v6286_v11 = vpack.c.bf16 %v5404_v30, %v5403_v61  ;;  %v6788_v49 = vpop.f32.mrb[112].mxu1  ;;  %v5634_v33 = vmul.f32 %v5404_v30, %v5404_v30 }
 0x240   : > { %v6281_v29 = vpack.c.bf16 %v5402_v44, %v5401_v19  ;;  %v5593_v32 = vadd.f32 %v5402_v44, %v5401_v19  ;;  %v5632_v58 = vmul.f32 %v5402_v44, %v5402_v44  ;;  %v6882_v5 = vpop.f32.mrb[116].mxu0  ;;  %v6789_v26 = vpop.f32.mrb[113].mxu1 }
 0x241   : > { %6373 = vst [vmem:[%s8802_s13 + $0x8] sm:$0xff] %v6286_v11   ;;  %v5299_v40 = vadd.f32 %v6882_v5, %v8740_v56  ;;  %v5290_v4 = vpop.f32.mrb[117].mxu0  ;;  %v6790_v53 = vadd.f32 %v6789_v26, %v6788_v49  ;;  %v6791_v0 = vpop.f32.mrb[114].mxu1 }
 0x242   : > { %6282 = vst [vmem:[%s8802_s13] sm:$0xff] %v6281_v29   ;;  %v5594_v20 = vadd.f32 %v5593_v32, %v5403_v61  ;;  %v5663_v21 = vadd.f32 %v5632_v58, %v5631_v52  ;;  %v5291_v15 = vadd.f32 %v5290_v4, %v8728_v36  ;;  %v6883_v27 = vpop.f32.mrb[118].mxu0  ;;  %v6792_v57 = vpop.f32.mrb[115].mxu1 }
 0x243   : > { %v5302_v23 = vadd.f32 %v6883_v27, %v8743_v62  ;;  %v5293_v37 = vpop.f32.mrb[119].mxu0  ;;  %v5407_v6 = vmax.f32 %v5299_v40, 0.0  ;;  %v6793_v3 = vadd.f32 %v6792_v57, %v6791_v0  ;;  %v8811_v36 = vadd.f32 %v6790_v53, %v8696_v28 }
 0x244   : > { %v5664_v34 = vadd.f32 %v5663_v21, %v5633_v16  ;;  %v5405_v1 = vmax.f32 %v5291_v15, 0.0  ;;  %v5595_v2 = vadd.f32 %v5594_v20, %v5404_v30  ;;  %v5294_v56 = vadd.f32 %v5293_v37, %v8731_v10 }
 0x245   : > { %v5408_v42 = vmax.f32 %v5302_v23, 0.0  ;;  %v8814_v19 = vadd.f32 %v6793_v3, %v8701_v55  ;;  %v5637_v10 = vmul.f32 %v5407_v6, %v5407_v6 }
 0x246   : > { %v5596_v25 = vadd.f32 %v5595_v2, %v5405_v1  ;;  %v5635_v63 = vmul.f32 %v5405_v1, %v5405_v1  ;;  %v5665_v7 = vadd.f32 %v5664_v34, %v5634_v33  ;;  %v5406_v45 = vmax.f32 %v5294_v56, 0.0 }
 0x247   : > { %v6296_v62 = vpack.c.bf16 %v5408_v42, %v5407_v6  ;;  %v5638_v5 = vmul.f32 %v5408_v42, %v5408_v42 }
 0x248   : > { %v5666_v14 = vadd.f32 %v5665_v7, %v5635_v63  ;;  %v6291_v61 = vpack.c.bf16 %v5406_v45, %v5405_v1  ;;  %v5597_v30 = vadd.f32 %v5596_v25, %v5406_v45  ;;  %v5636_v44 = vmul.f32 %v5406_v45, %v5406_v45  ;;  %v6886_v29 = vpop.f32.mrb[120].mxu0  ;;  %v6794_v28 = vpop.f32.mrb[116].mxu1 }
 0x249   : > { %6375 = vst [vmem:[%s8802_s13 + $0x18] sm:$0xff] %v6296_v62   ;;  %v5315_v32 = vadd.f32 %v6886_v29, %v8764_v8  ;;  %v5306_v58 = vpop.f32.mrb[121].mxu0  ;;  %v6795_v40 = vpop.f32.mrb[117].mxu1 }
 0x24a   : > { %6374 = vst [vmem:[%s8802_s13 + $0x10] sm:$0xff] %v6291_v61   ;;  %v5598_v11 = vadd.f32 %v5597_v30, %v5407_v6  ;;  %v5667_v52 = vadd.f32 %v5666_v14, %v5636_v44  ;;  %v5307_v55 = vadd.f32 %v5306_v58, %v8752_v43  ;;  %v6887_v16 = vpop.f32.mrb[122].mxu0  ;;  %v6796_v20 = vadd.f32 %v6795_v40, %v6794_v28  ;;  %v6797_v21 = vpop.f32.mrb[118].mxu1 }
 0x24b   : > { %v5318_v26 = vadd.f32 %v6887_v16, %v8767_v54  ;;  %v5309_v15 = vpop.f32.mrb[123].mxu0  ;;  %v6798_v53 = vpop.f32.mrb[119].mxu1  ;;  %v5411_v8 = vmax.f32 %v5315_v32, 0.0 }
 0x24c   : > { %v5668_v49 = vadd.f32 %v5667_v52, %v5637_v10  ;;  %v5599_v4 = vadd.f32 %v5598_v11, %v5408_v42  ;;  %v5409_v27 = vmax.f32 %v5307_v55, 0.0  ;;  %v5310_v0 = vadd.f32 %v5309_v15, %v8755_v38 }
 0x24d   : > { %v6799_v23 = vadd.f32 %v6798_v53, %v6797_v21  ;;  %v5412_v37 = vmax.f32 %v5318_v26, 0.0  ;;  %v5186_v34 = vadd.f32 %v6796_v20, %v8707_v17  ;;  %v5641_v63 = vmul.f32 %v5411_v8, %v5411_v8 }
 0x24e   : > { %v5669_v33 = vadd.f32 %v5668_v49, %v5638_v5  ;;  %v5600_v43 = vadd.f32 %v5599_v4, %v5409_v27  ;;  %v5639_v1 = vmul.f32 %v5409_v27, %v5409_v27  ;;  %v5410_v2 = vmax.f32 %v5310_v0, 0.0 }
 0x24f   : > { %v6306_v57 = vpack.c.bf16 %v5412_v37, %v5411_v8  ;;  %v5189_v56 = vadd.f32 %v6799_v23, %v8713_v59  ;;  %v5642_v30 = vmul.f32 %v5412_v37, %v5412_v37 }
 0x250   : > { %v5670_v54 = vadd.f32 %v5669_v33, %v5639_v1  ;;  %v6301_v6 = vpack.c.bf16 %v5410_v2, %v5409_v27  ;;  %v5601_v3 = vadd.f32 %v5600_v43, %v5410_v2  ;;  %v5640_v42 = vmul.f32 %v5410_v2, %v5410_v2  ;;  %v6890_v25 = vpop.f32.mrb[124].mxu0 }
 0x251   : > { %6377 = vst [vmem:[%s8802_s13 + $0x28] sm:$0xff] %v6306_v57   ;;  %v5331_v45 = vadd.f32 %v6890_v25, %v8790_v39  ;;  %v5322_v62 = vpop.f32.mrb[125].mxu0 }
 0x252   : > { %6376 = vst [vmem:[%s8802_s13 + $0x20] sm:$0xff] %v6301_v6   ;;  %v5602_v38 = vadd.f32 %v5601_v3, %v5411_v8  ;;  %v5671_v7 = vadd.f32 %v5670_v54, %v5640_v42  ;;  %v6800_v17 = vpop.f32.mrb[120].mxu1  ;;  %v5323_v14 = vadd.f32 %v5322_v62, %v8776_v50  ;;  %v6891_v61 = vpop.f32.mrb[126].mxu0 }
 0x253   : > { %v6801_v59 = vpop.f32.mrb[121].mxu1  ;;  %v5334_v11 = vadd.f32 %v6891_v61, %v8795_v31  ;;  %v5325_v52 = vpop.f32.mrb[127].mxu0  ;;  %v5415_v5 = vmax.f32 %v5331_v45, 0.0 }
 0x254   : > { %v5672_v44 = vadd.f32 %v5671_v7, %v5641_v63  ;;  %v5603_v10 = vadd.f32 %v5602_v38, %v5412_v37  ;;  %v6802_v29 = vadd.f32 %v6801_v59, %v6800_v17  ;;  %v6803_v28 = vpop.f32.mrb[122].mxu1  ;;  %v5413_v32 = vmax.f32 %v5323_v14, 0.0 }
 0x255   : > { %v5326_v58 = vadd.f32 %v5325_v52, %v8779_v48  ;;  %v6804_v49 = vpop.f32.mrb[123].mxu1  ;;  %v5416_v40 = vmax.f32 %v5334_v11, 0.0  ;;  %v5645_v48 = vmul.f32 %v5415_v5, %v5415_v5 }
 0x256   : > { %v5673_v39 = vadd.f32 %v5672_v44, %v5642_v30  ;;  %v5604_v50 = vadd.f32 %v5603_v10, %v5413_v32  ;;  %v5643_v55 = vmul.f32 %v5413_v32, %v5413_v32  ;;  %v6805_v4 = vadd.f32 %v6804_v49, %v6803_v28 }
 0x257   : > { %v5414_v16 = vmax.f32 %v5326_v58, 0.0  ;;  %v6316_v20 = vpack.c.bf16 %v5416_v40, %v5415_v5  ;;  %v5194_v21 = vadd.f32 %v6802_v29, %v8719_v60  ;;  %v5646_v43 = vmul.f32 %v5416_v40, %v5416_v40 }
 0x258   : > { %v5674_v31 = vadd.f32 %v5673_v39, %v5643_v55  ;;  %v5197_v33 = vadd.f32 %v6805_v4, %v8725_v35 }
 0x259   : > { %v6311_v26 = vpack.c.bf16 %v5414_v16, %v5413_v32  ;;  %v5605_v15 = vadd.f32 %v5604_v50, %v5414_v16  ;;  %v5644_v27 = vmul.f32 %v5414_v16, %v5414_v16  ;;  %6379 = vst [vmem:[%s8802_s13 + $0x38] sm:$0xff] %v6316_v20  }
 0x25a   : > { %v6894_v8 = vpop.f32.mrb[128].mxu0 }
 0x25b   : > { %6378 = vst [vmem:[%s8802_s13 + $0x30] sm:$0xff] %v6311_v26   ;;  %v5606_v53 = vadd.f32 %v5605_v15, %v5415_v5  ;;  %v5675_v0 = vadd.f32 %v5674_v31, %v5644_v27  ;;  %v5347_v23 = vadd.f32 %v6894_v8, %v5186_v34  ;;  %v5338_v37 = vpop.f32.mrb[129].mxu0 }
 0x25c   : > { %v6806_v2 = vpop.f32.mrb[124].mxu1  ;;  %v5339_v57 = vadd.f32 %v5338_v37, %v8811_v36  ;;  %v6895_v54 = vpop.f32.mrb[130].mxu0 }
 0x25d   : > { %v5676_v1 = vadd.f32 %v5675_v0, %v5645_v48  ;;  %v5607_v60 = vadd.f32 %v5606_v53, %v5416_v40  ;;  %v6807_v6 = vpop.f32.mrb[125].mxu1  ;;  %v5350_v3 = vadd.f32 %v6895_v54, %v5189_v56  ;;  %v5341_v42 = vpop.f32.mrb[131].mxu0  ;;  %v5419_v45 = vmax.f32 %v5347_v23, 0.0 }
 0x25e   : > { %v6808_v25 = vadd.f32 %v6807_v6, %v6806_v2  ;;  %v6809_v63 = vpop.f32.mrb[126].mxu1  ;;  %v5417_v35 = vmax.f32 %v5339_v57, 0.0  ;;  %v5342_v7 = vadd.f32 %v5341_v42, %v8814_v19 }
 0x25f   : > { %v5677_v38 = vadd.f32 %v5676_v1, %v5646_v43  ;;  %v6810_v34 = vpop.f32.mrb[127].mxu1  ;;  %v5420_v62 = vmax.f32 %v5350_v3, 0.0  ;;  %v5649_v19 = vmul.f32 %v5419_v45, %v5419_v45 }
 0x260   : > { %v5608_v17 = vadd.f32 %v5607_v60, %v5417_v35  ;;  %v5647_v14 = vmul.f32 %v5417_v35, %v5417_v35  ;;  %v6811_v61 = vadd.f32 %v6810_v34, %v6809_v63  ;;  %v5418_v36 = vmax.f32 %v5342_v7, 0.0 }
 0x261   : > { %v6326_v30 = vpack.c.bf16 %v5420_v62, %v5419_v45  ;;  %v5202_v44 = vadd.f32 %v6808_v25, %v8734_v22  ;;  %v5650_v50 = vmul.f32 %v5420_v62, %v5420_v62 }
 0x262   : > { %v5678_v56 = vadd.f32 %v5677_v38, %v5647_v14  ;;  %v6321_v59 = vpack.c.bf16 %v5418_v36, %v5417_v35  ;;  %v5609_v10 = vadd.f32 %v5608_v17, %v5418_v36  ;;  %v5648_v11 = vmul.f32 %v5418_v36, %v5418_v36 }
 0x263   : > { %6381 = vst [vmem:[%s8802_s13 + $0x48] sm:$0xff] %v6326_v30   ;;  %v6898_v52 = vpop.f32.mrb[132].mxu0  ;;  %v5205_v29 = vadd.f32 %v6811_v61, %v8737_v9 }
 0x264   : > { %6380 = vst [vmem:[%s8802_s13 + $0x40] sm:$0xff] %v6321_v59   ;;  %v5610_v28 = vadd.f32 %v5609_v10, %v5419_v45  ;;  %v5679_v32 = vadd.f32 %v5678_v56, %v5648_v11  ;;  %v5363_v58 = vadd.f32 %v6898_v52, %v5202_v44  ;;  %v5354_v5 = vpop.f32.mrb[133].mxu0 }
 0x265   : > { %v6812_v39 = vpop.f32.mrb[128].mxu1  ;;  %v5355_v49 = vadd.f32 %v5354_v5, %v5194_v21  ;;  %v6899_v40 = vpop.f32.mrb[134].mxu0 }
 0x266   : > { %v5680_v55 = vadd.f32 %v5679_v32, %v5649_v19  ;;  %v6813_v22 = vpop.f32.mrb[129].mxu1  ;;  %v5611_v4 = vadd.f32 %v5610_v28, %v5420_v62  ;;  %v5366_v16 = vadd.f32 %v6899_v40, %v5205_v29  ;;  %v5357_v20 = vpop.f32.mrb[135].mxu0  ;;  %v5423_v27 = vmax.f32 %v5363_v58, 0.0 }
 0x267   : > { %v6814_v31 = vadd.f32 %v6813_v22, %v6812_v39  ;;  %v6815_v26 = vpop.f32.mrb[130].mxu1  ;;  %v5421_v15 = vmax.f32 %v5355_v49, 0.0  ;;  %v5358_v9 = vadd.f32 %v5357_v20, %v5197_v33 }
 0x268   : > { %v5681_v48 = vadd.f32 %v5680_v55, %v5650_v50  ;;  %v6816_v53 = vpop.f32.mrb[131].mxu1  ;;  %v5424_v0 = vmax.f32 %v5366_v16, 0.0  ;;  %v5653_v33 = vmul.f32 %v5423_v27, %v5423_v27 }
 0x269   : > { %v5612_v8 = vadd.f32 %v5611_v4, %v5421_v15  ;;  %v5651_v23 = vmul.f32 %v5421_v15, %v5421_v15  ;;  %v6817_v21 = vadd.f32 %v6816_v53, %v6815_v26  ;;  %v5422_v37 = vmax.f32 %v5358_v9, 0.0 }
 0x26a   : > { %v6336_v43 = vpack.c.bf16 %v5424_v0, %v5423_v27  ;;  %v5210_v1 = vadd.f32 %v6814_v31, %v8746_v51  ;;  %v5654_v63 = vmul.f32 %v5424_v0, %v5424_v0 }
 0x26b   : > { %v5682_v2 = vadd.f32 %v5681_v48, %v5651_v23  ;;  %v6331_v57 = vpack.c.bf16 %v5422_v37, %v5421_v15  ;;  %v5613_v60 = vadd.f32 %v5612_v8, %v5422_v37  ;;  %v5652_v54 = vmul.f32 %v5422_v37, %v5422_v37 }
 0x26c   : > { %6383 = vst [vmem:[%s8802_s13 + $0x58] sm:$0xff] %v6336_v43   ;;  %v5213_v6 = vadd.f32 %v6817_v21, %v8749_v41 }
 0x26d   : > { %6382 = vst [vmem:[%s8802_s13 + $0x50] sm:$0xff] %v6331_v57   ;;  %v5614_v3 = vadd.f32 %v5613_v60, %v5423_v27  ;;  %v5683_v42 = vadd.f32 %v5682_v2, %v5652_v54 }
 0x26e   : > { %v6902_v25 = vpop.f32.mrb[136].mxu0 }
 0x26f   : > { %v5684_v35 = vadd.f32 %v5683_v42, %v5653_v33  ;;  %v6818_v38 = vpop.f32.mrb[132].mxu1  ;;  %v5370_v7 = vpop.f32.mrb[137].mxu0  ;;  %v5615_v45 = vadd.f32 %v5614_v3, %v5424_v0 }
 0x270   : > { %v6819_v34 = vpop.f32.mrb[133].mxu1  ;;  %v5371_v62 = vadd.f32 %v5370_v7, %v5210_v1  ;;  %v6903_v51 = vpop.f32.mrb[138].mxu0 }
 0x271   : > { %v6820_v17 = vadd.f32 %v6819_v34, %v6818_v38  ;;  %v6821_v14 = vpop.f32.mrb[134].mxu1  ;;  %v5685_v61 = vadd.f32 %v5684_v35, %v5654_v63  ;;  %v5373_v36 = vpop.f32.mrb[139].mxu0 }
 0x272   : > { %v5425_v30 = vmax.f32 %v5371_v62, 0.0  ;;  %v6822_v41 = vpop.f32.mrb[135].mxu1  ;;  %v5374_v44 = vadd.f32 %v5373_v36, %v5213_v6 }
 0x273   : > { %v5218_v56 = vadd.f32 %v6820_v17, %v8758_v24  ;;  %v6823_v59 = vadd.f32 %v6822_v41, %v6821_v14 }
 0x274   : > { %v5616_v10 = vadd.f32 %v5615_v45, %v5425_v30  ;;  %v5655_v11 = vmul.f32 %v5425_v30, %v5425_v30  ;;  %v5426_v52 = vmax.f32 %v5374_v44, 0.0 }
 0x275   : > { %v5379_v29 = vadd.f32 %v6902_v25, %v5218_v56  ;;  %v5221_v19 = vadd.f32 %v6823_v59, %v8761_v46 }
 0x276   : > { %v5686_v28 = vadd.f32 %v5685_v61, %v5655_v11  ;;  %v6341_v32 = vpack.c.bf16 %v5426_v52, %v5425_v30  ;;  %v5617_v58 = vadd.f32 %v5616_v10, %v5426_v52  ;;  %v5656_v5 = vmul.f32 %v5426_v52, %v5426_v52 }
 0x277   : > { %v5427_v39 = vmax.f32 %v5379_v29, 0.0  ;;  %v5382_v49 = vadd.f32 %v6903_v51, %v5221_v19 }
 0x278   : > { %6384 = vst [vmem:[%s8802_s13 + $0x60] sm:$0xff] %v6341_v32   ;;  %v5687_v40 = vadd.f32 %v5686_v28, %v5656_v5 }
 0x279   : > { %v5657_v50 = vmul.f32 %v5427_v39, %v5427_v39  ;;  %v5428_v55 = vmax.f32 %v5382_v49, 0.0  ;;  %v5618_v22 = vadd.f32 %v5617_v58, %v5427_v39  ;;  %v6824_v24 = vpop.f32.mrb[136].mxu1  ;;  %v6906_v4 = vpop.f32.mrb[140].mxu0 }
 0x27a   : > { %v6825_v16 = vpop.f32.mrb[137].mxu1  ;;  %v5386_v20 = vpop.f32.mrb[141].mxu0 }
 0x27b   : > { %v6346_v31 = vpack.c.bf16 %v5428_v55, %v5427_v39  ;;  %v5658_v26 = vmul.f32 %v5428_v55, %v5428_v55  ;;  %v5688_v15 = vadd.f32 %v5687_v40, %v5657_v50  ;;  %v6826_v46 = vadd.f32 %v6825_v16, %v6824_v24  ;;  %v6827_v9 = vpop.f32.mrb[138].mxu1  ;;  %v6907_v27 = vpop.f32.mrb[142].mxu0 }
 0x27c   : > { %v6828_v48 = vpop.f32.mrb[139].mxu1  ;;  %v5619_v53 = vadd.f32 %v5618_v22, %v5428_v55  ;;  %v5389_v0 = vpop.f32.mrb[143].mxu0 }
 0x27d   : > { %6385 = vst [vmem:[%s8802_s13 + $0x68] sm:$0xff] %v6346_v31   ;;  %v6829_v8 = vadd.f32 %v6828_v48, %v6827_v9  ;;  %v5226_v23 = vadd.f32 %v6826_v46, %v8770_v18  ;;  %v5689_v21 = vadd.f32 %v5688_v15, %v5658_v26 }
 0x27f   : > { %v5387_v37 = vadd.f32 %v5386_v20, %v5226_v23  ;;  %v5229_v43 = vadd.f32 %v6829_v8, %v8773_v13 }
 0x281   : > { %v5429_v1 = vmax.f32 %v5387_v37, 0.0  ;;  %v5390_v2 = vadd.f32 %v5389_v0, %v5229_v43 }
 0x282   : > { %v6830_v57 = vpop.f32.mrb[140].mxu1 }
 0x283   : > { %v5620_v60 = vadd.f32 %v5619_v53, %v5429_v1  ;;  %v5659_v54 = vmul.f32 %v5429_v1, %v5429_v1  ;;  %v5430_v6 = vmax.f32 %v5390_v2, 0.0  ;;  %v6831_v33 = vpop.f32.mrb[141].mxu1 }
 0x284   : > { %v6832_v3 = vadd.f32 %v6831_v33, %v6830_v57  ;;  %v6833_v42 = vpop.f32.mrb[142].mxu1 }
 0x285   : > { %v5690_v25 = vadd.f32 %v5689_v21, %v5659_v54  ;;  %v6351_v63 = vpack.c.bf16 %v5430_v6, %v5429_v1  ;;  %v5621_v35 = vadd.f32 %v5620_v60, %v5430_v6  ;;  %v5660_v38 = vmul.f32 %v5430_v6, %v5430_v6  ;;  %v6834_v7 = vpop.f32.mrb[143].mxu1 }
 0x286   : > { %v5234_v18 = vadd.f32 %v6832_v3, %v8782_v47  ;;  %v6835_v45 = vadd.f32 %v6834_v7, %v6833_v42 }
 0x287   : > { %6386 = vst [vmem:[%s8802_s13 + $0x70] sm:$0xff] %v6351_v63   ;;  %v5691_v13 = vadd.f32 %v5690_v25, %v5660_v38 }
 0x288   : > { %v5395_v34 = vadd.f32 %v6906_v4, %v5234_v18  ;;  %v5237_v62 = vadd.f32 %v6835_v45, %v8785_v12 }
 0x28a   : > { %v5431_v51 = vmax.f32 %v5395_v34, 0.0  ;;  %v5398_v17 = vadd.f32 %v6907_v27, %v5237_v62 }
 0x28c   : > { %v5622_v14 = vadd.f32 %v5621_v35, %v5431_v51  ;;  %v5661_v61 = vmul.f32 %v5431_v51, %v5431_v51  ;;  %v5432_v36 = vmax.f32 %v5398_v17, 0.0 }
 0x28e   : > { %v5692_v30 = vadd.f32 %v5691_v13, %v5661_v61  ;;  %v6356_v41 = vpack.c.bf16 %v5432_v36, %v5431_v51  ;;  %v5623_v44 = vadd.f32 %v5622_v14, %v5432_v36  ;;  %v5662_v56 = vmul.f32 %v5432_v36, %v5432_v36 }
 0x290   : > { %6387 = vst [vmem:[%s8802_s13 + $0x78] sm:$0xff] %v6356_v41   ;;  %v5624_v59 = vrot.slane %v5623_v44, 4  ;;  %v5693_v47 = vadd.f32 %v5692_v30, %v5662_v56 }
 0x292   : > { %v5625_v10 = vadd.f32 %v5624_v59, %v5623_v44  ;;  %v5694_v11 = vrot.slane %v5693_v47, 4 }
 0x294   : > { %v5626_v52 = vrot.slane %v5625_v10, 2  ;;  %v5695_v29 = vadd.f32 %v5694_v11, %v5693_v47 }
 0x296   : > { %v5627_v19 = vadd.f32 %v5626_v52, %v5625_v10  ;;  %v5696_v12 = vrot.slane %v5695_v29, 2 }
 0x298   : > { %v5628_v28 = vrot.slane %v5627_v19, 1  ;;  %v5697_v32 = vadd.f32 %v5696_v12, %v5695_v29 }
 0x29a   : > { %v5629_v58 = vadd.f32 %v5628_v28, %v5627_v19  ;;  %v5698_v5 = vrot.slane %v5697_v32, 1 }
 0x29c   : > { %5630 = vst [vmem:[%s292_s15] sm:$0x1] %v5629_v58  ;;  %v5699_v39 = vadd.f32 %v5698_v5, %v5697_v32 }
 0x29e   : > { %5700 = vst [vmem:[%s295_s18] sm:$0x1] %v5699_v39 }
 0x29f PF: > { %s18_s24 = sadd.s32 1, %s7064_s24  }
 0x2a0   : > { %p15_p4 = scmp.ge.s32.totalorder %s18_s24, 4  }
 0x2a2   :  { %17 = sbr.rel (!%p15_p4) target bundleno = 1 (0x1), region = 96 }

</bundles_post_ra>
